<compile_context>
chip_gen: v5e
topology: v5e:2x2
jax: 0.10.0
libtpu: 0.0.40
codegen_flags: <defaults>
</compile_context>

<pallas_src>
import functools

import jax
import jax.numpy as jnp
from jax.experimental import pallas as pl
from jax.experimental.pallas import tpu as pltpu


NEG_SLOPE = 0.01  # nn.LeakyReLU default negative_slope


def _leaky(v):
    return jnp.where(v >= 0.0, v, NEG_SLOPE * v)


# ----------------------------- Pallas kernel ------------------------------ #
def tab_resnet_kernel(
    x_ref,                    # [tb, n_cat + n_cont] f32  (raw X_deep tile)
    tbl_ref,                  # [n_cat*(vocab+1), d0] bf16 (embeddings @ W0 rows, resident)
    wc_ref,                   # [n_cont, d0] f32           (W0 rows of continuous cols)
    b0_ref,                   # [1, d0] f32
    wf_ref, bf_ref,           # block0 fused lin1|resize  ([d0, 2*d1] bf16, [1, 2*d1] f32)
    w12_ref, b12_ref,         # block0 lin2+bn2           ([d1, d1] bf16, [1, d1] f32)
    w21_ref, b21_ref,         # block1 lin1+bn1
    w22_ref, b22_ref,         # block1 lin2+bn2
    o_ref,                    # [tb, d2] bf16
    *, n_cat, rows_per_table,
):
    tb = x_ref.shape[0]
    total = tbl_ref.shape[0]               # n_cat * (vocab + 1)
    n_cont = x_ref.shape[1] - n_cat
    d1 = w12_ref.shape[0]

    def mm(x, w_ref):
        # bf16 MXU matmul with f32 accumulation.
        return jnp.dot(x.astype(jnp.bfloat16), w_ref[...],
                       preferred_element_type=jnp.float32)

    # ---- initial Linear+BN with the embedding gather as a one-hot matmul ----
    x = x_ref[...]
    idx = x[:, :n_cat].astype(jnp.int32)                     # .long() semantics
    lanes = jax.lax.broadcasted_iota(jnp.int32, (tb, total), 1)
    onehot = jnp.zeros((tb, total), jnp.float32)
    for c in range(n_cat):                                   # static unroll (n_cat small)
        onehot = onehot + (
            lanes == (idx[:, c:c + 1] + c * rows_per_table)
        ).astype(jnp.float32)
    h0 = mm(onehot, tbl_ref) + b0_ref[...]                   # gather + W0 in one MXU pass
    wc = wc_ref[...]
    x_cont = x[:, n_cat:]
    for j in range(n_cont):                                  # continuous cols: VPU fold-in
        h0 = h0 + x_cont[:, j:j + 1] * wc[j:j + 1, :]

    # ---- BasicBlock 0 (d0 -> d1; resize branch fused into the same matmul) --
    z = mm(h0, wf_ref) + bf_ref[...]                         # [tb, 2*d1] f32
    out = _leaky(z[:, :d1])                                  # lin1 -> bn1 -> leaky
    identity = z[:, d1:]                                     # resize: lin -> bn
    out = mm(out, w12_ref) + b12_ref[...]                    # lin2 -> bn2
    h = _leaky(out + identity)

    # ---- BasicBlock 1 (d1 -> d2 == d1, identity residual) -------------------
    out = _leaky(mm(h, w21_ref) + b21_ref[...])
    out = mm(out, w22_ref) + b22_ref[...]
    h = _leaky(out + h)

    # bf16 store halves the lane-fragmented (d2=16) writeback bytes.
    o_ref[...] = h.astype(o_ref.dtype)


# ------------------------------ Pallas wrapper ----------------------------- #
def tab_resnet_forward(x_deep, params, *, n_cat, vocab, block_rows=512):
    """Whole TabResnet forward (eval mode) as one batch-tiled pallas_call."""
    (tbl, wc, b0, w_f, b_f, w12, b12, w21, b21, w22, b22) = params
    B, n_cols = x_deep.shape
    d2 = w22.shape[1]

    # Large tile amortizes the ~0.35us/step grid overhead; cap at B/2 so the
    # grid keeps >= 2 steps for v7x megacore sharding.  Multiple of 8 rows.
    tb = min(block_rows, max(8, (B // 2 // 8) * 8))
    tb = max(8, (tb // 8) * 8)
    grid = (pl.cdiv(B, tb),)

    def resident(arr):
        # Full-extent block + constant index_map -> fetched once, VMEM-resident.
        return pl.BlockSpec(arr.shape, lambda i: (0,) * arr.ndim)

    kernel = functools.partial(tab_resnet_kernel,
                               n_cat=n_cat, rows_per_table=vocab + 1)
    weights = (tbl, wc, b0, w_f, b_f, w12, b12, w21, b21, w22, b22)

    grid_spec = pltpu.PrefetchScalarGridSpec(
        num_scalar_prefetch=0,
        grid=grid,
        in_specs=[pl.BlockSpec((tb, n_cols), lambda i: (i, 0))]   # batch-tiled input
                 + [resident(w) for w in weights],
        out_specs=pl.BlockSpec((tb, d2), lambda i: (i, 0)),
    )
    return pl.pallas_call(
        kernel,
        out_shape=jax.ShapeDtypeStruct((B, d2), jnp.bfloat16),
        grid_spec=grid_spec,
        compiler_params=pltpu.CompilerParams(
            dimension_semantics=("parallel",),          # megacore-shard batch (v7x)
            vmem_limit_bytes=32 * 1024 * 1024,
        ),
    )(x_deep.astype(jnp.float32), *weights)


# ------------------------------ parameter prep ----------------------------- #
def fold_linear_bn(w, b, gamma, beta, rmean, rvar, eps=1e-5):
    """Fold Linear(w:[in,out], b:[out]) + BatchNorm1d(eval) into (W_eff, b_eff)."""
    s = gamma / jnp.sqrt(rvar + eps)
    w_eff = w * s[None, :]
    b_eff = (b - rmean) * s + beta
    return w_eff.astype(jnp.float32), b_eff.reshape(1, -1).astype(jnp.float32)


def make_raw_params(key, dims_pairs):
    """Deterministic synthetic (Linear, BN) raw params per (in_dim, out_dim) pair."""
    params = []
    for (din, dout) in dims_pairs:
        key, k1, k2, k3, k4, k5, k6 = jax.random.split(key, 7)
        w = 0.1 * jax.random.normal(k1, (din, dout), jnp.float32)
        b = 0.1 * jax.random.normal(k2, (dout,), jnp.float32)
        gamma = 1.0 + 0.1 * jax.random.normal(k3, (dout,), jnp.float32)
        beta = 0.1 * jax.random.normal(k4, (dout,), jnp.float32)
        rmean = 0.1 * jax.random.normal(k5, (dout,), jnp.float32)
        rvar = 0.5 + jnp.abs(jax.random.normal(k6, (dout,), jnp.float32))
        params.append((w, b, gamma, beta, rmean, rvar))
    return params, key


def prepare_model(raw_params, embed_tables, emb_dim, n_cat):
    """Fold Linear+BN, fuse block0 branches, fold the embedding lookup into the
    initial projection.  Returns the 11-tuple of kernel parameters."""
    folded = [fold_linear_bn(*p) for p in raw_params]
    (w0, b0), (w11, b11), (w12, b12), (wr, br), (w21, b21), (w22, b22) = folded

    # Per-column projected embedding tables, concatenated along rows:
    #   h0 = b0 + x_cont @ W0[cont rows] + onehot @ concat_c(emb_table_c @ W0[rows of c])
    proj_tables = jnp.concatenate(
        [embed_tables[c] @ w0[c * emb_dim:(c + 1) * emb_dim, :] for c in range(n_cat)],
        axis=0)                                              # [n_cat*(vocab+1), d0]
    w0_cont = w0[n_cat * emb_dim:, :]                        # [n_cont, d0]

    # Block-0 lin1 and resize share the same LHS -> one wider MXU pass.
    w_f = jnp.concatenate([w11, wr], axis=1)                 # [d0, 2*d1]
    b_f = jnp.concatenate([b11, br], axis=1)                 # [1, 2*d1]

    bf16 = lambda a: a.astype(jnp.bfloat16)
    return (bf16(proj_tables), w0_cont.astype(jnp.float32), b0,
            bf16(w_f), b_f, bf16(w12), b12, bf16(w21), b21, bf16(w22), b22)


# ------------------------------- references -------------------------------- #
def reference_full(x_deep, embed_tables, raw_params, n_cat, eps=1e-5):
    """End-to-end pure-JAX f32 reference following the PyTorch module exactly
    (eval mode: dropout = identity, BN uses running stats)."""
    idx = x_deep[:, :n_cat].astype(jnp.int32)
    embeds = [jnp.take(tbl, idx[:, c], axis=0) for c, tbl in enumerate(embed_tables)]
    x = jnp.concatenate(embeds + [x_deep[:, n_cat:].astype(jnp.float32)], axis=1)

    def lin_bn(v, p):
        w, b, gamma, beta, rmean, rvar = p
        y = v @ w + b
        return (y - rmean) / jnp.sqrt(rvar + eps) * gamma + beta

    p0, p11, p12, pr, p21, p22 = raw_params
    h = lin_bn(x, p0)
    out = _leaky(lin_bn(h, p11))
    out = lin_bn(out, p12)
    h = _leaky(out + lin_bn(h, pr))
    out = _leaky(lin_bn(h, p21))
    out = lin_bn(out, p22)
    return _leaky(out + h)


def reference_matched(x_deep, params, n_cat, rows_per_table):
    """Pure-JAX replica of the exact kernel math (one-hot gather, bf16 matmuls,
    f32 elementwise, bf16 output)."""
    tbl, wc, b0, w_f, b_f, w12, b12, w21, b21, w22, b22 = params
    d1 = w12.shape[0]
    B = x_deep.shape[0]
    total = tbl.shape[0]

    def mm(x, w):
        return jnp.dot(x.astype(jnp.bfloat16), w, preferred_element_type=jnp.float32)

    idx = x_deep[:, :n_cat].astype(jnp.int32)
    lanes = jnp.arange(total, dtype=jnp.int32)[None, :]
    onehot = jnp.zeros((B, total), jnp.float32)
    for c in range(n_cat):
        onehot = onehot + (lanes == (idx[:, c:c + 1] + c * rows_per_table)).astype(jnp.float32)
    h0 = mm(onehot, tbl) + b0
    x_cont = x_deep[:, n_cat:].astype(jnp.float32)
    for j in range(x_cont.shape[1]):
        h0 = h0 + x_cont[:, j:j + 1] * wc[j:j + 1, :]

    z = mm(h0, w_f) + b_f
    out = _leaky(z[:, :d1])
    identity = z[:, d1:]
    out = mm(out, w12) + b12
    h = _leaky(out + identity)
    out = _leaky(mm(h, w21) + b21)
    out = mm(out, w22) + b22
    return _leaky(out + h).astype(jnp.bfloat16)


# ----------------------------------- main ----------------------------------- #
if __name__ == "__main__":
    key = jax.random.PRNGKey(0)

    # Model config (mirrors the TabResnet docstring example):
    #   embed_input = [('a',4,8), ('b',4,8), ('c',4,8), ('d',4,8)], cont = ['e']
    n_cat, vocab, emb_dim = 4, 4, 8
    blocks_dims = [32, 16, 16]                 # initial proj + 2 BasicBlocks
    d0, d1, d2 = blocks_dims
    n_cont = 1
    dense_input_dim = n_cat * emb_dim + n_cont  # 33 (!= blocks_dims[0])

    # Embedding tables (padding_idx=0 -> zero row).
    embed_tables = []
    for _ in range(n_cat):
        key, k = jax.random.split(key)
        tbl = 0.1 * jax.random.normal(k, (vocab + 1, emb_dim), jnp.float32)
        embed_tables.append(tbl.at[0].set(0.0))

    # Raw Linear+BN params: initial(33->32), blk0 lin1(32->16), blk0 lin2(16->16),
    # blk0 resize(32->16), blk1 lin1(16->16), blk1 lin2(16->16).
    dims_pairs = [(dense_input_dim, d0),
                  (d0, d1), (d1, d1), (d0, d1),
                  (d1, d2), (d2, d2)]
    raw_params, key = make_raw_params(key, dims_pairs)
    params = prepare_model(raw_params, embed_tables, emb_dim, n_cat)

    # Input: 4 categorical index columns + 1 continuous column.
    B = 1024                                   # -> tb=512, 2 grid steps (megacore-friendly)
    key, ki, kc = jax.random.split(key, 3)
    x_cat = jax.random.randint(ki, (B, n_cat), 0, vocab + 1).astype(jnp.float32)
    x_cont = jax.random.uniform(kc, (B, n_cont), jnp.float32)
    x_deep = jnp.concatenate([x_cat, x_cont], axis=1)        # [B, 5]

    out = tab_resnet_forward(x_deep, params, n_cat=n_cat, vocab=vocab)
    out = jax.block_until_ready(out)
    assert out.shape == (B, d2) and out.dtype == jnp.bfloat16
    out_f32 = out.astype(jnp.float32)

    # (1) tight check vs a pure-JAX replica of the exact kernel math.
    ref_m = reference_matched(x_deep, params, n_cat, vocab + 1).astype(jnp.float32)
    assert jnp.allclose(out_f32, ref_m, atol=2e-2, rtol=2e-2), \
        float(jnp.max(jnp.abs(out_f32 - ref_m)))

    # (2) end-to-end check vs the unfused f32 reference (includes the embedding
    #     lookup); loose tolerance accounts for bf16 matmuls + bf16 output.
    ref_f = reference_full(x_deep, embed_tables, raw_params, n_cat)
    assert jnp.allclose(out_f32, ref_f, atol=4e-2, rtol=4e-2), \
        float(jnp.max(jnp.abs(out_f32 - ref_f)))

    print("KERNEL_OK")
</pallas_src>

<mosaic_0001>
module attributes {stable_mosaic.version = 11 : i64} {
  func.func @tab_resnet_kernel(%arg0: i32, %arg1: memref<512x5xf32, #tpu.memory_space<vmem>>, %arg2: memref<20x32xbf16, #tpu.memory_space<vmem>>, %arg3: memref<1x32xf32, #tpu.memory_space<vmem>>, %arg4: memref<1x32xf32, #tpu.memory_space<vmem>>, %arg5: memref<32x32xbf16, #tpu.memory_space<vmem>>, %arg6: memref<1x32xf32, #tpu.memory_space<vmem>>, %arg7: memref<16x16xbf16, #tpu.memory_space<vmem>>, %arg8: memref<1x16xf32, #tpu.memory_space<vmem>>, %arg9: memref<16x16xbf16, #tpu.memory_space<vmem>>, %arg10: memref<1x16xf32, #tpu.memory_space<vmem>>, %arg11: memref<16x16xbf16, #tpu.memory_space<vmem>>, %arg12: memref<1x16xf32, #tpu.memory_space<vmem>>, %arg13: memref<512x16xbf16, #tpu.memory_space<vmem>>) attributes {dimension_semantics = [#tpu.dimension_semantics<parallel>], iteration_bounds = array<i64: 2>, scalar_prefetch = 0 : i64, scratch_operands = 0 : i64, tpu.core_type = #tpu.core_type<tc>, window_params = [{transform_indices = @transform_0, window_bounds = array<i64: 512, 5>}, {pipeline_mode = #tpu.pipeline_mode<synchronous>, transform_indices = @transform_1, window_bounds = array<i64: 20, 32>}, {pipeline_mode = #tpu.pipeline_mode<synchronous>, transform_indices = @transform_2, window_bounds = array<i64: 1, 32>}, {pipeline_mode = #tpu.pipeline_mode<synchronous>, transform_indices = @transform_3, window_bounds = array<i64: 1, 32>}, {pipeline_mode = #tpu.pipeline_mode<synchronous>, transform_indices = @transform_4, window_bounds = array<i64: 32, 32>}, {pipeline_mode = #tpu.pipeline_mode<synchronous>, transform_indices = @transform_5, window_bounds = array<i64: 1, 32>}, {pipeline_mode = #tpu.pipeline_mode<synchronous>, transform_indices = @transform_6, window_bounds = array<i64: 16, 16>}, {pipeline_mode = #tpu.pipeline_mode<synchronous>, transform_indices = @transform_7, window_bounds = array<i64: 1, 16>}, {pipeline_mode = #tpu.pipeline_mode<synchronous>, transform_indices = @transform_8, window_bounds = array<i64: 16, 16>}, {pipeline_mode = #tpu.pipeline_mode<synchronous>, transform_indices = @transform_9, window_bounds = array<i64: 1, 16>}, {pipeline_mode = #tpu.pipeline_mode<synchronous>, transform_indices = @transform_10, window_bounds = array<i64: 16, 16>}, {pipeline_mode = #tpu.pipeline_mode<synchronous>, transform_indices = @transform_11, window_bounds = array<i64: 1, 16>}, {transform_indices = @transform_12, window_bounds = array<i64: 512, 16>}]} {
    %c0 = arith.constant 0 : index
    %c0_0 = arith.constant 0 : index
    %0 = vector.load %arg1[%c0, %c0_0] : memref<512x5xf32, #tpu.memory_space<vmem>>, vector<512x5xf32>
    %1 = vector.extract_strided_slice %0 {offsets = [0, 0], sizes = [512, 4], strides = [1, 1]} : vector<512x5xf32> to vector<512x4xf32>
    %2 = arith.fptosi %1 : vector<512x4xf32> to vector<512x4xi32>
    %3 = tpu.iota {dimensions = array<i32: 1>} : vector<512x20xi32>
    %cst = arith.constant 0.000000e+00 : f32
    %4 = vector.broadcast %cst : f32 to vector<512x20xf32>
    %5 = vector.extract_strided_slice %2 {offsets = [0, 0], sizes = [512, 1], strides = [1, 1]} : vector<512x4xi32> to vector<512x1xi32>
    %c0_i32 = arith.constant 0 : i32
    %6 = vector.broadcast %c0_i32 : i32 to vector<512x1xi32>
    %7 = arith.addi %5, %6 : vector<512x1xi32>
    %8 = vector.broadcast %7 : vector<512x1xi32> to vector<512x20xi32>
    %9 = arith.cmpi eq, %3, %8 : vector<512x20xi32>
    %10 = arith.extui %9 : vector<512x20xi1> to vector<512x20xi32>
    %11 = arith.sitofp %10 : vector<512x20xi32> to vector<512x20xf32>
    %12 = arith.addf %4, %11 : vector<512x20xf32>
    %13 = vector.extract_strided_slice %2 {offsets = [0, 1], sizes = [512, 1], strides = [1, 1]} : vector<512x4xi32> to vector<512x1xi32>
    %c5_i32 = arith.constant 5 : i32
    %14 = vector.broadcast %c5_i32 : i32 to vector<512x1xi32>
    %15 = arith.addi %13, %14 : vector<512x1xi32>
    %16 = vector.broadcast %15 : vector<512x1xi32> to vector<512x20xi32>
    %17 = arith.cmpi eq, %3, %16 : vector<512x20xi32>
    %18 = arith.extui %17 : vector<512x20xi1> to vector<512x20xi32>
    %19 = arith.sitofp %18 : vector<512x20xi32> to vector<512x20xf32>
    %20 = arith.addf %12, %19 : vector<512x20xf32>
    %21 = vector.extract_strided_slice %2 {offsets = [0, 2], sizes = [512, 1], strides = [1, 1]} : vector<512x4xi32> to vector<512x1xi32>
    %c10_i32 = arith.constant 10 : i32
    %22 = vector.broadcast %c10_i32 : i32 to vector<512x1xi32>
    %23 = arith.addi %21, %22 : vector<512x1xi32>
    %24 = vector.broadcast %23 : vector<512x1xi32> to vector<512x20xi32>
    %25 = arith.cmpi eq, %3, %24 : vector<512x20xi32>
    %26 = arith.extui %25 : vector<512x20xi1> to vector<512x20xi32>
    %27 = arith.sitofp %26 : vector<512x20xi32> to vector<512x20xf32>
    %28 = arith.addf %20, %27 : vector<512x20xf32>
    %29 = vector.extract_strided_slice %2 {offsets = [0, 3], sizes = [512, 1], strides = [1, 1]} : vector<512x4xi32> to vector<512x1xi32>
    %c15_i32 = arith.constant 15 : i32
    %30 = vector.broadcast %c15_i32 : i32 to vector<512x1xi32>
    %31 = arith.addi %29, %30 : vector<512x1xi32>
    %32 = vector.broadcast %31 : vector<512x1xi32> to vector<512x20xi32>
    %33 = arith.cmpi eq, %3, %32 : vector<512x20xi32>
    %34 = arith.extui %33 : vector<512x20xi1> to vector<512x20xi32>
    %35 = arith.sitofp %34 : vector<512x20xi32> to vector<512x20xf32>
    %36 = arith.addf %28, %35 : vector<512x20xf32>
    %37 = arith.truncf %36 : vector<512x20xf32> to vector<512x20xbf16>
    %c0_1 = arith.constant 0 : index
    %c0_2 = arith.constant 0 : index
    %38 = vector.load %arg2[%c0_1, %c0_2] : memref<20x32xbf16, #tpu.memory_space<vmem>>, vector<20x32xbf16>
    %cst_3 = arith.constant dense<0.000000e+00> : vector<512x32xf32>
    %39 = tpu.matmul %37, %38, %cst_3 {dimension_numbers = #tpu.dot_dimension_numbers<[1], [0], [0], [1], [0, 0, 1, 1], [], []>} : vector<512x20xbf16>, vector<20x32xbf16>, vector<512x32xf32> -> vector<512x32xf32>
    %c0_4 = arith.constant 0 : index
    %c0_5 = arith.constant 0 : index
    %40 = vector.load %arg4[%c0_4, %c0_5] : memref<1x32xf32, #tpu.memory_space<vmem>>, vector<1x32xf32>
    %41 = vector.broadcast %40 : vector<1x32xf32> to vector<512x32xf32>
    %42 = arith.addf %39, %41 : vector<512x32xf32>
    %c0_6 = arith.constant 0 : index
    %c0_7 = arith.constant 0 : index
    %43 = vector.load %arg3[%c0_6, %c0_7] : memref<1x32xf32, #tpu.memory_space<vmem>>, vector<1x32xf32>
    %44 = vector.extract_strided_slice %0 {offsets = [0, 4], sizes = [512, 1], strides = [1, 1]} : vector<512x5xf32> to vector<512x1xf32>
    %45 = vector.broadcast %44 : vector<512x1xf32> to vector<512x32xf32>
    %46 = vector.broadcast %43 : vector<1x32xf32> to vector<512x32xf32>
    %47 = arith.mulf %45, %46 : vector<512x32xf32>
    %48 = arith.addf %42, %47 : vector<512x32xf32>
    %49 = arith.truncf %48 : vector<512x32xf32> to vector<512x32xbf16>
    %c0_8 = arith.constant 0 : index
    %c0_9 = arith.constant 0 : index
    %50 = vector.load %arg5[%c0_8, %c0_9] : memref<32x32xbf16, #tpu.memory_space<vmem>>, vector<32x32xbf16>
    %cst_10 = arith.constant dense<0.000000e+00> : vector<512x32xf32>
    %51 = tpu.matmul %49, %50, %cst_10 {dimension_numbers = #tpu.dot_dimension_numbers<[1], [0], [0], [1], [0, 0, 1, 1], [], []>} : vector<512x32xbf16>, vector<32x32xbf16>, vector<512x32xf32> -> vector<512x32xf32>
    %c0_11 = arith.constant 0 : index
    %c0_12 = arith.constant 0 : index
    %52 = vector.load %arg6[%c0_11, %c0_12] : memref<1x32xf32, #tpu.memory_space<vmem>>, vector<1x32xf32>
    %53 = vector.broadcast %52 : vector<1x32xf32> to vector<512x32xf32>
    %54 = arith.addf %51, %53 : vector<512x32xf32>
    %55 = vector.extract_strided_slice %54 {offsets = [0, 0], sizes = [512, 16], strides = [1, 1]} : vector<512x32xf32> to vector<512x16xf32>
    %cst_13 = arith.constant 0.000000e+00 : f32
    %56 = vector.broadcast %cst_13 : f32 to vector<512x16xf32>
    %57 = arith.cmpf oge, %55, %56 : vector<512x16xf32>
    %cst_14 = arith.constant 0.00999999977 : f32
    %58 = vector.broadcast %cst_14 : f32 to vector<512x16xf32>
    %59 = arith.mulf %58, %55 : vector<512x16xf32>
    %60 = arith.select %57, %55, %59 : vector<512x16xi1>, vector<512x16xf32>
    %61 = vector.extract_strided_slice %54 {offsets = [0, 16], sizes = [512, 16], strides = [1, 1]} : vector<512x32xf32> to vector<512x16xf32>
    %62 = arith.truncf %60 : vector<512x16xf32> to vector<512x16xbf16>
    %c0_15 = arith.constant 0 : index
    %c0_16 = arith.constant 0 : index
    %63 = vector.load %arg7[%c0_15, %c0_16] : memref<16x16xbf16, #tpu.memory_space<vmem>>, vector<16x16xbf16>
    %cst_17 = arith.constant dense<0.000000e+00> : vector<512x16xf32>
    %64 = tpu.matmul %62, %63, %cst_17 {dimension_numbers = #tpu.dot_dimension_numbers<[1], [0], [0], [1], [0, 0, 1, 1], [], []>} : vector<512x16xbf16>, vector<16x16xbf16>, vector<512x16xf32> -> vector<512x16xf32>
    %c0_18 = arith.constant 0 : index
    %c0_19 = arith.constant 0 : index
    %65 = vector.load %arg8[%c0_18, %c0_19] : memref<1x16xf32, #tpu.memory_space<vmem>>, vector<1x16xf32>
    %66 = vector.broadcast %65 : vector<1x16xf32> to vector<512x16xf32>
    %67 = arith.addf %64, %66 : vector<512x16xf32>
    %68 = arith.addf %67, %61 : vector<512x16xf32>
    %cst_20 = arith.constant 0.000000e+00 : f32
    %69 = vector.broadcast %cst_20 : f32 to vector<512x16xf32>
    %70 = arith.cmpf oge, %68, %69 : vector<512x16xf32>
    %cst_21 = arith.constant 0.00999999977 : f32
    %71 = vector.broadcast %cst_21 : f32 to vector<512x16xf32>
    %72 = arith.mulf %71, %68 : vector<512x16xf32>
    %73 = arith.select %70, %68, %72 : vector<512x16xi1>, vector<512x16xf32>
    %74 = arith.truncf %73 : vector<512x16xf32> to vector<512x16xbf16>
    %c0_22 = arith.constant 0 : index
    %c0_23 = arith.constant 0 : index
    %75 = vector.load %arg9[%c0_22, %c0_23] : memref<16x16xbf16, #tpu.memory_space<vmem>>, vector<16x16xbf16>
    %cst_24 = arith.constant dense<0.000000e+00> : vector<512x16xf32>
    %76 = tpu.matmul %74, %75, %cst_24 {dimension_numbers = #tpu.dot_dimension_numbers<[1], [0], [0], [1], [0, 0, 1, 1], [], []>} : vector<512x16xbf16>, vector<16x16xbf16>, vector<512x16xf32> -> vector<512x16xf32>
    %c0_25 = arith.constant 0 : index
    %c0_26 = arith.constant 0 : index
    %77 = vector.load %arg10[%c0_25, %c0_26] : memref<1x16xf32, #tpu.memory_space<vmem>>, vector<1x16xf32>
    %78 = vector.broadcast %77 : vector<1x16xf32> to vector<512x16xf32>
    %79 = arith.addf %76, %78 : vector<512x16xf32>
    %cst_27 = arith.constant 0.000000e+00 : f32
    %80 = vector.broadcast %cst_27 : f32 to vector<512x16xf32>
    %81 = arith.cmpf oge, %79, %80 : vector<512x16xf32>
    %cst_28 = arith.constant 0.00999999977 : f32
    %82 = vector.broadcast %cst_28 : f32 to vector<512x16xf32>
    %83 = arith.mulf %82, %79 : vector<512x16xf32>
    %84 = arith.select %81, %79, %83 : vector<512x16xi1>, vector<512x16xf32>
    %85 = arith.truncf %84 : vector<512x16xf32> to vector<512x16xbf16>
    %c0_29 = arith.constant 0 : index
    %c0_30 = arith.constant 0 : index
    %86 = vector.load %arg11[%c0_29, %c0_30] : memref<16x16xbf16, #tpu.memory_space<vmem>>, vector<16x16xbf16>
    %cst_31 = arith.constant dense<0.000000e+00> : vector<512x16xf32>
    %87 = tpu.matmul %85, %86, %cst_31 {dimension_numbers = #tpu.dot_dimension_numbers<[1], [0], [0], [1], [0, 0, 1, 1], [], []>} : vector<512x16xbf16>, vector<16x16xbf16>, vector<512x16xf32> -> vector<512x16xf32>
    %c0_32 = arith.constant 0 : index
    %c0_33 = arith.constant 0 : index
    %88 = vector.load %arg12[%c0_32, %c0_33] : memref<1x16xf32, #tpu.memory_space<vmem>>, vector<1x16xf32>
    %89 = vector.broadcast %88 : vector<1x16xf32> to vector<512x16xf32>
    %90 = arith.addf %87, %89 : vector<512x16xf32>
    %91 = arith.addf %90, %73 : vector<512x16xf32>
    %cst_34 = arith.constant 0.000000e+00 : f32
    %92 = vector.broadcast %cst_34 : f32 to vector<512x16xf32>
    %93 = arith.cmpf oge, %91, %92 : vector<512x16xf32>
    %cst_35 = arith.constant 0.00999999977 : f32
    %94 = vector.broadcast %cst_35 : f32 to vector<512x16xf32>
    %95 = arith.mulf %94, %91 : vector<512x16xf32>
    %96 = arith.select %93, %91, %95 : vector<512x16xi1>, vector<512x16xf32>
    %97 = arith.truncf %96 : vector<512x16xf32> to vector<512x16xbf16>
    %c0_36 = arith.constant 0 : index
    %c0_37 = arith.constant 0 : index
    %98 = vector.load %arg13[%c0_36, %c0_37] : memref<512x16xbf16, #tpu.memory_space<vmem>>, vector<512x16xbf16>
    tpu.vector_store %arg13[%c0_36, %c0_37], %97 {strides = array<i32>} : memref<512x16xbf16, #tpu.memory_space<vmem>>, vector<512x16xbf16>,
    return
  }
  func.func @transform_0(%arg0: i32) -> (i32, i32) {
    %c0_i32 = arith.constant 0 : i32
    %c0_i32_0 = arith.constant 0 : i32
    return %arg0, %c0_i32 : i32, i32
  }
  func.func @transform_1(%arg0: i32) -> (i32, i32) {
    %c0_i32 = arith.constant 0 : i32
    %c0_i32_0 = arith.constant 0 : i32
    %c0_i32_1 = arith.constant 0 : i32
    return %c0_i32, %c0_i32_0 : i32, i32
  }
  func.func @transform_2(%arg0: i32) -> (i32, i32) {
    %c0_i32 = arith.constant 0 : i32
    %c0_i32_0 = arith.constant 0 : i32
    %c0_i32_1 = arith.constant 0 : i32
    return %c0_i32, %c0_i32_0 : i32, i32
  }
  func.func @transform_3(%arg0: i32) -> (i32, i32) {
    %c0_i32 = arith.constant 0 : i32
    %c0_i32_0 = arith.constant 0 : i32
    %c0_i32_1 = arith.constant 0 : i32
    return %c0_i32, %c0_i32_0 : i32, i32
  }
  func.func @transform_4(%arg0: i32) -> (i32, i32) {
    %c0_i32 = arith.constant 0 : i32
    %c0_i32_0 = arith.constant 0 : i32
    %c0_i32_1 = arith.constant 0 : i32
    return %c0_i32, %c0_i32_0 : i32, i32
  }
  func.func @transform_5(%arg0: i32) -> (i32, i32) {
    %c0_i32 = arith.constant 0 : i32
    %c0_i32_0 = arith.constant 0 : i32
    %c0_i32_1 = arith.constant 0 : i32
    return %c0_i32, %c0_i32_0 : i32, i32
  }
  func.func @transform_6(%arg0: i32) -> (i32, i32) {
    %c0_i32 = arith.constant 0 : i32
    %c0_i32_0 = arith.constant 0 : i32
    %c0_i32_1 = arith.constant 0 : i32
    return %c0_i32, %c0_i32_0 : i32, i32
  }
  func.func @transform_7(%arg0: i32) -> (i32, i32) {
    %c0_i32 = arith.constant 0 : i32
    %c0_i32_0 = arith.constant 0 : i32
    %c0_i32_1 = arith.constant 0 : i32
    return %c0_i32, %c0_i32_0 : i32, i32
  }
  func.func @transform_8(%arg0: i32) -> (i32, i32) {
    %c0_i32 = arith.constant 0 : i32
    %c0_i32_0 = arith.constant 0 : i32
    %c0_i32_1 = arith.constant 0 : i32
    return %c0_i32, %c0_i32_0 : i32, i32
  }
  func.func @transform_9(%arg0: i32) -> (i32, i32) {
    %c0_i32 = arith.constant 0 : i32
    %c0_i32_0 = arith.constant 0 : i32
    %c0_i32_1 = arith.constant 0 : i32
    return %c0_i32, %c0_i32_0 : i32, i32
  }
  func.func @transform_10(%arg0: i32) -> (i32, i32) {
    %c0_i32 = arith.constant 0 : i32
    %c0_i32_0 = arith.constant 0 : i32
    %c0_i32_1 = arith.constant 0 : i32
    return %c0_i32, %c0_i32_0 : i32, i32
  }
  func.func @transform_11(%arg0: i32) -> (i32, i32) {
    %c0_i32 = arith.constant 0 : i32
    %c0_i32_0 = arith.constant 0 : i32
    %c0_i32_1 = arith.constant 0 : i32
    return %c0_i32, %c0_i32_0 : i32, i32
  }
  func.func @transform_12(%arg0: i32) -> (i32, i32) {
    %c0_i32 = arith.constant 0 : i32
    %c0_i32_0 = arith.constant 0 : i32
    return %arg0, %c0_i32 : i32, i32
  }
}

</mosaic_0001>

<bundles_post_ra>
// kernel: tpu_custom_call.1
= control target key start
LH: loop header
LB: loop body
LE: loop exit
PB: predicated region body
PF: predicated region fallthrough
CT: control target
= control target key end

     0   :  { %s7021_s21 = smov 0   ;;  %s10218_s0 = inlined_call_operand.vmem [shape: f32[1024,5], index: 0, kind: input, shape index: {}]   ;;  %s10219_s1 = inlined_call_operand.vmem [shape: bf16[20,32], index: 1, kind: input, shape index: {}]   ;;  %s10220_s2 = inlined_call_operand.vmem [shape: f32[1,32], index: 2, kind: input, shape index: {}]   ;;  %s10221_s3 = inlined_call_operand.vmem [shape: f32[1,32], index: 3, kind: input, shape index: {}]   ;;  %s10222_s4 = inlined_call_operand.vmem [shape: bf16[32,32], index: 4, kind: input, shape index: {}]   ;;  %s10223_s5 = inlined_call_operand.vmem [shape: f32[1,32], index: 5, kind: input, shape index: {}]   ;;  %s10224_s6 = inlined_call_operand.vmem [shape: bf16[16,16], index: 6, kind: input, shape index: {}]   ;;  %s10225_s7 = inlined_call_operand.vmem [shape: f32[1,16], index: 7, kind: input, shape index: {}]   ;;  %s10226_s8 = inlined_call_operand.vmem [shape: bf16[16,16], index: 8, kind: input, shape index: {}]   ;;  %s10227_s9 = inlined_call_operand.vmem [shape: f32[1,16], index: 9, kind: input, shape index: {}]   ;;  %s10228_s10 = inlined_call_operand.vmem [shape: bf16[16,16], index: 10, kind: input, shape index: {}]   ;;  %s10229_s11 = inlined_call_operand.vmem [shape: f32[1,16], index: 11, kind: input, shape index: {}]   ;;  %s10230_s12 = inlined_call_operand.vmem [shape: bf16[1024,16], index: 12, kind: output, shape index: {}]  }
   0x1 LB: > { %s5885_s22 = sadd.s32 4294967295, %s6947_s21   ;;  %p5889_p0 = scmp.ge.s32.totalorder %s6947_s21, 1  ;;  %s6947_s21 = sphi %s7021_s21, %s22_s21  }
   0x2   : > { %p363_p1 = scmp.lt.s32.totalorder %s6947_s21, 3 }
   0x4   : > { %p364_p2 = pnand %p5889_p0, %p363_p1 }
   0x6   : > { %367 = sbr.rel (%p364_p2) target bundleno = 2282 (0x8ea), region = 68 }
   0xb   : > { %s5890_s23 = sshll.u32 %s5885_s22, 6  ;;  %v6949_v0 = vmov 0   ;;  %s6955_s26 = smov 112  }
   0xc   : > { %6683 = vset.pattern.permute.xlu2 %v6949_v0  ;;  %6682 = vset.pattern.permute.xlu1 %v6949_v0  ;;  %p406_p3 = scmp.lt.s32.totalorder %s5890_s23, 127 }
   0xd   : > { %6681 = vset.pattern.permute.xlu0 %v6949_v0 }
   0xe   : > { %s10524_s23 = smov (!%p406_p3, %s5890_s23), 127 }
   0xf   : > { %s5891_s24 = sshll.u32 %s10524_s23, 3 }
  0x10   : > { %s7035_s27 = scalar_lea.vmem %s10218_s0, %s5891_s24 }
  0x11   : > { %v422_v1 = vld [vmem:[%s7035_s27 + $0x20] sm:$0xff]  ;;  %v420_v2 = vld [vmem:[%s7035_s27 + $0x10] sm:$0xff]  ;;  %v423_v6 = vld [vmem:[%s7035_s27 + $0x28] sm:$0xff] }
  0x12   : > { %v418_v3 = vld [vmem:[%s7035_s27] sm:$0xff]  ;;  %vm6366_vm0 = vcmp.lt.s32.totalorder %v422_v1, 0  ;;  %v6367_v4 = vceil.f32 %v422_v1  ;;  %v6368_v5 = vfloor.f32 %v422_v1  ;;  %vm6356_vm1 = vcmp.lt.s32.totalorder %v420_v2, 0  ;;  %v421_v7 = vld [vmem:[%s7035_s27 + $0x18] sm:$0xff]  ;;  %v419_v14 = vld [vmem:[%s7035_s27 + $0x8] sm:$0xff] }
  0x13   : > { %v6357_v8 = vceil.f32 %v420_v2  ;;  %v6358_v9 = vfloor.f32 %v420_v2  ;;  %vm6346_vm2 = vcmp.lt.s32.totalorder %v418_v3, 0  ;;  %v6347_v10 = vceil.f32 %v418_v3  ;;  %v426_v27 = vld [vmem:[%s7035_s27 + $0x40] sm:$0xff]  ;;  %v425_v29 = vld [vmem:[%s7035_s27 + $0x38] sm:$0xff]  ;;  %v424_v31 = vld [vmem:[%s7035_s27 + $0x30] sm:$0xff] }
  0x14   : > { %v6369_v11 = vsel %vm6366_vm0, %v6367_v4, %v6368_v5  ;;  %v6348_v12 = vfloor.f32 %v418_v3  ;;  %vm6371_vm3 = vcmp.lt.s32.totalorder %v423_v6, 0  ;;  %v6372_v13 = vceil.f32 %v423_v6  ;;  %v429_v42 = vld [vmem:[%s7035_s27 + $0x58] sm:$0xff]  ;;  %v428_v44 = vld [vmem:[%s7035_s27 + $0x50] sm:$0xff]  ;;  %v427_v46 = vld [vmem:[%s7035_s27 + $0x48] sm:$0xff] }
  0x15   : > { %v7043_v15 = vcvt.f32.s32 %v6369_v11  ;;  %v6359_v16 = vsel %vm6356_vm1, %v6357_v8, %v6358_v9  ;;  %v6373_v17 = vfloor.f32 %v423_v6  ;;  %vm6361_vm4 = vcmp.lt.s32.totalorder %v421_v7, 0  ;;  %v432_v57 = vld [vmem:[%s7035_s27 + $0x70] sm:$0xff]  ;;  %v431_v59 = vld [vmem:[%s7035_s27 + $0x68] sm:$0xff]  ;;  %v430_v61 = vld [vmem:[%s7035_s27 + $0x60] sm:$0xff] }
  0x16   : > { %v7045_v18 = vcvt.f32.s32 %v6359_v16  ;;  %v6349_v19 = vsel %vm6346_vm2, %v6347_v10, %v6348_v12  ;;  %v6362_v20 = vceil.f32 %v421_v7  ;;  %v6363_v21 = vfloor.f32 %v421_v7  ;;  %v435_v8 = vld [vmem:[%s7035_s27 + $0x88] sm:$0xff]  ;;  %v434_v10 = vld [vmem:[%s7035_s27 + $0x80] sm:$0xff]  ;;  %v433_v12 = vld [vmem:[%s7035_s27 + $0x78] sm:$0xff] }
  0x17   : > { %561 = vperm.xlu2 %6683, %v7043_v15   ;;  %v7048_v22 = vcvt.f32.s32 %v6349_v19  ;;  %vm6351_vm5 = vcmp.lt.s32.totalorder %v419_v14, 0  ;;  %v6352_v23 = vceil.f32 %v419_v14  ;;  %v6374_v24 = vsel %vm6371_vm3, %v6372_v13, %v6373_v17 }
  0x18   : > { %555 = vperm.xlu1 %6682, %v7045_v18   ;;  %v6353_v25 = vfloor.f32 %v419_v14  ;;  %v6364_v26 = vsel %vm6361_vm4, %v6362_v20, %v6363_v21  ;;  %v7055_v30 = vcvt.f32.s32 %v6374_v24  ;;  %v6387_v33 = vceil.f32 %v426_v27 }
  0x19   : > { %549 = vperm.xlu0 %6681, %v7048_v22   ;;  %v7058_v32 = vcvt.f32.s32 %v6364_v26  ;;  %v6388_v34 = vfloor.f32 %v426_v27  ;;  %vm6386_vm6 = vcmp.lt.s32.totalorder %v426_v27, 0  ;;  %v6382_v36 = vceil.f32 %v425_v29  ;;  %v438_v26 = vld [vmem:[%s7035_s27 + $0xa0] sm:$0xff] }
  0x1a   : > { %v6354_v28 = vsel %vm6351_vm5, %v6352_v23, %v6353_v25  ;;  %v6383_v37 = vfloor.f32 %v425_v29  ;;  %vm6381_vm7 = vcmp.lt.s32.totalorder %v425_v29, 0  ;;  %v6377_v38 = vceil.f32 %v424_v31 }
  0x1b   : > { %v7060_v35 = vcvt.f32.s32 %v6354_v28  ;;  %v6378_v39 = vfloor.f32 %v424_v31  ;;  %vm6376_vm8 = vcmp.lt.s32.totalorder %v424_v31, 0  ;;  %v6389_v40 = vsel %vm6386_vm6, %v6387_v33, %v6388_v34  ;;  %v437_v28 = vld [vmem:[%s7035_s27 + $0x98] sm:$0xff]  ;;  %v436_v31 = vld [vmem:[%s7035_s27 + $0x90] sm:$0xff] }
  0x1c   : > { %v6384_v41 = vsel %vm6381_vm7, %v6382_v36, %v6383_v37  ;;  %v7067_v45 = vcvt.f32.s32 %v6389_v40  ;;  %v6402_v48 = vceil.f32 %v429_v42  ;;  %v6403_v49 = vfloor.f32 %v429_v42 }
  0x1d   : > { %v6379_v43 = vsel %vm6376_vm8, %v6377_v38, %v6378_v39  ;;  %v7070_v47 = vcvt.f32.s32 %v6384_v41  ;;  %vm6401_vm9 = vcmp.lt.s32.totalorder %v429_v42, 0  ;;  %v6397_v51 = vceil.f32 %v428_v44 }
  0x1e   : > { %v7072_v50 = vcvt.f32.s32 %v6379_v43  ;;  %v6398_v52 = vfloor.f32 %v428_v44  ;;  %vm6396_vm10 = vcmp.lt.s32.totalorder %v428_v44, 0  ;;  %v6392_v53 = vceil.f32 %v427_v46  ;;  %v441_v44 = vld [vmem:[%s7035_s27 + $0xb8] sm:$0xff] }
  0x1f   : > { %564 = vperm.xlu2 %6683, %v7055_v30   ;;  %v6393_v54 = vfloor.f32 %v427_v46  ;;  %vm6391_vm11 = vcmp.lt.s32.totalorder %v427_v46, 0  ;;  %v6404_v55 = vsel %vm6401_vm9, %v6402_v48, %v6403_v49  ;;  %v6417_v63 = vceil.f32 %v432_v57  ;;  %v440_v48 = vld [vmem:[%s7035_s27 + $0xb0] sm:$0xff] }
  0x20   : > { %558 = vperm.xlu1 %6682, %v7058_v32   ;;  %v6399_v56 = vsel %vm6396_vm10, %v6397_v51, %v6398_v52  ;;  %v7079_v60 = vcvt.f32.s32 %v6404_v55  ;;  %v6418_v0 = vfloor.f32 %v432_v57  ;;  %vm6416_vm12 = vcmp.lt.s32.totalorder %v432_v57, 0  ;;  %v439_v51 = vld [vmem:[%s7035_s27 + $0xa8] sm:$0xff] }
  0x21   : > { %552 = vperm.xlu0 %6681, %v7060_v35   ;;  %v6394_v58 = vsel %vm6391_vm11, %v6392_v53, %v6393_v54  ;;  %v7082_v62 = vcvt.f32.s32 %v6399_v56  ;;  %v6412_v2 = vceil.f32 %v431_v59  ;;  %v6413_v3 = vfloor.f32 %v431_v59 }
  0x22   : > { %v7084_v1 = vcvt.f32.s32 %v6394_v58  ;;  %vm6411_vm13 = vcmp.lt.s32.totalorder %v431_v59, 0  ;;  %v6407_v4 = vceil.f32 %v430_v61  ;;  %v6408_v5 = vfloor.f32 %v430_v61 }
  0x23   : > { %vm6406_vm14 = vcmp.lt.s32.totalorder %v430_v61, 0  ;;  %v6419_v6 = vsel %vm6416_vm12, %v6417_v63, %v6418_v0  ;;  %v6414_v7 = vsel %vm6411_vm13, %v6412_v2, %v6413_v3  ;;  %v6432_v14 = vceil.f32 %v435_v8  ;;  %v444_v0 = vld [vmem:[%s7035_s27 + $0xd0] sm:$0xff]  ;;  %v443_v3 = vld [vmem:[%s7035_s27 + $0xc8] sm:$0xff] }
  0x24   : > { %v6409_v9 = vsel %vm6406_vm14, %v6407_v4, %v6408_v5  ;;  %v7091_v11 = vcvt.f32.s32 %v6419_v6  ;;  %v7094_v13 = vcvt.f32.s32 %v6414_v7  ;;  %v6433_v16 = vfloor.f32 %v435_v8  ;;  %v442_v5 = vld [vmem:[%s7035_s27 + $0xc0] sm:$0xff] }
  0x25   : > { %v7096_v17 = vcvt.f32.s32 %v6409_v9  ;;  %vm6431_vm15 = vcmp.lt.s32.totalorder %v435_v8, 0  ;;  %v6427_v19 = vceil.f32 %v434_v10  ;;  %v6428_v20 = vfloor.f32 %v434_v10 }
  0x26   : > { %vm6426_vm0 = vcmp.lt.s32.totalorder %v434_v10, 0  ;;  %v6422_v21 = vceil.f32 %v433_v12  ;;  %v6423_v23 = vfloor.f32 %v433_v12  ;;  %vm6421_vm1 = vcmp.lt.s32.totalorder %v433_v12, 0 }
  0x27   : > { %573 = vperm.xlu2 %6683, %v7067_v45   ;;  %v6434_v24 = vsel %vm6431_vm15, %v6432_v14, %v6433_v16  ;;  %v6429_v25 = vsel %vm6426_vm0, %v6427_v19, %v6428_v20  ;;  %v6447_v34 = vceil.f32 %v438_v26  ;;  %v6448_v36 = vfloor.f32 %v438_v26 }
  0x28   : > { %570 = vperm.xlu1 %6682, %v7070_v47   ;;  %v6424_v27 = vsel %vm6421_vm1, %v6422_v21, %v6423_v23  ;;  %v7103_v29 = vcvt.f32.s32 %v6434_v24  ;;  %v7106_v33 = vcvt.f32.s32 %v6429_v25  ;;  %vm6446_vm2 = vcmp.lt.s32.totalorder %v438_v26, 0  ;;  %v447_v21 = vld [vmem:[%s7035_s27 + $0xe8] sm:$0xff]  ;;  %v446_v24 = vld [vmem:[%s7035_s27 + $0xe0] sm:$0xff]  ;;  %v445_v26 = vld [vmem:[%s7035_s27 + $0xd8] sm:$0xff] }
  0x29   : > { %567 = vperm.xlu0 %6681, %v7072_v50   ;;  %v7108_v37 = vcvt.f32.s32 %v6424_v27  ;;  %v6442_v38 = vceil.f32 %v437_v28  ;;  %v6443_v39 = vfloor.f32 %v437_v28  ;;  %vm6441_vm3 = vcmp.lt.s32.totalorder %v437_v28, 0 }
  0x2a   : > { %v6437_v40 = vceil.f32 %v436_v31  ;;  %v6438_v41 = vfloor.f32 %v436_v31  ;;  %vm6436_vm4 = vcmp.lt.s32.totalorder %v436_v31, 0  ;;  %v6449_v42 = vsel %vm6446_vm2, %v6447_v34, %v6448_v36 }
  0x2b   : > { %v6444_v43 = vsel %vm6441_vm3, %v6442_v38, %v6443_v39  ;;  %v7115_v49 = vcvt.f32.s32 %v6449_v42  ;;  %v6462_v53 = vceil.f32 %v441_v44  ;;  %v6463_v54 = vfloor.f32 %v441_v44 }
  0x2c   : > { %v6439_v46 = vsel %vm6436_vm4, %v6437_v40, %v6438_v41  ;;  %v7118_v52 = vcvt.f32.s32 %v6444_v43  ;;  %vm6461_vm5 = vcmp.lt.s32.totalorder %v441_v44, 0  ;;  %v6457_v56 = vceil.f32 %v440_v48  ;;  %v450_v43 = vld [vmem:[%s7035_s27 + $0x100] sm:$0xff] }
  0x2d   : > { %10309 = vst [vmem:[#allocation2_spill] sm:$0xff] %v7115_v49  ;;  %v7120_v55 = vcvt.f32.s32 %v6439_v46  ;;  %v6458_v57 = vfloor.f32 %v440_v48  ;;  %vm6456_vm6 = vcmp.lt.s32.totalorder %v440_v48, 0  ;;  %v6452_v58 = vceil.f32 %v439_v51  ;;  %v449_v46 = vld [vmem:[%s7035_s27 + $0xf8] sm:$0xff] }
  0x2e   : > { %v6453_v59 = vfloor.f32 %v439_v51  ;;  %vm6451_vm7 = vcmp.lt.s32.totalorder %v439_v51, 0  ;;  %v6464_v61 = vsel %vm6461_vm5, %v6462_v53, %v6463_v54  ;;  %v6477_v7 = vceil.f32 %v444_v0  ;;  %v448_v51 = vld [vmem:[%s7035_s27 + $0xf0] sm:$0xff] }
  0x2f   : > { %582 = vperm.xlu2 %6683, %v7079_v60   ;;  %10310 = vst [vmem:[#allocation3_spill] sm:$0xff] %v7120_v55  ;;  %v6459_v63 = vsel %vm6456_vm6, %v6457_v56, %v6458_v57  ;;  %v7127_v4 = vcvt.f32.s32 %v6464_v61  ;;  %v6478_v8 = vfloor.f32 %v444_v0  ;;  %vm6476_vm8 = vcmp.lt.s32.totalorder %v444_v0, 0 }
  0x30   : > { %579 = vperm.xlu1 %6682, %v7082_v62   ;;  %v6454_v2 = vsel %vm6451_vm7, %v6452_v58, %v6453_v59  ;;  %v7130_v6 = vcvt.f32.s32 %v6459_v63  ;;  %v6472_v10 = vceil.f32 %v443_v3  ;;  %v6473_v12 = vfloor.f32 %v443_v3 }
  0x31   : > { %576 = vperm.xlu0 %6681, %v7084_v1   ;;  %v7132_v9 = vcvt.f32.s32 %v6454_v2  ;;  %vm6471_vm9 = vcmp.lt.s32.totalorder %v443_v3, 0  ;;  %v6467_v14 = vceil.f32 %v442_v5  ;;  %v6468_v16 = vfloor.f32 %v442_v5  ;;  %v453_v3 = vld [vmem:[%s7035_s27 + $0x118] sm:$0xff] }
  0x32   : > { %vm6466_vm10 = vcmp.lt.s32.totalorder %v442_v5, 0  ;;  %v6479_v19 = vsel %vm6476_vm8, %v6477_v7, %v6478_v8  ;;  %v6474_v20 = vsel %vm6471_vm9, %v6472_v10, %v6473_v12  ;;  %v6492_v28 = vceil.f32 %v447_v21  ;;  %v452_v7 = vld [vmem:[%s7035_s27 + $0x110] sm:$0xff]  ;;  %v451_v10 = vld [vmem:[%s7035_s27 + $0x108] sm:$0xff] }
  0x33   : > { %10311 = vst [vmem:[#allocation4_spill] sm:$0xff] %v7132_v9  ;;  %v6469_v23 = vsel %vm6466_vm10, %v6467_v14, %v6468_v16  ;;  %v7139_v25 = vcvt.f32.s32 %v6479_v19  ;;  %v7142_v27 = vcvt.f32.s32 %v6474_v20  ;;  %v6493_v31 = vfloor.f32 %v447_v21 }
  0x34   : > { %v7144_v34 = vcvt.f32.s32 %v6469_v23  ;;  %vm6491_vm11 = vcmp.lt.s32.totalorder %v447_v21, 0  ;;  %v6487_v36 = vceil.f32 %v446_v24  ;;  %v6488_v38 = vfloor.f32 %v446_v24 }
  0x35   : > { %10312 = vst [vmem:[#allocation5_spill] sm:$0xff] %v7142_v27  ;;  %vm6486_vm12 = vcmp.lt.s32.totalorder %v446_v24, 0  ;;  %v6482_v39 = vceil.f32 %v445_v26  ;;  %v6483_v40 = vfloor.f32 %v445_v26  ;;  %vm6481_vm13 = vcmp.lt.s32.totalorder %v445_v26, 0 }
  0x36   : > { %10313 = vst [vmem:[#allocation6_spill] sm:$0xff] %v7144_v34  ;;  %v6494_v41 = vsel %vm6491_vm11, %v6492_v28, %v6493_v31  ;;  %v6489_v42 = vsel %vm6486_vm12, %v6487_v36, %v6488_v38  ;;  %v6507_v54 = vceil.f32 %v450_v43  ;;  %v6508_v56 = vfloor.f32 %v450_v43  ;;  %v456_v31 = vld [vmem:[%s7035_s27 + $0x130] sm:$0xff]  ;;  %v455_v38 = vld [vmem:[%s7035_s27 + $0x128] sm:$0xff] }
  0x37   : > { %591 = vperm.xlu2 %6683, %v7091_v11   ;;  %v6484_v44 = vsel %vm6481_vm13, %v6482_v39, %v6483_v40  ;;  %v7151_v48 = vcvt.f32.s32 %v6494_v41  ;;  %v7154_v53 = vcvt.f32.s32 %v6489_v42  ;;  %vm6506_vm14 = vcmp.lt.s32.totalorder %v450_v43, 0  ;;  %v454_v40 = vld [vmem:[%s7035_s27 + $0x120] sm:$0xff] }
  0x38   : > { %588 = vperm.xlu1 %6682, %v7094_v13   ;;  %v7156_v57 = vcvt.f32.s32 %v6484_v44  ;;  %v6502_v58 = vceil.f32 %v449_v46  ;;  %v6503_v59 = vfloor.f32 %v449_v46  ;;  %vm6501_vm15 = vcmp.lt.s32.totalorder %v449_v46, 0 }
  0x39   : > { %585 = vperm.xlu0 %6681, %v7096_v17   ;;  %10314 = vst [vmem:[#allocation7_spill] sm:$0xff] %v7154_v53  ;;  %v6497_v61 = vceil.f32 %v448_v51  ;;  %v6498_v63 = vfloor.f32 %v448_v51  ;;  %vm6496_vm0 = vcmp.lt.s32.totalorder %v448_v51, 0  ;;  %v6509_v0 = vsel %vm6506_vm14, %v6507_v54, %v6508_v56 }
  0x3a   : > { %10315 = vst [vmem:[#allocation8_spill] sm:$0xff] %v7156_v57  ;;  %v6504_v2 = vsel %vm6501_vm15, %v6502_v58, %v6503_v59  ;;  %v7163_v8 = vcvt.f32.s32 %v6509_v0  ;;  %v6522_v14 = vceil.f32 %v453_v3  ;;  %v6523_v16 = vfloor.f32 %v453_v3 }
  0x3b   : > { %v6499_v5 = vsel %vm6496_vm0, %v6497_v61, %v6498_v63  ;;  %v7166_v12 = vcvt.f32.s32 %v6504_v2  ;;  %vm6521_vm1 = vcmp.lt.s32.totalorder %v453_v3, 0  ;;  %v6517_v20 = vceil.f32 %v452_v7  ;;  %v459_v63 = vld [vmem:[%s7035_s27 + $0x148] sm:$0xff]  ;;  %v458_v2 = vld [vmem:[%s7035_s27 + $0x140] sm:$0xff] }
  0x3c   : > { %10316 = vst [vmem:[#allocation9_spill] sm:$0xff] %v7163_v8  ;;  %v7168_v19 = vcvt.f32.s32 %v6499_v5  ;;  %v6518_v21 = vfloor.f32 %v452_v7  ;;  %vm6516_vm2 = vcmp.lt.s32.totalorder %v452_v7, 0  ;;  %v6512_v23 = vceil.f32 %v451_v10  ;;  %v457_v5 = vld [vmem:[%s7035_s27 + $0x138] sm:$0xff] }
  0x3d   : > { %10317 = vst [vmem:[#allocation10_spill] sm:$0xff] %v7166_v12  ;;  %v6513_v24 = vfloor.f32 %v451_v10  ;;  %vm6511_vm3 = vcmp.lt.s32.totalorder %v451_v10, 0  ;;  %v6524_v26 = vsel %vm6521_vm1, %v6522_v14, %v6523_v16  ;;  %v6537_v42 = vceil.f32 %v456_v31 }
  0x3e   : > { %10318 = vst [vmem:[#allocation11_spill] sm:$0xff] %v7168_v19  ;;  %v6519_v28 = vsel %vm6516_vm2, %v6517_v20, %v6518_v21  ;;  %v7175_v39 = vcvt.f32.s32 %v6524_v26  ;;  %v6538_v43 = vfloor.f32 %v456_v31  ;;  %vm6536_vm4 = vcmp.lt.s32.totalorder %v456_v31, 0 }
  0x3f   : > { %600 = vperm.xlu2 %6683, %v7103_v29   ;;  %v6514_v36 = vsel %vm6511_vm3, %v6512_v23, %v6513_v24  ;;  %v7178_v41 = vcvt.f32.s32 %v6519_v28  ;;  %v6532_v46 = vceil.f32 %v455_v38  ;;  %v6533_v51 = vfloor.f32 %v455_v38 }
  0x40   : > { %597 = vperm.xlu1 %6682, %v7106_v33   ;;  %10319 = vst [vmem:[#allocation12_spill] sm:$0xff] %v7175_v39  ;;  %v7180_v44 = vcvt.f32.s32 %v6514_v36  ;;  %vm6531_vm5 = vcmp.lt.s32.totalorder %v455_v38, 0  ;;  %v6527_v54 = vceil.f32 %v454_v40  ;;  %v6528_v56 = vfloor.f32 %v454_v40  ;;  %v462_v36 = vld [vmem:[%s7035_s27 + $0x160] sm:$0xff] }
  0x41   : > { %594 = vperm.xlu0 %6681, %v7108_v37   ;;  %10320 = vst [vmem:[#allocation13_spill] sm:$0xff] %v7178_v41  ;;  %vm6526_vm6 = vcmp.lt.s32.totalorder %v454_v40, 0  ;;  %v6539_v58 = vsel %vm6536_vm4, %v6537_v42, %v6538_v43  ;;  %v6534_v61 = vsel %vm6531_vm5, %v6532_v46, %v6533_v51  ;;  %v6552_v10 = vceil.f32 %v459_v63  ;;  %v461_v40 = vld [vmem:[%s7035_s27 + $0x158] sm:$0xff]  ;;  %v460_v43 = vld [vmem:[%s7035_s27 + $0x150] sm:$0xff] }
  0x42   : > { %v6529_v0 = vsel %vm6526_vm6, %v6527_v54, %v6528_v56  ;;  %v7189_v3 = vcvt.f32.s32 %v6539_v58  ;;  %v7192_v7 = vcvt.f32.s32 %v6534_v61  ;;  %v6553_v14 = vfloor.f32 %v459_v63 }
  0x43   : > { %v7194_v16 = vcvt.f32.s32 %v6529_v0  ;;  %vm6551_vm7 = vcmp.lt.s32.totalorder %v459_v63, 0  ;;  %v6547_v20 = vceil.f32 %v458_v2  ;;  %v6548_v21 = vfloor.f32 %v458_v2 }
  0x44   : > { %10321 = vst [vmem:[#allocation14_spill] sm:$0xff] %v7189_v3  ;;  %vm6546_vm8 = vcmp.lt.s32.totalorder %v458_v2, 0  ;;  %v6542_v23 = vceil.f32 %v457_v5  ;;  %v6543_v24 = vfloor.f32 %v457_v5  ;;  %vm6541_vm9 = vcmp.lt.s32.totalorder %v457_v5, 0 }
  0x45   : > { %10322 = vst [vmem:[#allocation15_spill] sm:$0xff] %v7192_v7  ;;  %v6554_v26 = vsel %vm6551_vm7, %v6552_v10, %v6553_v14  ;;  %v6549_v31 = vsel %vm6546_vm8, %v6547_v20, %v6548_v21  ;;  %v6567_v51 = vceil.f32 %v462_v36  ;;  %v6568_v54 = vfloor.f32 %v462_v36  ;;  %v465_v14 = vld [vmem:[%s7035_s27 + $0x178] sm:$0xff]  ;;  %v464_v21 = vld [vmem:[%s7035_s27 + $0x170] sm:$0xff] }
  0x46   : > { %10323 = vst [vmem:[#allocation16_spill] sm:$0xff] %v7194_v16  ;;  %v6544_v38 = vsel %vm6541_vm9, %v6542_v23, %v6543_v24  ;;  %v7203_v42 = vcvt.f32.s32 %v6554_v26  ;;  %v7206_v46 = vcvt.f32.s32 %v6549_v31  ;;  %vm6566_vm10 = vcmp.lt.s32.totalorder %v462_v36, 0  ;;  %v463_v24 = vld [vmem:[%s7035_s27 + $0x168] sm:$0xff] }
  0x47   : > { %609 = vperm.xlu2 %6683, %v7115_v49   ;;  %v7208_v56 = vcvt.f32.s32 %v6544_v38  ;;  %v6562_v58 = vceil.f32 %v461_v40  ;;  %v6563_v61 = vfloor.f32 %v461_v40  ;;  %vm6561_vm11 = vcmp.lt.s32.totalorder %v461_v40, 0  ;;  %v479_v49 = vld [vmem:[%s7035_s27 + $0x1e8] sm:$0xff] }
  0x48   : > { %606 = vperm.xlu1 %6682, %v7118_v52   ;;  %10324 = vst [vmem:[#allocation17_spill] sm:$0xff] %v7203_v42  ;;  %v6557_v63 = vceil.f32 %v460_v43  ;;  %v6558_v0 = vfloor.f32 %v460_v43  ;;  %vm6556_vm12 = vcmp.lt.s32.totalorder %v460_v43, 0  ;;  %v6569_v2 = vsel %vm6566_vm10, %v6567_v51, %v6568_v54 }
  0x49   : > { %603 = vperm.xlu0 %6681, %v7120_v55   ;;  %10325 = vst [vmem:[#allocation18_spill] sm:$0xff] %v7206_v46  ;;  %v6564_v10 = vsel %vm6561_vm11, %v6562_v58, %v6563_v61  ;;  %v7217_v23 = vcvt.f32.s32 %v6569_v2  ;;  %v6582_v31 = vceil.f32 %v465_v14  ;;  %v6583_v36 = vfloor.f32 %v465_v14 }
  0x4a   : > { %10326 = vst [vmem:[#allocation19_spill] sm:$0xff] %v7208_v56  ;;  %v6559_v20 = vsel %vm6556_vm12, %v6557_v63, %v6558_v0  ;;  %v7220_v26 = vcvt.f32.s32 %v6564_v10  ;;  %vm6581_vm13 = vcmp.lt.s32.totalorder %v465_v14, 0  ;;  %v6577_v40 = vceil.f32 %v464_v21  ;;  %v468_v0 = vld [vmem:[%s7035_s27 + $0x190] sm:$0xff]  ;;  %v467_v14 = vld [vmem:[%s7035_s27 + $0x188] sm:$0xff] }
  0x4b   : > { %10327 = vst [vmem:[#allocation20_spill] sm:$0xff] %v7217_v23  ;;  %v7222_v38 = vcvt.f32.s32 %v6559_v20  ;;  %v6578_v43 = vfloor.f32 %v464_v21  ;;  %vm6576_vm14 = vcmp.lt.s32.totalorder %v464_v21, 0  ;;  %v6572_v51 = vceil.f32 %v463_v24 }
  0x4c   : > { %10328 = vst [vmem:[#allocation21_spill] sm:$0xff] %v7220_v26  ;;  %v6573_v54 = vfloor.f32 %v463_v24  ;;  %vm6571_vm15 = vcmp.lt.s32.totalorder %v463_v24, 0  ;;  %v6584_v58 = vsel %vm6581_vm13, %v6582_v31, %v6583_v36  ;;  %v6597_v24 = vceil.f32 %v468_v0 }
  0x4d   : > { %10329 = vst [vmem:[#allocation22_spill] sm:$0xff] %v7222_v38  ;;  %v6579_v63 = vsel %vm6576_vm14, %v6577_v40, %v6578_v43  ;;  %v7235_v21 = vcvt.f32.s32 %v6584_v58  ;;  %v6598_v31 = vfloor.f32 %v468_v0  ;;  %vm6596_vm0 = vcmp.lt.s32.totalorder %v468_v0, 0 }
  0x4e   : > { %v6574_v10 = vsel %vm6571_vm15, %v6572_v51, %v6573_v54  ;;  %v6592_v40 = vceil.f32 %v467_v14  ;;  %v6593_v43 = vfloor.f32 %v467_v14  ;;  %vm6591_vm1 = vcmp.lt.s32.totalorder %v467_v14, 0 }
  0x4f   : > { %618 = vperm.xlu2 %6683, %v7127_v4   ;;  %10331 = vst [vmem:[#allocation24_spill] sm:$0xff] %v7235_v21  ;;  %v7240_v36 = vcvt.f32.s32 %v6574_v10  ;;  %v6599_v58 = vsel %vm6596_vm0, %v6597_v24, %v6598_v31  ;;  %vm6651_vm13 = vcmp.lt.s32.totalorder %v479_v49, 0  ;;  %vm2677_vm0 = vcmask 1041408  }
  0x50   : > { %615 = vperm.xlu1 %6682, %v7130_v6   ;;  %v6594_v10 = vsel %vm6591_vm1, %v6592_v40, %v6593_v43 }
  0x51   : > { %612 = vperm.xlu0 %6681, %v7132_v9   ;;  %10333 = vst [vmem:[#allocation26_spill] sm:$0xff] %v7240_v36  ;;  %v475_v9 = vld [vmem:[%s7035_s27 + $0x1c8] sm:$0xff] }
  0x52   : > { %vm6631_vm11 = vcmp.lt.s32.totalorder %v475_v9, 0 }
  0x57   : > { %627 = vperm.xlu2 %6683, %v7139_v25  }
  0x58   : > { %624 = vperm.xlu1 %6682, %v7142_v27  }
  0x59   : > { %621 = vperm.xlu0 %6681, %v7144_v34  }
  0x5f   : > { %636 = vperm.xlu2 %6683, %v7151_v48  }
  0x60   : > { %633 = vperm.xlu1 %6682, %v7154_v53  }
  0x61   : > { %630 = vperm.xlu0 %6681, %v7156_v57   ;;  %v474_v57 = vld [vmem:[%s7035_s27 + $0x1c0] sm:$0xff] }
  0x62   : > { %vm6626_vm6 = vcmp.lt.s32.totalorder %v474_v57, 0 }
  0x67   : > { %645 = vperm.xlu2 %6683, %v7163_v8  }
  0x68   : > { %642 = vperm.xlu1 %6682, %v7166_v12   ;;  %v7253_v12 = vcvt.f32.s32 %v6599_v58 }
  0x69   : > { %639 = vperm.xlu0 %6681, %v7168_v19   ;;  %v469_v19 = vld [vmem:[%s7035_s27 + $0x198] sm:$0xff] }
  0x6a   : > { %10335 = vst [vmem:[#allocation28_spill] sm:$0xff] %v7253_v12  ;;  %vm6601_vm5 = vcmp.lt.s32.totalorder %v469_v19, 0 }
  0x6f   : > { %654 = vperm.xlu2 %6683, %v7175_v39   ;;  %v2026_v39 = vadd.s32 15, %v7072_v50 }
  0x70   : > { %651 = vperm.xlu1 %6682, %v7178_v41   ;;  %v470_v41 = vld [vmem:[%s7035_s27 + $0x1a0] sm:$0xff] }
  0x71   : > { %648 = vperm.xlu0 %6681, %v7180_v44   ;;  %v7185_v59 = vpop.permute.xlu2 %561  ;;  %v6607_v40 = vceil.f32 %v470_v41  ;;  %v6608_v43 = vfloor.f32 %v470_v41  ;;  %vm6606_vm4 = vcmp.lt.s32.totalorder %v470_v41, 0 }
  0x77   : > { %663 = vperm.xlu2 %6683, %v7189_v3  }
  0x78   : > { %660 = vperm.xlu1 %6682, %v7192_v7  }
  0x79   : > { %657 = vperm.xlu0 %6681, %v7194_v16   ;;  %v7199_v28 = vpop.permute.xlu2 %564 }
  0x7f   : > { %672 = vperm.xlu2 %6683, %v7203_v42   ;;  %v466_v42 = vld [vmem:[%s7035_s27 + $0x180] sm:$0xff] }
  0x80   : > { %669 = vperm.xlu1 %6682, %v7206_v46   ;;  %v6587_v51 = vceil.f32 %v466_v42  ;;  %v6588_v54 = vfloor.f32 %v466_v42  ;;  %vm6586_vm2 = vcmp.lt.s32.totalorder %v466_v42, 0  ;;  %v471_v46 = vld [vmem:[%s7035_s27 + $0x1a8] sm:$0xff] }
  0x81   : > { %666 = vperm.xlu0 %6681, %v7208_v56   ;;  %v7213_v5 = vpop.permute.xlu2 %573  ;;  %v6612_v42 = vceil.f32 %v471_v46  ;;  %v6613_v24 = vfloor.f32 %v471_v46  ;;  %vm6611_vm3 = vcmp.lt.s32.totalorder %v471_v46, 0  ;;  %v478_v56 = vld [vmem:[%s7035_s27 + $0x1e0] sm:$0xff] }
  0x82   : > { %v6589_v7 = vsel %vm6586_vm2, %v6587_v51, %v6588_v54  ;;  %v6602_v51 = vceil.f32 %v469_v19  ;;  %v6603_v54 = vfloor.f32 %v469_v19  ;;  %v6627_v19 = vceil.f32 %v474_v57 }
  0x83   : > { %v7258_v31 = vcvt.f32.s32 %v6589_v7  ;;  %v6614_v58 = vsel %vm6611_vm3, %v6612_v42, %v6613_v24  ;;  %v6609_v7 = vsel %vm6606_vm4, %v6607_v40, %v6608_v43  ;;  %v6628_v42 = vfloor.f32 %v474_v57 }
  0x84   : > { %v6604_v34 = vsel %vm6601_vm5, %v6602_v51, %v6603_v54  ;;  %vm6646_vm14 = vcmp.lt.s32.totalorder %v478_v56, 0 }
  0x85   : > { %10337 = vst [vmem:[#allocation30_spill] sm:$0xff] %v7258_v31  ;;  %v7276_v24 = vcvt.f32.s32 %v6604_v34 }
  0x87   : > { %681 = vperm.xlu2 %6683, %v7217_v23   ;;  %v7238_v23 = vcvt.f32.s32 %v6579_v63  ;;  %10339 = vst [vmem:[#allocation32_spill] sm:$0xff] %v7276_v24 }
  0x88   : > { %678 = vperm.xlu1 %6682, %v7220_v26  }
  0x89   : > { %675 = vperm.xlu0 %6681, %v7222_v38   ;;  %v7227_v61 = vpop.permute.xlu2 %582  ;;  %10332 = vst [vmem:[#allocation25_spill] sm:$0xff] %v7238_v23 }
  0x8a   : > { %10330 = vst [vmem:[#allocation23_spill] sm:$0xff] %v7227_v61  ;;  %v7230_v2 = vpop.permute.xlu1 %555 }
  0x8b   : > { %v7233_v20 = vpop.permute.xlu0 %549 }
  0x8f   : > { %690 = vperm.xlu2 %6683, %v7235_v21   ;;  %v7256_v21 = vcvt.f32.s32 %v6594_v10 }
  0x90   : > { %687 = vperm.xlu1 %6682, %v7238_v23   ;;  %v473_v23 = vld [vmem:[%s7035_s27 + $0x1b8] sm:$0xff] }
  0x91   : > { %684 = vperm.xlu0 %6681, %v7240_v36   ;;  %v7245_v63 = vpop.permute.xlu2 %591  ;;  %10336 = vst [vmem:[#allocation29_spill] sm:$0xff] %v7256_v21  ;;  %v7271_v36 = vcvt.f32.s32 %v6614_v58  ;;  %v6622_v40 = vceil.f32 %v473_v23  ;;  %v6623_v43 = vfloor.f32 %v473_v23  ;;  %vm6621_vm7 = vcmp.lt.s32.totalorder %v473_v23, 0 }
  0x92   : > { %10334 = vst [vmem:[#allocation27_spill] sm:$0xff] %v7245_v63  ;;  %v7248_v0 = vpop.permute.xlu1 %558  ;;  %v472_v63 = vld [vmem:[%s7035_s27 + $0x1b0] sm:$0xff]  ;;  %v6629_v58 = vsel %vm6626_vm6, %v6627_v19, %v6628_v42 }
  0x93   : > { %v7251_v14 = vpop.permute.xlu0 %552  ;;  %v6617_v51 = vceil.f32 %v472_v63  ;;  %v6618_v54 = vfloor.f32 %v472_v63  ;;  %vm6616_vm8 = vcmp.lt.s32.totalorder %v472_v63, 0  ;;  %v6624_v34 = vsel %vm6621_vm7, %v6622_v40, %v6623_v43 }
  0x94   : > { %v7289_v26 = vcvt.f32.s32 %v6629_v58  ;;  %v7292_v16 = vcvt.f32.s32 %v6624_v34 }
  0x97   : > { %699 = vperm.xlu2 %6683, %v7253_v12   ;;  %v7274_v12 = vcvt.f32.s32 %v6609_v7 }
  0x98   : > { %696 = vperm.xlu1 %6682, %v7256_v21   ;;  %v476_v21 = vld [vmem:[%s7035_s27 + $0x1d0] sm:$0xff] }
  0x99   : > { %693 = vperm.xlu0 %6681, %v7258_v31   ;;  %v7263_v10 = vpop.permute.xlu2 %600  ;;  %v6619_v31 = vsel %vm6616_vm8, %v6617_v51, %v6618_v54  ;;  %v6637_v40 = vceil.f32 %v476_v21  ;;  %v6638_v43 = vfloor.f32 %v476_v21  ;;  %vm6636_vm10 = vcmp.lt.s32.totalorder %v476_v21, 0 }
  0x9a   : > { %10338 = vst [vmem:[#allocation31_spill] sm:$0xff] %v7263_v10  ;;  %v7266_v46 = vpop.permute.xlu1 %570  ;;  %v477_v10 = vld [vmem:[%s7035_s27 + $0x1d8] sm:$0xff]  ;;  %v7294_v42 = vcvt.f32.s32 %v6619_v31  ;;  %v6632_v51 = vceil.f32 %v475_v9  ;;  %v6633_v54 = vfloor.f32 %v475_v9 }
  0x9b   : > { %v7269_v41 = vpop.permute.xlu0 %567  ;;  %v6642_v63 = vceil.f32 %v477_v10  ;;  %v6643_v19 = vfloor.f32 %v477_v10  ;;  %vm6641_vm9 = vcmp.lt.s32.totalorder %v477_v10, 0  ;;  %v6639_v31 = vsel %vm6636_vm10, %v6637_v40, %v6638_v43 }
  0x9c   : > { %v7310_v8 = vcvt.f32.s32 %v6639_v31  ;;  %v6653_v40 = vfloor.f32 %v479_v49  ;;  %v6647_v43 = vceil.f32 %v478_v56 }
  0x9d   : > { %v6644_v58 = vsel %vm6641_vm9, %v6642_v63, %v6643_v19  ;;  %v6652_v19 = vceil.f32 %v479_v49  ;;  %v481_v49 = vld [vmem:[%s7035_s27 + $0x1f8] sm:$0xff]  ;;  %vm2580_vm9 = vcmask 162816  }
  0x9e   : > { %v7307_v38 = vcvt.f32.s32 %v6644_v58  ;;  %v6663_v61 = vfloor.f32 %v481_v49  ;;  %vm6661_vm15 = vcmp.lt.s32.totalorder %v481_v49, 0 }
  0x9f   : > { %708 = vperm.xlu2 %6683, %v7271_v36   ;;  %v6654_v58 = vsel %vm6651_vm13, %v6652_v19, %v6653_v40  ;;  %v997_v40 = vadd.s32 5, %v7060_v35 }
  0xa0   : > { %705 = vperm.xlu1 %6682, %v7274_v12  }
  0xa1   : > { %702 = vperm.xlu0 %6681, %v7276_v24   ;;  %v7281_v7 = vpop.permute.xlu2 %609  ;;  %v480_v24 = vld [vmem:[%s7035_s27 + $0x1f0] sm:$0xff] }
  0xa2   : > { %10340 = vst [vmem:[#allocation33_spill] sm:$0xff] %v7281_v7  ;;  %v7284_v57 = vpop.permute.xlu1 %579  ;;  %v6634_v7 = vsel %vm6631_vm11, %v6632_v51, %v6633_v54  ;;  %v6657_v9 = vceil.f32 %v480_v24  ;;  %v6658_v3 = vfloor.f32 %v480_v24  ;;  %vm6656_vm12 = vcmp.lt.s32.totalorder %v480_v24, 0 }
  0xa3   : > { %10341 = vst [vmem:[#allocation34_spill] sm:$0xff] %v7284_v57  ;;  %v7287_v23 = vpop.permute.xlu0 %576  ;;  %v7312_v63 = vcvt.f32.s32 %v6634_v7 }
  0xa4   : > { %v6659_v51 = vsel %vm6656_vm12, %v6657_v9, %v6658_v3 }
  0xa7   : > { %717 = vperm.xlu2 %6683, %v7289_v26  }
  0xa8   : > { %714 = vperm.xlu1 %6682, %v7292_v16  }
  0xa9   : > { %711 = vperm.xlu0 %6681, %v7294_v42   ;;  %v7299_v34 = vpop.permute.xlu2 %618 }
  0xaa   : > { %10342 = vst [vmem:[#allocation35_spill] sm:$0xff] %v7299_v34  ;;  %v7302_v10 = vpop.permute.xlu1 %588  ;;  %v6648_v34 = vfloor.f32 %v478_v56  ;;  %v6662_v56 = vceil.f32 %v481_v49 }
  0xab   : > { %10343 = vst [vmem:[#allocation36_spill] sm:$0xff] %v7302_v10  ;;  %v7305_v21 = vpop.permute.xlu0 %585  ;;  %v7323_v10 = vcvt.f32.s32 %v6659_v51  ;;  %v996_v51 = vadd.s32 5, %v7048_v22 }
  0xac   : > { %10344 = vst [vmem:[#allocation37_spill] sm:$0xff] %v7305_v21  ;;  %v6649_v24 = vsel %vm6646_vm14, %v6647_v43, %v6648_v34  ;;  %v7326_v21 = vcvt.f32.s32 %v6654_v58  ;;  %v6664_v9 = vsel %vm6661_vm15, %v6662_v56, %v6663_v61  ;;  %v10280_v58 = vmov 1  }
  0xad   : > { %v7328_v57 = vcvt.f32.s32 %v6649_v24  ;;  %v7340_v43 = vcvt.f32.s32 %v6664_v9  ;;  %v1000_v56 = vadd.s32 5, %v7043_v15  ;;  %v999_v9 = vadd.s32 5, %v7058_v32 }
  0xaf   : > { %726 = vperm.xlu2 %6683, %v7307_v38  }
  0xb0   : > { %723 = vperm.xlu1 %6682, %v7310_v8  }
  0xb1   : > { %720 = vperm.xlu0 %6681, %v7312_v63   ;;  %v7317_v54 = vpop.permute.xlu2 %627 }
  0xb2   : > { %10345 = vst [vmem:[#allocation38_spill] sm:$0xff] %v7317_v54  ;;  %v7319_v7 = vpop.permute.xlu1 %597  ;;  %v1002_v54 = vadd.s32 5, %v7072_v50 }
  0xb3   : > { %10346 = vst [vmem:[#allocation39_spill] sm:$0xff] %v7319_v7  ;;  %v7321_v31 = vpop.permute.xlu0 %594  ;;  %v1514_v7 = vadd.s32 10, %v7072_v50 }
  0xb4   : > { %10347 = vst [vmem:[#allocation40_spill] sm:$0xff] %v7321_v31  ;;  %v10288_v31 = vmov 4  }
  0xb7   : > { %735 = vperm.xlu2 %6683, %v7323_v10  }
  0xb8   : > { %732 = vperm.xlu1 %6682, %v7326_v21  }
  0xb9   : > { %729 = vperm.xlu0 %6681, %v7328_v57   ;;  %v7333_v3 = vpop.permute.xlu2 %636 }
  0xba   : > { %10348 = vst [vmem:[#allocation41_spill] sm:$0xff] %v7333_v3  ;;  %v7335_v34 = vpop.permute.xlu1 %606  ;;  %v998_v3 = vadd.s32 5, %v7045_v18 }
  0xbb   : > { %10349 = vst [vmem:[#allocation42_spill] sm:$0xff] %v7335_v34  ;;  %v7337_v19 = vpop.permute.xlu0 %603 }
  0xbc   : > { %10350 = vst [vmem:[#allocation43_spill] sm:$0xff] %v7337_v19 }
  0xbf   : > { %6685 = vset.pattern.permute.xlu2 %v10280_v58 }
  0xc0   : > { %6684 = vset.pattern.permute.xlu1 %v10280_v58  ;;  %1064 = vperm.xlu2 %6685, %v997_v40  }
  0xc1   : > { %738 = vperm.xlu0 %6681, %v7340_v43   ;;  %1061 = vperm.xlu1 %6684, %v996_v51   ;;  %v7346_v24 = vpop.permute.xlu2 %645 }
  0xc2   : > { %10351 = vst [vmem:[#allocation44_spill] sm:$0xff] %v7346_v24  ;;  %v7348_v61 = vpop.permute.xlu1 %615 }
  0xc3   : > { %10352 = vst [vmem:[#allocation45_spill] sm:$0xff] %v7348_v61  ;;  %v7350_v49 = vpop.permute.xlu0 %612  ;;  %v1001_v61 = vadd.s32 5, %v7055_v30 }
  0xc4   : > { %10353 = vst [vmem:[#allocation46_spill] sm:$0xff] %v7350_v49  ;;  %v1003_v49 = vadd.s32 5, %v7070_v47 }
  0xc8   : > { %1073 = vperm.xlu2 %6685, %v1000_v56  }
  0xc9   : > { %6686 = vset.pattern.permute.xlu0 %v10280_v58  ;;  %1070 = vperm.xlu1 %6684, %v999_v9   ;;  %v7356_v40 = vpop.permute.xlu2 %654  ;;  %v1004_v58 = vadd.s32 5, %v7067_v45 }
  0xca   : > { %10354 = vst [vmem:[#allocation47_spill] sm:$0xff] %v7356_v40  ;;  %1067 = vperm.xlu0 %6686, %v998_v3   ;;  %v7358_v51 = vpop.permute.xlu1 %624  ;;  %v1005_v3 = vadd.s32 5, %v7084_v1  ;;  %v1006_v40 = vadd.s32 5, %v7082_v62 }
  0xcb   : > { %10355 = vst [vmem:[#allocation48_spill] sm:$0xff] %v7358_v51  ;;  %v7360_v24 = vpop.permute.xlu0 %621 }
  0xcc   : > { %10356 = vst [vmem:[#allocation49_spill] sm:$0xff] %v7360_v24  ;;  %v10284_v24 = vmov 2  }
  0xd0   : > { %1079 = vperm.xlu2 %6685, %v1002_v54  }
  0xd1   : > { %1076 = vperm.xlu1 %6684, %v1001_v61   ;;  %v7365_v34 = vpop.permute.xlu2 %663 }
  0xd2   : > { %10357 = vst [vmem:[#allocation50_spill] sm:$0xff] %v7365_v34  ;;  %1082 = vperm.xlu0 %6686, %v1003_v49   ;;  %v7367_v56 = vpop.permute.xlu1 %633  ;;  %v1008_v49 = vadd.s32 5, %v7096_v17  ;;  %v1007_v34 = vadd.s32 5, %v7079_v60 }
  0xd3   : > { %10358 = vst [vmem:[#allocation51_spill] sm:$0xff] %v7367_v56  ;;  %v7369_v9 = vpop.permute.xlu0 %630  ;;  %v1009_v56 = vadd.s32 5, %v7094_v13 }
  0xd4   : > { %10359 = vst [vmem:[#allocation52_spill] sm:$0xff] %v7369_v9 }
  0xd8   : > { %1088 = vperm.xlu2 %6685, %v1005_v3  }
  0xd9   : > { %1085 = vperm.xlu1 %6684, %v1004_v58   ;;  %v7374_v51 = vpop.permute.xlu2 %672 }
  0xda   : > { %10360 = vst [vmem:[#allocation53_spill] sm:$0xff] %v7374_v51  ;;  %1091 = vperm.xlu0 %6686, %v1006_v40   ;;  %v7376_v54 = vpop.permute.xlu1 %642  ;;  %v1011_v40 = vadd.s32 5, %v7108_v37  ;;  %v1010_v51 = vadd.s32 5, %v7091_v11 }
  0xdb   : > { %10361 = vst [vmem:[#allocation54_spill] sm:$0xff] %v7376_v54  ;;  %v7378_v61 = vpop.permute.xlu0 %639 }
  0xdc   : > { %10362 = vst [vmem:[#allocation55_spill] sm:$0xff] %v7378_v61  ;;  %v1052_v61 = vadd.s32 5, %v7289_v26 }
  0xe0   : > { %1097 = vperm.xlu2 %6685, %v1008_v49  }
  0xe1   : > { %1094 = vperm.xlu1 %6684, %v1007_v34   ;;  %v7383_v9 = vpop.permute.xlu2 %681 }
  0xe2   : > { %10363 = vst [vmem:[#allocation56_spill] sm:$0xff] %v7383_v9  ;;  %1100 = vperm.xlu0 %6686, %v1009_v56   ;;  %v7385_v3 = vpop.permute.xlu1 %651  ;;  %v2020_v56 = vadd.s32 15, %v7048_v22  ;;  %v1054_v9 = vadd.s32 5, %v7310_v8 }
  0xe3   : > { %10364 = vst [vmem:[#allocation57_spill] sm:$0xff] %v7385_v3  ;;  %v7387_v58 = vpop.permute.xlu0 %648  ;;  %v1509_v3 = vadd.s32 10, %v7060_v35 }
  0xe4   : > { %10365 = vst [vmem:[#allocation58_spill] sm:$0xff] %v7387_v58  ;;  %v10282_v58 = vmov 3  }
  0xe8   : > { %1106 = vperm.xlu2 %6685, %v1011_v40  }
  0xe9   : > { %1103 = vperm.xlu1 %6684, %v1010_v51   ;;  %v7392_v54 = vpop.permute.xlu2 %690 }
  0xea   : > { %10366 = vst [vmem:[#allocation59_spill] sm:$0xff] %v7392_v54  ;;  %1229 = vperm.xlu0 %6686, %v1052_v61   ;;  %v7394_v49 = vpop.permute.xlu1 %660  ;;  %v1508_v54 = vadd.s32 10, %v7048_v22  ;;  %v1511_v22 = vadd.s32 10, %v7058_v32 }
  0xeb   : > { %10367 = vst [vmem:[#allocation60_spill] sm:$0xff] %v7394_v49  ;;  %v7396_v34 = vpop.permute.xlu0 %657  ;;  %v1510_v49 = vadd.s32 10, %v7045_v18 }
  0xec   : > { %10368 = vst [vmem:[#allocation61_spill] sm:$0xff] %v7396_v34  ;;  %v2021_v34 = vadd.s32 15, %v7060_v35  ;;  %v2023_v35 = vadd.s32 15, %v7058_v32 }
  0xf0   : > { %6688 = vset.pattern.permute.xlu2 %v10282_v58 }
  0xf1   : > { %6687 = vset.pattern.permute.xlu1 %v10284_v24  ;;  %v7403_v51 = vpop.permute.xlu2 %699  ;;  %2085 = vperm.xlu2 %6688, %v2020_v56   ;;  %v2022_v56 = vadd.s32 15, %v7045_v18  ;;  %v1513_v18 = vadd.s32 10, %v7055_v30 }
  0xf2   : > { %10369 = vst [vmem:[#allocation62_spill] sm:$0xff] %v7403_v51  ;;  %1235 = vperm.xlu0 %6686, %v1054_v9   ;;  %v7405_v61 = vpop.permute.xlu1 %669  ;;  %1576 = vperm.xlu1 %6687, %v1509_v3   ;;  %v10373_v9 = vmov 3  }
  0xf3   : > { %10370 = vst [vmem:[#allocation63_spill] sm:$0xff] %v7405_v61  ;;  %v7407_v40 = vpop.permute.xlu0 %666 }
  0xf4   : > { %10371 = vst [vmem:[#allocation64_spill] sm:$0xff] %v7407_v40 }
  0xf9   : > { %v7412_v19 = vpop.permute.xlu2 %708  ;;  %6690 = vset.pattern.permute.xlu2 %v10284_v24 }
  0xfa   : > { %6713 = vset.pattern.permute.xlu0 %v10284_v24  ;;  %v7416_v58 = vpop.permute.xlu1 %678  ;;  %6689 = vset.pattern.permute.xlu1 %v10373_v9 }
  0xfb   : > { %10372 = vst [vmem:[#allocation65_spill] sm:$0xff] %v7416_v58  ;;  %1573 = vperm.xlu0 %6713, %v1508_v54   ;;  %v7419_v3 = vpop.permute.xlu0 %675  ;;  %1579 = vperm.xlu2 %6690, %v1510_v49   ;;  %v1512_v54 = vadd.s32 10, %v7043_v15  ;;  %v2024_v49 = vadd.s32 15, %v7043_v15 }
  0xfc   : > { %10374 = vst [vmem:[#allocation66_spill] sm:$0xff] %v7419_v3  ;;  %2088 = vperm.xlu1 %6689, %v2021_v34  }
 0x101   : > { %v7424_v51 = vpop.permute.xlu2 %717 }
 0x102   : > { %10375 = vst [vmem:[#allocation67_spill] sm:$0xff] %v7424_v51  ;;  %v7426_v61 = vpop.permute.xlu1 %687  ;;  %v2029_v51 = vadd.s32 15, %v7084_v1 }
 0x103   : > { %10376 = vst [vmem:[#allocation68_spill] sm:$0xff] %v7426_v61  ;;  %1582 = vperm.xlu0 %6713, %v1511_v22   ;;  %v7428_v24 = vpop.permute.xlu0 %684  ;;  %6691 = vset.pattern.permute.xlu2 %v10373_v9  ;;  %v10381_v22 = vmov 2   ;;  %v1049_v61 = vadd.s32 5, %v7271_v36 }
 0x104   : > { %10377 = vst [vmem:[#allocation69_spill] sm:$0xff] %v7428_v24  ;;  %2091 = vperm.xlu1 %6689, %v2022_v56   ;;  %2094 = vperm.xlu2 %6691, %v2023_v35   ;;  %v1515_v56 = vadd.s32 10, %v7070_v47  ;;  %v1048_v24 = vadd.s32 5, %v7274_v12 }
 0x109   : > { %v7433_v34 = vpop.permute.xlu2 %726 }
 0x10a   : > { %10378 = vst [vmem:[#allocation70_spill] sm:$0xff] %v7433_v34  ;;  %v7436_v32 = vpop.permute.xlu1 %696  ;;  %v2027_v34 = vadd.s32 15, %v7070_v47  ;;  %v1051_v47 = vadd.s32 5, %v7292_v16 }
 0x10b   : > { %10379 = vst [vmem:[#allocation71_spill] sm:$0xff] %v7436_v32  ;;  %1585 = vperm.xlu0 %6713, %v1512_v54   ;;  %v7438_v3 = vpop.permute.xlu0 %693  ;;  %v10384_v54 = vmov 1  }
 0x10c   : > { %10380 = vst [vmem:[#allocation72_spill] sm:$0xff] %v7438_v3  ;;  %6692 = vset.pattern.permute.xlu1 %v10381_v22  ;;  %2097 = vperm.xlu2 %6691, %v2024_v49   ;;  %v1562_v49 = vadd.s32 10, %v7294_v42  ;;  %v1561_v3 = vadd.s32 10, %v7271_v36 }
 0x10d   : > { %1588 = vperm.xlu1 %6692, %v1513_v18  }
 0x111   : > { %v7442_v35 = vpop.permute.xlu2 %735 }
 0x112   : > { %10382 = vst [vmem:[#allocation73_spill] sm:$0xff] %v7442_v35  ;;  %v7445_v15 = vpop.permute.xlu1 %705  ;;  %v2073_v35 = vadd.s32 15, %v7271_v36  ;;  %v2025_v36 = vadd.s32 15, %v7055_v30  ;;  %v2072_v30 = vadd.s32 15, %v7274_v12 }
 0x113   : > { %1594 = vperm.xlu0 %6713, %v1515_v56   ;;  %v7448_v58 = vpop.permute.xlu0 %702  ;;  %v1560_v56 = vadd.s32 10, %v7274_v12 }
 0x114   : > { %10383 = vst [vmem:[#allocation74_spill] sm:$0xff] %v7448_v58  ;;  %6694 = vset.pattern.permute.xlu2 %v10384_v54 }
 0x115   : > { %6693 = vset.pattern.permute.xlu1 %v10384_v54  ;;  %1220 = vperm.xlu2 %6694, %v1049_v61  }
 0x116   : > { %1217 = vperm.xlu1 %6693, %v1048_v24   ;;  %v1524_v24 = vadd.s32 10, %v7106_v33 }
 0x11a   : > { %v7453_v18 = vpop.permute.xlu1 %714  ;;  %v7455_v32 = vpop.permute.xlu2 %1064 }
 0x11b   : > { %1735 = vperm.xlu0 %6713, %v1562_v49   ;;  %v7458_v40 = vpop.permute.xlu0 %711 }
 0x11d   : > { %6696 = vset.pattern.permute.xlu2 %v10381_v22 }
 0x11e   : > { %6695 = vset.pattern.permute.xlu1 %v10381_v22  ;;  %1732 = vperm.xlu2 %6696, %v1561_v3  }
 0x11f   : > { %1729 = vperm.xlu1 %6695, %v1560_v56  }
 0x122   : > { %v7464_v61 = vpop.permute.xlu1 %723  ;;  %v7466_v58 = vpop.permute.xlu2 %1073 }
 0x123   : > { %10385 = vst [vmem:[#allocation75_spill] sm:$0xff] %v7464_v61  ;;  %1621 = vperm.xlu0 %6713, %v1524_v24   ;;  %v7469_v49 = vpop.permute.xlu0 %720  ;;  %v6867_v24 = vld [vmem:[%s7035_s27 + $0x18] sm:$0xff] }
 0x124   : > { %10386 = vst [vmem:[#allocation76_spill] sm:$0xff] %v7469_v49  ;;  %v2028_v49 = vadd.s32 15, %v7067_v45 }
 0x126   : > { %1591 = vperm.xlu2 %6696, %v1514_v7  }
 0x127   : > { %6697 = vset.pattern.permute.xlu1 %v10373_v9 }
 0x128   : > { %2244 = vperm.xlu1 %6697, %v2073_v35  }
 0x12a   : > { %v7473_v3 = vpop.permute.xlu1 %732  ;;  %v7475_v56 = vpop.permute.xlu2 %1079 }
 0x12b   : > { %10387 = vst [vmem:[#allocation77_spill] sm:$0xff] %v7473_v3  ;;  %6745 = vset.pattern.permute.xlu0 %v10288_v31  ;;  %v7478_v61 = vpop.permute.xlu0 %729  ;;  %v2074_v31 = vadd.s32 15, %v7294_v42 }
 0x12c   : > { %10388 = vst [vmem:[#allocation78_spill] sm:$0xff] %v7478_v61  ;;  %2868 = vperm.xlu0 %6745, %v6867_v24   ;;  %v1050_v24 = vadd.s32 5, %v7294_v42  ;;  %v1517_v42 = vadd.s32 10, %v7084_v1  ;;  %v2077_v61 = vadd.s32 15, %v7312_v63  ;;  %v1053_v1 = vadd.s32 5, %v7312_v63 }
 0x12e   : > { %6698 = vset.pattern.permute.xlu2 %v10373_v9 }
 0x12f   : > { %2106 = vperm.xlu2 %6698, %v2027_v34  }
 0x130   : > { %2103 = vperm.xlu1 %6697, %v2026_v39  }
 0x132   : > { %v7485_v7 = vpop.permute.xlu2 %1088 }
 0x133   : > { %v7487_v35 = vpop.permute.xlu0 %738  ;;  %v7489_v3 = vpop.permute.xlu1 %1061 }
 0x134   : > { %10389 = vst [vmem:[#allocation79_spill] sm:$0xff] %v7487_v35  ;;  %6746 = vset.pattern.permute.xlu0 %v10373_v9 }
 0x135   : > { %2100 = vperm.xlu0 %6746, %v2025_v36   ;;  %v1563_v36 = vadd.s32 10, %v7292_v16 }
 0x137   : > { %6700 = vset.pattern.permute.xlu2 %v10384_v54 }
 0x138   : > { %6699 = vset.pattern.permute.xlu1 %v10384_v54  ;;  %1226 = vperm.xlu2 %6700, %v1051_v47   ;;  %v2075_v47 = vadd.s32 15, %v7292_v16  ;;  %v2566_v16 = vld [vmem:[%s10219_s1 + $0x8] sm:$0x3] }
 0x139   : > { %1223 = vperm.xlu1 %6699, %v1050_v24  }
 0x13a   : > { %v7497_v50 = vpop.permute.xlu2 %1097 }
 0x13b   : > { %10390 = vst [vmem:[#allocation80_spill] sm:$0xff] %v7497_v50  ;;  %v7499_v39 = vpop.permute.xlu1 %1070 }
 0x13c   : > { %v7501_v34 = vpop.permute.xlu0 %1067 }
 0x13d   : > { %2241 = vperm.xlu0 %6746, %v2072_v30   ;;  %v1516_v30 = vadd.s32 10, %v7067_v45 }
 0x140   : > { %6702 = vset.pattern.permute.xlu2 %v10373_v9 }
 0x141   : > { %6701 = vset.pattern.permute.xlu1 %v10381_v22  ;;  %2247 = vperm.xlu2 %6702, %v2074_v31   ;;  %v2576_v31 = vunpack.c.l.b16 %v2566_v16  ;;  %v2081_v16 = vadd.s32 15, %v7326_v21 }
 0x142   : > { %1738 = vperm.xlu1 %6701, %v1563_v36   ;;  %v7510_v24 = vpop.permute.xlu2 %1106 }
 0x143   : > { %v7508_v12 = vpop.permute.xlu1 %1076  ;;  %10391 = vst [vmem:[#allocation81_spill] sm:$0xff] %v7510_v24  ;;  %v2578_v50 = vpack.c.b16 %v2576_v31, %v2576_v31 }
 0x144   : > { %v7512_v35 = vpop.permute.xlu0 %1082 }
 0x145   : > { %2250 = vperm.xlu0 %6746, %v2075_v47   ;;  %v2679_v53 = vsel %vm2677_vm0, %v2578_v50, 0 }
 0x146   : > { %2687 = vmatpush.bf16.msra.mxu0 %v2679_v53  ;;  %6342 = vmatpush.bf16.msra.mxu1 %v2679_v53  ;;  %v1564_v53 = vadd.s32 10, %v7289_v26 }
 0x149   : > { %6703 = vset.pattern.permute.xlu2 %v10381_v22 }
 0x14a   : > { %1597 = vperm.xlu1 %6701, %v1516_v30   ;;  %1600 = vperm.xlu2 %6703, %v1517_v42   ;;  %v2079_v30 = vadd.s32 15, %v7307_v38  ;;  %v6336_v42 = vld [vmem:[%s10219_s1] sm:$0xff] }
 0x14b   : > { %v7521_v36 = vpop.permute.xlu1 %1085  ;;  %v7525_v47 = vpop.permute.xlu2 %2085  ;;  %2688 = vmatpush.bf16.msra.mxu0 %v6336_v42  ;;  %6343 = vmatpush.bf16.msra.mxu1 %v6336_v42  ;;  %v2038_v42 = vadd.s32 15, %v7120_v55 }
 0x14c   : > { %v7523_v24 = vpop.permute.xlu0 %1091 }
 0x14d   : > { %10392 = vst [vmem:[#allocation82_spill] sm:$0xff] %v7523_v24  ;;  %2256 = vperm.xlu0 %6746, %v2077_v61  }
 0x152   : > { %6704 = vset.pattern.permute.xlu1 %v10373_v9  ;;  %6705 = vset.pattern.permute.xlu2 %v10373_v9 }
 0x153   : > { %2109 = vperm.xlu1 %6704, %v2028_v49   ;;  %2112 = vperm.xlu2 %6705, %v2029_v51   ;;  %v7535_v61 = vpop.permute.xlu1 %1094 }
 0x154   : > { %10393 = vst [vmem:[#allocation83_spill] sm:$0xff] %v7535_v61  ;;  %v7537_v50 = vpop.permute.xlu0 %1100  ;;  %v2076_v61 = vadd.s32 15, %v7289_v26  ;;  %v2045_v26 = vadd.s32 15, %v7142_v27 }
 0x155   : > { %10394 = vst [vmem:[#allocation84_spill] sm:$0xff] %v7537_v50  ;;  %2262 = vperm.xlu0 %6746, %v2079_v30   ;;  %v7539_v45 = vpop.permute.xlu2 %1579  ;;  %v546_v30 = vlaneseq  ;;  %v1565_v50 = vadd.s32 10, %v7312_v63  ;;  %v1518_v63 = vadd.s32 10, %v7082_v62 }
 0x15b   : > { %6706 = vset.pattern.permute.xlu1 %v10384_v54  ;;  %6707 = vset.pattern.permute.xlu2 %v10381_v22  ;;  %v7546_v51 = vpop.permute.xlu1 %1103 }
 0x15c   : > { %10395 = vst [vmem:[#allocation85_spill] sm:$0xff] %v7546_v51  ;;  %v7548_v49 = vpop.permute.xlu0 %1229  ;;  %1232 = vperm.xlu1 %6706, %v1053_v1   ;;  %1741 = vperm.xlu2 %6707, %v1564_v53  }
 0x15d   : > { %10396 = vst [vmem:[#allocation86_spill] sm:$0xff] %v7548_v49  ;;  %2268 = vperm.xlu0 %6746, %v2081_v16   ;;  %v7559_v49 = vand.u32 127, %v546_v30 }
 0x15e   : > { %v7550_v31 = vpop.permute.xlu2 %2094 }
 0x15f   : > { %vm741_vm1 = vcmp.eq.s32.totalorder %v7559_v49, %v7251_v14  ;;  %vm1253_vm2 = vcmp.eq.s32.totalorder %v7559_v49, %v7455_v32  ;;  %vm740_vm3 = vcmp.eq.s32.totalorder %v7559_v49, %v7233_v20  ;;  %vm1252_vm4 = vcmp.eq.s32.totalorder %v7559_v49, %v7489_v3 }
 0x160   : > { %v1519_v20 = vadd.s32 10, %v7079_v60  ;;  %vm2276_vm6 = vcmp.eq.s32.totalorder %v7559_v49, %v7525_v47  ;;  %vm1255_vm10 = vcmp.eq.s32.totalorder %v7559_v49, %v7499_v39  ;;  %vm743_vm11 = vcmp.eq.s32.totalorder %v7559_v49, %v7248_v0 }
 0x161   : > { %vm1254_vm12 = vcmp.eq.s32.totalorder %v7559_v49, %v7501_v34  ;;  %vm742_vm14 = vcmp.eq.s32.totalorder %v7559_v49, %v7230_v2  ;;  %vm1766_vm15 = vcmp.eq.s32.totalorder %v7559_v49, %v7539_v45 }
 0x164   : > { %v7555_v24 = vpop.permute.xlu0 %1235  ;;  %6708 = vset.pattern.permute.xlu1 %v10381_v22  ;;  %6709 = vset.pattern.permute.xlu2 %v10373_v9  ;;  %v1577_v51 = vpop.permute.xlu1 %1576 }
 0x165   : > { %10397 = vst [vmem:[#allocation87_spill] sm:$0xff] %v7555_v24  ;;  %2139 = vperm.xlu0 %6746, %v2038_v42   ;;  %1744 = vperm.xlu1 %6708, %v1565_v50   ;;  %vm1765_vm5 = vcmp.eq.s32.totalorder %v7559_v49, %v1577_v51 }
 0x166   : > { %2253 = vperm.xlu2 %6709, %v2076_v61   ;;  %v7561_v1 = vpop.permute.xlu2 %2097  ;;  %v6954_v61 = vmov 0.0  }
 0x167   : > { %v5895_v50 = vsel %vm741_vm1, 1.0, %v6954_v61  ;;  %v5959_v14 = vsel %vm1253_vm2, 1.0, %v6954_v61  ;;  %v5894_v53 = vsel %vm740_vm3, 1.0, %v6954_v61  ;;  %v5958_v32 = vsel %vm1252_vm4, 1.0, %v6954_v61 }
 0x168   : > { %v6023_v16 = vsel %vm1765_vm5, 1.0, %v6954_v61  ;;  %v1445_v3 = vadd.f32 %v5959_v14, %v5895_v50  ;;  %v1444_v30 = vadd.f32 %v5958_v32, %v5894_v53  ;;  %v6086_v50 = vsel %vm2276_vm6, 1.0, %v6954_v61 }
 0x169   : > { %v1056_v53 = vadd.s32 5, %v7328_v57  ;;  %v2030_v32 = vadd.s32 15, %v7082_v62  ;;  %v5897_v0 = vsel %vm743_vm11, 1.0, %v6954_v61  ;;  %v5960_v39 = vsel %vm1254_vm12, 1.0, %v6954_v61 }
 0x16a   : > { %v1957_v27 = vadd.f32 %v6023_v16, %v1445_v3  ;;  %v2031_v16 = vadd.s32 15, %v7079_v60  ;;  %v5961_v60 = vsel %vm1255_vm10, 1.0, %v6954_v61  ;;  %v6024_v2 = vsel %vm1766_vm15, 1.0, %v6954_v61 }
 0x16b   : > { %v1447_v3 = vadd.f32 %v5961_v60, %v5897_v0  ;;  %vm2279_vm1 = vcmp.eq.s32.totalorder %v7559_v49, %v7550_v31  ;;  %vm1256_vm2 = vcmp.eq.s32.totalorder %v7559_v49, %v7466_v58  ;;  %vm744_vm3 = vcmp.eq.s32.totalorder %v7559_v49, %v7185_v59 }
 0x16c   : > { %vm1257_vm4 = vcmp.eq.s32.totalorder %v7559_v49, %v7508_v12  ;;  %v1568_v58 = vadd.s32 10, %v7328_v57  ;;  %vm745_vm6 = vcmp.eq.s32.totalorder %v7559_v49, %v7199_v28  ;;  %v5898_v12 = vsel %vm744_vm3, 1.0, %v6954_v61 }
 0x16d   : > { %2160 = vperm.xlu0 %6746, %v2045_v26   ;;  %v1574_v51 = vpop.permute.xlu0 %1573  ;;  %1603 = vperm.xlu1 %6708, %v1518_v63   ;;  %v5899_v28 = vsel %vm745_vm6, 1.0, %v6954_v61  ;;  %vm746_vm10 = vcmp.eq.s32.totalorder %v7559_v49, %v7269_v41  ;;  %vm793_vm11 = vcmp.eq.s32.totalorder %v7559_v49, %v7412_v19  ;;  %vm792_vm15 = vcmp.eq.s32.totalorder %v7559_v49, %v7445_v15 }
 0x16e   : > { %vm1764_vm7 = vcmp.eq.s32.totalorder %v7559_v49, %v1574_v51  ;;  %6710 = vset.pattern.permute.xlu2 %v10381_v22  ;;  %v2089_v42 = vpop.permute.xlu1 %2088  ;;  %v5900_v19 = vsel %vm746_vm10, 1.0, %v6954_v61 }
 0x16f   : > { %v6022_v24 = vsel %vm1764_vm7, 1.0, %v6954_v61  ;;  %vm2277_vm8 = vcmp.eq.s32.totalorder %v7559_v49, %v2089_v42  ;;  %1606 = vperm.xlu2 %6710, %v1519_v20   ;;  %v7586_v55 = vpop.permute.xlu2 %1220  ;;  %v1058_v20 = vadd.s32 5, %v7323_v10  ;;  %v5896_v42 = vsel %vm742_vm14, 1.0, %v6954_v61 }
 0x170   : > { %v1956_v26 = vadd.f32 %v6022_v24, %v1444_v30  ;;  %v6087_v63 = vsel %vm2277_vm8, 1.0, %v6954_v61  ;;  %v1055_v30 = vadd.s32 5, %v7307_v38  ;;  %vm2280_vm8 = vcmp.eq.s32.totalorder %v7559_v49, %v7561_v1 }
 0x171   : > { %v2469_v14 = vadd.f32 %v6087_v63, %v1957_v27  ;;  %vm1305_vm12 = vcmp.eq.s32.totalorder %v7559_v49, %v7586_v55  ;;  %v6090_v1 = vsel %vm2280_vm8, 1.0, %v6954_v61  ;;  %vm794_vm8 = vcmp.eq.s32.totalorder %v7559_v49, %v7458_v40 }
 0x172   : > { %v2468_v47 = vadd.f32 %v6086_v50, %v1956_v26  ;;  %v1446_v26 = vadd.f32 %v5960_v39, %v5896_v42  ;;  %v1566_v50 = vadd.s32 10, %v7310_v8  ;;  %v2078_v39 = vadd.s32 15, %v7310_v8 }
 0x173   : > { %v1521_v8 = vadd.s32 10, %v7094_v13 }
 0x174   : > { %v2532_v51 = vpack.c.bf16 %v2469_v14, %v2468_v47  ;;  %v1958_v47 = vadd.f32 %v6024_v2, %v1446_v26  ;;  %v1018_v2 = vadd.s32 5, %v7130_v6 }
 0x175   : > { %6763 = vset.pattern.permute.xlu0 %v10384_v54  ;;  %v1583_v24 = vpop.permute.xlu0 %1582  ;;  %6711 = vset.pattern.permute.xlu1 %v10373_v9 }
 0x176   : > { %1241 = vperm.xlu0 %6763, %v1056_v53   ;;  %2115 = vperm.xlu1 %6711, %v2030_v32   ;;  %v2092_v27 = vpop.permute.xlu1 %2091  ;;  %vm1767_vm13 = vcmp.eq.s32.totalorder %v7559_v49, %v1583_v24  ;;  %v6089_v32 = vsel %vm2279_vm1, 1.0, %v6954_v61  ;;  %v1013_v24 = vadd.s32 5, %v7103_v29 }
 0x177   : > { %6154 = vmatmul.msk.bf16.vlgmr.msra.gmra.mxu0 %vm2580_vm9, %v2532_v51  ;;  %6712 = vset.pattern.permute.xlu2 %v10373_v9  ;;  %v6025_v34 = vsel %vm1767_vm13, 1.0, %v6954_v61  ;;  %vm2278_vm0 = vcmp.eq.s32.totalorder %v7559_v49, %v2092_v27  ;;  %v1567_v27 = vadd.s32 10, %v7307_v38  ;;  %v1015_v38 = vadd.s32 5, %v7118_v52 }
 0x178   : > { %2118 = vperm.xlu2 %6712, %v2031_v16   ;;  %v7605_v62 = vpop.permute.xlu2 %1732  ;;  %v1959_v45 = vadd.f32 %v6025_v34, %v1447_v3  ;;  %v6088_v14 = vsel %vm2278_vm0, 1.0, %v6954_v61  ;;  %v1520_v3 = vadd.s32 10, %v7096_v17 }
 0x179   : > { %v2470_v16 = vadd.f32 %v6088_v14, %v1958_v47  ;;  %v2033_v14 = vadd.s32 15, %v7094_v13  ;;  %v5962_v13 = vsel %vm1256_vm2, 1.0, %v6954_v61  ;;  %vm1817_vm0 = vcmp.eq.s32.totalorder %v7559_v49, %v7605_v62 }
 0x17a   : > { %v2471_v31 = vadd.f32 %v6089_v32, %v1959_v45  ;;  %v1025_v32 = vadd.s32 5, %v7151_v48  ;;  %vm1258_vm2 = vcmp.eq.s32.totalorder %v7559_v49, %v7475_v56  ;;  %v5946_v56 = vsel %vm792_vm15, 1.0, %v6954_v61 }
 0x17b   : > { %vm795_vm15 = vcmp.eq.s32.totalorder %v7559_v49, %v7453_v18 }
 0x17c   : > { %v2533_v0 = vpack.c.bf16 %v2471_v31, %v2470_v16  ;;  %v1057_v16 = vadd.s32 5, %v7326_v21 }
 0x17d   : > { %v7621_v63 = vpop.permute.xlu0 %1585 }
 0x17e   : > { %1247 = vperm.xlu0 %6763, %v1058_v20   ;;  %6714 = vset.pattern.permute.xlu1 %v10384_v54  ;;  %vm1768_vm5 = vcmp.eq.s32.totalorder %v7559_v49, %v7621_v63 }
 0x17f   : > { %1238 = vperm.xlu1 %6714, %v1055_v30   ;;  %v7626_v53 = vpop.permute.xlu1 %1588  ;;  %v6026_v63 = vsel %vm1768_vm5, 1.0, %v6954_v61 }
 0x180   : > { %6715 = vset.pattern.permute.xlu2 %v10381_v22  ;;  %v7630_v51 = vpop.permute.xlu2 %1591  ;;  %vm1769_vm7 = vcmp.eq.s32.totalorder %v7559_v49, %v7626_v53 }
 0x181   : > { %1747 = vperm.xlu2 %6715, %v1566_v50   ;;  %v2032_v50 = vadd.s32 15, %v7096_v17  ;;  %v6027_v53 = vsel %vm1769_vm7, 1.0, %v6954_v61  ;;  %vm1770_vm5 = vcmp.eq.s32.totalorder %v7559_v49, %v7630_v51  ;;  %vm747_vm7 = vcmp.eq.s32.totalorder %v7559_v49, %v7266_v46 }
 0x185   : > { %v7634_v60 = vpop.permute.xlu0 %1594 }
 0x186   : > { %1112 = vperm.xlu0 %6763, %v1013_v24   ;;  %v5963_v24 = vsel %vm1257_vm4, 1.0, %v6954_v61  ;;  %vm1259_vm4 = vcmp.eq.s32.totalorder %v7559_v49, %v7512_v35  ;;  %vm1771_vm10 = vcmp.eq.s32.totalorder %v7559_v49, %v7634_v60  ;;  %v5901_v35 = vsel %vm747_vm7, 1.0, %v6954_v61 }
 0x187   : > { %6155 = vmatmul.msk.bf16.gmra.mxu0 %vm2580_vm9, %v2533_v0  ;;  %6716 = vset.pattern.permute.xlu1 %v10381_v22  ;;  %v1448_v0 = vadd.f32 %v5962_v13, %v5898_v12  ;;  %v6075_v12 = vsel %vm1817_vm0, 1.0, %v6954_v61  ;;  %vm1261_vm7 = vcmp.eq.s32.totalorder %v7559_v49, %v7485_v7 }
 0x188   : > { %1750 = vperm.xlu1 %6716, %v1567_v27   ;;  %v7639_v34 = vpop.permute.xlu1 %1217  ;;  %v1531_v27 = vadd.s32 10, %v7127_v4 }
 0x189   : > { %6717 = vset.pattern.permute.xlu2 %v10373_v9  ;;  %v7642_v20 = vpop.permute.xlu2 %2106  ;;  %vm1304_vm13 = vcmp.eq.s32.totalorder %v7559_v49, %v7639_v34  ;;  %v2080_v34 = vadd.s32 15, %v7328_v57  ;;  %v5947_v57 = vsel %vm793_vm11, 1.0, %v6954_v61 }
 0x18a   : > { %2259 = vperm.xlu2 %6717, %v2078_v39  }
 0x18d   : > { %v7646_v30 = vpop.permute.xlu0 %1735 }
 0x18e   : > { %1118 = vperm.xlu0 %6763, %v1015_v38   ;;  %v1449_v38 = vadd.f32 %v5963_v24, %v5899_v28  ;;  %v1522_v28 = vadd.s32 10, %v7091_v11 }
 0x190   : > { %1609 = vperm.xlu1 %6716, %v1520_v3   ;;  %v1960_v3 = vadd.f32 %v6026_v63, %v1448_v0  ;;  %v5964_v63 = vsel %vm1258_vm2, 1.0, %v6954_v61 }
 0x191   : > { %v7649_v42 = vpop.permute.xlu1 %1729 }
 0x192   : > { %6718 = vset.pattern.permute.xlu2 %v10381_v22  ;;  %v7653_v26 = vpop.permute.xlu2 %1226  ;;  %vm1816_vm1 = vcmp.eq.s32.totalorder %v7559_v49, %v7649_v42 }
 0x193   : > { %1612 = vperm.xlu2 %6718, %v1521_v8   ;;  %v6074_v24 = vsel %vm1816_vm1, 1.0, %v6954_v61  ;;  %vm1818_vm1 = vcmp.eq.s32.totalorder %v7559_v49, %v7646_v30 }
 0x195   : > { %v7655_v45 = vpop.permute.xlu0 %1621 }
 0x196   : > { %1127 = vperm.xlu0 %6763, %v1018_v2   ;;  %v1569_v2 = vadd.s32 10, %v7326_v21  ;;  %v2472_v21 = vadd.f32 %v6090_v1, %v1960_v3  ;;  %v1523_v1 = vadd.s32 10, %v7108_v37 }
 0x198   : > { %6719 = vset.pattern.permute.xlu1 %v10373_v9 }
 0x199   : > { %2121 = vperm.xlu1 %6719, %v2032_v50   ;;  %v1961_v50 = vadd.f32 %v6027_v53, %v1449_v38  ;;  %v1450_v38 = vadd.f32 %v5964_v63, %v5900_v19 }
 0x19a   : > { %v7660_v47 = vpop.permute.xlu1 %2244 }
 0x19b   : > { %6720 = vset.pattern.permute.xlu2 %v10373_v9  ;;  %v7664_v31 = vpop.permute.xlu2 %2247  ;;  %vm2329_vm3 = vcmp.eq.s32.totalorder %v7559_v49, %v7660_v47 }
 0x19c   : > { %2124 = vperm.xlu2 %6720, %v2033_v14   ;;  %v6139_v62 = vsel %vm2329_vm3, 1.0, %v6954_v61  ;;  %vm2330_vm3 = vcmp.eq.s32.totalorder %v7559_v49, %v7664_v31 }
 0x19d   : > { %v6140_v31 = vsel %vm2330_vm3, 1.0, %v6954_v61 }
 0x19e   : > { %1148 = vperm.xlu0 %6763, %v1025_v32   ;;  %v7668_v17 = vpop.permute.xlu0 %2868  ;;  %v6011_v32 = vsel %vm1305_vm12, 1.0, %v6954_v61  ;;  %vm2283_vm12 = vcmp.eq.s32.totalorder %v7559_v49, %v7642_v20  ;;  %v2034_v20 = vadd.s32 15, %v7091_v11 }
 0x19f   : > { %v1497_v15 = vadd.f32 %v6011_v32, %v5947_v57  ;;  %v6093_v60 = vsel %vm2283_vm12, 1.0, %v6954_v61 }
 0x1a1   : > { %6721 = vset.pattern.permute.xlu1 %v10384_v54  ;;  %v2009_v53 = vadd.f32 %v6075_v12, %v1497_v15  ;;  %v6076_v15 = vsel %vm1818_vm1, 1.0, %v6954_v61 }
 0x1a2   : > { %1244 = vperm.xlu1 %6721, %v1057_v16   ;;  %v7684_v59 = vpop.permute.xlu1 %2103  ;;  %v6010_v16 = vsel %vm1304_vm13, 1.0, %v6954_v61  ;;  %vm1307_vm13 = vcmp.eq.s32.totalorder %v7559_v49, %v7653_v26  ;;  %v5949_v26 = vsel %vm795_vm15, 1.0, %v6954_v61 }
 0x1a3   : > { %vm2282_vm11 = vcmp.eq.s32.totalorder %v7559_v49, %v7684_v59 }
 0x1a4   : > { %6722 = vset.pattern.permute.xlu2 %v10381_v22  ;;  %v7691_v39 = vpop.permute.xlu2 %1600 }
 0x1a5   : > { %1753 = vperm.xlu2 %6722, %v1568_v58   ;;  %v1534_v58 = vadd.s32 10, %v7139_v25 }
 0x1a6   : > { %6772 = vset.pattern.permute.xlu0 %v10381_v22 }
 0x1a7   : > { %1642 = vperm.xlu0 %6772, %v1531_v27   ;;  %v2101_v8 = vpop.permute.xlu0 %2100  ;;  %v1496_v27 = vadd.f32 %v6010_v16, %v5946_v56 }
 0x1a8   : > { %vm2281_vm14 = vcmp.eq.s32.totalorder %v7559_v49, %v2101_v8  ;;  %v2521_v8 = vadd.f32 %v6139_v62, %v2009_v53  ;;  %v6868_v53 = vld [vmem:[%s7035_s27 + $0x30] sm:$0xff] }
 0x1a9   : > { %v6091_v14 = vsel %vm2281_vm14, 1.0, %v6954_v61  ;;  %v2008_v41 = vadd.f32 %v6074_v24, %v1496_v27  ;;  %v2035_v27 = vadd.s32 15, %v7108_v37 }
 0x1aa   : > { %v2473_v55 = vadd.f32 %v6091_v14, %v1961_v50  ;;  %6723 = vset.pattern.permute.xlu1 %v10381_v22  ;;  %v6028_v50 = vsel %vm1770_vm5, 1.0, %v6954_v61  ;;  %v1541_v14 = vadd.s32 10, %v7180_v44  ;;  %vm748_vm5 = vcmp.eq.s32.totalorder %v7559_v49, %v7213_v5 }
 0x1ab   : > { %1756 = vperm.xlu1 %6723, %v1569_v2   ;;  %v1224_v13 = vpop.permute.xlu1 %1223  ;;  %v5965_v2 = vsel %vm1259_vm4, 1.0, %v6954_v61  ;;  %v1962_v16 = vadd.f32 %v6028_v50, %v1450_v38  ;;  %vm1260_vm4 = vcmp.eq.s32.totalorder %v7559_v49, %v7521_v36  ;;  %v1059_v38 = vadd.s32 5, %v7340_v43 }
 0x1ac   : > { %v2534_v42 = vpack.c.bf16 %v2473_v55, %v2472_v21  ;;  %vm1306_vm14 = vcmp.eq.s32.totalorder %v7559_v49, %v1224_v13  ;;  %v6029_v55 = vsel %vm1771_vm10, 1.0, %v6954_v61  ;;  %v1451_v32 = vadd.f32 %v5965_v2, %v5901_v35 }
 0x1ad   : > { %6724 = vset.pattern.permute.xlu2 %v10373_v9  ;;  %v7739_v47 = vpop.permute.xlu2 %2112  ;;  %v6012_v57 = vsel %vm1306_vm14, 1.0, %v6954_v61  ;;  %vm1773_vm10 = vcmp.eq.s32.totalorder %v7559_v49, %v7691_v39  ;;  %v5902_v7 = vsel %vm748_vm5, 1.0, %v6954_v61 }
 0x1ae   : > { %2265 = vperm.xlu2 %6724, %v2080_v34   ;;  %6156 = vmatmul.msk.bf16.gmra.mxu0 %vm2580_vm9, %v2534_v42  ;;  %v6092_v34 = vsel %vm2282_vm11, 1.0, %v6954_v61  ;;  %v6013_v42 = vsel %vm1307_vm13, 1.0, %v6954_v61  ;;  %v1963_v12 = vadd.f32 %v6029_v55, %v1451_v32  ;;  %vm2285_vm11 = vcmp.eq.s32.totalorder %v7559_v49, %v7739_v47 }
 0x1af   : > { %1651 = vperm.xlu0 %6772, %v1534_v58   ;;  %v2242_v0 = vpop.permute.xlu0 %2241  ;;  %v5948_v58 = vsel %vm794_vm8, 1.0, %v6954_v61  ;;  %v2474_v40 = vadd.f32 %v6092_v34, %v1962_v16  ;;  %v1499_v19 = vadd.f32 %v6013_v42, %v5949_v26  ;;  %v6031_v5 = vsel %vm1773_vm10, 1.0, %v6954_v61  ;;  %v6869_v34 = vld [vmem:[%s7035_s27 + $0x68] sm:$0xff] }
 0x1b0   : > { %vm2328_vm6 = vcmp.eq.s32.totalorder %v7559_v49, %v2242_v0  ;;  %v2475_v24 = vadd.f32 %v6093_v60, %v1963_v12  ;;  %v1498_v63 = vadd.f32 %v6012_v57, %v5948_v58  ;;  %v1571_v58 = vadd.s32 10, %v7340_v43  ;;  %v10399_v12 = vld [vmem:[#allocation86_spill] sm:$0xff]  ;;  %v10400_v26 = vld [vmem:[#allocation67_spill] sm:$0xff] }
 0x1b1   : > { %v6138_v3 = vsel %vm2328_vm6, 1.0, %v6954_v61  ;;  %vm749_vm6 = vcmp.eq.s32.totalorder %v7559_v49, %v7287_v23  ;;  %v1012_v57 = vadd.s32 5, %v7106_v33  ;;  %vm1308_vm13 = vcmp.eq.s32.totalorder %v7559_v49, %v10399_v12  ;;  %v10409_v12 = vld [vmem:[#allocation3_spill] sm:$0xff] }
 0x1b2   : > { %v2520_v51 = vadd.f32 %v6138_v3, %v2008_v41  ;;  %v2535_v30 = vpack.c.bf16 %v2475_v24, %v2474_v40  ;;  %v2010_v0 = vadd.f32 %v6076_v15, %v1498_v63  ;;  %v5966_v41 = vsel %vm1260_vm4, 1.0, %v6954_v61  ;;  %v10402_v15 = vld [vmem:[#allocation7_spill] sm:$0xff] }
 0x1b3   : > { %1615 = vperm.xlu1 %6723, %v1522_v28   ;;  %v10398_v28 = vmov 4   ;;  %v1452_v50 = vadd.f32 %v5966_v41, %v5902_v7  ;;  %vm796_vm15 = vcmp.eq.s32.totalorder %v7559_v49, %v10400_v26  ;;  %v6014_v24 = vsel %vm1308_vm13, 1.0, %v6954_v61 }
 0x1b4   : > { %v1739_v59 = vpop.permute.xlu1 %1738  ;;  %v2558_v21 = vpack.c.bf16 %v2521_v8, %v2520_v51  ;;  %v2522_v3 = vadd.f32 %v6140_v31, %v2010_v0  ;;  %v5903_v8 = vsel %vm749_vm6, 1.0, %v6954_v61  ;;  %v5967_v51 = vsel %vm1261_vm7, 1.0, %v6954_v61 }
 0x1b5   : > { %vm1819_vm0 = vcmp.eq.s32.totalorder %v7559_v49, %v1739_v59  ;;  %v1453_v23 = vadd.f32 %v5967_v51, %v5903_v8  ;;  %v1525_v7 = vadd.s32 10, %v7103_v29  ;;  %v10403_v8 = vld [vmem:[#allocation12_spill] sm:$0xff] }
 0x1b6   : > { %6725 = vset.pattern.permute.xlu2 %v10381_v22  ;;  %6180 = vmatmul.msk.bf16.vlgmr.msra.gmra.mxu1 %vm2580_vm9, %v2558_v21  ;;  %v7789_v46 = vpop.permute.xlu2 %1741  ;;  %v6077_v13 = vsel %vm1819_vm0, 1.0, %v6954_v61  ;;  %v6095_v21 = vsel %vm2285_vm11, 1.0, %v6954_v61  ;;  %v2055_v51 = vadd.s32 15, %v10403_v8 }
 0x1b7   : > { %1618 = vperm.xlu2 %6725, %v1523_v1   ;;  %1672 = vperm.xlu0 %6772, %v1541_v14   ;;  %v2251_v56 = vpop.permute.xlu0 %2250  ;;  %v2011_v11 = vadd.f32 %v6077_v13, %v1499_v19  ;;  %v1570_v14 = vadd.s32 10, %v7323_v10  ;;  %v1965_v35 = vadd.f32 %v6031_v5, %v1453_v23  ;;  %v10401_v13 = vld [vmem:[#allocation76_spill] sm:$0xff]  ;;  %vm1820_vm1 = vcmp.eq.s32.totalorder %v7559_v49, %v7789_v46  ;;  %v10404_v5 = vld [vmem:[#allocation82_spill] sm:$0xff] }
 0x1b8   : > { %vm2331_vm2 = vcmp.eq.s32.totalorder %v7559_v49, %v2251_v56  ;;  %v6870_v56 = vld [vmem:[%s7035_s27 + $0x80] sm:$0xff]  ;;  %vm797_vm0 = vcmp.eq.s32.totalorder %v7559_v49, %v10401_v13  ;;  %v6078_v46 = vsel %vm1820_vm1, 1.0, %v6954_v61  ;;  %vm1262_vm5 = vcmp.eq.s32.totalorder %v7559_v49, %v10404_v5 }
 0x1b9   : > { %v6141_v62 = vsel %vm2331_vm2, 1.0, %v6954_v61  ;;  %v2477_v16 = vadd.f32 %v6095_v21, %v1965_v35  ;;  %v10407_v23 = vld [vmem:[#allocation34_spill] sm:$0xff] }
 0x1ba   : > { %v2523_v37 = vadd.f32 %v6141_v62, %v2011_v11  ;;  %v2048_v11 = vadd.s32 15, %v10402_v15 }
 0x1bb   : > { %6726 = vset.pattern.permute.xlu1 %v10373_v9 }
 0x1bc   : > { %2127 = vperm.xlu1 %6726, %v2034_v20   ;;  %v1598_v18 = vpop.permute.xlu1 %1597  ;;  %v2559_v39 = vpack.c.bf16 %v2523_v37, %v2522_v3  ;;  %v2082_v20 = vadd.s32 15, %v7323_v10  ;;  %v5950_v10 = vsel %vm796_vm15, 1.0, %v6954_v61 }
 0x1bd   : > { %vm1772_vm8 = vcmp.eq.s32.totalorder %v7559_v49, %v1598_v18  ;;  %v5951_v18 = vsel %vm797_vm0, 1.0, %v6954_v61  ;;  %v1500_v62 = vadd.f32 %v6014_v24, %v5950_v10  ;;  %v10410_v10 = vld [vmem:[#allocation9_spill] sm:$0xff] }
 0x1be   : > { %6157 = vmatmul.msk.bf16.gmra.mxu0 %vm2580_vm9, %v2535_v30  ;;  %v6030_v2 = vsel %vm1772_vm8, 1.0, %v6954_v61  ;;  %vm750_vm8 = vcmp.eq.s32.totalorder %v7559_v49, %v10407_v23 }
 0x1bf   : > { %6727 = vset.pattern.permute.xlu2 %v10373_v9  ;;  %6789 = vset.pattern.permute.xlu0 %v10398_v28  ;;  %v1964_v59 = vadd.f32 %v6030_v2, %v1452_v50  ;;  %v2257_v19 = vpop.permute.xlu0 %2256 }
 0x1c0   : > { %2130 = vperm.xlu2 %6727, %v2035_v27   ;;  %v7836_v36 = vpop.permute.xlu2 %2253  ;;  %2883 = vperm.xlu0 %6789, %v6868_v53   ;;  %vm2333_vm3 = vcmp.eq.s32.totalorder %v7559_v49, %v2257_v19  ;;  %v2083_v27 = vadd.s32 15, %v7340_v43  ;;  %v2012_v53 = vadd.f32 %v6078_v46, %v1500_v62  ;;  %v6872_v62 = vld [vmem:[%s7035_s27 + $0x8] sm:$0xff] }
 0x1c1   : > { %vm2332_vm2 = vcmp.eq.s32.totalorder %v7559_v49, %v7836_v36  ;;  %v6143_v37 = vsel %vm2333_vm3, 1.0, %v6954_v61 }
 0x1c2   : > { %v6142_v31 = vsel %vm2332_vm2, 1.0, %v6954_v61 }
 0x1c3   : > { %v2524_v43 = vadd.f32 %v6142_v31, %v2012_v53  ;;  %v10412_v31 = vld [vmem:[#allocation19_spill] sm:$0xff] }
 0x1c4   : > { %6728 = vset.pattern.permute.xlu1 %v10384_v54  ;;  %v10414_v53 = vld [vmem:[#allocation75_spill] sm:$0xff] }
 0x1c5   : > { %1250 = vperm.xlu1 %6728, %v1059_v38   ;;  %v2110_v1 = vpop.permute.xlu1 %2109  ;;  %vm798_vm1 = vcmp.eq.s32.totalorder %v7559_v49, %v10414_v53 }
 0x1c6   : > { %vm2284_vm12 = vcmp.eq.s32.totalorder %v7559_v49, %v2110_v1  ;;  %6181 = vmatmul.msk.bf16.gmra.mxu1 %vm2580_vm9, %v2559_v39  ;;  %v2036_v39 = vadd.s32 15, %v7106_v33  ;;  %v10405_v1 = vld [vmem:[#allocation83_spill] sm:$0xff]  ;;  %v5968_v33 = vsel %vm1262_vm5, 1.0, %v6954_v61 }
 0x1c7   : > { %v6094_v47 = vsel %vm2284_vm12, 1.0, %v6954_v61  ;;  %vm1263_vm6 = vcmp.eq.s32.totalorder %v7559_v49, %v10405_v1  ;;  %v2263_v19 = vpop.permute.xlu0 %2262 }
 0x1c8   : > { %v2476_v55 = vadd.f32 %v6094_v47, %v1964_v59  ;;  %6729 = vset.pattern.permute.xlu2 %v10381_v22  ;;  %2918 = vperm.xlu0 %6789, %v6869_v34   ;;  %v5969_v59 = vsel %vm1263_vm6, 1.0, %v6954_v61  ;;  %v10408_v47 = vld [vmem:[#allocation14_spill] sm:$0xff]  ;;  %vm2335_vm3 = vcmp.eq.s32.totalorder %v7559_v49, %v2263_v19  ;;  %v10421_v19 = vld [vmem:[#allocation16_spill] sm:$0xff] }
 0x1c9   : > { %1759 = vperm.xlu2 %6729, %v1570_v14   ;;  %v7864_v32 = vpop.permute.xlu2 %1606  ;;  %v10406_v14 = vld [vmem:[#allocation23_spill] sm:$0xff]  ;;  %v2058_v35 = vadd.s32 15, %v10408_v47 }
 0x1ca   : > { %v2536_v60 = vpack.c.bf16 %v2477_v16, %v2476_v55  ;;  %vm751_vm7 = vcmp.eq.s32.totalorder %v7559_v49, %v10406_v14  ;;  %vm1775_vm10 = vcmp.eq.s32.totalorder %v7559_v49, %v7864_v32  ;;  %v2037_v55 = vadd.s32 15, %v7103_v29 }
 0x1cb   : > { %v5905_v34 = vsel %vm751_vm7, 1.0, %v6954_v61  ;;  %v5904_v16 = vsel %vm750_vm8, 1.0, %v6954_v61  ;;  %v6033_v32 = vsel %vm1775_vm10, 1.0, %v6954_v61  ;;  %v6145_v14 = vsel %vm2335_vm3, 1.0, %v6954_v61 }
 0x1cd   : > { %6730 = vset.pattern.permute.xlu1 %v10381_v22 }
 0x1ce   : > { %1762 = vperm.xlu1 %6730, %v1571_v58   ;;  %6158 = vmatmul.msk.bf16.gmra.mxu0 %vm2580_vm9, %v2536_v60  ;;  %v1233_v42 = vpop.permute.xlu1 %1232  ;;  %v1454_v60 = vadd.f32 %v5968_v33, %v5904_v16 }
 0x1cf   : > { %vm1309_vm14 = vcmp.eq.s32.totalorder %v7559_v49, %v1233_v42  ;;  %v1455_v42 = vadd.f32 %v5969_v59, %v5905_v34 }
 0x1d0   : > { %2933 = vperm.xlu0 %6789, %v6870_v56   ;;  %v6015_v63 = vsel %vm1309_vm14, 1.0, %v6954_v61 }
 0x1d1   : > { %6731 = vset.pattern.permute.xlu2 %v10384_v54  ;;  %v1501_v0 = vadd.f32 %v6015_v63, %v5951_v18  ;;  %v1028_v18 = vadd.s32 5, %v10410_v10 }
 0x1d2   : > { %1109 = vperm.xlu2 %6731, %v1012_v57   ;;  %v2119_v40 = vpop.permute.xlu2 %2118 }
 0x1d3   : > { %vm2287_vm12 = vcmp.eq.s32.totalorder %v7559_v49, %v2119_v40  ;;  %v1014_v40 = vadd.s32 5, %v10409_v12 }
 0x1d4   : > { %v6097_v57 = vsel %vm2287_vm12, 1.0, %v6954_v61 }
 0x1d6   : > { %6732 = vset.pattern.permute.xlu1 %v10373_v9 }
 0x1d7   : > { %2271 = vperm.xlu1 %6732, %v2082_v20   ;;  %v1745_v30 = vpop.permute.xlu1 %1744  ;;  %v1967_v20 = vadd.f32 %v6033_v32, %v1455_v42 }
 0x1d8   : > { %vm1821_vm4 = vcmp.eq.s32.totalorder %v7559_v49, %v1745_v30  ;;  %6794 = vset.pattern.permute.xlu0 %v10373_v9  ;;  %v6871_v30 = vld [vmem:[%s7035_s27] sm:$0xff] }
 0x1d9   : > { %v6079_v36 = vsel %vm1821_vm4, 1.0, %v6954_v61  ;;  %2169 = vperm.xlu0 %6794, %v2048_v11   ;;  %v2479_v13 = vadd.f32 %v6097_v57, %v1967_v20  ;;  %v10418_v20 = vld [vmem:[#allocation80_spill] sm:$0xff] }
 0x1da   : > { %v2013_v41 = vadd.f32 %v6079_v36, %v1501_v0  ;;  %6733 = vset.pattern.permute.xlu2 %v10373_v9  ;;  %v10413_v36 = vld [vmem:[#allocation70_spill] sm:$0xff]  ;;  %vm1264_vm7 = vcmp.eq.s32.totalorder %v7559_v49, %v10418_v20 }
 0x1db   : > { %2274 = vperm.xlu2 %6733, %v2083_v27   ;;  %v7899_v38 = vpop.permute.xlu2 %1747  ;;  %v10411_v27 = vld [vmem:[#allocation87_spill] sm:$0xff]  ;;  %vm799_vm0 = vcmp.eq.s32.totalorder %v7559_v49, %v10413_v36 }
 0x1dc   : > { %v2525_v3 = vadd.f32 %v6143_v37, %v2013_v41  ;;  %vm1310_vm14 = vcmp.eq.s32.totalorder %v7559_v49, %v10411_v27  ;;  %v1035_v37 = vadd.s32 5, %v10412_v31  ;;  %v7953_v41 = vpop.permute.xlu0 %2268  ;;  %vm1822_vm2 = vcmp.eq.s32.totalorder %v7559_v49, %v7899_v38  ;;  %v10422_v27 = vld [vmem:[#allocation4_spill] sm:$0xff] }
 0x1de   : > { %v2560_v2 = vpack.c.bf16 %v2525_v3, %v2524_v43  ;;  %v1526_v43 = vadd.s32 10, %v10409_v12  ;;  %v6016_v3 = vsel %vm1310_vm14, 1.0, %v6954_v61 }
 0x1df   : > { %6734 = vset.pattern.permute.xlu1 %v10381_v22  ;;  %v1604_v50 = vpop.permute.xlu1 %1603 }
 0x1e0   : > { %1624 = vperm.xlu1 %6734, %v1525_v7   ;;  %6182 = vmatmul.msk.bf16.gmra.mxu1 %vm2580_vm9, %v2560_v2  ;;  %vm1774_vm11 = vcmp.eq.s32.totalorder %v7559_v49, %v1604_v50  ;;  %v5952_v2 = vsel %vm798_vm1, 1.0, %v6954_v61  ;;  %v6080_v50 = vsel %vm1822_vm2, 1.0, %v6954_v61 }
 0x1e1   : > { %2190 = vperm.xlu0 %6794, %v2055_v51   ;;  %v6032_v58 = vsel %vm1774_vm11, 1.0, %v6954_v61  ;;  %v5953_v51 = vsel %vm799_vm0, 1.0, %v6954_v61  ;;  %v1502_v5 = vadd.f32 %v6016_v3, %v5952_v2 }
 0x1e2   : > { %v1966_v26 = vadd.f32 %v6032_v58, %v1454_v60  ;;  %v2039_v58 = vadd.s32 15, %v7118_v52 }
 0x1e3   : > { %2133 = vperm.xlu2 %6733, %v2036_v39   ;;  %v1527_v39 = vadd.s32 10, %v7118_v52  ;;  %v2014_v59 = vadd.f32 %v6080_v50, %v1502_v5  ;;  %v10420_v52 = vld [vmem:[#allocation36_spill] sm:$0xff] }
 0x1e4   : > { %v7919_v21 = vpop.permute.xlu2 %2259  ;;  %v7977_v60 = vpop.permute.xlu0 %2139  ;;  %vm753_vm10 = vcmp.eq.s32.totalorder %v7559_v49, %v10420_v52  ;;  %v6873_v5 = vld [vmem:[%s7035_s27 + $0x10] sm:$0xff] }
 0x1e5   : > { %vm2334_vm4 = vcmp.eq.s32.totalorder %v7559_v49, %v7919_v21 }
 0x1e6   : > { %v6144_v23 = vsel %vm2334_vm4, 1.0, %v6954_v61  ;;  %vm2337_vm4 = vcmp.eq.s32.totalorder %v7559_v49, %v7953_v41  ;;  %v2041_v41 = vadd.s32 15, %v10422_v27 }
 0x1e7   : > { %v2526_v34 = vadd.f32 %v6144_v23, %v2014_v59 }
 0x1e8   : > { %6735 = vset.pattern.permute.xlu1 %v10373_v9  ;;  %v2116_v56 = vpop.permute.xlu1 %2115 }
 0x1e9   : > { %vm2286_vm13 = vcmp.eq.s32.totalorder %v7559_v49, %v2116_v56  ;;  %2199 = vperm.xlu0 %6794, %v2058_v35   ;;  %2136 = vperm.xlu1 %6735, %v2037_v55   ;;  %v10415_v35 = vld [vmem:[#allocation22_spill] sm:$0xff] }
 0x1ea   : > { %v6096_v29 = vsel %vm2286_vm13, 1.0, %v6954_v61  ;;  %v1038_v55 = vadd.s32 5, %v10415_v35  ;;  %v10416_v56 = vld [vmem:[#allocation2_spill] sm:$0xff] }
 0x1eb   : > { %v2478_v24 = vadd.f32 %v6096_v29, %v1966_v26  ;;  %6736 = vset.pattern.permute.xlu2 %v10384_v54  ;;  %v1016_v12 = vadd.s32 5, %v10416_v56  ;;  %v10419_v26 = vld [vmem:[#allocation84_spill] sm:$0xff]  ;;  %v1528_v23 = vadd.s32 10, %v10416_v56 }
 0x1ec   : > { %1115 = vperm.xlu2 %6736, %v1014_v40   ;;  %v10417_v40 = vld [vmem:[#allocation37_spill] sm:$0xff]  ;;  %vm1265_vm8 = vcmp.eq.s32.totalorder %v7559_v49, %v10419_v26  ;;  %v8005_v53 = vpop.permute.xlu0 %2160 }
 0x1ed   : > { %v7934_v63 = vpop.permute.xlu2 %1612  ;;  %v2537_v11 = vpack.c.bf16 %v2479_v13, %v2478_v24  ;;  %vm752_vm6 = vcmp.eq.s32.totalorder %v7559_v49, %v10417_v40  ;;  %v5970_v13 = vsel %vm1264_vm7, 1.0, %v6954_v61  ;;  %v5971_v24 = vsel %vm1265_vm8, 1.0, %v6954_v61 }
 0x1ee   : > { %vm1777_vm11 = vcmp.eq.s32.totalorder %v7559_v49, %v7934_v63  ;;  %v5906_v29 = vsel %vm752_vm6, 1.0, %v6954_v61 }
 0x1ef   : > { %6159 = vmatmul.msk.bf16.gmra.mxu0 %vm2580_vm9, %v2537_v11  ;;  %v1544_v11 = vadd.s32 10, %v10421_v19  ;;  %v6035_v63 = vsel %vm1777_vm11, 1.0, %v6954_v61 }
 0x1f1   : > { %6811 = vset.pattern.permute.xlu0 %v10384_v54  ;;  %6737 = vset.pattern.permute.xlu1 %v10398_v28  ;;  %v1239_v46 = vpop.permute.xlu1 %1238 }
 0x1f2   : > { %1157 = vperm.xlu0 %6811, %v1028_v18   ;;  %2853 = vperm.xlu1 %6737, %v6871_v30   ;;  %vm1311_vm15 = vcmp.eq.s32.totalorder %v7559_v49, %v1239_v46  ;;  %v5907_v46 = vsel %vm753_vm10, 1.0, %v6954_v61 }
 0x1f3   : > { %v6017_v7 = vsel %vm1311_vm15, 1.0, %v6954_v61  ;;  %v1457_v36 = vadd.f32 %v5971_v24, %v5907_v46 }
 0x1f4   : > { %6738 = vset.pattern.permute.xlu2 %v10398_v28  ;;  %v1503_v1 = vadd.f32 %v6017_v7, %v5953_v51  ;;  %v1242_v59 = vpop.permute.xlu0 %1241 }
 0x1f5   : > { %2858 = vperm.xlu2 %6738, %v6872_v62   ;;  %v1017_v62 = vadd.s32 5, %v10422_v27  ;;  %v1969_v3 = vadd.f32 %v6035_v63, %v1457_v36  ;;  %vm1312_vm15 = vcmp.eq.s32.totalorder %v7559_v49, %v1242_v59 }
 0x1f6   : > { %v7946_v0 = vpop.permute.xlu2 %2124 }
 0x1f7   : > { %vm2289_vm13 = vcmp.eq.s32.totalorder %v7559_v49, %v7946_v0 }
 0x1fa   : > { %1178 = vperm.xlu0 %6811, %v1035_v37   ;;  %6739 = vset.pattern.permute.xlu1 %v10381_v22  ;;  %v1751_v38 = vpop.permute.xlu1 %1750  ;;  %v1456_v37 = vadd.f32 %v5970_v13, %v5906_v29 }
 0x1fb   : > { %vm1823_vm5 = vcmp.eq.s32.totalorder %v7559_v49, %v1751_v38  ;;  %1627 = vperm.xlu1 %6739, %v1526_v43   ;;  %v6099_v43 = vsel %vm2289_vm13, 1.0, %v6954_v61  ;;  %v10423_v38 = vld [vmem:[#allocation21_spill] sm:$0xff] }
 0x1fc   : > { %v6081_v33 = vsel %vm1823_vm5, 1.0, %v6954_v61  ;;  %v2481_v2 = vadd.f32 %v6099_v43, %v1969_v3  ;;  %v10426_v43 = vld [vmem:[#allocation40_spill] sm:$0xff]  ;;  %v10428_v3 = vld [vmem:[#allocation85_spill] sm:$0xff] }
 0x1fd   : > { %v2015_v21 = vadd.f32 %v6081_v33, %v1503_v1  ;;  %6740 = vset.pattern.permute.xlu2 %v10381_v22  ;;  %vm755_vm7 = vcmp.eq.s32.totalorder %v7559_v49, %v10426_v43  ;;  %vm1266_vm10 = vcmp.eq.s32.totalorder %v7559_v49, %v10428_v3  ;;  %v10436_v3 = vld [vmem:[#allocation73_spill] sm:$0xff] }
 0x1fe   : > { %1630 = vperm.xlu2 %6740, %v1527_v39   ;;  %v1551_v39 = vadd.s32 10, %v10423_v38 }
 0x1ff   : > { %v2527_v16 = vadd.f32 %v6145_v14, %v2015_v21  ;;  %v7974_v32 = vpop.permute.xlu2 %1753  ;;  %v1529_v21 = vadd.s32 10, %v10422_v27  ;;  %v1019_v27 = vadd.s32 5, %v7127_v4 }
 0x200   : > { %vm1824_vm3 = vcmp.eq.s32.totalorder %v7559_v49, %v7974_v32 }
 0x201   : > { %v2561_v42 = vpack.c.bf16 %v2527_v16, %v2526_v34  ;;  %v10425_v34 = vld [vmem:[#allocation78_spill] sm:$0xff]  ;;  %v6082_v20 = vsel %vm1824_vm3, 1.0, %v6954_v61 }
 0x202   : > { %1187 = vperm.xlu0 %6811, %v1038_v55   ;;  %v1610_v57 = vpop.permute.xlu1 %1609  ;;  %v10424_v55 = vld [vmem:[#allocation77_spill] sm:$0xff]  ;;  %vm800_vm2 = vcmp.eq.s32.totalorder %v7559_v49, %v10425_v34 }
 0x203   : > { %6741 = vset.pattern.permute.xlu1 %v10373_v9  ;;  %6183 = vmatmul.msk.bf16.gmra.mxu1 %vm2580_vm9, %v2561_v42  ;;  %vm1776_vm12 = vcmp.eq.s32.totalorder %v7559_v49, %v1610_v57  ;;  %vm801_vm1 = vcmp.eq.s32.totalorder %v7559_v49, %v10424_v55  ;;  %v2040_v57 = vadd.s32 15, %v10416_v56  ;;  %v5954_v32 = vsel %vm800_vm2, 1.0, %v6954_v61 }
 0x204   : > { %2142 = vperm.xlu1 %6741, %v2039_v58   ;;  %v6034_v30 = vsel %vm1776_vm12, 1.0, %v6954_v61  ;;  %v6018_v58 = vsel %vm1312_vm15, 1.0, %v6954_v61  ;;  %v5955_v40 = vsel %vm801_vm1, 1.0, %v6954_v61  ;;  %v6147_v56 = vsel %vm2337_vm4, 1.0, %v6954_v61 }
 0x205   : > { %v1968_v7 = vadd.f32 %v6034_v30, %v1456_v37  ;;  %v1504_v52 = vadd.f32 %v6018_v58, %v5954_v32  ;;  %vm802_vm4 = vcmp.eq.s32.totalorder %v7559_v49, %v10436_v3 }
 0x206   : > { %6742 = vset.pattern.permute.xlu2 %v10384_v54 }
 0x207   : > { %1121 = vperm.xlu2 %6742, %v1016_v12   ;;  %v6874_v12 = vld [vmem:[%s7035_s27 + $0xb8] sm:$0xff] }
 0x208   : > { %v2266_v18 = vpop.permute.xlu2 %2265 }
 0x209   : > { %vm2336_vm5 = vcmp.eq.s32.totalorder %v7559_v49, %v2266_v18 }
 0x20a   : > { %6820 = vset.pattern.permute.xlu0 %v10381_v22  ;;  %v6146_v13 = vsel %vm2336_vm5, 1.0, %v6954_v61 }
 0x20b   : > { %1681 = vperm.xlu0 %6820, %v1544_v11   ;;  %v2122_v0 = vpop.permute.xlu1 %2121  ;;  %v2016_v11 = vadd.f32 %v6082_v20, %v1504_v52  ;;  %v6877_v20 = vld [vmem:[%s7035_s27 + $0x28] sm:$0xff] }
 0x20c   : > { %vm2288_vm14 = vcmp.eq.s32.totalorder %v7559_v49, %v2122_v0  ;;  %6743 = vset.pattern.permute.xlu1 %v10384_v54  ;;  %v10427_v0 = vld [vmem:[#allocation81_spill] sm:$0xff] }
 0x20d   : > { %v6098_v51 = vsel %vm2288_vm14, 1.0, %v6954_v61  ;;  %1124 = vperm.xlu1 %6743, %v1017_v62   ;;  %v2528_v46 = vadd.f32 %v6146_v13, %v2016_v11  ;;  %v6875_v62 = vld [vmem:[%s7035_s27 + $0xd0] sm:$0xff]  ;;  %vm1267_vm8 = vcmp.eq.s32.totalorder %v7559_v49, %v10427_v0  ;;  %v10432_v11 = vld [vmem:[#allocation29_spill] sm:$0xff]  ;;  %v6338_v0 = vld [vmem:[%s10222_s4 + $0x8] sm:$0xff] }
 0x20e   : > { %v2480_v50 = vadd.f32 %v6098_v51, %v1968_v7  ;;  %v10429_v7 = vld [vmem:[#allocation27_spill] sm:$0xff]  ;;  %v10430_v51 = vld [vmem:[#allocation26_spill] sm:$0xff]  ;;  %3457 = vmatpush.bf16.msrb.mxu1 %v6338_v0  ;;  %v6880_v0 = vld [vmem:[%s7035_s27 + $0x110] sm:$0xff] }
 0x20f   : > { %6744 = vset.pattern.permute.xlu2 %v10398_v28  ;;  %vm754_vm11 = vcmp.eq.s32.totalorder %v7559_v49, %v10429_v7  ;;  %v10437_v7 = vld [vmem:[#allocation30_spill] sm:$0xff] }
 0x210   : > { %2863 = vperm.xlu2 %6744, %v6873_v5   ;;  %v2538_v1 = vpack.c.bf16 %v2481_v2, %v2480_v50  ;;  %v2065_v2 = vadd.s32 15, %v10430_v51  ;;  %v5909_v50 = vsel %vm755_vm7, 1.0, %v6954_v61  ;;  %v5972_v5 = vsel %vm1266_vm10, 1.0, %v6954_v61 }
 0x211   : > { %v8014_v14 = vpop.permute.xlu2 %1618 }
 0x212   : > { %6160 = vmatmul.msk.bf16.gmra.mxu0 %vm2580_vm9, %v2538_v1  ;;  %vm1779_vm12 = vcmp.eq.s32.totalorder %v7559_v49, %v8014_v14  ;;  %v6876_v1 = vld [vmem:[%s7035_s27 + $0x20] sm:$0xff] }
 0x213   : > { %1702 = vperm.xlu0 %6820, %v1551_v39   ;;  %v5973_v39 = vsel %vm1267_vm8, 1.0, %v6954_v61  ;;  %v6037_v14 = vsel %vm1779_vm12, 1.0, %v6954_v61 }
 0x214   : > { %v1245_v33 = vpop.permute.xlu1 %1244 }
 0x215   : > { %6747 = vset.pattern.permute.xlu1 %v10381_v22  ;;  %vm1313_vm0 = vcmp.eq.s32.totalorder %v7559_v49, %v1245_v33 }
 0x216   : > { %1633 = vperm.xlu1 %6747, %v1528_v23   ;;  %v6019_v42 = vsel %vm1313_vm0, 1.0, %v6954_v61  ;;  %v5908_v23 = vsel %vm754_vm11, 1.0, %v6954_v61 }
 0x217   : > { %v1505_v29 = vadd.f32 %v6019_v42, %v5955_v40  ;;  %v1458_v55 = vadd.f32 %v5972_v5, %v5908_v23 }
 0x218   : > { %6748 = vset.pattern.permute.xlu2 %v10381_v22 }
 0x219   : > { %1636 = vperm.xlu2 %6748, %v1529_v21   ;;  %v1459_v21 = vadd.f32 %v5973_v39, %v5909_v50 }
 0x21a   : > { %v2131_v16 = vpop.permute.xlu2 %2130 }
 0x21b   : > { %6825 = vset.pattern.permute.xlu0 %v10398_v28  ;;  %vm2291_vm14 = vcmp.eq.s32.totalorder %v7559_v49, %v2131_v16  ;;  %v1971_v16 = vadd.f32 %v6037_v14, %v1459_v21  ;;  %v5956_v14 = vsel %vm802_vm4, 1.0, %v6954_v61 }
 0x21c   : > { %2968 = vperm.xlu0 %6825, %v6874_v12   ;;  %v6101_v34 = vsel %vm2291_vm14, 1.0, %v6954_v61  ;;  %v1530_v12 = vadd.s32 10, %v7130_v6 }
 0x21d   : > { %v1757_v26 = vpop.permute.xlu1 %1756  ;;  %v2483_v40 = vadd.f32 %v6101_v34, %v1971_v16 }
 0x21e   : > { %vm1825_vm6 = vcmp.eq.s32.totalorder %v7559_v49, %v1757_v26  ;;  %6749 = vset.pattern.permute.xlu1 %v10373_v9  ;;  %v10431_v26 = vld [vmem:[#allocation25_spill] sm:$0xff] }
 0x21f   : > { %v6083_v24 = vsel %vm1825_vm6, 1.0, %v6954_v61  ;;  %2145 = vperm.xlu1 %6749, %v2040_v57   ;;  %v1554_v52 = vadd.s32 10, %v10431_v26 }
 0x220   : > { %v2017_v18 = vadd.f32 %v6083_v24, %v1505_v29  ;;  %v2043_v24 = vadd.s32 15, %v7127_v4  ;;  %v10435_v4 = vld [vmem:[#allocation5_spill] sm:$0xff] }
 0x221   : > { %6750 = vset.pattern.permute.xlu2 %v10373_v9 }
 0x222   : > { %v2529_v63 = vadd.f32 %v6147_v56, %v2017_v18  ;;  %2148 = vperm.xlu2 %6750, %v2041_v41   ;;  %v2042_v56 = vadd.s32 15, %v7130_v6  ;;  %v1045_v18 = vadd.s32 5, %v10432_v11 }
 0x223   : > { %v8047_v30 = vpop.permute.xlu2 %1759 }
 0x224   : > { %2983 = vperm.xlu0 %6825, %v6875_v62   ;;  %v2562_v37 = vpack.c.bf16 %v2529_v63, %v2528_v46  ;;  %v1248_v63 = vpop.permute.xlu0 %1247  ;;  %v10433_v62 = vld [vmem:[#allocation6_spill] sm:$0xff]  ;;  %vm1826_vm5 = vcmp.eq.s32.totalorder %v7559_v49, %v8047_v30 }
 0x225   : > { %v1616_v36 = vpop.permute.xlu1 %1615  ;;  %vm1314_vm2 = vcmp.eq.s32.totalorder %v7559_v49, %v1248_v63  ;;  %v6084_v30 = vsel %vm1826_vm5, 1.0, %v6954_v61  ;;  %v2044_v63 = vadd.s32 15, %v10433_v62 }
 0x226   : > { %6184 = vmatmul.msk.bf16.gmra.mxu1 %vm2580_vm9, %v2562_v37  ;;  %vm1778_vm13 = vcmp.eq.s32.totalorder %v7559_v49, %v1616_v36  ;;  %v1020_v37 = vadd.s32 5, %v10433_v62  ;;  %v1021_v36 = vadd.s32 5, %v10435_v4  ;;  %v6020_v39 = vsel %vm1314_vm2, 1.0, %v6954_v61 }
 0x227   : > { %6751 = vset.pattern.permute.xlu1 %v10384_v54  ;;  %v6036_v33 = vsel %vm1778_vm13, 1.0, %v6954_v61  ;;  %v1506_v21 = vadd.f32 %v6020_v39, %v5956_v14  ;;  %vm1780_vm13 = vcmp.eq.s32.totalorder %v7559_v49, %v7655_v45 }
 0x228   : > { %1130 = vperm.xlu1 %6751, %v1019_v27   ;;  %v1970_v42 = vadd.f32 %v6036_v33, %v1458_v55  ;;  %v10434_v27 = vld [vmem:[#allocation79_spill] sm:$0xff]  ;;  %v6337_v33 = vld [vmem:[%s10222_s4] sm:$0xff] }
 0x229   : > { %vm803_vm1 = vcmp.eq.s32.totalorder %v7559_v49, %v10434_v27  ;;  %3458 = vmatpush.bf16.msrb.mxu1 %v6337_v33  ;;  %v2018_v16 = vadd.f32 %v6084_v30, %v1506_v21  ;;  %v10440_v30 = vld [vmem:[#allocation8_spill] sm:$0xff] }
 0x22a   : > { %6752 = vset.pattern.permute.xlu2 %v10398_v28  ;;  %v5957_v50 = vsel %vm803_vm1, 1.0, %v6954_v61  ;;  %v1023_v33 = vadd.s32 5, %v10440_v30  ;;  %vm3354_vm1 = vcmask 261120  }
 0x22b   : > { %2873 = vperm.xlu2 %6752, %v6876_v1  }
 0x22c   : > { %v8074_v59 = vpop.permute.xlu2 %1109  ;;  %6834 = vset.pattern.permute.xlu0 %v10373_v9 }
 0x22d   : > { %2220 = vperm.xlu0 %6834, %v2065_v2   ;;  %v2068_v2 = vadd.s32 15, %v10437_v7  ;;  %vm1268_vm8 = vcmp.eq.s32.totalorder %v7559_v49, %v8074_v59 }
 0x22e   : > { %v2128_v58 = vpop.permute.xlu1 %2127 }
 0x22f   : > { %vm2290_vm15 = vcmp.eq.s32.totalorder %v7559_v49, %v2128_v58 }
 0x230   : > { %v6100_v57 = vsel %vm2290_vm15, 1.0, %v6954_v61  ;;  %6753 = vset.pattern.permute.xlu1 %v10398_v28 }
 0x231   : > { %v2482_v32 = vadd.f32 %v6100_v57, %v1970_v42  ;;  %2878 = vperm.xlu1 %6753, %v6877_v20   ;;  %v1532_v57 = vadd.s32 10, %v10433_v62 }
 0x233   : > { %6754 = vset.pattern.permute.xlu2 %v10381_v22  ;;  %v2539_v29 = vpack.c.bf16 %v2483_v40, %v2482_v32  ;;  %v6878_v32 = vld [vmem:[%s7035_s27 + $0x38] sm:$0xff] }
 0x234   : > { %1639 = vperm.xlu2 %6754, %v1530_v12  }
 0x235   : > { %v2275_v41 = vpop.permute.xlu2 %2274  ;;  %6839 = vset.pattern.permute.xlu0 %v10381_v22  ;;  %6161 = vmatmul.msk.bf16.gmra.mxu0 %vm2580_vm9, %v2539_v29  ;;  %v1113_v29 = vpop.permute.xlu0 %1112 }
 0x236   : > { %1711 = vperm.xlu0 %6839, %v1554_v52   ;;  %vm2339_vm6 = vcmp.eq.s32.totalorder %v7559_v49, %v2275_v41  ;;  %v6879_v41 = vld [vmem:[%s7035_s27 + $0x108] sm:$0xff]  ;;  %vm1269_vm11 = vcmp.eq.s32.totalorder %v7559_v49, %v1113_v29 }
 0x237   : > { %v1251_v13 = vpop.permute.xlu1 %1250  ;;  %v6149_v34 = vsel %vm2339_vm6, 1.0, %v6954_v61  ;;  %v5975_v27 = vsel %vm1269_vm11, 1.0, %v6954_v61 }
 0x238   : > { %vm1315_vm0 = vcmp.eq.s32.totalorder %v7559_v49, %v1251_v13  ;;  %v2690_v13 = vpop.f32.mrf.mxu0 }
 0x239   : > { %6755 = vset.pattern.permute.xlu1 %v10373_v9  ;;  %v6021_v43 = vsel %vm1315_vm0, 1.0, %v6954_v61 }
 0x23a   : > { %2151 = vperm.xlu1 %6755, %v2042_v56   ;;  %v1507_v1 = vadd.f32 %v6021_v43, %v5957_v50  ;;  %v1533_v56 = vadd.s32 10, %v10435_v4  ;;  %v6038_v43 = vsel %vm1780_vm13, 1.0, %v6954_v61 }
 0x23c   : > { %6756 = vset.pattern.permute.xlu2 %v10373_v9 }
 0x23d   : > { %2154 = vperm.xlu2 %6756, %v2043_v24   ;;  %v8092_v46 = vpop.permute.xlu2 %2133 }
 0x23e   : > { %6844 = vset.pattern.permute.xlu0 %v10384_v54  ;;  %vm2292_vm15 = vcmp.eq.s32.totalorder %v7559_v49, %v8092_v46 }
 0x23f   : > { %1208 = vperm.xlu0 %6844, %v1045_v18   ;;  %v10438_v18 = vld [vmem:[#allocation39_spill] sm:$0xff]  ;;  %v6102_v50 = vsel %vm2292_vm15, 1.0, %v6954_v61 }
 0x240   : > { %v1763_v6 = vpop.permute.xlu1 %1762  ;;  %vm756_vm10 = vcmp.eq.s32.totalorder %v7559_v49, %v10438_v18  ;;  %v6882_v18 = vld [vmem:[%s7035_s27 + $0x40] sm:$0xff] }
 0x241   : > { %vm1827_vm3 = vcmp.eq.s32.totalorder %v7559_v49, %v1763_v6  ;;  %v10439_v6 = vld [vmem:[#allocation31_spill] sm:$0xff]  ;;  %v5910_v59 = vsel %vm756_vm10, 1.0, %v6954_v61 }
 0x242   : > { %6757 = vset.pattern.permute.xlu1 %v10384_v54  ;;  %v6085_v5 = vsel %vm1827_vm3, 1.0, %v6954_v61  ;;  %vm757_vm12 = vcmp.eq.s32.totalorder %v7559_v49, %v10439_v6  ;;  %v1119_v6 = vpop.permute.xlu0 %1118 }
 0x243   : > { %1133 = vperm.xlu1 %6757, %v1020_v37   ;;  %v2019_v55 = vadd.f32 %v6085_v5, %v1507_v1  ;;  %v5974_v37 = vsel %vm1268_vm8, 1.0, %v6954_v61  ;;  %v2692_v5 = vpop.f32.mrf.mxu0  ;;  %vm1271_vm4 = vcmp.eq.s32.totalorder %v7559_v49, %v1119_v6  ;;  %vm2294_vm8 = vcmp.eq.s32.totalorder %v7559_v49, %v7977_v60 }
 0x244   : > { %v1460_v4 = vadd.f32 %v5974_v37, %v5910_v59  ;;  %v6884_v37 = vld [vmem:[%s7035_s27 + $0x48] sm:$0xff]  ;;  %v1535_v59 = vadd.s32 10, %v10440_v30 }
 0x245   : > { %6758 = vset.pattern.permute.xlu2 %v10384_v54  ;;  %v2531_v12 = vadd.f32 %v6149_v34, %v2019_v55 }
 0x246   : > { %1136 = vperm.xlu2 %6758, %v1021_v36   ;;  %v8117_v23 = vpop.permute.xlu2 %1115  ;;  %v5911_v36 = vsel %vm757_vm12, 1.0, %v6954_v61  ;;  %v1972_v46 = vadd.f32 %v6038_v43, %v1460_v4  ;;  %v10441_v4 = vld [vmem:[#allocation43_spill] sm:$0xff] }
 0x247   : > { %6849 = vset.pattern.permute.xlu0 %v10373_v9  ;;  %v1461_v3 = vadd.f32 %v5975_v27, %v5911_v36  ;;  %vm1270_vm2 = vcmp.eq.s32.totalorder %v7559_v49, %v8117_v23  ;;  %vm758_vm3 = vcmp.eq.s32.totalorder %v7559_v49, %v10441_v4  ;;  %v2046_v36 = vadd.s32 15, %v7139_v25 }
 0x248   : > { %2229 = vperm.xlu0 %6849, %v2068_v2   ;;  %v1022_v2 = vadd.s32 5, %v7139_v25  ;;  %v2484_v21 = vadd.f32 %v6102_v50, %v1972_v46  ;;  %v5977_v25 = vsel %vm1271_vm4, 1.0, %v6954_v61  ;;  %v1536_v4 = vadd.s32 10, %v10402_v15 }
 0x249   : > { %v2272_v58 = vpop.permute.xlu1 %2271 }
 0x24a   : > { %vm2338_vm7 = vcmp.eq.s32.totalorder %v7559_v49, %v2272_v58  ;;  %v8170_v58 = vld [vmem:[%s10220_s2] ss:$0 sm:$0xff] }
 0x24b   : > { %v6148_v42 = vsel %vm2338_vm7, 1.0, %v6954_v61  ;;  %6759 = vset.pattern.permute.xlu1 %v10398_v28  ;;  %v3177_v50 = vmul.f32 %v8170_v58, %v7668_v17 }
 0x24c   : > { %v2530_v40 = vadd.f32 %v6148_v42, %v2018_v16  ;;  %2888 = vperm.xlu1 %6759, %v6878_v32   ;;  %v8175_v16 = vld [vmem:[%s10221_s3] ss:$0 sm:$0xff] }
 0x24d   : > { %v2691_v32 = vadd.f32 %v8175_v16, %v2690_v13 }
 0x24e   : > { %6760 = vset.pattern.permute.xlu2 %v10381_v22  ;;  %v2563_v20 = vpack.c.bf16 %v2531_v12, %v2530_v40 }
 0x24f   : > { %1645 = vperm.xlu2 %6760, %v1532_v57   ;;  %v2859_v52 = vpop.permute.xlu2 %2858  ;;  %v6881_v57 = vld [vmem:[%s7035_s27 + $0x128] sm:$0xff] }
 0x250   : > { %6854 = vset.pattern.permute.xlu0 %v10398_v28  ;;  %6185 = vmatmul.msk.bf16.gmra.mxu1 %vm2580_vm9, %v2563_v20  ;;  %v3175_v12 = vmul.f32 %v8170_v58, %v2859_v52  ;;  %v2693_v20 = vadd.f32 %v8175_v16, %v2692_v5  ;;  %v6883_v52 = vld [vmem:[%s7035_s27 + $0x140] sm:$0xff] }
 0x251   : > { %3018 = vperm.xlu0 %6854, %v6879_v41   ;;  %v2695_v41 = vpop.f32.mrf.mxu0 }
 0x252   : > { %v1625_v24 = vpop.permute.xlu1 %1624  ;;  %v2696_v5 = vadd.f32 %v8175_v16, %v2695_v41 }
 0x253   : > { %vm1781_vm14 = vcmp.eq.s32.totalorder %v7559_v49, %v1625_v24 }
 0x254   : > { %6761 = vset.pattern.permute.xlu1 %v10381_v22  ;;  %v6039_v45 = vsel %vm1781_vm14, 1.0, %v6954_v61 }
 0x255   : > { %1648 = vperm.xlu1 %6761, %v1533_v56   ;;  %v1973_v1 = vadd.f32 %v6039_v45, %v1461_v3  ;;  %v3239_v56 = vadd.f32 %v3175_v12, %v2693_v20  ;;  %v5976_v45 = vsel %vm1270_vm2, 1.0, %v6954_v61  ;;  %v6885_v3 = vld [vmem:[%s7035_s27 + $0x158] sm:$0xff] }
 0x257   : > { %6762 = vset.pattern.permute.xlu2 %v10373_v9 }
 0x258   : > { %2157 = vperm.xlu2 %6762, %v2044_v63   ;;  %v8154_v62 = vpop.permute.xlu2 %1630 }
 0x259   : > { %3023 = vperm.xlu0 %6854, %v6880_v0   ;;  %v2697_v43 = vpop.f32.mrf.mxu0  ;;  %v10442_v0 = vld [vmem:[#allocation42_spill] sm:$0xff]  ;;  %vm1783_vm7 = vcmp.eq.s32.totalorder %v7559_v49, %v8154_v62  ;;  %v1024_v62 = vadd.s32 5, %v10402_v15  ;;  %v8258_v15 = vpop.permute.xlu0 %1127 }
 0x25a   : > { %vm759_vm6 = vcmp.eq.s32.totalorder %v7559_v49, %v10442_v0  ;;  %v2698_v46 = vadd.f32 %v8175_v16, %v2697_v43  ;;  %v6890_v0 = vld [vmem:[%s7035_s27 + $0x1a0] sm:$0xff] }
 0x25b   : > { %v2137_v39 = vpop.permute.xlu1 %2136  ;;  %v5913_v17 = vsel %vm759_vm6, 1.0, %v6954_v61  ;;  %vm1274_vm6 = vcmp.eq.s32.totalorder %v7559_v49, %v8258_v15 }
 0x25c   : > { %vm2293_vm0 = vcmp.eq.s32.totalorder %v7559_v49, %v2137_v39 }
 0x25d   : > { %v6103_v14 = vsel %vm2293_vm0, 1.0, %v6954_v61  ;;  %6764 = vset.pattern.permute.xlu1 %v10384_v54 }
 0x25e   : > { %v2485_v55 = vadd.f32 %v6103_v14, %v1973_v1  ;;  %1139 = vperm.xlu1 %6764, %v1022_v2   ;;  %v5912_v2 = vsel %vm758_vm3, 1.0, %v6954_v61 }
 0x25f   : > { %v1462_v1 = vadd.f32 %v5976_v45, %v5912_v2  ;;  %v10444_v2 = vld [vmem:[#allocation33_spill] sm:$0xff] }
 0x260   : > { %6765 = vset.pattern.permute.xlu2 %v10384_v54  ;;  %v2540_v34 = vpack.c.bf16 %v2485_v55, %v2484_v21  ;;  %v1463_v21 = vadd.f32 %v5977_v25, %v5913_v17  ;;  %vm760_vm15 = vcmp.eq.s32.totalorder %v7559_v49, %v10444_v2 }
 0x261   : > { %1142 = vperm.xlu2 %6765, %v1023_v33   ;;  %v8177_v42 = vpop.permute.xlu2 %1121  ;;  %3038 = vperm.xlu0 %6854, %v6881_v57   ;;  %v6041_v33 = vsel %vm1783_vm7, 1.0, %v6954_v61  ;;  %v6104_v57 = vsel %vm2294_vm8, 1.0, %v6954_v61 }
 0x262   : > { %6162 = vmatmul.msk.bf16.gmra.mxu0 %vm2580_vm9, %v2540_v34  ;;  %v2047_v34 = vadd.s32 15, %v10440_v30  ;;  %vm1272_vm13 = vcmp.eq.s32.totalorder %v7559_v49, %v8177_v42 }
 0x263   : > { %v5978_v42 = vsel %vm1272_vm13, 1.0, %v6954_v61 }
 0x264   : > { %v2854_v40 = vpop.permute.xlu1 %2853 }
 0x265   : > { %v3174_v29 = vmul.f32 %v8170_v58, %v2854_v40  ;;  %v3241_v40 = vadd.f32 %v3177_v50, %v2698_v46 }
 0x266   : > { %6766 = vset.pattern.permute.xlu1 %v10398_v28 }
 0x267   : > { %v3238_v24 = vadd.f32 %v3174_v29, %v2691_v32  ;;  %2893 = vperm.xlu1 %6766, %v6882_v18   ;;  %v1975_v32 = vadd.f32 %v6041_v33, %v1463_v21  ;;  %v2049_v33 = vadd.s32 15, %v7151_v48 }
 0x269   : > { %v3302_v63 = vpack.c.bf16 %v3239_v56, %v3238_v24  ;;  %6767 = vset.pattern.permute.xlu2 %v10398_v28  ;;  %3053 = vperm.xlu0 %6854, %v6883_v52   ;;  %v6886_v56 = vld [vmem:[%s7035_s27 + $0x170] sm:$0xff]  ;;  %v8232_v24 = vpop.f32.mrf.mxu1 }
 0x26a   : > { %2898 = vperm.xlu2 %6767, %v6884_v37   ;;  %v2864_v13 = vpop.permute.xlu2 %2863  ;;  %v6887_v37 = vld [vmem:[%s7035_s27 + $0x188] sm:$0xff] }
 0x26b   : > { %6194 = vmatmul.msk.bf16.vlgmr.msrb.gmra.mxu1 %vm3354_vm1, %v3302_v63  ;;  %v3176_v23 = vmul.f32 %v8170_v58, %v2864_v13  ;;  %v6888_v13 = vld [vmem:[%s7035_s27 + $0x50] sm:$0xff] }
 0x26d   : > { %v1628_v27 = vpop.permute.xlu1 %1627  ;;  %v3240_v60 = vadd.f32 %v3176_v23, %v2696_v5  ;;  %v1537_v23 = vadd.s32 10, %v7151_v48  ;;  %v5914_v5 = vsel %vm760_vm15, 1.0, %v6954_v61 }
 0x26e   : > { %vm1782_vm5 = vcmp.eq.s32.totalorder %v7559_v49, %v1628_v27 }
 0x26f   : > { %6768 = vset.pattern.permute.xlu1 %v10381_v22  ;;  %v6040_v39 = vsel %vm1782_vm5, 1.0, %v6954_v61  ;;  %v3303_v30 = vpack.c.bf16 %v3241_v40, %v3240_v60  ;;  %v6891_v60 = vld [vmem:[%s7035_s27 + $0x1b8] sm:$0xff] }
 0x270   : > { %1654 = vperm.xlu1 %6768, %v1535_v59   ;;  %v1974_v55 = vadd.f32 %v6040_v39, %v1462_v1  ;;  %v6889_v59 = vld [vmem:[%s7035_s27 + $0x58] sm:$0xff] }
 0x271   : > { %3068 = vperm.xlu0 %6854, %v6885_v3   ;;  %v8240_v6 = vpop.f32.mrf.mxu1 }
 0x272   : > { %6769 = vset.pattern.permute.xlu2 %v10373_v9  ;;  %v2486_v29 = vadd.f32 %v6104_v57, %v1974_v55 }
 0x273   : > { %2163 = vperm.xlu2 %6769, %v2046_v36   ;;  %v1637_v14 = vpop.permute.xlu2 %1636  ;;  %v10443_v36 = vld [vmem:[#allocation46_spill] sm:$0xff] }
 0x274   : > { %vm761_vm12 = vcmp.eq.s32.totalorder %v7559_v49, %v10443_v36  ;;  %vm1785_vm14 = vcmp.eq.s32.totalorder %v7559_v49, %v1637_v14  ;;  %v1464_v14 = vadd.f32 %v5978_v42, %v5914_v5 }
 0x275   : > { %v5915_v3 = vsel %vm761_vm12, 1.0, %v6954_v61  ;;  %v6043_v25 = vsel %vm1785_vm14, 1.0, %v6954_v61 }
 0x276   : > { %v2143_v12 = vpop.permute.xlu1 %2142 }
 0x277   : > { %vm2295_vm10 = vcmp.eq.s32.totalorder %v7559_v49, %v2143_v12  ;;  %v10445_v12 = vld [vmem:[#allocation11_spill] sm:$0xff] }
 0x278   : > { %v6105_v20 = vsel %vm2295_vm10, 1.0, %v6954_v61  ;;  %6770 = vset.pattern.permute.xlu1 %v10373_v9  ;;  %v1026_v40 = vadd.s32 5, %v10445_v12 }
 0x279   : > { %v2487_v41 = vadd.f32 %v6105_v20, %v1975_v32  ;;  %3083 = vperm.xlu0 %6854, %v6886_v56   ;;  %2166 = vperm.xlu1 %6770, %v2047_v34   ;;  %v8266_v39 = vpop.f32.mrf.mxu1 }
 0x27b   : > { %6771 = vset.pattern.permute.xlu2 %v10384_v54  ;;  %6195 = vmatmul.msk.bf16.gmra.mxu1 %vm3354_vm1, %v3303_v30  ;;  %v2541_v18 = vpack.c.bf16 %v2487_v41, %v2486_v29  ;;  %v2700_v29 = vpop.f32.mrf.mxu0  ;;  %v6892_v30 = vld [vmem:[%s7035_s27 + $0x1d0] sm:$0xff] }
 0x27c   : > { %1145 = vperm.xlu2 %6771, %v1024_v62   ;;  %v2149_v63 = vpop.permute.xlu2 %2148  ;;  %v8280_v62 = vpop.permute.xlu0 %1148  ;;  %v2701_v2 = vadd.f32 %v8175_v16, %v2700_v29 }
 0x27d   : > { %6163 = vmatmul.msk.bf16.gmra.mxu0 %vm2580_vm9, %v2541_v18  ;;  %vm2297_vm2 = vcmp.eq.s32.totalorder %v7559_v49, %v2149_v63  ;;  %v10446_v18 = vld [vmem:[#allocation10_spill] sm:$0xff] }
 0x27e   : > { %v6107_v21 = vsel %vm2297_vm2, 1.0, %v6954_v61  ;;  %v1027_v63 = vadd.s32 5, %v10446_v18 }
 0x27f   : > { %v1125_v52 = vpop.permute.xlu1 %1124 }
 0x280   : > { %vm1273_vm11 = vcmp.eq.s32.totalorder %v7559_v49, %v1125_v52 }
 0x281   : > { %3098 = vperm.xlu0 %6854, %v6887_v37   ;;  %6773 = vset.pattern.permute.xlu1 %v10398_v28  ;;  %v5979_v45 = vsel %vm1273_vm11, 1.0, %v6954_v61  ;;  %v8283_v56 = vpop.f32.mrf.mxu1 }
 0x282   : > { %2903 = vperm.xlu1 %6773, %v6888_v13   ;;  %v1465_v50 = vadd.f32 %v5979_v45, %v5915_v3 }
 0x284   : > { %6774 = vset.pattern.permute.xlu2 %v10398_v28  ;;  %v1977_v17 = vadd.f32 %v6043_v25, %v1465_v50  ;;  %v1643_v37 = vpop.permute.xlu0 %1642 }
 0x285   : > { %2908 = vperm.xlu2 %6774, %v6889_v59   ;;  %v8244_v27 = vpop.permute.xlu2 %2873  ;;  %v6893_v59 = vld [vmem:[%s7035_s27 + $0x60] sm:$0xff]  ;;  %vm1787_vm7 = vcmp.eq.s32.totalorder %v7559_v49, %v1643_v37 }
 0x286   : > { %v2489_v20 = vadd.f32 %v6107_v21, %v1977_v17  ;;  %v3178_v45 = vmul.f32 %v8170_v58, %v8244_v27  ;;  %v1539_v27 = vadd.s32 10, %v10446_v18  ;;  %v10448_v17 = vld [vmem:[#allocation45_spill] sm:$0xff]  ;;  %v5980_v21 = vsel %vm1274_vm6, 1.0, %v6954_v61 }
 0x287   : > { %vm762_vm8 = vcmp.eq.s32.totalorder %v7559_v49, %v10448_v17 }
 0x288   : > { %v1634_v43 = vpop.permute.xlu1 %1633 }
 0x289   : > { %3113 = vperm.xlu0 %6854, %v6890_v0   ;;  %vm1784_vm0 = vcmp.eq.s32.totalorder %v7559_v49, %v1634_v43  ;;  %v8290_v13 = vpop.f32.mrf.mxu1  ;;  %v6894_v43 = vld [vmem:[%s7035_s27 + $0x1e8] sm:$0xff]  ;;  %v1538_v0 = vadd.s32 10, %v10445_v12 }
 0x28a   : > { %6775 = vset.pattern.permute.xlu1 %v10381_v22  ;;  %v6042_v46 = vsel %vm1784_vm0, 1.0, %v6954_v61 }
 0x28b   : > { %1657 = vperm.xlu1 %6775, %v1536_v4   ;;  %v1976_v34 = vadd.f32 %v6042_v46, %v1464_v14  ;;  %v2702_v4 = vpop.f32.mrf.mxu0  ;;  %v3242_v46 = vadd.f32 %v3178_v45, %v2701_v2  ;;  %v6895_v2 = vld [vmem:[%s7035_s27 + $0x70] sm:$0xff] }
 0x28c   : > { %v2703_v50 = vadd.f32 %v8175_v16, %v2702_v4 }
 0x28d   : > { %6776 = vset.pattern.permute.xlu2 %v10381_v22 }
 0x28e   : > { %1660 = vperm.xlu2 %6776, %v1537_v23   ;;  %v8271_v1 = vpop.permute.xlu2 %1639  ;;  %v10447_v23 = vld [vmem:[#allocation35_spill] sm:$0xff] }
 0x28f   : > { %vm763_vm5 = vcmp.eq.s32.totalorder %v7559_v49, %v10447_v23  ;;  %vm1786_vm10 = vcmp.eq.s32.totalorder %v7559_v49, %v8271_v1  ;;  %v1029_v23 = vadd.s32 5, %v7180_v44 }
 0x290   : > { %v5917_v5 = vsel %vm763_vm5, 1.0, %v6954_v61 }
 0x291   : > { %3128 = vperm.xlu0 %6854, %v6891_v60   ;;  %v2146_v55 = vpop.permute.xlu1 %2145  ;;  %v6045_v60 = vsel %vm1787_vm7, 1.0, %v6954_v61 }
 0x292   : > { %vm2296_vm3 = vcmp.eq.s32.totalorder %v7559_v49, %v2146_v55 }
 0x293   : > { %v6106_v57 = vsel %vm2296_vm3, 1.0, %v6954_v61  ;;  %6777 = vset.pattern.permute.xlu1 %v10373_v9  ;;  %vm2301_vm3 = vcmp.eq.s32.totalorder %v7559_v49, %v8005_v53  ;;  %v2053_v53 = vadd.s32 15, %v7180_v44  ;;  %v1031_v44 = vadd.s32 5, %v10403_v8 }
 0x294   : > { %v2488_v32 = vadd.f32 %v6106_v57, %v1976_v34  ;;  %2172 = vperm.xlu1 %6777, %v2049_v33   ;;  %v8314_v33 = vpop.permute.xlu0 %1651  ;;  %v5916_v57 = vsel %vm762_vm8, 1.0, %v6954_v61 }
 0x295   : > { %v1466_v1 = vadd.f32 %v5980_v21, %v5916_v57  ;;  %v1540_v21 = vadd.s32 10, %v10410_v10  ;;  %vm1790_vm8 = vcmp.eq.s32.totalorder %v7559_v49, %v8314_v33 }
 0x296   : > { %6778 = vset.pattern.permute.xlu2 %v10384_v54  ;;  %v2542_v48 = vpack.c.bf16 %v2489_v20, %v2488_v32  ;;  %v6044_v32 = vsel %vm1786_vm10, 1.0, %v6954_v61 }
 0x297   : > { %1151 = vperm.xlu2 %6778, %v1026_v40   ;;  %v2155_v41 = vpop.permute.xlu2 %2154  ;;  %v8323_v40 = vpop.f32.mrf.mxu1 }
 0x298   : > { %6164 = vmatmul.msk.bf16.gmra.mxu0 %vm2580_vm9, %v2542_v48  ;;  %vm2299_vm11 = vcmp.eq.s32.totalorder %v7559_v49, %v2155_v41  ;;  %v2050_v48 = vadd.s32 15, %v10445_v12 }
 0x299   : > { %3143 = vperm.xlu0 %6854, %v6892_v30   ;;  %v6109_v29 = vsel %vm2299_vm11, 1.0, %v6954_v61 }
 0x29a   : > { %v1131_v52 = vpop.permute.xlu1 %1130 }
 0x29b   : > { %vm1275_vm4 = vcmp.eq.s32.totalorder %v7559_v49, %v1131_v52  ;;  %v2051_v52 = vadd.s32 15, %v10446_v18 }
 0x29c   : > { %6779 = vset.pattern.permute.xlu1 %v10384_v54  ;;  %v5981_v42 = vsel %vm1275_vm4, 1.0, %v6954_v61  ;;  %v8333_v4 = vpop.permute.xlu0 %1672 }
 0x29d   : > { %1154 = vperm.xlu1 %6779, %v1027_v63   ;;  %v1467_v15 = vadd.f32 %v5981_v42, %v5917_v5  ;;  %v1978_v63 = vadd.f32 %v6044_v32, %v1466_v1  ;;  %v6896_v32 = vld [vmem:[%s7035_s27 + $0x78] sm:$0xff] }
 0x29f   : > { %6780 = vset.pattern.permute.xlu2 %v10398_v28  ;;  %v1979_v20 = vadd.f32 %v6045_v60, %v1467_v15  ;;  %v8336_v45 = vpop.f32.mrf.mxu1  ;;  %v10449_v15 = vld [vmem:[#allocation49_spill] sm:$0xff] }
 0x2a0   : > { %2913 = vperm.xlu2 %6780, %v6893_v59   ;;  %v8294_v36 = vpop.permute.xlu2 %1136  ;;  %vm764_vm14 = vcmp.eq.s32.totalorder %v7559_v49, %v10449_v15 }
 0x2a1   : > { %3158 = vperm.xlu0 %6854, %v6894_v43   ;;  %v2491_v59 = vadd.f32 %v6109_v29, %v1979_v20  ;;  %v2705_v43 = vpop.f32.mrf.mxu0  ;;  %vm1277_vm15 = vcmp.eq.s32.totalorder %v7559_v49, %v8294_v36  ;;  %v5918_v1 = vsel %vm764_vm14, 1.0, %v6954_v61  ;;  %v2052_v36 = vadd.s32 15, %v10410_v10 }
 0x2a2   : > { %v2706_v5 = vadd.f32 %v8175_v16, %v2705_v43 }
 0x2a3   : > { %v2879_v3 = vpop.permute.xlu1 %2878 }
 0x2a4   : > { %v3179_v25 = vmul.f32 %v8170_v58, %v2879_v3  ;;  %v2884_v18 = vpop.permute.xlu0 %2883 }
 0x2a5   : > { %6781 = vset.pattern.permute.xlu1 %v10381_v22 }
 0x2a6   : > { %v3243_v14 = vadd.f32 %v3179_v25, %v2703_v50  ;;  %1663 = vperm.xlu1 %6781, %v1538_v0  }
 0x2a7   : > { %v8345_v25 = vpop.f32.mrf.mxu1 }
 0x2a8   : > { %6782 = vset.pattern.permute.xlu2 %v10381_v22  ;;  %v3304_v55 = vpack.c.bf16 %v3243_v14, %v3242_v46 }
 0x2a9   : > { %1666 = vperm.xlu2 %6782, %v1539_v27   ;;  %v1646_v34 = vpop.permute.xlu2 %1645  ;;  %v2707_v42 = vpop.f32.mrf.mxu0  ;;  %v3180_v27 = vmul.f32 %v8170_v58, %v2884_v18 }
 0x2aa   : > { %6196 = vmatmul.msk.bf16.gmra.mxu1 %vm3354_vm1, %v3304_v55  ;;  %v2708_v14 = vadd.f32 %v8175_v16, %v2707_v42  ;;  %vm1788_vm0 = vcmp.eq.s32.totalorder %v7559_v49, %v1646_v34 }
 0x2ab   : > { %v3244_v60 = vadd.f32 %v3180_v27, %v2706_v5 }
 0x2ac   : > { %v2152_v30 = vpop.permute.xlu1 %2151 }
 0x2ad   : > { %vm2298_vm12 = vcmp.eq.s32.totalorder %v7559_v49, %v2152_v30 }
 0x2ae   : > { %v6108_v41 = vsel %vm2298_vm12, 1.0, %v6954_v61  ;;  %6783 = vset.pattern.permute.xlu1 %v10373_v9 }
 0x2af   : > { %v2490_v37 = vadd.f32 %v6108_v41, %v1978_v63  ;;  %2175 = vperm.xlu1 %6783, %v2050_v48   ;;  %v10450_v48 = vld [vmem:[#allocation48_spill] sm:$0xff]  ;;  %v8365_v29 = vpop.f32.mrf.mxu1  ;;  %v5983_v63 = vsel %vm1277_vm15, 1.0, %v6954_v61  ;;  %v6046_v41 = vsel %vm1788_vm0, 1.0, %v6954_v61 }
 0x2b0   : > { %vm765_vm2 = vcmp.eq.s32.totalorder %v7559_v49, %v10450_v48 }
 0x2b1   : > { %6784 = vset.pattern.permute.xlu2 %v10373_v9  ;;  %v2543_v12 = vpack.c.bf16 %v2491_v59, %v2490_v37  ;;  %v5919_v34 = vsel %vm765_vm2, 1.0, %v6954_v61  ;;  %vm1281_vm2 = vcmp.eq.s32.totalorder %v7559_v49, %v8280_v62 }
 0x2b2   : > { %2178 = vperm.xlu2 %6784, %v2051_v52   ;;  %v2158_v0 = vpop.permute.xlu2 %2157  ;;  %v1469_v59 = vadd.f32 %v5983_v63, %v5919_v34 }
 0x2b3   : > { %6165 = vmatmul.msk.bf16.gmra.mxu0 %vm2580_vm9, %v2543_v12  ;;  %vm2300_vm4 = vcmp.eq.s32.totalorder %v7559_v49, %v2158_v0  ;;  %v6111_v12 = vsel %vm2301_vm3, 1.0, %v6954_v61 }
 0x2b5   : > { %v1134_v3 = vpop.permute.xlu1 %1133 }
 0x2b6   : > { %vm1276_vm13 = vcmp.eq.s32.totalorder %v7559_v49, %v1134_v3 }
 0x2b7   : > { %6785 = vset.pattern.permute.xlu1 %v10384_v54  ;;  %v5982_v55 = vsel %vm1276_vm13, 1.0, %v6954_v61  ;;  %v8382_v27 = vpop.f32.mrf.mxu1 }
 0x2b8   : > { %1160 = vperm.xlu1 %6785, %v1029_v23   ;;  %v1468_v30 = vadd.f32 %v5982_v55, %v5918_v1  ;;  %v6110_v23 = vsel %vm2300_vm4, 1.0, %v6954_v61 }
 0x2ba   : > { %6786 = vset.pattern.permute.xlu2 %v10398_v28  ;;  %v1980_v43 = vadd.f32 %v6046_v41, %v1468_v30  ;;  %v6897_v41 = vld [vmem:[%s7035_s27 + $0x88] sm:$0xff] }
 0x2bb   : > { %2923 = vperm.xlu2 %6786, %v6895_v2   ;;  %v8343_v50 = vpop.permute.xlu2 %1142  ;;  %v2710_v2 = vpop.f32.mrf.mxu0 }
 0x2bc   : > { %v2492_v10 = vadd.f32 %v6110_v23, %v1980_v43  ;;  %vm1279_vm10 = vcmp.eq.s32.totalorder %v7559_v49, %v8343_v50  ;;  %v6048_v50 = vsel %vm1790_vm8, 1.0, %v6954_v61 }
 0x2be   : > { %v2889_v46 = vpop.permute.xlu1 %2888 }
 0x2bf   : > { %v3181_v17 = vmul.f32 %v8170_v58, %v2889_v46  ;;  %v10451_v46 = vld [vmem:[#allocation13_spill] sm:$0xff] }
 0x2c0   : > { %6787 = vset.pattern.permute.xlu1 %v10398_v28  ;;  %v1542_v48 = vadd.s32 10, %v10451_v46 }
 0x2c1   : > { %v3245_v57 = vadd.f32 %v3181_v17, %v2708_v14  ;;  %2928 = vperm.xlu1 %6787, %v6896_v32   ;;  %v1030_v14 = vadd.s32 5, %v10451_v46  ;;  %v2711_v32 = vadd.f32 %v8175_v16, %v2710_v2 }
 0x2c3   : > { %6788 = vset.pattern.permute.xlu2 %v10381_v22  ;;  %v3305_v20 = vpack.c.bf16 %v3245_v57, %v3244_v60  ;;  %v2712_v60 = vpop.f32.mrf.mxu0 }
 0x2c4   : > { %1669 = vperm.xlu2 %6788, %v1540_v21   ;;  %v2899_v52 = vpop.permute.xlu2 %2898  ;;  %v2713_v1 = vadd.f32 %v8175_v16, %v2712_v60  ;;  %v1032_v60 = vadd.s32 5, %v10421_v19 }
 0x2c5   : > { %6197 = vmatmul.msk.bf16.gmra.mxu1 %vm3354_vm1, %v3305_v20  ;;  %v3183_v55 = vmul.f32 %v8170_v58, %v2899_v52 }
 0x2c7   : > { %v1649_v37 = vpop.permute.xlu1 %1648  ;;  %v3247_v30 = vadd.f32 %v3183_v55, %v2713_v1 }
 0x2c8   : > { %vm1789_vm5 = vcmp.eq.s32.totalorder %v7559_v49, %v1649_v37  ;;  %v1543_v37 = vadd.s32 10, %v10403_v8  ;;  %v8419_v8 = vld [vmem:[%s10223_s5] ss:$0 sm:$0xff] }
 0x2c9   : > { %v6047_v3 = vsel %vm1789_vm5, 1.0, %v6954_v61  ;;  %6790 = vset.pattern.permute.xlu1 %v10373_v9 }
 0x2ca   : > { %v1981_v0 = vadd.f32 %v6047_v3, %v1469_v59  ;;  %2181 = vperm.xlu1 %6790, %v2052_v36   ;;  %v10452_v59 = vld [vmem:[#allocation38_spill] sm:$0xff]  ;;  %v2054_v3 = vadd.s32 15, %v10451_v46 }
 0x2cb   : > { %vm766_vm7 = vcmp.eq.s32.totalorder %v7559_v49, %v10452_v59  ;;  %v2715_v23 = vpop.f32.mrf.mxu0 }
 0x2cc   : > { %v2493_v18 = vadd.f32 %v6111_v12, %v1981_v0  ;;  %6791 = vset.pattern.permute.xlu2 %v10373_v9  ;;  %v10453_v0 = vld [vmem:[#allocation52_spill] sm:$0xff] }
 0x2cd   : > { %2184 = vperm.xlu2 %6791, %v2053_v53   ;;  %v2164_v42 = vpop.permute.xlu2 %2163  ;;  %v8389_v15 = vpop.f32.mrf.mxu1  ;;  %v5920_v53 = vsel %vm766_vm7, 1.0, %v6954_v61  ;;  %vm767_vm11 = vcmp.eq.s32.totalorder %v7559_v49, %v10453_v0 }
 0x2ce   : > { %v2544_v5 = vpack.c.bf16 %v2493_v18, %v2492_v10  ;;  %v5985_v10 = vsel %vm1279_vm10, 1.0, %v6954_v61  ;;  %vm2302_vm13 = vcmp.eq.s32.totalorder %v7559_v49, %v2164_v42 }
 0x2cf   : > { %v6112_v55 = vsel %vm2302_vm13, 1.0, %v6954_v61 }
 0x2d0   : > { %6166 = vmatmul.msk.bf16.gmra.mxu0 %vm2580_vm9, %v2544_v5  ;;  %v1140_v17 = vpop.permute.xlu1 %1139  ;;  %v5921_v5 = vsel %vm767_vm11, 1.0, %v6954_v61 }
 0x2d1   : > { %vm1278_vm6 = vcmp.eq.s32.totalorder %v7559_v49, %v1140_v17  ;;  %v1471_v17 = vadd.f32 %v5985_v10, %v5921_v5  ;;  %v6898_v5 = vld [vmem:[%s7035_s27 + $0x90] sm:$0xff] }
 0x2d2   : > { %6792 = vset.pattern.permute.xlu1 %v10384_v54  ;;  %v5984_v12 = vsel %vm1278_vm6, 1.0, %v6954_v61 }
 0x2d3   : > { %1163 = vperm.xlu1 %6792, %v1030_v14   ;;  %v1470_v33 = vadd.f32 %v5984_v12, %v5920_v53 }
 0x2d5   : > { %6793 = vset.pattern.permute.xlu2 %v10384_v54  ;;  %v8402_v34 = vpop.f32.mrf.mxu1 }
 0x2d6   : > { %1166 = vperm.xlu2 %6793, %v1031_v44   ;;  %v8391_v21 = vpop.permute.xlu2 %1145  ;;  %v1982_v44 = vadd.f32 %v6048_v50, %v1470_v33 }
 0x2d7   : > { %vm1280_vm3 = vcmp.eq.s32.totalorder %v7559_v49, %v8391_v21 }
 0x2d8   : > { %v5986_v21 = vsel %vm1280_vm3, 1.0, %v6954_v61 }
 0x2d9   : > { %v2894_v57 = vpop.permute.xlu1 %2893 }
 0x2da   : > { %v3182_v20 = vmul.f32 %v8170_v58, %v2894_v57 }
 0x2db   : > { %6795 = vset.pattern.permute.xlu1 %v10398_v28 }
 0x2dc   : > { %v3246_v63 = vadd.f32 %v3182_v20, %v2711_v32  ;;  %2938 = vperm.xlu1 %6795, %v6897_v41   ;;  %v2919_v32 = vpop.permute.xlu0 %2918  ;;  %v10454_v20 = vld [vmem:[#allocation15_spill] sm:$0xff] }
 0x2dd   : > { %v3187_v62 = vmul.f32 %v8170_v58, %v2919_v32 }
 0x2de   : > { %6796 = vset.pattern.permute.xlu2 %v10381_v22  ;;  %v3306_v36 = vpack.c.bf16 %v3247_v30, %v3246_v63  ;;  %v2717_v30 = vpop.f32.mrf.mxu0  ;;  %v2494_v63 = vadd.f32 %v6112_v55, %v1982_v44  ;;  %v10455_v44 = vld [vmem:[#allocation41_spill] sm:$0xff]  ;;  %v10456_v55 = vld [vmem:[#allocation51_spill] sm:$0xff] }
 0x2df   : > { %1675 = vperm.xlu2 %6796, %v1542_v48   ;;  %v2909_v52 = vpop.permute.xlu2 %2908  ;;  %v1033_v48 = vadd.s32 5, %v10454_v20  ;;  %v2718_v53 = vadd.f32 %v8175_v16, %v2717_v30  ;;  %vm769_vm15 = vcmp.eq.s32.totalorder %v7559_v49, %v10455_v44  ;;  %vm768_vm0 = vcmp.eq.s32.totalorder %v7559_v49, %v10456_v55 }
 0x2e0   : > { %6198 = vmatmul.msk.bf16.gmra.mxu1 %vm3354_vm1, %v3306_v36  ;;  %v5922_v30 = vsel %vm768_vm0, 1.0, %v6954_v61 }
 0x2e2   : > { %v1655_v43 = vpop.permute.xlu1 %1654 }
 0x2e3   : > { %vm1791_vm12 = vcmp.eq.s32.totalorder %v7559_v49, %v1655_v43  ;;  %v3185_v43 = vmul.f32 %v8170_v58, %v2909_v52 }
 0x2e4   : > { %6797 = vset.pattern.permute.xlu1 %v10381_v22  ;;  %v6049_v46 = vsel %vm1791_vm12, 1.0, %v6954_v61  ;;  %v8454_v50 = vpop.permute.xlu0 %2933 }
 0x2e5   : > { %1678 = vperm.xlu1 %6797, %v1543_v37   ;;  %v1983_v57 = vadd.f32 %v6049_v46, %v1471_v17  ;;  %v3249_v10 = vadd.f32 %v3185_v43, %v2718_v53  ;;  %v6899_v17 = vld [vmem:[%s7035_s27 + $0x98] sm:$0xff] }
 0x2e6   : > { %v2720_v33 = vpop.f32.mrf.mxu0 }
 0x2e7   : > { %6798 = vset.pattern.permute.xlu2 %v10373_v9  ;;  %v2721_v53 = vadd.f32 %v8175_v16, %v2720_v33 }
 0x2e8   : > { %2187 = vperm.xlu2 %6798, %v2054_v3   ;;  %v8428_v18 = vpop.permute.xlu2 %1660  ;;  %v3460_v2 = vpop.f32.mrf.mxu1  ;;  %v2716_v3 = vadd.f32 %v8175_v16, %v2715_v23 }
 0x2e9   : > { %v8433_v14 = vadd.f32 %v8419_v8, %v3460_v2  ;;  %vm1793_vm5 = vcmp.eq.s32.totalorder %v7559_v49, %v8428_v18 }
 0x2ea   : > { %v6051_v33 = vsel %vm1793_vm5, 1.0, %v6954_v61 }
 0x2eb   : > { %4186 = vrot.lane.b32.xlu0 %v8433_v14, %s6955_s26  ;;  %v2167_v42 = vpop.permute.xlu1 %2166 }
 0x2ec   : > { %vm2303_vm14 = vcmp.eq.s32.totalorder %v7559_v49, %v2167_v42  ;;  %v2170_v43 = vpop.permute.xlu0 %2169 }
 0x2ed   : > { %v6113_v1 = vsel %vm2303_vm14, 1.0, %v6954_v61  ;;  %6799 = vset.pattern.permute.xlu1 %v10384_v54  ;;  %vm2304_vm6 = vcmp.eq.s32.totalorder %v7559_v49, %v2170_v43 }
 0x2ee   : > { %v2495_v41 = vadd.f32 %v6113_v1, %v1983_v57  ;;  %1169 = vperm.xlu1 %6799, %v1032_v60   ;;  %v1545_v60 = vadd.s32 10, %v10454_v20  ;;  %v5923_v1 = vsel %vm769_vm15, 1.0, %v6954_v61  ;;  %v6114_v55 = vsel %vm2304_vm6, 1.0, %v6954_v61 }
 0x2ef   : > { %vm1797_vm6 = vcmp.eq.s32.totalorder %v7559_v49, %v8333_v4 }
 0x2f0   : > { %v2545_v36 = vpack.c.bf16 %v2495_v41, %v2494_v63  ;;  %6800 = vset.pattern.permute.xlu2 %v10384_v54  ;;  %v8444_v37 = vpop.f32.mrf.mxu1  ;;  %v5987_v63 = vsel %vm1281_vm2, 1.0, %v6954_v61  ;;  %v2722_v41 = vpop.f32.mrf.mxu0 }
 0x2f1   : > { %1172 = vperm.xlu2 %6800, %v1033_v48   ;;  %v8446_v59 = vpop.permute.xlu2 %1151  ;;  %v2056_v48 = vadd.s32 15, %v10421_v19 }
 0x2f2   : > { %6167 = vmatmul.msk.bf16.gmra.mxu0 %vm2580_vm9, %v2545_v36  ;;  %vm1282_vm13 = vcmp.eq.s32.totalorder %v7559_v49, %v8446_v59 }
 0x2f4   : > { %v2904_v12 = vpop.permute.xlu1 %2903  ;;  %v8537_v59 = vpop.permute.xlu0 %2190 }
 0x2f5   : > { %v3184_v0 = vmul.f32 %v8170_v58, %v2904_v12 }
 0x2f6   : > { %6801 = vset.pattern.permute.xlu1 %v10398_v28 }
 0x2f7   : > { %v3248_v2 = vadd.f32 %v3184_v0, %v2716_v3  ;;  %2943 = vperm.xlu1 %6801, %v6898_v5   ;;  %v2723_v0 = vadd.f32 %v8175_v16, %v2722_v41 }
 0x2f8   : > { %v3465_v46 = vpop.f32.mrf.mxu1 }
 0x2f9   : > { %6802 = vset.pattern.permute.xlu2 %v10398_v28  ;;  %v3307_v52 = vpack.c.bf16 %v3249_v10, %v3248_v2  ;;  %v8470_v42 = vadd.f32 %v8419_v8, %v3465_v46  ;;  %v1472_v10 = vadd.f32 %v5986_v21, %v5922_v30  ;;  %v1473_v46 = vadd.f32 %v5987_v63, %v5923_v1 }
 0x2fa   : > { %2948 = vperm.xlu2 %6802, %v6899_v17   ;;  %v2914_v23 = vpop.permute.xlu2 %2913  ;;  %v1034_v30 = vadd.s32 5, %v10408_v47 }
 0x2fb   : > { %6199 = vmatmul.msk.bf16.gmra.mxu1 %vm3354_vm1, %v3307_v52  ;;  %v3686_v12 = vmul.f32 0.01, %v8470_v42  ;;  %v3186_v3 = vmul.f32 %v8170_v58, %v2914_v23  ;;  %vm3622_vm7 = vcmp.ge.f32.partialorder %v8470_v42, 0.0  ;;  %v2057_v52 = vadd.s32 15, %v10454_v20 }
 0x2fc   : > { %v1985_v18 = vadd.f32 %v6051_v33, %v1473_v46  ;;  %v10458_v33 = vld [vmem:[#allocation55_spill] sm:$0xff] }
 0x2fd   : > { %v1658_v57 = vpop.permute.xlu1 %1657  ;;  %v3250_v17 = vadd.f32 %v3186_v3, %v2721_v53  ;;  %v8500_v44 = vsel %vm3622_vm7, %v8470_v42, %v3686_v12  ;;  %v6900_v12 = vld [vmem:[%s7035_s27 + $0xa0] sm:$0xff]  ;;  %v6901_v3 = vld [vmem:[%s7035_s27 + $0xa8] sm:$0xff]  ;;  %v1546_v53 = vadd.s32 10, %v10408_v47  ;;  %vm770_vm15 = vcmp.eq.s32.totalorder %v7559_v49, %v10458_v33 }
 0x2fe   : > { %vm1792_vm4 = vcmp.eq.s32.totalorder %v7559_v49, %v1658_v57 }
 0x2ff   : > { %6803 = vset.pattern.permute.xlu1 %v10381_v22  ;;  %v6050_v32 = vsel %vm1792_vm4, 1.0, %v6954_v61 }
 0x300   : > { %1684 = vperm.xlu1 %6803, %v1545_v60   ;;  %v3467_v36 = vpop.f32.mrf.mxu1  ;;  %v1984_v23 = vadd.f32 %v6050_v32, %v1472_v10  ;;  %v10457_v32 = vld [vmem:[#allocation54_spill] sm:$0xff] }
 0x301   : > { %v3468_v19 = vadd.f32 %v8419_v8, %v3467_v36  ;;  %vm771_vm12 = vcmp.eq.s32.totalorder %v7559_v49, %v10457_v32  ;;  %v10460_v32 = vld [vmem:[#allocation17_spill] sm:$0xff] }
 0x302   : > { %6804 = vset.pattern.permute.xlu2 %v10373_v9  ;;  %v2496_v41 = vadd.f32 %v6114_v55, %v1984_v23  ;;  %v5925_v46 = vsel %vm771_vm12, 1.0, %v6954_v61 }
 0x303   : > { %vm3623_vm8 = vcmp.ge.f32.partialorder %v3468_v19, 0.0  ;;  %v3687_v2 = vmul.f32 0.01, %v3468_v19  ;;  %2193 = vperm.xlu2 %6804, %v2056_v48   ;;  %4192 = vrot.lane.b32.xlu0 %v3468_v19, %s6955_s26  ;;  %v1667_v5 = vpop.permute.xlu2 %1666  ;;  %v3251_v48 = vadd.f32 %v3187_v62, %v2723_v0 }
 0x304   : > { %vm1795_vm14 = vcmp.eq.s32.totalorder %v7559_v49, %v1667_v5  ;;  %v5924_v5 = vsel %vm770_vm15, 1.0, %v6954_v61 }
 0x305   : > { %v8502_v60 = vsel %vm3623_vm8, %v3468_v19, %v3687_v2  ;;  %v3308_v63 = vpack.c.bf16 %v3251_v48, %v3250_v17  ;;  %v1547_v2 = vadd.s32 10, %v10412_v31  ;;  %v6053_v17 = vsel %vm1795_vm14, 1.0, %v6954_v61 }
 0x306   : > { %v2173_v57 = vpop.permute.xlu1 %2172  ;;  %v3813_v1 = vpack.c.bf16 %v8502_v60, %v8500_v44 }
 0x307   : > { %vm2305_vm10 = vcmp.eq.s32.totalorder %v7559_v49, %v2173_v57 }
 0x308   : > { %v6115_v20 = vsel %vm2305_vm10, 1.0, %v6954_v61  ;;  %6805 = vset.pattern.permute.xlu1 %v10373_v9 }
 0x309   : > { %v2497_v21 = vadd.f32 %v6115_v20, %v1985_v18  ;;  %2196 = vperm.xlu1 %6805, %v2057_v52   ;;  %v5988_v52 = vsel %vm1282_vm13, 1.0, %v6954_v61  ;;  %v2059_v18 = vadd.s32 15, %v10412_v31  ;;  %v2725_v31 = vpop.f32.mrf.mxu0 }
 0x30a   : > { %v1474_v57 = vadd.f32 %v5988_v52, %v5924_v5 }
 0x30b   : > { %v2546_v36 = vpack.c.bf16 %v2497_v21, %v2496_v41  ;;  %6806 = vset.pattern.permute.xlu2 %v10384_v54  ;;  %6200 = vmatmul.msk.bf16.gmra.mxu1 %vm3354_vm1, %v3308_v63  ;;  %v10459_v21 = vld [vmem:[#allocation18_spill] sm:$0xff] }
 0x30c   : > { %1175 = vperm.xlu2 %6806, %v1034_v30   ;;  %v2179_v62 = vpop.permute.xlu2 %2178  ;;  %v1548_v5 = vadd.s32 10, %v10459_v21 }
 0x30d   : > { %6168 = vmatmul.msk.bf16.gmra.mxu0 %vm2580_vm9, %v2546_v36  ;;  %vm2307_vm2 = vcmp.eq.s32.totalorder %v7559_v49, %v2179_v62  ;;  %v1036_v36 = vadd.s32 5, %v10459_v21 }
 0x30e   : > { %v6117_v20 = vsel %vm2307_vm2, 1.0, %v6954_v61 }
 0x30f   : > { %v1155_v43 = vpop.permute.xlu1 %1154 }
 0x310   : > { %vm1283_vm11 = vcmp.eq.s32.totalorder %v7559_v49, %v1155_v43 }
 0x311   : > { %6807 = vset.pattern.permute.xlu1 %v10398_v28  ;;  %v5989_v10 = vsel %vm1283_vm11, 1.0, %v6954_v61  ;;  %v2727_v33 = vpop.f32.mrf.mxu0 }
 0x312   : > { %2953 = vperm.xlu1 %6807, %v6900_v12   ;;  %v1475_v47 = vadd.f32 %v5989_v10, %v5925_v46  ;;  %v6902_v46 = vld [vmem:[%s7035_s27 + $0xb0] sm:$0xff] }
 0x314   : > { %6808 = vset.pattern.permute.xlu2 %v10398_v28  ;;  %v1987_v48 = vadd.f32 %v6053_v17, %v1475_v47 }
 0x315   : > { %2958 = vperm.xlu2 %6808, %v6901_v3   ;;  %v2924_v19 = vpop.permute.xlu2 %2923 }
 0x316   : > { %v2499_v62 = vadd.f32 %v6117_v20, %v1987_v48  ;;  %v3188_v17 = vmul.f32 %v8170_v58, %v2924_v19  ;;  %v2726_v48 = vadd.f32 %v8175_v16, %v2725_v31  ;;  %v1549_v19 = vadd.s32 10, %v10460_v32 }
 0x318   : > { %v1664_v0 = vpop.permute.xlu1 %1663 }
 0x319   : > { %vm1794_vm0 = vcmp.eq.s32.totalorder %v7559_v49, %v1664_v0  ;;  %v1037_v0 = vadd.s32 5, %v10460_v32 }
 0x31a   : > { %6809 = vset.pattern.permute.xlu1 %v10381_v22  ;;  %v6052_v23 = vsel %vm1794_vm0, 1.0, %v6954_v61 }
 0x31b   : > { %1687 = vperm.xlu1 %6809, %v1546_v53   ;;  %v1986_v63 = vadd.f32 %v6052_v23, %v1474_v57  ;;  %v8549_v53 = vpop.permute.xlu0 %2199  ;;  %v10461_v23 = vld [vmem:[#allocation58_spill] sm:$0xff] }
 0x31c   : > { %vm773_vm5 = vcmp.eq.s32.totalorder %v7559_v49, %v10461_v23  ;;  %v2061_v23 = vadd.s32 15, %v10460_v32 }
 0x31d   : > { %6810 = vset.pattern.permute.xlu2 %v10381_v22 }
 0x31e   : > { %1690 = vperm.xlu2 %6810, %v1547_v2   ;;  %v1670_v55 = vpop.permute.xlu2 %1669 }
 0x31f   : > { %vm1796_vm10 = vcmp.eq.s32.totalorder %v7559_v49, %v1670_v55 }
 0x321   : > { %v2176_v30 = vpop.permute.xlu1 %2175 }
 0x322   : > { %vm2306_vm3 = vcmp.eq.s32.totalorder %v7559_v49, %v2176_v30 }
 0x323   : > { %v6116_v41 = vsel %vm2306_vm3, 1.0, %v6954_v61  ;;  %6812 = vset.pattern.permute.xlu1 %v10373_v9  ;;  %v1158_v52 = vpop.permute.xlu0 %1157  ;;  %vm2311_vm3 = vcmp.eq.s32.totalorder %v7559_v49, %v8537_v59  ;;  %v2063_v59 = vadd.s32 15, %v10423_v38 }
 0x324   : > { %v2498_v43 = vadd.f32 %v6116_v41, %v1986_v63  ;;  %2202 = vperm.xlu1 %6812, %v2059_v18   ;;  %v2728_v18 = vadd.f32 %v8175_v16, %v2727_v33  ;;  %vm1284_vm7 = vcmp.eq.s32.totalorder %v7559_v49, %v1158_v52  ;;  %v5927_v63 = vsel %vm773_vm5, 1.0, %v6954_v61 }
 0x325   : > { %v3252_v41 = vadd.f32 %v3188_v17, %v2726_v48  ;;  %v6055_v16 = vsel %vm1797_vm6, 1.0, %v6954_v61  ;;  %v5990_v4 = vsel %vm1284_vm7, 1.0, %v6954_v61  ;;  %v2060_v33 = vadd.s32 15, %v10459_v21 }
 0x326   : > { %v2547_v12 = vpack.c.bf16 %v2499_v62, %v2498_v43  ;;  %6813 = vset.pattern.permute.xlu2 %v10384_v54  ;;  %v10462_v62 = vld [vmem:[#allocation44_spill] sm:$0xff] }
 0x327   : > { %1181 = vperm.xlu2 %6813, %v1036_v36   ;;  %v2185_v3 = vpop.permute.xlu2 %2184  ;;  %v8555_v2 = vpop.f32.mrf.mxu1  ;;  %vm772_vm8 = vcmp.eq.s32.totalorder %v7559_v49, %v10462_v62 }
 0x328   : > { %6169 = vmatmul.msk.bf16.gmra.mxu0 %vm2580_vm9, %v2547_v12  ;;  %vm2309_vm11 = vcmp.eq.s32.totalorder %v7559_v49, %v2185_v3  ;;  %v5926_v31 = vsel %vm772_vm8, 1.0, %v6954_v61 }
 0x329   : > { %v1476_v55 = vadd.f32 %v5990_v4, %v5926_v31  ;;  %v6119_v52 = vsel %vm2309_vm11, 1.0, %v6954_v61  ;;  %v8616_v4 = vld [vmem:[%s10221_s3] ss:$0 sm:$0xff] }
 0x32a   : > { %v1161_v10 = vpop.permute.xlu1 %1160 }
 0x32b   : > { %vm1285_vm4 = vcmp.eq.s32.totalorder %v7559_v49, %v1161_v10 }
 0x32c   : > { %6814 = vset.pattern.permute.xlu1 %v10384_v54  ;;  %v5991_v20 = vsel %vm1285_vm4, 1.0, %v6954_v61 }
 0x32d   : > { %1184 = vperm.xlu1 %6814, %v1037_v0   ;;  %v6054_v0 = vsel %vm1796_vm10, 1.0, %v6954_v61 }
 0x32f   : > { %6815 = vset.pattern.permute.xlu2 %v10398_v28  ;;  %v8584_v10 = vpop.f32.mrf.mxu1 }
 0x330   : > { %2963 = vperm.xlu2 %6815, %v6902_v46   ;;  %v8559_v47 = vpop.permute.xlu2 %1166 }
 0x331   : > { %vm1287_vm15 = vcmp.eq.s32.totalorder %v7559_v49, %v8559_v47 }
 0x333   : > { %v2929_v57 = vpop.permute.xlu1 %2928 }
 0x334   : > { %v3189_v30 = vmul.f32 %v8170_v58, %v2929_v57  ;;  %v1477_v58 = vadd.f32 %v5991_v20, %v5927_v63  ;;  %v1039_v63 = vadd.s32 5, %v10423_v38  ;;  %v1041_v38 = vadd.s32 5, %v10430_v51 }
 0x335   : > { %6816 = vset.pattern.permute.xlu1 %v10381_v22 }
 0x336   : > { %v3253_v36 = vadd.f32 %v3189_v30, %v2728_v18  ;;  %1693 = vperm.xlu1 %6816, %v1548_v5   ;;  %v1989_v46 = vadd.f32 %v6055_v16, %v1477_v58  ;;  %v1988_v5 = vadd.f32 %v6054_v0, %v1476_v55  ;;  %v2730_v18 = vpop.f32.mrf.mxu0  ;;  %v8609_v58 = vld [vmem:[%s10220_s2] ss:$0 sm:$0xff] }
 0x337   : > { %v3190_v16 = vmul.f32 %v8609_v58, %v8454_v50  ;;  %v1550_v50 = vadd.s32 10, %v10415_v35 }
 0x338   : > { %v3309_v43 = vpack.c.bf16 %v3253_v36, %v3252_v41  ;;  %6817 = vset.pattern.permute.xlu2 %v10381_v22  ;;  %v2501_v57 = vadd.f32 %v6119_v52, %v1989_v46  ;;  %v6903_v41 = vld [vmem:[%s7035_s27 + $0xc0] sm:$0xff]  ;;  %v10463_v46 = vld [vmem:[#allocation57_spill] sm:$0xff] }
 0x339   : > { %1696 = vperm.xlu2 %6817, %v1549_v19   ;;  %v1676_v12 = vpop.permute.xlu2 %1675  ;;  %vm774_vm14 = vcmp.eq.s32.totalorder %v7559_v49, %v10463_v46 }
 0x33a   : > { %6201 = vmatmul.msk.bf16.gmra.mxu1 %vm3354_vm1, %v3309_v43  ;;  %v2731_v43 = vadd.f32 %v8616_v4, %v2730_v18  ;;  %vm1798_vm0 = vcmp.eq.s32.totalorder %v7559_v49, %v1676_v12  ;;  %v5993_v18 = vsel %vm1287_vm15, 1.0, %v6954_v61  ;;  %v2062_v12 = vadd.s32 15, %v10415_v35 }
 0x33c   : > { %v2182_v17 = vpop.permute.xlu1 %2181 }
 0x33d   : > { %vm2308_vm12 = vcmp.eq.s32.totalorder %v7559_v49, %v2182_v17 }
 0x33e   : > { %v6118_v3 = vsel %vm2308_vm12, 1.0, %v6954_v61  ;;  %6818 = vset.pattern.permute.xlu1 %v10373_v9  ;;  %v2732_v36 = vpop.f32.mrf.mxu0 }
 0x33f   : > { %v2500_v48 = vadd.f32 %v6118_v3, %v1988_v5  ;;  %2205 = vperm.xlu1 %6818, %v2060_v33   ;;  %v2733_v0 = vadd.f32 %v8616_v4, %v2732_v36  ;;  %v3254_v33 = vadd.f32 %v3190_v16, %v2731_v43  ;;  %v6906_v5 = vld [vmem:[%s7035_s27 + $0xc8] sm:$0xff]  ;;  %v5928_v3 = vsel %vm774_vm14, 1.0, %v6954_v61 }
 0x340   : > { %v6121_v16 = vsel %vm2311_vm3, 1.0, %v6954_v61 }
 0x341   : > { %v2548_v20 = vpack.c.bf16 %v2501_v57, %v2500_v48  ;;  %6819 = vset.pattern.permute.xlu2 %v10373_v9  ;;  %v10464_v57 = vld [vmem:[#allocation47_spill] sm:$0xff] }
 0x342   : > { %2208 = vperm.xlu2 %6819, %v2061_v23   ;;  %v3475_v21 = vpop.f32.mrf.mxu1  ;;  %v2188_v30 = vpop.permute.xlu2 %2187  ;;  %vm775_vm2 = vcmp.eq.s32.totalorder %v7559_v49, %v10464_v57 }
 0x343   : > { %v8595_v19 = vadd.f32 %v8419_v8, %v3475_v21  ;;  %6170 = vmatmul.msk.bf16.gmra.mxu0 %vm2580_vm9, %v2548_v20  ;;  %v6056_v20 = vsel %vm1798_vm0, 1.0, %v6954_v61  ;;  %vm2310_vm4 = vcmp.eq.s32.totalorder %v7559_v49, %v2188_v30 }
 0x344   : > { %v6120_v43 = vsel %vm2310_vm4, 1.0, %v6954_v61 }
 0x345   : > { %4198 = vrot.lane.b32.xlu0 %v8595_v19, %s6955_s26  ;;  %v1164_v32 = vpop.permute.xlu1 %1163 }
 0x346   : > { %vm1286_vm13 = vcmp.eq.s32.totalorder %v7559_v49, %v1164_v32 }
 0x347   : > { %6821 = vset.pattern.permute.xlu1 %v10384_v54  ;;  %v5992_v52 = vsel %vm1286_vm13, 1.0, %v6954_v61 }
 0x348   : > { %1190 = vperm.xlu1 %6821, %v1039_v63   ;;  %v1478_v48 = vadd.f32 %v5992_v52, %v5928_v3  ;;  %v5929_v63 = vsel %vm775_vm2, 1.0, %v6954_v61  ;;  %v10465_v52 = vld [vmem:[#allocation20_spill] sm:$0xff]  ;;  %v8656_v3 = vpop.permute.xlu0 %1178 }
 0x349   : > { %vm1291_vm2 = vcmp.eq.s32.totalorder %v7559_v49, %v8656_v3 }
 0x34a   : > { %6822 = vset.pattern.permute.xlu2 %v10398_v28  ;;  %v8637_v21 = vpop.f32.mrf.mxu1  ;;  %v1990_v36 = vadd.f32 %v6056_v20, %v1478_v48 }
 0x34b   : > { %2973 = vperm.xlu2 %6822, %v6903_v41   ;;  %v8604_v62 = vpop.permute.xlu2 %1172  ;;  %v1479_v41 = vadd.f32 %v5993_v18, %v5929_v63 }
 0x34c   : > { %v2502_v35 = vadd.f32 %v6120_v43, %v1990_v36  ;;  %vm1289_vm10 = vcmp.eq.s32.totalorder %v7559_v49, %v8604_v62 }
 0x34e   : > { %v2939_v31 = vpop.permute.xlu1 %2938 }
 0x34f   : > { %v3191_v55 = vmul.f32 %v8609_v58, %v2939_v31 }
 0x350   : > { %6823 = vset.pattern.permute.xlu1 %v10398_v28  ;;  %v8672_v36 = vpop.permute.xlu0 %1187 }
 0x351   : > { %v3255_v17 = vadd.f32 %v3191_v55, %v2733_v0  ;;  %2978 = vperm.xlu1 %6823, %v6906_v5   ;;  %v2735_v55 = vpop.f32.mrf.mxu0 }
 0x352   : > { %v2736_v63 = vadd.f32 %v8616_v4, %v2735_v55 }
 0x353   : > { %v3310_v23 = vpack.c.bf16 %v3255_v17, %v3254_v33  ;;  %6824 = vset.pattern.permute.xlu2 %v10381_v22  ;;  %v1040_v17 = vadd.s32 5, %v10465_v52 }
 0x354   : > { %1699 = vperm.xlu2 %6824, %v1550_v50   ;;  %v2949_v47 = vpop.permute.xlu2 %2948 }
 0x355   : > { %6202 = vmatmul.msk.bf16.gmra.mxu1 %vm3354_vm1, %v3310_v23  ;;  %v3193_v20 = vmul.f32 %v8609_v58, %v2949_v47 }
 0x357   : > { %v1679_v32 = vpop.permute.xlu1 %1678 }
 0x358   : > { %vm1799_vm5 = vcmp.eq.s32.totalorder %v7559_v49, %v1679_v32 }
 0x359   : > { %v6057_v31 = vsel %vm1799_vm5, 1.0, %v6954_v61  ;;  %6826 = vset.pattern.permute.xlu1 %v10373_v9  ;;  %v2737_v18 = vpop.f32.mrf.mxu0 }
 0x35a   : > { %v1991_v30 = vadd.f32 %v6057_v31, %v1479_v41  ;;  %2211 = vperm.xlu1 %6826, %v2062_v12   ;;  %v2738_v32 = vadd.f32 %v8616_v4, %v2737_v18 }
 0x35c   : > { %v2503_v0 = vadd.f32 %v6121_v16, %v1991_v30  ;;  %6827 = vset.pattern.permute.xlu2 %v10373_v9  ;;  %v1552_v16 = vadd.s32 10, %v10465_v52  ;;  %v3257_v43 = vadd.f32 %v3193_v20, %v2738_v32 }
 0x35d   : > { %2214 = vperm.xlu2 %6827, %v2063_v59   ;;  %v8652_v46 = vpop.f32.mrf.mxu1  ;;  %v2194_v50 = vpop.permute.xlu2 %2193  ;;  %v6907_v59 = vld [vmem:[%s7035_s27 + $0xd8] sm:$0xff] }
 0x35e   : > { %v2549_v33 = vpack.c.bf16 %v2503_v0, %v2502_v35  ;;  %v1553_v35 = vadd.s32 10, %v10430_v51  ;;  %v10466_v0 = vld [vmem:[#allocation61_spill] sm:$0xff]  ;;  %v10467_v51 = vld [vmem:[#allocation60_spill] sm:$0xff]  ;;  %vm2312_vm13 = vcmp.eq.s32.totalorder %v7559_v49, %v2194_v50 }
 0x35f   : > { %vm776_vm7 = vcmp.eq.s32.totalorder %v7559_v49, %v10466_v0  ;;  %vm777_vm11 = vcmp.eq.s32.totalorder %v7559_v49, %v10467_v51 }
 0x360   : > { %6171 = vmatmul.msk.bf16.gmra.mxu0 %vm2580_vm9, %v2549_v33  ;;  %v1170_v5 = vpop.permute.xlu1 %1169  ;;  %v1682_v33 = vpop.permute.xlu0 %1681 }
 0x361   : > { %vm1288_vm6 = vcmp.eq.s32.totalorder %v7559_v49, %v1170_v5  ;;  %vm1800_vm8 = vcmp.eq.s32.totalorder %v7559_v49, %v1682_v33  ;;  %v2064_v5 = vadd.s32 15, %v10465_v52 }
 0x362   : > { %6828 = vset.pattern.permute.xlu1 %v10384_v54  ;;  %v6058_v20 = vsel %vm1800_vm8, 1.0, %v6954_v61 }
 0x363   : > { %1193 = vperm.xlu1 %6828, %v1040_v17   ;;  %v5994_v17 = vsel %vm1288_vm6, 1.0, %v6954_v61  ;;  %vm2314_vm6 = vcmp.eq.s32.totalorder %v7559_v49, %v8549_v53 }
 0x365   : > { %6829 = vset.pattern.permute.xlu2 %v10384_v54  ;;  %v3482_v23 = vpop.f32.mrf.mxu1 }
 0x366   : > { %v8662_v57 = vadd.f32 %v8419_v8, %v3482_v23  ;;  %1196 = vperm.xlu2 %6829, %v1041_v38   ;;  %v8664_v48 = vpop.permute.xlu2 %1175  ;;  %v2740_v38 = vpop.f32.mrf.mxu0  ;;  %v5930_v23 = vsel %vm776_vm7, 1.0, %v6954_v61 }
 0x367   : > { %v1480_v18 = vadd.f32 %v5994_v17, %v5930_v23  ;;  %vm1290_vm15 = vcmp.eq.s32.totalorder %v7559_v49, %v8664_v48 }
 0x368   : > { %4204 = vrot.lane.b32.xlu0 %v8662_v57, %s6955_s26 }
 0x369   : > { %v2944_v12 = vpop.permute.xlu1 %2943 }
 0x36a   : > { %v3192_v41 = vmul.f32 %v8609_v58, %v2944_v12  ;;  %v5995_v12 = vsel %vm1289_vm10, 1.0, %v6954_v61 }
 0x36b   : > { %6830 = vset.pattern.permute.xlu1 %v10398_v28 }
 0x36c   : > { %v3256_v31 = vadd.f32 %v3192_v41, %v2736_v63  ;;  %2988 = vperm.xlu1 %6830, %v6907_v59   ;;  %v5931_v63 = vsel %vm777_vm11, 1.0, %v6954_v61 }
 0x36d   : > { %v1481_v41 = vadd.f32 %v5995_v12, %v5931_v63  ;;  %v6339_v12 = vld [vmem:[%s10224_s6] sm:$0xff]  ;;  %v2741_v63 = vadd.f32 %v8616_v4, %v2740_v38 }
 0x36e   : > { %v3311_v47 = vpack.c.bf16 %v3257_v43, %v3256_v31  ;;  %6831 = vset.pattern.permute.xlu2 %v10381_v22  ;;  %v1042_v43 = vadd.s32 5, %v10431_v26  ;;  %v6122_v31 = vsel %vm2312_vm13, 1.0, %v6954_v61  ;;  %3960 = vmatpush.bf16.msrb.mxu0 %v6339_v12 }
 0x36f   : > { %1705 = vperm.xlu2 %6831, %v1552_v16   ;;  %v2959_v30 = vpop.permute.xlu2 %2958  ;;  %v1992_v16 = vadd.f32 %v6058_v20, %v1480_v18  ;;  %6344 = vmatpush.bf16.msra.mxu2 %v6339_v12 }
 0x370   : > { %6203 = vmatmul.msk.bf16.gmra.mxu1 %vm3354_vm1, %v3311_v47  ;;  %v3195_v18 = vmul.f32 %v8609_v58, %v2959_v30  ;;  %v8724_v30 = vpop.permute.xlu0 %1702  ;;  %6345 = vmatpush.bf16.msra.mxu3 %v6339_v12  ;;  %v5996_v12 = vsel %vm1290_vm15, 1.0, %v6954_v61 }
 0x371   : > { %v2504_v33 = vadd.f32 %v6122_v31, %v1992_v16 }
 0x372   : > { %v1685_v55 = vpop.permute.xlu1 %1684 }
 0x373   : > { %vm1801_vm12 = vcmp.eq.s32.totalorder %v7559_v49, %v1685_v55  ;;  %v2742_v55 = vpop.f32.mrf.mxu0 }
 0x374   : > { %6832 = vset.pattern.permute.xlu1 %v10381_v22  ;;  %v6059_v32 = vsel %vm1801_vm12, 1.0, %v6954_v61 }
 0x375   : > { %1708 = vperm.xlu1 %6832, %v1553_v35   ;;  %v1993_v47 = vadd.f32 %v6059_v32, %v1481_v41  ;;  %v10468_v35 = vld [vmem:[#allocation24_spill] sm:$0xff]  ;;  %v2743_v32 = vadd.f32 %v8616_v4, %v2742_v55 }
 0x376   : > { %v1043_v0 = vadd.s32 5, %v10468_v35 }
 0x377   : > { %6833 = vset.pattern.permute.xlu2 %v10373_v9 }
 0x378   : > { %2217 = vperm.xlu2 %6833, %v2064_v5   ;;  %v8697_v62 = vpop.permute.xlu2 %1690  ;;  %v8699_v52 = vpop.f32.mrf.mxu1 }
 0x379   : > { %vm1803_vm5 = vcmp.eq.s32.totalorder %v7559_v49, %v8697_v62 }
 0x37b   : > { %v2197_v59 = vpop.permute.xlu1 %2196  ;;  %v2745_v16 = vpop.f32.mrf.mxu0 }
 0x37c   : > { %vm2313_vm14 = vcmp.eq.s32.totalorder %v7559_v49, %v2197_v59  ;;  %v6908_v59 = vld [vmem:[%s7035_s27 + $0xe0] sm:$0xff] }
 0x37d   : > { %v6123_v50 = vsel %vm2313_vm14, 1.0, %v6954_v61  ;;  %6835 = vset.pattern.permute.xlu1 %v10384_v54 }
 0x37e   : > { %v2505_v17 = vadd.f32 %v6123_v50, %v1993_v47  ;;  %1199 = vperm.xlu1 %6835, %v1042_v43   ;;  %v3259_v43 = vadd.f32 %v3195_v18, %v2743_v32  ;;  %v2066_v18 = vadd.s32 15, %v10431_v26  ;;  %v5997_v32 = vsel %vm1291_vm2, 1.0, %v6954_v61  ;;  %v2969_v26 = vpop.permute.xlu0 %2968 }
 0x380   : > { %v2550_v5 = vpack.c.bf16 %v2505_v17, %v2504_v33  ;;  %6836 = vset.pattern.permute.xlu2 %v10384_v54  ;;  %v8710_v23 = vpop.f32.mrf.mxu1  ;;  %v1555_v33 = vadd.s32 10, %v10468_v35 }
 0x381   : > { %1202 = vperm.xlu2 %6836, %v1043_v0   ;;  %v8712_v51 = vpop.permute.xlu2 %1181  ;;  %v6909_v0 = vld [vmem:[%s7035_s27 + $0xe8] sm:$0xff] }
 0x382   : > { %6172 = vmatmul.msk.bf16.gmra.mxu0 %vm2580_vm9, %v2550_v5  ;;  %v10469_v5 = vld [vmem:[#allocation50_spill] sm:$0xff]  ;;  %vm1292_vm11 = vcmp.eq.s32.totalorder %v7559_v49, %v8712_v51 }
 0x383   : > { %vm778_vm0 = vcmp.eq.s32.totalorder %v7559_v49, %v10469_v5  ;;  %v2067_v5 = vadd.s32 15, %v10468_v35 }
 0x384   : > { %v2954_v20 = vpop.permute.xlu1 %2953  ;;  %v5932_v3 = vsel %vm778_vm0, 1.0, %v6954_v61 }
 0x385   : > { %v3194_v41 = vmul.f32 %v8609_v58, %v2954_v20  ;;  %v2747_v20 = vpop.f32.mrf.mxu0 }
 0x386   : > { %6837 = vset.pattern.permute.xlu1 %v10398_v28  ;;  %v2748_v62 = vadd.f32 %v8616_v4, %v2747_v20 }
 0x387   : > { %v3258_v31 = vadd.f32 %v3194_v41, %v2741_v63  ;;  %2993 = vperm.xlu1 %6837, %v6908_v59   ;;  %v10470_v63 = vld [vmem:[#allocation64_spill] sm:$0xff]  ;;  %v1482_v59 = vadd.f32 %v5996_v12, %v5932_v3  ;;  %v1044_v12 = vadd.s32 5, %v10437_v7 }
 0x388   : > { %v3490_v47 = vpop.f32.mrf.mxu1  ;;  %vm779_vm4 = vcmp.eq.s32.totalorder %v7559_v49, %v10470_v63  ;;  %v6124_v63 = vsel %vm2314_vm6, 1.0, %v6954_v61 }
 0x389   : > { %v3312_v50 = vpack.c.bf16 %v3259_v43, %v3258_v31  ;;  %v8727_v38 = vadd.f32 %v8419_v8, %v3490_v47  ;;  %6838 = vset.pattern.permute.xlu2 %v10398_v28  ;;  %v3197_v43 = vmul.f32 %v8609_v58, %v2969_v26  ;;  %v2746_v31 = vadd.f32 %v8616_v4, %v2745_v16 }
 0x38a   : > { %2998 = vperm.xlu2 %6838, %v6909_v0   ;;  %v2964_v55 = vpop.permute.xlu2 %2963  ;;  %v6061_v0 = vsel %vm1803_vm5, 1.0, %v6954_v61  ;;  %vm1807_vm5 = vcmp.eq.s32.totalorder %v7559_v49, %v8724_v30 }
 0x38b   : > { %4210 = vrot.lane.b32.xlu0 %v8727_v38, %s6955_s26  ;;  %6204 = vmatmul.msk.bf16.gmra.mxu1 %vm3354_vm1, %v3312_v50  ;;  %v3196_v48 = vmul.f32 %v8609_v58, %v2964_v55  ;;  %v5933_v50 = vsel %vm779_vm4, 1.0, %v6954_v61  ;;  %v3261_v26 = vadd.f32 %v3197_v43, %v2748_v62  ;;  %v6910_v43 = vld [vmem:[%s7035_s27 + $0xf0] sm:$0xff]  ;;  %vm1294_vm4 = vcmp.eq.s32.totalorder %v7559_v49, %v8672_v36 }
 0x38c   : > { %v1483_v55 = vadd.f32 %v5997_v32, %v5933_v50  ;;  %v10471_v50 = vld [vmem:[#allocation53_spill] sm:$0xff]  ;;  %v6000_v36 = vsel %vm1294_vm4, 1.0, %v6954_v61 }
 0x38d   : > { %v1688_v17 = vpop.permute.xlu1 %1687  ;;  %vm781_vm10 = vcmp.eq.s32.totalorder %v7559_v49, %v10471_v50 }
 0x38e   : > { %vm1802_vm3 = vcmp.eq.s32.totalorder %v7559_v49, %v1688_v17  ;;  %v1995_v20 = vadd.f32 %v6061_v0, %v1483_v55 }
 0x38f   : > { %6840 = vset.pattern.permute.xlu1 %v10381_v22  ;;  %v6060_v41 = vsel %vm1802_vm3, 1.0, %v6954_v61 }
 0x390   : > { %1714 = vperm.xlu1 %6840, %v1555_v33   ;;  %v3260_v33 = vadd.f32 %v3196_v48, %v2746_v31  ;;  %v1994_v17 = vadd.f32 %v6060_v41, %v1482_v59  ;;  %v6911_v31 = vld [vmem:[%s7035_s27 + $0xf8] sm:$0xff]  ;;  %v1556_v59 = vadd.s32 10, %v10437_v7 }
 0x392   : > { %6841 = vset.pattern.permute.xlu2 %v10373_v9  ;;  %v3313_v48 = vpack.c.bf16 %v3261_v26, %v3260_v33  ;;  %v2506_v35 = vadd.f32 %v6124_v63, %v1994_v17  ;;  %v1557_v33 = vadd.s32 10, %v10432_v11  ;;  %v5935_v17 = vsel %vm781_vm10, 1.0, %v6954_v61 }
 0x393   : > { %2223 = vperm.xlu2 %6841, %v2066_v18   ;;  %v1697_v47 = vpop.permute.xlu2 %1696  ;;  %v5998_v63 = vsel %vm1292_vm11, 1.0, %v6954_v61 }
 0x394   : > { %vm1805_vm12 = vcmp.eq.s32.totalorder %v7559_v49, %v1697_v47  ;;  %v8796_v47 = vpop.f32.mrf.mxu1 }
 0x396   : > { %v2203_v16 = vpop.permute.xlu1 %2202 }
 0x397   : > { %vm2315_vm7 = vcmp.eq.s32.totalorder %v7559_v49, %v2203_v16  ;;  %v6063_v16 = vsel %vm1805_vm12, 1.0, %v6954_v61 }
 0x398   : > { %v6125_v18 = vsel %vm2315_vm7, 1.0, %v6954_v61  ;;  %6842 = vset.pattern.permute.xlu1 %v10373_v9 }
 0x399   : > { %v2507_v3 = vadd.f32 %v6125_v18, %v1995_v20  ;;  %2226 = vperm.xlu1 %6842, %v2067_v5   ;;  %v10472_v5 = vld [vmem:[#allocation63_spill] sm:$0xff] }
 0x39a   : > { %vm780_vm13 = vcmp.eq.s32.totalorder %v7559_v49, %v10472_v5 }
 0x39b   : > { %v2551_v32 = vpack.c.bf16 %v2507_v3, %v2506_v35  ;;  %6843 = vset.pattern.permute.xlu2 %v10384_v54  ;;  %6205 = vmatmul.msk.bf16.gmra.mxu1 %vm3354_vm1, %v3313_v48  ;;  %v5934_v51 = vsel %vm780_vm13, 1.0, %v6954_v61  ;;  %v2069_v48 = vadd.s32 15, %v10432_v11  ;;  %v2750_v11 = vpop.f32.mrf.mxu0 }
 0x39c   : > { %1205 = vperm.xlu2 %6843, %v1044_v12   ;;  %v2209_v53 = vpop.permute.xlu2 %2208  ;;  %v1484_v20 = vadd.f32 %v5998_v63, %v5934_v51 }
 0x39d   : > { %6173 = vmatmul.msk.bf16.gmra.mxu0 %vm2580_vm9, %v2551_v32  ;;  %vm2317_vm15 = vcmp.eq.s32.totalorder %v7559_v49, %v2209_v53 }
 0x39e   : > { %v6127_v35 = vsel %vm2317_vm15, 1.0, %v6954_v61 }
 0x39f   : > { %v1185_v41 = vpop.permute.xlu1 %1184 }
 0x3a0   : > { %vm1293_vm8 = vcmp.eq.s32.totalorder %v7559_v49, %v1185_v41  ;;  %v10473_v41 = vld [vmem:[#allocation28_spill] sm:$0xff] }
 0x3a1   : > { %6845 = vset.pattern.permute.xlu1 %v10398_v28  ;;  %v5999_v55 = vsel %vm1293_vm8, 1.0, %v6954_v61 }
 0x3a2   : > { %3003 = vperm.xlu1 %6845, %v6910_v43   ;;  %v1485_v7 = vadd.f32 %v5999_v55, %v5935_v17  ;;  %v1046_v43 = vadd.s32 5, %v10473_v41 }
 0x3a3   : > { %v2752_v51 = vpop.f32.mrf.mxu0 }
 0x3a4   : > { %6846 = vset.pattern.permute.xlu2 %v10398_v28  ;;  %v1997_v18 = vadd.f32 %v6063_v16, %v1485_v7  ;;  %v6912_v16 = vld [vmem:[%s7035_s27 + $0x100] sm:$0xff] }
 0x3a5   : > { %3008 = vperm.xlu2 %6846, %v6911_v31   ;;  %v2974_v62 = vpop.permute.xlu2 %2973 }
 0x3a6   : > { %v2509_v31 = vadd.f32 %v6127_v35, %v1997_v18  ;;  %v10475_v18 = vld [vmem:[#allocation65_spill] sm:$0xff]  ;;  %v2753_v35 = vadd.f32 %v8616_v4, %v2752_v51  ;;  %v2070_v51 = vadd.s32 15, %v10473_v41 }
 0x3a7   : > { %vm783_vm3 = vcmp.eq.s32.totalorder %v7559_v49, %v10475_v18 }
 0x3a8   : > { %v1694_v0 = vpop.permute.xlu1 %1693 }
 0x3a9   : > { %vm1804_vm14 = vcmp.eq.s32.totalorder %v7559_v49, %v1694_v0 }
 0x3aa   : > { %6847 = vset.pattern.permute.xlu1 %v10381_v22  ;;  %v6062_v26 = vsel %vm1804_vm14, 1.0, %v6954_v61 }
 0x3ab   : > { %1717 = vperm.xlu1 %6847, %v1556_v59   ;;  %v1996_v32 = vadd.f32 %v6062_v26, %v1484_v20  ;;  %v3198_v20 = vmul.f32 %v8609_v58, %v2974_v62 }
 0x3ad   : > { %6848 = vset.pattern.permute.xlu2 %v10381_v22 }
 0x3ae   : > { %1720 = vperm.xlu2 %6848, %v1557_v33   ;;  %v1700_v12 = vpop.permute.xlu2 %1699  ;;  %v10474_v33 = vld [vmem:[#allocation32_spill] sm:$0xff] }
 0x3af   : > { %v1047_v17 = vadd.s32 5, %v10474_v33  ;;  %v1559_v62 = vadd.s32 10, %v10474_v33  ;;  %vm1806_vm7 = vcmp.eq.s32.totalorder %v7559_v49, %v1700_v12 }
 0x3b1   : > { %v2206_v3 = vpop.permute.xlu1 %2205 }
 0x3b2   : > { %vm2316_vm0 = vcmp.eq.s32.totalorder %v7559_v49, %v2206_v3 }
 0x3b3   : > { %v6126_v53 = vsel %vm2316_vm0, 1.0, %v6954_v61  ;;  %6850 = vset.pattern.permute.xlu1 %v10373_v9 }
 0x3b4   : > { %v2508_v59 = vadd.f32 %v6126_v53, %v1996_v32  ;;  %2232 = vperm.xlu1 %6850, %v2069_v48   ;;  %v5937_v53 = vsel %vm783_vm3, 1.0, %v6954_v61 }
 0x3b6   : > { %v2552_v50 = vpack.c.bf16 %v2509_v31, %v2508_v59  ;;  %6851 = vset.pattern.permute.xlu2 %v10384_v54  ;;  %v10476_v59 = vld [vmem:[#allocation66_spill] sm:$0xff] }
 0x3b7   : > { %1211 = vperm.xlu2 %6851, %v1046_v43   ;;  %v8806_v0 = vpop.f32.mrf.mxu1  ;;  %v2215_v55 = vpop.permute.xlu2 %2214  ;;  %vm782_vm6 = vcmp.eq.s32.totalorder %v7559_v49, %v10476_v59 }
 0x3b8   : > { %6174 = vmatmul.msk.bf16.gmra.mxu0 %vm2580_vm9, %v2552_v50  ;;  %vm2319_vm8 = vcmp.eq.s32.totalorder %v7559_v49, %v2215_v55  ;;  %v2071_v55 = vadd.s32 15, %v10474_v33 }
 0x3ba   : > { %v1191_v5 = vpop.permute.xlu1 %1190 }
 0x3bb   : > { %vm1295_vm2 = vcmp.eq.s32.totalorder %v7559_v49, %v1191_v5  ;;  %v5936_v5 = vsel %vm782_vm6, 1.0, %v6954_v61 }
 0x3bc   : > { %6852 = vset.pattern.permute.xlu1 %v10384_v54  ;;  %v1558_v54 = vadd.s32 10, %v10473_v41  ;;  %v6001_v3 = vsel %vm1295_vm2, 1.0, %v6954_v61  ;;  %v2755_v41 = vpop.f32.mrf.mxu0 }
 0x3bd   : > { %1214 = vperm.xlu1 %6852, %v1047_v17   ;;  %v1487_v50 = vadd.f32 %v6001_v3, %v5937_v53  ;;  %v2984_v53 = vpop.permute.xlu0 %2983 }
 0x3be   : > { %v3200_v59 = vmul.f32 %v8609_v58, %v2984_v53  ;;  %v6917_v53 = vld [vmem:[%s7035_s27 + $0x148] sm:$0xff] }
 0x3bf   : > { %6853 = vset.pattern.permute.xlu2 %v10398_v28  ;;  %v3497_v7 = vpop.f32.mrf.mxu1 }
 0x3c0   : > { %v8813_v63 = vadd.f32 %v8419_v8, %v3497_v7  ;;  %3013 = vperm.xlu2 %6853, %v6912_v16   ;;  %v8817_v26 = vpop.permute.xlu2 %1196  ;;  %v2751_v8 = vadd.f32 %v8616_v4, %v2750_v11  ;;  %v6065_v11 = vsel %vm1807_vm5, 1.0, %v6954_v61  ;;  %v6064_v7 = vsel %vm1806_vm7, 1.0, %v6954_v61 }
 0x3c1   : > { %v1486_v16 = vadd.f32 %v6000_v36, %v5936_v5  ;;  %v1999_v12 = vadd.f32 %v6065_v11, %v1487_v50  ;;  %v2756_v50 = vadd.f32 %v8616_v4, %v2755_v41  ;;  %v6915_v5 = vld [vmem:[%s7035_s27 + $0x130] sm:$0xff]  ;;  %vm1297_vm13 = vcmp.eq.s32.totalorder %v7559_v49, %v8817_v26 }
 0x3c2   : > { %4216 = vrot.lane.b32.xlu0 %v8813_v63, %s6955_s26  ;;  %v3262_v43 = vadd.f32 %v3198_v20, %v2751_v8  ;;  %v6129_v20 = vsel %vm2319_vm8, 1.0, %v6954_v61 }
 0x3c3   : > { %v2979_v48 = vpop.permute.xlu1 %2978  ;;  %v1998_v18 = vadd.f32 %v6064_v7, %v1486_v16  ;;  %v3264_v7 = vadd.f32 %v3200_v59, %v2756_v50 }
 0x3c4   : > { %v3199_v32 = vmul.f32 %v8609_v58, %v2979_v48  ;;  %v2511_v48 = vadd.f32 %v6129_v20, %v1999_v12 }
 0x3c5   : > { %6855 = vset.pattern.permute.xlu1 %v10381_v22 }
 0x3c6   : > { %v3263_v31 = vadd.f32 %v3199_v32, %v2753_v35  ;;  %1723 = vperm.xlu1 %6855, %v1558_v54  }
 0x3c8   : > { %v3314_v30 = vpack.c.bf16 %v3263_v31, %v3262_v43  ;;  %6856 = vset.pattern.permute.xlu2 %v10381_v22  ;;  %v6914_v43 = vld [vmem:[%s7035_s27 + $0x120] sm:$0xff] }
 0x3c9   : > { %1726 = vperm.xlu2 %6856, %v1559_v62   ;;  %v1706_v17 = vpop.permute.xlu2 %1705  ;;  %v6913_v62 = vld [vmem:[%s7035_s27 + $0x118] sm:$0xff] }
 0x3ca   : > { %6206 = vmatmul.msk.bf16.gmra.mxu1 %vm3354_vm1, %v3314_v30  ;;  %vm1808_vm14 = vcmp.eq.s32.totalorder %v7559_v49, %v1706_v17 }
 0x3cc   : > { %v2212_v54 = vpop.permute.xlu1 %2211 }
 0x3cd   : > { %vm2318_vm10 = vcmp.eq.s32.totalorder %v7559_v49, %v2212_v54  ;;  %v6916_v54 = vld [vmem:[%s7035_s27 + $0x138] sm:$0xff] }
 0x3ce   : > { %v6128_v22 = vsel %vm2318_vm10, 1.0, %v6954_v61  ;;  %6857 = vset.pattern.permute.xlu1 %v10373_v9 }
 0x3cf   : > { %v2510_v8 = vadd.f32 %v6128_v22, %v1998_v18  ;;  %2235 = vperm.xlu1 %6857, %v2070_v51   ;;  %v10478_v18 = vld [vmem:[#allocation69_spill] sm:$0xff]  ;;  %v2221_v22 = vpop.permute.xlu0 %2220 }
 0x3d0   : > { %vm785_vm15 = vcmp.eq.s32.totalorder %v7559_v49, %v10478_v18  ;;  %vm2321_vm0 = vcmp.eq.s32.totalorder %v7559_v49, %v2221_v22 }
 0x3d1   : > { %v2553_v35 = vpack.c.bf16 %v2511_v48, %v2510_v8  ;;  %6858 = vset.pattern.permute.xlu2 %v10373_v9  ;;  %v2757_v9 = vpop.f32.mrf.mxu0  ;;  %v6003_v48 = vsel %vm1297_vm13, 1.0, %v6954_v61  ;;  %v6066_v8 = vsel %vm1808_vm14, 1.0, %v6954_v61  ;;  %v5939_v17 = vsel %vm785_vm15, 1.0, %v6954_v61 }
 0x3d2   : > { %2238 = vperm.xlu2 %6858, %v2071_v55   ;;  %v2218_v3 = vpop.permute.xlu2 %2217  ;;  %v8857_v33 = vpop.f32.mrf.mxu1  ;;  %v2758_v11 = vadd.f32 %v8616_v4, %v2757_v9 }
 0x3d3   : > { %6175 = vmatmul.msk.bf16.gmra.mxu0 %vm2580_vm9, %v2553_v35  ;;  %vm2320_vm2 = vcmp.eq.s32.totalorder %v7559_v49, %v2218_v3 }
 0x3d4   : > { %v6130_v9 = vsel %vm2320_vm2, 1.0, %v6954_v61 }
 0x3d5   : > { %v1194_v32 = vpop.permute.xlu1 %1193 }
 0x3d6   : > { %vm1296_vm11 = vcmp.eq.s32.totalorder %v7559_v49, %v1194_v32  ;;  %v1489_v32 = vadd.f32 %v6003_v48, %v5939_v17  ;;  %v6922_v48 = vld [vmem:[%s7035_s27 + $0x178] sm:$0xff] }
 0x3d7   : > { %6859 = vset.pattern.permute.xlu1 %v10398_v28  ;;  %v6002_v16 = vsel %vm1296_vm11, 1.0, %v6954_v61 }
 0x3d8   : > { %3028 = vperm.xlu1 %6859, %v6913_v62  }
 0x3d9   : > { %v2760_v3 = vpop.f32.mrf.mxu0 }
 0x3da   : > { %6860 = vset.pattern.permute.xlu2 %v10398_v28  ;;  %v10477_v28 = vld [vmem:[#allocation56_spill] sm:$0xff]  ;;  %v8880_v35 = vpop.f32.mrf.mxu1  ;;  %v2761_v17 = vadd.f32 %v8616_v4, %v2760_v3 }
 0x3db   : > { %3033 = vperm.xlu2 %6860, %v6914_v43   ;;  %v8860_v31 = vpop.permute.xlu2 %1202  ;;  %vm784_vm12 = vcmp.eq.s32.totalorder %v7559_v49, %v10477_v28  ;;  %v6131_v43 = vsel %vm2321_vm0, 1.0, %v6954_v61 }
 0x3dc   : > { %v5938_v51 = vsel %vm784_vm12, 1.0, %v6954_v61  ;;  %vm1299_vm7 = vcmp.eq.s32.totalorder %v7559_v49, %v8860_v31 }
 0x3dd   : > { %v1488_v55 = vadd.f32 %v6002_v16, %v5938_v51  ;;  %v8895_v16 = vld [vmem:[%s10223_s5] ss:$0 sm:$0xff] }
 0x3de   : > { %v2989_v36 = vpop.permute.xlu1 %2988  ;;  %v6920_v51 = vld [vmem:[%s7035_s27 + $0x160] sm:$0xff] }
 0x3df   : > { %v3201_v30 = vmul.f32 %v8609_v58, %v2989_v36  ;;  %v2000_v62 = vadd.f32 %v6066_v8, %v1488_v55  ;;  %v6918_v36 = vld [vmem:[%s7035_s27 + $0x150] sm:$0xff] }
 0x3e0   : > { %3043 = vperm.xlu1 %6859, %v6915_v5  }
 0x3e1   : > { %v3265_v12 = vadd.f32 %v3201_v30, %v2758_v11  ;;  %v2512_v11 = vadd.f32 %v6130_v9, %v2000_v62  ;;  %v2762_v22 = vpop.f32.mrf.mxu0  ;;  %v6923_v62 = vld [vmem:[%s7035_s27 + $0x180] sm:$0xff] }
 0x3e3   : > { %v3315_v20 = vpack.c.bf16 %v3265_v12, %v3264_v7  ;;  %3048 = vperm.xlu2 %6860, %v6916_v54   ;;  %v6921_v54 = vld [vmem:[%s7035_s27 + $0x168] sm:$0xff] }
 0x3e4   : > { %v2999_v26 = vpop.permute.xlu2 %2998 }
 0x3e5   : > { %6207 = vmatmul.msk.bf16.gmra.mxu1 %vm3354_vm1, %v3315_v20  ;;  %v3203_v55 = vmul.f32 %v8609_v58, %v2999_v26 }
 0x3e7   : > { %v1709_v41 = vpop.permute.xlu1 %1708 }
 0x3e8   : > { %vm1809_vm3 = vcmp.eq.s32.totalorder %v7559_v49, %v1709_v41  ;;  %3058 = vperm.xlu1 %6859, %v6917_v53   ;;  %v2763_v41 = vadd.f32 %v8616_v4, %v2762_v22 }
 0x3e9   : > { %v6067_v59 = vsel %vm1809_vm3, 1.0, %v6954_v61 }
 0x3ea   : > { %v2001_v50 = vadd.f32 %v6067_v59, %v1489_v32  ;;  %v3267_v53 = vadd.f32 %v3203_v55, %v2763_v41  ;;  %v6005_v55 = vsel %vm1299_vm7, 1.0, %v6954_v61 }
 0x3eb   : > { %3063 = vperm.xlu2 %6860, %v6918_v36   ;;  %v10479_v36 = vld [vmem:[#allocation68_spill] sm:$0xff] }
 0x3ec   : > { %v2513_v30 = vadd.f32 %v6131_v43, %v2001_v50  ;;  %v6924_v50 = vld [vmem:[%s7035_s27 + $0x190] sm:$0xff]  ;;  %vm786_vm5 = vcmp.eq.s32.totalorder %v7559_v49, %v10479_v36 }
 0x3ed   : > { %v3505_v28 = vpop.f32.mrf.mxu1  ;;  %v2224_v5 = vpop.permute.xlu2 %2223 }
 0x3ee   : > { %v2554_v7 = vpack.c.bf16 %v2513_v30, %v2512_v11  ;;  %v8898_v12 = vadd.f32 %v8895_v16, %v3505_v28  ;;  %v1712_v11 = vpop.permute.xlu0 %1711  ;;  %v6925_v28 = vld [vmem:[%s7035_s27 + $0x198] sm:$0xff]  ;;  %vm2322_vm11 = vcmp.eq.s32.totalorder %v7559_v49, %v2224_v5 }
 0x3ef   : > { %vm1810_vm6 = vcmp.eq.s32.totalorder %v7559_v49, %v1712_v11 }
 0x3f0   : > { %3073 = vperm.xlu1 %6859, %v6920_v51   ;;  %4222 = vrot.lane.b32.xlu0 %v8898_v12, %s6955_s26  ;;  %v1200_v20 = vpop.permute.xlu1 %1199  ;;  %v5940_v51 = vsel %vm786_vm5, 1.0, %v6954_v61  ;;  %v6068_v22 = vsel %vm1810_vm6, 1.0, %v6954_v61 }
 0x3f1   : > { %6176 = vmatmul.msk.bf16.gmra.mxu0 %vm2580_vm9, %v2554_v7  ;;  %vm1298_vm4 = vcmp.eq.s32.totalorder %v7559_v49, %v1200_v20  ;;  %v2765_v7 = vpop.f32.mrf.mxu0  ;;  %v10480_v20 = vld [vmem:[#allocation59_spill] sm:$0xff] }
 0x3f2   : > { %v6004_v30 = vsel %vm1298_vm4, 1.0, %v6954_v61  ;;  %vm787_vm8 = vcmp.eq.s32.totalorder %v7559_v49, %v10480_v20 }
 0x3f3   : > { %3078 = vperm.xlu2 %6860, %v6921_v54   ;;  %v1490_v54 = vadd.f32 %v6004_v30, %v5940_v51  ;;  %v5941_v31 = vsel %vm787_vm8, 1.0, %v6954_v61  ;;  %v6928_v51 = vld [vmem:[%s7035_s27 + $0x1c0] sm:$0xff] }
 0x3f4   : > { %v1491_v41 = vadd.f32 %v6005_v55, %v5941_v31  ;;  %v6929_v55 = vld [vmem:[%s7035_s27 + $0x1c8] sm:$0xff] }
 0x3f5   : > { %v8914_v59 = vpop.f32.mrf.mxu1 }
 0x3f6   : > { %v8905_v18 = vpop.permute.xlu2 %1205  ;;  %v1209_v30 = vpop.permute.xlu0 %1208 }
 0x3f7   : > { %vm1300_vm13 = vcmp.eq.s32.totalorder %v7559_v49, %v8905_v18  ;;  %vm1301_vm15 = vcmp.eq.s32.totalorder %v7559_v49, %v1209_v30 }
 0x3f8   : > { %3088 = vperm.xlu1 %6859, %v6922_v48   ;;  %v6926_v48 = vld [vmem:[%s7035_s27 + $0x1a8] sm:$0xff]  ;;  %v6007_v30 = vsel %vm1301_vm15, 1.0, %v6954_v61 }
 0x3f9   : > { %v2994_v8 = vpop.permute.xlu1 %2993  ;;  %v2767_v36 = vpop.f32.mrf.mxu0 }
 0x3fa   : > { %v3202_v32 = vmul.f32 %v8609_v58, %v2994_v8 }
 0x3fb   : > { %3093 = vperm.xlu2 %6860, %v6923_v62  }
 0x3fc   : > { %v3266_v43 = vadd.f32 %v3202_v32, %v2761_v17  ;;  %v2002_v32 = vadd.f32 %v6068_v22, %v1490_v54 }
 0x3fe   : > { %v3316_v9 = vpack.c.bf16 %v3267_v53, %v3266_v43  ;;  %v6132_v53 = vsel %vm2322_vm11, 1.0, %v6954_v61  ;;  %v6927_v43 = vld [vmem:[%s7035_s27 + $0x1b0] sm:$0xff] }
 0x3ff   : > { %v3009_v26 = vpop.permute.xlu2 %3008 }
 0x400   : > { %3103 = vperm.xlu1 %6859, %v6924_v50   ;;  %6208 = vmatmul.msk.bf16.gmra.mxu1 %vm3354_vm1, %v3316_v9  ;;  %v3205_v22 = vmul.f32 %v8609_v58, %v3009_v26  ;;  %v2230_v26 = vpop.permute.xlu0 %2229 }
 0x401   : > { %vm2324_vm4 = vcmp.eq.s32.totalorder %v7559_v49, %v2230_v26 }
 0x402   : > { %v1715_v3 = vpop.permute.xlu1 %1714  ;;  %v6134_v26 = vsel %vm2324_vm4, 1.0, %v6954_v61 }
 0x403   : > { %3108 = vperm.xlu2 %6860, %v6925_v28   ;;  %vm1811_vm10 = vcmp.eq.s32.totalorder %v7559_v49, %v1715_v3  ;;  %v2514_v3 = vadd.f32 %v6132_v53, %v2002_v32  ;;  %v2770_v53 = vpop.f32.mrf.mxu0 }
 0x404   : > { %v6069_v17 = vsel %vm1811_vm10, 1.0, %v6954_v61 }
 0x405   : > { %v2003_v5 = vadd.f32 %v6069_v17, %v1491_v41  ;;  %v2766_v17 = vadd.f32 %v8616_v4, %v2765_v7  ;;  %v2768_v41 = vadd.f32 %v8616_v4, %v2767_v36  ;;  %v10481_v36 = vld [vmem:[#allocation72_spill] sm:$0xff] }
 0x406   : > { %vm788_vm14 = vcmp.eq.s32.totalorder %v7559_v49, %v10481_v36  ;;  %v8986_v36 = vadd.f32 %v8895_v16, %v8444_v37 }
 0x408   : > { %3118 = vperm.xlu1 %6859, %v6926_v48   ;;  %v8933_v8 = vpop.f32.mrf.mxu1  ;;  %v8937_v62 = vpop.permute.xlu2 %1720 }
 0x409   : > { %vm1813_vm3 = vcmp.eq.s32.totalorder %v7559_v49, %v8937_v62 }
 0x40b   : > { %3123 = vperm.xlu2 %6860, %v6927_v43   ;;  %v2227_v9 = vpop.permute.xlu1 %2226  ;;  %v3269_v43 = vadd.f32 %v3205_v22, %v2768_v41  ;;  %v10482_v22 = vld [vmem:[#allocation71_spill] sm:$0xff] }
 0x40c   : > { %vm2323_vm12 = vcmp.eq.s32.totalorder %v7559_v49, %v2227_v9  ;;  %vm789_vm2 = vcmp.eq.s32.totalorder %v7559_v49, %v10482_v22 }
 0x40d   : > { %v6133_v50 = vsel %vm2323_vm12, 1.0, %v6954_v61  ;;  %v5943_v62 = vsel %vm789_vm2, 1.0, %v6954_v61 }
 0x40e   : > { %v2515_v11 = vadd.f32 %v6133_v50, %v2003_v5  ;;  %v6930_v5 = vld [vmem:[%s7035_s27 + $0x1d8] sm:$0xff] }
 0x410   : > { %v2555_v28 = vpack.c.bf16 %v2515_v11, %v2514_v3  ;;  %3133 = vperm.xlu1 %6859, %v6928_v51   ;;  %v3512_v20 = vpop.f32.mrf.mxu1  ;;  %v6931_v3 = vld [vmem:[%s7035_s27 + $0x1e0] sm:$0xff]  ;;  %v6006_v51 = vsel %vm1300_vm13, 1.0, %v6954_v61 }
 0x411   : > { %v8945_v54 = vadd.f32 %v8895_v16, %v3512_v20  ;;  %v8952_v48 = vpop.permute.xlu2 %1211  ;;  %v6932_v20 = vld [vmem:[%s7035_s27 + $0x1f0] sm:$0xff] }
 0x412   : > { %6177 = vmatmul.msk.bf16.gmra.mxu0 %vm2580_vm9, %v2555_v28  ;;  %v2772_v28 = vpop.f32.mrf.mxu0  ;;  %vm1302_vm8 = vcmp.eq.s32.totalorder %v7559_v49, %v8952_v48  ;;  %v9037_v48 = vadd.f32 %v8895_v16, %v8699_v52 }
 0x413   : > { %3138 = vperm.xlu2 %6860, %v6929_v55   ;;  %4228 = vrot.lane.b32.xlu0 %v8945_v54, %s6955_s26  ;;  %v5942_v55 = vsel %vm788_vm14, 1.0, %v6954_v61 }
 0x414   : > { %v3004_v31 = vpop.permute.xlu1 %3003 }
 0x415   : > { %v3204_v32 = vmul.f32 %v8609_v58, %v3004_v31  ;;  %v3019_v31 = vpop.permute.xlu0 %3018 }
 0x416   : > { %v3207_v41 = vmul.f32 %v8609_v58, %v3019_v31  ;;  %v9004_v31 = vadd.f32 %v8895_v16, %v8584_v10 }
 0x417   : > { %v3268_v9 = vadd.f32 %v3204_v32, %v2766_v17  ;;  %v2771_v32 = vadd.f32 %v8616_v4, %v2770_v53 }
 0x418   : > { %3148 = vperm.xlu1 %6859, %v6930_v5   ;;  %v6933_v5 = vld [vmem:[%s7035_s27 + $0x1f8] sm:$0xff]  ;;  %v3689_v60 = vmul.f32 0.01, %v9004_v31  ;;  %s5893_s27 = sshll.u32 %s10524_s23, 2 }
 0x419   : > { %v3317_v50 = vpack.c.bf16 %v3269_v43, %v3268_v9  ;;  %v2773_v43 = vadd.f32 %v8616_v4, %v2772_v28  ;;  %v1492_v9 = vadd.f32 %v6006_v51, %v5942_v55  ;;  %v8998_v55 = vadd.f32 %v8895_v16, %v8555_v2  ;;  %s9732_s20 = scalar_lea.vmem %s10230_s12, %s5893_s27 }
 0x41a   : > { %v3014_v11 = vpop.permute.xlu2 %3013  ;;  %v2775_v37 = vpop.f32.mrf.mxu0 }
 0x41b   : > { %3153 = vperm.xlu2 %6860, %v6931_v3   ;;  %6209 = vmatmul.msk.bf16.gmra.mxu1 %vm3354_vm1, %v3317_v50  ;;  %v3206_v18 = vmul.f32 %v8609_v58, %v3014_v11  ;;  %v6071_v50 = vsel %vm1813_vm3, 1.0, %v6954_v61  ;;  %v1493_v3 = vadd.f32 %v6007_v30, %v5943_v62  ;;  %v3271_v53 = vadd.f32 %v3207_v41, %v2773_v43 }
 0x41c   : > { %v9012_v41 = vadd.f32 %v8895_v16, %v8637_v21  ;;  %v9021_v43 = vadd.f32 %v8895_v16, %v8652_v46  ;;  %v6008_v46 = vsel %vm1302_vm8, 1.0, %v6954_v61  ;;  %vm3856_vm3 = vcmask 130048  }
 0x41d   : > { %v1718_v7 = vpop.permute.xlu1 %1717 }
 0x41e   : > { %vm1812_vm0 = vcmp.eq.s32.totalorder %v7559_v49, %v1718_v7  ;;  %v3270_v7 = vadd.f32 %v3206_v18, %v2771_v32  ;;  %v10483_v32 = vld [vmem:[#allocation74_spill] sm:$0xff]  ;;  %vm3627_vm8 = vcmp.ge.f32.partialorder %v9012_v41, 0.0 }
 0x41f   : > { %v6070_v17 = vsel %vm1812_vm0, 1.0, %v6954_v61  ;;  %vm791_vm7 = vcmp.eq.s32.totalorder %v7559_v49, %v10483_v32  ;;  %vm3620_vm0 = vcmp.ge.f32.partialorder %v8433_v14, 0.0 }
 0x420   : > { %3163 = vperm.xlu1 %6859, %v6932_v20   ;;  %v2004_v11 = vadd.f32 %v6070_v17, %v1492_v9  ;;  %v2005_v20 = vadd.f32 %v6071_v50, %v1493_v3  ;;  %v3318_v28 = vpack.c.bf16 %v3271_v53, %v3270_v7  ;;  %v5945_v21 = vsel %vm791_vm7, 1.0, %v6954_v61 }
 0x421   : > { %vm3624_vm7 = vcmp.ge.f32.partialorder %v8998_v55, 0.0 }
 0x422   : > { %v2516_v51 = vadd.f32 %v6134_v26, %v2004_v11  ;;  %v2777_v2 = vpop.f32.mrf.mxu0 }
 0x423   : > { %3168 = vperm.xlu2 %6860, %v6933_v5   ;;  %v1727_v17 = vpop.permute.xlu2 %1726  ;;  %v10484_v5 = vld [vmem:[#allocation62_spill] sm:$0xff] }
 0x424   : > { %vm1815_vm10 = vcmp.eq.s32.totalorder %v7559_v49, %v1727_v17  ;;  %vm790_vm11 = vcmp.eq.s32.totalorder %v7559_v49, %v10484_v5  ;;  %v9059_v17 = vadd.f32 %v8895_v16, %v8796_v47  ;;  %v9073_v47 = vadd.f32 %v8895_v16, %v8806_v0  ;;  %v9078_v5 = vld [vmem:[%s10221_s3] ss:$0 sm:$0xff] }
 0x425   : > { %v6073_v50 = vsel %vm1815_vm10, 1.0, %v6954_v61  ;;  %v5944_v11 = vsel %vm790_vm11, 1.0, %v6954_v61  ;;  %vm3626_vm10 = vcmp.ge.f32.partialorder %v8595_v19, 0.0 }
 0x426   : > { %v2233_v58 = vpop.permute.xlu1 %2232  ;;  %v1494_v53 = vadd.f32 %v6008_v46, %v5944_v11 }
 0x427   : > { %vm2325_vm5 = vcmp.eq.s32.totalorder %v7559_v49, %v2233_v58 }
 0x428   : > { %v6135_v4 = vsel %vm2325_vm5, 1.0, %v6954_v61  ;;  %4188 = vrot.lane.b32.xlu1 %v8986_v36, %s6955_s26 }
 0x429   : > { %v2517_v22 = vadd.f32 %v6135_v4, %v2005_v20  ;;  %v9050_v4 = vadd.f32 %v8895_v16, %v8710_v23 }
 0x42a   : > { %v9039_v7 = vpop.f32.mrf.mxu0 }
 0x42b   : > { %v2556_v18 = vpack.c.bf16 %v2517_v22, %v2516_v51  ;;  %4190 = vrot.lane.b32.xlu2 %v8470_v42, %s6955_s26  ;;  %6210 = vmatmul.msk.bf16.gmra.mxu1 %vm3354_vm1, %v3318_v28  ;;  %v9008_v42 = vpop.f32.mrf.mxu1 }
 0x42c   : > { %v2239_v3 = vpop.permute.xlu2 %2238 }
 0x42d   : > { %6178 = vmatmul.msk.bf16.gmra.mxu0 %vm2580_vm9, %v2556_v18  ;;  %vm2327_vm13 = vcmp.eq.s32.totalorder %v7559_v49, %v2239_v3 }
 0x42e   : > { %v6137_v52 = vsel %vm2327_vm13, 1.0, %v6954_v61  ;;  %vm3629_vm13 = vcmp.ge.f32.partialorder %v8662_v57, 0.0 }
 0x42f   : > { %v1215_v30 = vpop.permute.xlu1 %1214 }
 0x430   : > { %4194 = vrot.lane.b32.xlu1 %v8998_v55, %s6955_s26  ;;  %vm1303_vm6 = vcmp.eq.s32.totalorder %v7559_v49, %v1215_v30 }
 0x431   : > { %v6009_v9 = vsel %vm1303_vm6, 1.0, %v6954_v61  ;;  %vm3625_vm6 = vcmp.ge.f32.partialorder %v9004_v31, 0.0 }
 0x432   : > { %v1495_v62 = vadd.f32 %v6009_v9, %v5945_v21  ;;  %v2782_v9 = vpop.f32.mrf.mxu0 }
 0x433   : > { %4196 = vrot.lane.b32.xlu2 %v9004_v31, %s6955_s26  ;;  %v9043_v26 = vpop.f32.mrf.mxu1 }
 0x434   : > { %v2007_v20 = vadd.f32 %v6073_v50, %v1495_v62  ;;  %v2776_v62 = vadd.f32 %v9078_v5, %v2775_v37  ;;  %v2778_v50 = vadd.f32 %v9078_v5, %v2777_v2 }
 0x436   : > { %v2519_v18 = vadd.f32 %v6137_v52, %v2007_v20 }
 0x438   : > { %4200 = vrot.lane.b32.xlu1 %v9012_v41, %s6955_s26  ;;  %v1724_v10 = vpop.permute.xlu1 %1723 }
 0x439   : > { %vm1814_vm12 = vcmp.eq.s32.totalorder %v7559_v49, %v1724_v10  ;;  %v3024_v10 = vpop.permute.xlu0 %3023 }
 0x43a   : > { %v6072_v58 = vsel %vm1814_vm12, 1.0, %v6954_v61  ;;  %v2785_v52 = vpop.f32.mrf.mxu0 }
 0x43b   : > { %4202 = vrot.lane.b32.xlu2 %v9021_v43, %s6955_s26  ;;  %v2006_v51 = vadd.f32 %v6072_v58, %v1494_v53  ;;  %v9088_v58 = vadd.f32 %v8895_v16, %v8857_v33  ;;  %v3685_v53 = vmul.f32 0.01, %v8986_v36 }
 0x440   : > { %4206 = vrot.lane.b32.xlu1 %v9037_v48, %s6955_s26 }
 0x441   : > { %v2236_v28 = vpop.permute.xlu1 %2235 }
 0x442   : > { %vm2326_vm14 = vcmp.eq.s32.totalorder %v7559_v49, %v2236_v28  ;;  %v9068_v49 = vld [vmem:[%s10220_s2] ss:$0 sm:$0xff] }
 0x443   : > { %v6136_v22 = vsel %vm2326_vm14, 1.0, %v6954_v61  ;;  %4208 = vrot.lane.b32.xlu2 %v9050_v4, %s6955_s26  ;;  %v3208_v61 = vmul.f32 %v9068_v49, %v3024_v10  ;;  %vm3628_vm14 = vcmp.ge.f32.partialorder %v9021_v43, 0.0 }
 0x444   : > { %v2518_v30 = vadd.f32 %v6136_v22, %v2006_v51  ;;  %v3684_v51 = vmul.f32 0.01, %v8433_v14  ;;  %v9098_v22 = vadd.f32 %v8895_v16, %v8880_v35 }
 0x445   : > { %v3272_v11 = vadd.f32 %v3208_v61, %v2776_v62  ;;  %v9114_v62 = vadd.f32 %v8895_v16, %v8914_v59  ;;  %v2787_v59 = vpop.f32.mrf.mxu0 }
 0x446   : > { %v2557_v32 = vpack.c.bf16 %v2519_v18, %v2518_v30  ;;  %v3034_v30 = vpop.permute.xlu2 %3033  ;;  %v3748_v35 = vsel %vm3620_vm0, %v8433_v14, %v3684_v51  ;;  %v2781_v14 = vadd.f32 %v9078_v5, %v9039_v7  ;;  %v9138_v7 = vadd.f32 %v8895_v16, %v9043_v26 }
 0x447   : > { %v3520_v23 = vpop.f32.mrf.mxu1  ;;  %v2786_v26 = vadd.f32 %v9078_v5, %v2785_v52 }
 0x448   : > { %v3521_v21 = vadd.f32 %v8895_v16, %v3520_v23  ;;  %4212 = vrot.lane.b32.xlu1 %v9059_v17, %s6955_s26  ;;  %6179 = vmatmul.msk.bf16.gmra.mxu0 %vm2580_vm9, %v2557_v32  ;;  %vm3621_vm9 = vcmp.ge.f32.partialorder %v8986_v36, 0.0 }
 0x449   : > { %v3749_v18 = vsel %vm3621_vm9, %v8986_v36, %v3685_v53  ;;  %v3210_v36 = vmul.f32 %v9068_v49, %v3034_v30  ;;  %v9132_v53 = vadd.f32 %v8895_v16, %v9008_v42  ;;  %v2788_v30 = vadd.f32 %v9078_v5, %v2787_v59 }
 0x44a   : > { %4234 = vrot.lane.b32.xlu0 %v3521_v21, %s6955_s26  ;;  %v3029_v46 = vpop.permute.xlu1 %3028  ;;  %v3708_v28 = vmul.f32 0.01, %v3521_v21  ;;  %vm3644_vm15 = vcmp.ge.f32.partialorder %v3521_v21, 0.0  ;;  %v3812_v61 = vpack.c.bf16 %v3749_v18, %v3748_v35  ;;  %v3753_v59 = vsel %vm3625_vm6, %v9004_v31, %v3689_v60 }
 0x44b   : > { %v3209_v3 = vmul.f32 %v9068_v49, %v3029_v46  ;;  %4214 = vrot.lane.b32.xlu2 %v9073_v47, %s6955_s26  ;;  %v3039_v46 = vpop.permute.xlu0 %3038  ;;  %vm3631_vm9 = vcmp.ge.f32.partialorder %v9050_v4, 0.0 }
 0x44c   : > { %v9105_v32 = vsel %vm3644_vm15, %v3521_v21, %v3708_v28  ;;  %v3211_v21 = vmul.f32 %v9068_v49, %v3039_v46  ;;  %vm3630_vm15 = vcmp.ge.f32.partialorder %v9037_v48, 0.0 }
 0x44d   : > { %v3273_v0 = vadd.f32 %v3209_v3, %v2778_v50  ;;  %v2783_v50 = vadd.f32 %v9078_v5, %v2782_v9  ;;  %v9126_v3 = vadd.f32 %v8895_v16, %v8933_v8  ;;  %v2790_v8 = vpop.f32.mrf.mxu0 }
 0x44e   : > { %v3049_v28 = vpop.permute.xlu2 %3048 }
 0x44f   : > { %v3319_v20 = vpack.c.bf16 %v3273_v0, %v3272_v11  ;;  %v3522_v37 = vpop.f32.mrf.mxu1  ;;  %v3274_v11 = vadd.f32 %v3210_v36, %v2781_v14  ;;  %v3275_v0 = vadd.f32 %v3211_v21, %v2783_v50  ;;  %v3688_v50 = vmul.f32 0.01, %v8998_v55 }
 0x450   : > { %v3523_v2 = vadd.f32 %v8895_v16, %v3522_v37  ;;  %4218 = vrot.lane.b32.xlu1 %v9088_v58, %s6955_s26 }
 0x451   : > { %6211 = vmatmul.msk.bf16.gmra.mxu1 %vm3354_vm1, %v3319_v20  ;;  %v3320_v20 = vpack.c.bf16 %v3275_v0, %v3274_v11 }
 0x452   : > { %vm3645_vm2 = vcmp.ge.f32.partialorder %v3523_v2, 0.0  ;;  %v3709_v33 = vmul.f32 0.01, %v3523_v2  ;;  %v3044_v37 = vpop.permute.xlu1 %3043 }
 0x453   : > { %4220 = vrot.lane.b32.xlu2 %v9098_v22, %s6955_s26  ;;  %v3212_v42 = vmul.f32 %v9068_v49, %v3044_v37 }
 0x454   : > { %v9107_v23 = vsel %vm3645_vm2, %v3523_v2, %v3709_v33  ;;  %v3213_v33 = vmul.f32 %v9068_v49, %v3049_v28  ;;  %v3054_v28 = vpop.permute.xlu0 %3053 }
 0x455   : > { %v3824_v10 = vpack.c.bf16 %v9107_v23, %v9105_v32  ;;  %v3276_v35 = vadd.f32 %v3212_v42, %v2786_v26  ;;  %v2792_v46 = vpop.f32.mrf.mxu0  ;;  %v3214_v42 = vmul.f32 %v9068_v49, %v3054_v28  ;;  %v2843_v32 = vadd.f32 %v9078_v5, %v8382_v27 }
 0x456   : > { %v2793_v26 = vadd.f32 %v9078_v5, %v2792_v46 }
 0x458   : > { %4224 = vrot.lane.b32.xlu1 %v9114_v62, %s6955_s26  ;;  %6230 = vmatmul.msk.bf16.vlgmr.msrb.gmra.mxu0 %vm3856_vm3, %v3812_v61 }
 0x45a   : > { %v3059_v0 = vpop.permute.xlu1 %3058 }
 0x45b   : > { %4226 = vrot.lane.b32.xlu2 %v9126_v3, %s6955_s26  ;;  %v3215_v37 = vmul.f32 %v9068_v49, %v3059_v0 }
 0x45d   : > { %v2795_v11 = vpop.f32.mrf.mxu0 }
 0x460   : > { %4230 = vrot.lane.b32.xlu1 %v9132_v53, %s6955_s26 }
 0x461   : > { %6212 = vmatmul.msk.bf16.gmra.mxu1 %vm3354_vm1, %v3320_v20  ;;  %v3752_v20 = vsel %vm3624_vm7, %v8998_v55, %v3688_v50  ;;  %v3691_v55 = vmul.f32 0.01, %v9012_v41 }
 0x462   : > { %v3525_v9 = vpop.f32.mrf.mxu1 }
 0x463   : > { %4232 = vrot.lane.b32.xlu2 %v9138_v7, %s6955_s26  ;;  %v3526_v51 = vadd.f32 %v8895_v16, %v3525_v9  ;;  %v3814_v9 = vpack.c.bf16 %v3753_v59, %v3752_v20 }
 0x465   : > { %v3710_v61 = vmul.f32 0.01, %v3526_v51  ;;  %vm3646_vm4 = vcmp.ge.f32.partialorder %v3526_v51, 0.0  ;;  %v2797_v31 = vpop.f32.mrf.mxu0 }
 0x466   : > { %v2798_v50 = vadd.f32 %v9078_v5, %v2797_v31 }
 0x467   : > { %v9157_v52 = vsel %vm3646_vm4, %v3526_v51, %v3710_v61  ;;  %vm3633_vm4 = vcmp.ge.f32.partialorder %v9059_v17, 0.0 }
 0x468   : > { %4236 = vrot.lane.b32.xlu1 %v3523_v2, %s6955_s26  ;;  %6231 = vmatmul.msk.bf16.gmra.mxu0 %vm3856_vm3, %v3813_v1  ;;  %v3277_v2 = vadd.f32 %v3213_v33, %v2788_v30  ;;  %v3279_v33 = vadd.f32 %v3215_v37, %v2793_v26 }
 0x46a   : > { %v3527_v18 = vpop.f32.mrf.mxu1  ;;  %v3321_v1 = vpack.c.bf16 %v3277_v2, %v3276_v35 }
 0x46b   : > { %v3528_v36 = vadd.f32 %v8895_v16, %v3527_v18  ;;  %4238 = vrot.lane.b32.xlu2 %v3526_v51, %s6955_s26  ;;  %v2791_v51 = vadd.f32 %v9078_v5, %v2790_v8  ;;  %v3755_v8 = vsel %vm3627_vm8, %v9012_v41, %v3691_v55  ;;  %v2796_v41 = vadd.f32 %v9078_v5, %v2795_v11 }
 0x46c   : > { %v3692_v55 = vmul.f32 0.01, %v9021_v43  ;;  %vm3635_vm8 = vcmp.ge.f32.partialorder %v8813_v63, 0.0 }
 0x46d   : > { %vm3647_vm5 = vcmp.ge.f32.partialorder %v3528_v36, 0.0  ;;  %v3711_v44 = vmul.f32 0.01, %v3528_v36  ;;  %4240 = vrot.lane.b32.xlu0 %v3528_v36, %s6955_s26  ;;  %v3278_v18 = vadd.f32 %v3214_v42, %v2791_v51 }
 0x46e   : > { %v2800_v2 = vpop.f32.mrf.mxu0 }
 0x46f   : > { %v9159_v21 = vsel %vm3647_vm5, %v3528_v36, %v3711_v44  ;;  %v3322_v61 = vpack.c.bf16 %v3279_v33, %v3278_v18  ;;  %v3690_v36 = vmul.f32 0.01, %v8595_v19  ;;  %v3693_v18 = vmul.f32 0.01, %v8662_v57 }
 0x470   : > { %v3825_v14 = vpack.c.bf16 %v9159_v21, %v9157_v52  ;;  %vm3632_vm5 = vcmp.ge.f32.partialorder %v8727_v38, 0.0  ;;  %v2848_v52 = vadd.f32 %v9078_v5, %v8402_v34 }
 0x471   : > { %6213 = vmatmul.msk.bf16.gmra.mxu1 %vm3354_vm1, %v3321_v1  ;;  %v3754_v46 = vsel %vm3626_vm10, %v8595_v19, %v3690_v36  ;;  %v3069_v1 = vpop.permute.xlu0 %3068  ;;  %v3757_v11 = vsel %vm3629_vm13, %v8662_v57, %v3693_v18  ;;  %vm3634_vm10 = vcmp.ge.f32.partialorder %v9073_v47, 0.0 }
 0x472   : > { %v3815_v60 = vpack.c.bf16 %v3755_v8, %v3754_v46  ;;  %v3217_v20 = vmul.f32 %v9068_v49, %v3069_v1  ;;  %v3074_v8 = vpop.permute.xlu1 %3073 }
 0x474   : > { %v3281_v28 = vadd.f32 %v3217_v20, %v2798_v50  ;;  %v2801_v50 = vadd.f32 %v9078_v5, %v2800_v2  ;;  %v3695_v20 = vmul.f32 0.01, %v9050_v4 }
 0x476   : > { %v2802_v31 = vpop.f32.mrf.mxu0 }
 0x477   : > { %v2803_v46 = vadd.f32 %v9078_v5, %v2802_v31 }
 0x478   : > { %6232 = vmatmul.msk.bf16.gmra.mxu0 %vm3856_vm3, %v3814_v9  ;;  %v3064_v9 = vpop.permute.xlu2 %3063 }
 0x479   : > { %v3216_v37 = vmul.f32 %v9068_v49, %v3064_v9 }
 0x47b   : > { %v3280_v33 = vadd.f32 %v3216_v37, %v2796_v41  ;;  %v3694_v41 = vmul.f32 0.01, %v9037_v48 }
 0x47d   : > { %v3530_v30 = vpop.f32.mrf.mxu1 }
 0x47e   : > { %v3531_v35 = vadd.f32 %v8895_v16, %v3530_v30  ;;  %v3323_v30 = vpack.c.bf16 %v3281_v28, %v3280_v33 }
 0x480   : > { %4242 = vrot.lane.b32.xlu1 %v3531_v35, %s6955_s26  ;;  %v3712_v59 = vmul.f32 0.01, %v3531_v35  ;;  %vm3648_vm11 = vcmp.ge.f32.partialorder %v3531_v35, 0.0  ;;  %v3079_v36 = vpop.permute.xlu2 %3078 }
 0x481   : > { %6214 = vmatmul.msk.bf16.gmra.mxu1 %vm3354_vm1, %v3322_v61  ;;  %v3219_v1 = vmul.f32 %v9068_v49, %v3079_v36 }
 0x482   : > { %v3776_v42 = vsel %vm3648_vm11, %v3531_v35, %v3712_v59  ;;  %v3756_v35 = vsel %vm3628_vm14, %v9021_v43, %v3692_v55  ;;  %vm3637_vm11 = vcmp.ge.f32.partialorder %v9098_v22, 0.0 }
 0x483   : > { %v3816_v61 = vpack.c.bf16 %v3757_v11, %v3756_v35  ;;  %v3283_v57 = vadd.f32 %v3219_v1, %v2803_v46 }
 0x485   : > { %v3532_v44 = vpop.f32.mrf.mxu1 }
 0x486   : > { %v3533_v0 = vadd.f32 %v8895_v16, %v3532_v44 }
 0x488   : > { %6233 = vmatmul.msk.bf16.gmra.mxu0 %vm3856_vm3, %v3815_v60  ;;  %4244 = vrot.lane.b32.xlu2 %v3533_v0, %s6955_s26  ;;  %vm3649_vm12 = vcmp.ge.f32.partialorder %v3533_v0, 0.0  ;;  %v3713_v19 = vmul.f32 0.01, %v3533_v0 }
 0x48a   : > { %v3777_v51 = vsel %vm3649_vm12, %v3533_v0, %v3713_v19  ;;  %v3218_v0 = vmul.f32 %v9068_v49, %v3074_v8  ;;  %v3084_v8 = vpop.permute.xlu0 %3083  ;;  %vm3636_vm12 = vcmp.ge.f32.partialorder %v9088_v58, 0.0 }
 0x48b   : > { %v3826_v26 = vpack.c.bf16 %v3777_v51, %v3776_v42  ;;  %v3759_v42 = vsel %vm3631_vm9, %v9050_v4, %v3695_v20  ;;  %v3220_v46 = vmul.f32 %v9068_v49, %v3084_v8  ;;  %vm3639_vm9 = vcmp.ge.f32.partialorder %v9114_v62, 0.0 }
 0x48c   : > { %v3282_v43 = vadd.f32 %v3218_v0, %v2801_v50  ;;  %v3697_v50 = vmul.f32 0.01, %v9059_v17 }
 0x48d   : > { %6244 = vmatmul.msk.bf16.vlgmr.msra.gmra.mxu2 %vm3856_vm3, %v3826_v26  ;;  %v3758_v26 = vsel %vm3630_vm15, %v9037_v48, %v3694_v41  ;;  %vm3638_vm15 = vcmp.ge.f32.partialorder %v8898_v12, 0.0 }
 0x48e   : > { %v3324_v9 = vpack.c.bf16 %v3283_v57, %v3282_v43  ;;  %v3817_v31 = vpack.c.bf16 %v3759_v42, %v3758_v26  ;;  %v3696_v57 = vmul.f32 0.01, %v8727_v38  ;;  %v3761_v20 = vsel %vm3633_vm4, %v9059_v17, %v3697_v50 }
 0x48f   : > { %v2805_v44 = vpop.f32.mrf.mxu0  ;;  %vm3641_vm4 = vcmp.ge.f32.partialorder %v8945_v54, 0.0 }
 0x490   : > { %v2806_v4 = vadd.f32 %v9078_v5, %v2805_v44  ;;  %v3760_v41 = vsel %vm3632_vm5, %v8727_v38, %v3696_v57  ;;  %vm3640_vm5 = vcmp.ge.f32.partialorder %v9126_v3, 0.0 }
 0x491   : > { %6215 = vmatmul.msk.bf16.gmra.mxu1 %vm3354_vm1, %v3323_v30  ;;  %v3089_v30 = vpop.permute.xlu1 %3088 }
 0x492   : > { %v3284_v1 = vadd.f32 %v3220_v46, %v2806_v4  ;;  %v3099_v26 = vpop.permute.xlu0 %3098 }
 0x497   : > { %v2807_v2 = vpop.f32.mrf.mxu0 }
 0x498   : > { %v3535_v60 = vpop.f32.mrf.mxu1  ;;  %6234 = vmatmul.msk.bf16.gmra.mxu0 %vm3856_vm3, %v3816_v61  ;;  %v2808_v11 = vadd.f32 %v9078_v5, %v2807_v2  ;;  %v3221_v61 = vmul.f32 %v9068_v49, %v3089_v30  ;;  %v3818_v2 = vpack.c.bf16 %v3761_v20, %v3760_v41  ;;  %v3700_v20 = vmul.f32 0.01, %v9088_v58 }
 0x499   : > { %v3536_v59 = vadd.f32 %v8895_v16, %v3535_v60  ;;  %v3104_v46 = vpop.permute.xlu1 %3103 }
 0x49a   : > { %v3285_v60 = vadd.f32 %v3221_v61, %v2808_v11  ;;  %v3764_v41 = vsel %vm3636_vm12, %v9088_v58, %v3700_v20  ;;  %v2823_v58 = vadd.f32 %v9078_v5, %v8240_v6 }
 0x49b   : > { %4246 = vrot.lane.b32.xlu0 %v3536_v59, %s6955_s26  ;;  %v3714_v19 = vmul.f32 0.01, %v3536_v59  ;;  %vm3650_vm0 = vcmp.ge.f32.partialorder %v3536_v59, 0.0 }
 0x49d   : > { %v3778_v33 = vsel %vm3650_vm0, %v3536_v59, %v3714_v19  ;;  %v3325_v59 = vpack.c.bf16 %v3285_v60, %v3284_v1 }
 0x4a0   : > { %v3537_v37 = vpop.f32.mrf.mxu1 }
 0x4a1   : > { %v3538_v28 = vadd.f32 %v8895_v16, %v3537_v37  ;;  %6216 = vmatmul.msk.bf16.gmra.mxu1 %vm3354_vm1, %v3324_v9 }
 0x4a3   : > { %4248 = vrot.lane.b32.xlu1 %v3538_v28, %s6955_s26  ;;  %vm3651_vm2 = vcmp.ge.f32.partialorder %v3538_v28, 0.0  ;;  %v3715_v51 = vmul.f32 0.01, %v3538_v28 }
 0x4a5   : > { %v3779_v18 = vsel %vm3651_vm2, %v3538_v28, %v3715_v51 }
 0x4a6   : > { %v3827_v55 = vpack.c.bf16 %v3779_v18, %v3778_v33  ;;  %v3223_v33 = vmul.f32 %v9068_v49, %v3099_v26  ;;  %v3094_v18 = vpop.permute.xlu2 %3093  ;;  %v3114_v26 = vpop.permute.xlu0 %3113 }
 0x4a7   : > { %v3222_v30 = vmul.f32 %v9068_v49, %v3094_v18 }
 0x4a8   : > { %v3540_v35 = vpop.f32.mrf.mxu1  ;;  %6235 = vmatmul.msk.bf16.gmra.mxu0 %vm3856_vm3, %v3817_v31  ;;  %6245 = vmatmul.msk.bf16.gmra.mxu2 %vm3856_vm3, %v3827_v55  ;;  %v3699_v55 = vmul.f32 0.01, %v8813_v63 }
 0x4a9   : > { %v3541_v36 = vadd.f32 %v8895_v16, %v3540_v35  ;;  %v3698_v35 = vmul.f32 0.01, %v9073_v47 }
 0x4aa   : > { %v2810_v48 = vpop.f32.mrf.mxu0  ;;  %v3763_v61 = vsel %vm3635_vm8, %v8813_v63, %v3699_v55  ;;  %v3701_v63 = vmul.f32 0.01, %v9098_v22  ;;  %vm3643_vm8 = vcmp.ge.f32.partialorder %v9138_v7, 0.0 }
 0x4ab   : > { %4250 = vrot.lane.b32.xlu2 %v3541_v36, %s6955_s26  ;;  %v3716_v43 = vmul.f32 0.01, %v3541_v36  ;;  %vm3652_vm6 = vcmp.ge.f32.partialorder %v3541_v36, 0.0  ;;  %v2811_v17 = vadd.f32 %v9078_v5, %v2810_v48 }
 0x4ad   : > { %v3780_v19 = vsel %vm3652_vm6, %v3541_v36, %v3716_v43  ;;  %v3286_v38 = vadd.f32 %v3222_v30, %v2811_v17  ;;  %v3762_v36 = vsel %vm3634_vm10, %v9073_v47, %v3698_v35  ;;  %v3226_v30 = vmul.f32 %v9068_v49, %v3114_v26 }
 0x4ae   : > { %v3819_v8 = vpack.c.bf16 %v3763_v61, %v3762_v36  ;;  %v3109_v48 = vpop.permute.xlu2 %3108  ;;  %v3703_v35 = vmul.f32 0.01, %v9114_v62  ;;  %v3702_v36 = vmul.f32 0.01, %v8898_v12  ;;  %vm3642_vm10 = vcmp.ge.f32.partialorder %v9132_v53, 0.0 }
 0x4af   : > { %v3225_v50 = vmul.f32 %v9068_v49, %v3109_v48 }
 0x4b0   : > { %v3542_v0 = vpop.f32.mrf.mxu1 }
 0x4b1   : > { %v3543_v44 = vadd.f32 %v8895_v16, %v3542_v0  ;;  %6217 = vmatmul.msk.bf16.gmra.mxu1 %vm3354_vm1, %v3325_v59  ;;  %v3224_v59 = vmul.f32 %v9068_v49, %v3104_v46 }
 0x4b2   : > { %v2812_v37 = vpop.f32.mrf.mxu0 }
 0x4b3   : > { %4252 = vrot.lane.b32.xlu0 %v3543_v44, %s6955_s26  ;;  %vm3653_vm7 = vcmp.ge.f32.partialorder %v3543_v44, 0.0  ;;  %v3717_v9 = vmul.f32 0.01, %v3543_v44  ;;  %v2813_v51 = vadd.f32 %v9078_v5, %v2812_v37  ;;  %v3765_v37 = vsel %vm3637_vm11, %v9098_v22, %v3701_v63 }
 0x4b5   : > { %v3781_v28 = vsel %vm3653_vm7, %v3543_v44, %v3717_v9  ;;  %v3287_v31 = vadd.f32 %v3223_v33, %v2813_v51 }
 0x4b6   : > { %v3828_v42 = vpack.c.bf16 %v3781_v28, %v3780_v19  ;;  %v3820_v28 = vpack.c.bf16 %v3765_v37, %v3764_v41  ;;  %v3705_v37 = vmul.f32 0.01, %v8945_v54 }
 0x4b7   : > { %v3326_v11 = vpack.c.bf16 %v3287_v31, %v3286_v38  ;;  %v2821_v38 = vadd.f32 %v9078_v5, %v8232_v24  ;;  %v3767_v24 = vsel %vm3639_vm9, %v9114_v62, %v3703_v35 }
 0x4b8   : > { %6236 = vmatmul.msk.bf16.gmra.mxu0 %vm3856_vm3, %v3818_v2  ;;  %6246 = vmatmul.msk.bf16.gmra.mxu2 %vm3856_vm3, %v3828_v42  ;;  %v3119_v2 = vpop.permute.xlu1 %3118 }
 0x4b9   : > { %v3227_v22 = vmul.f32 %v9068_v49, %v3119_v2 }
 0x4bb   : > { %v3291_v55 = vadd.f32 %v3227_v22, %v2823_v58 }
 0x4c0   : > { %v3134_v26 = vpop.permute.xlu1 %3133 }
 0x4c1   : > { %6218 = vmatmul.msk.bf16.gmra.mxu1 %vm3354_vm1, %v3326_v11 }
 0x4c5   : > { %v2815_v4 = vpop.f32.mrf.mxu0 }
 0x4c6   : > { %v2816_v60 = vadd.f32 %v9078_v5, %v2815_v4  ;;  %v3290_v4 = vadd.f32 %v3226_v30, %v2821_v38 }
 0x4c8   : > { %6237 = vmatmul.msk.bf16.gmra.mxu0 %vm3856_vm3, %v3819_v8  ;;  %v3288_v47 = vadd.f32 %v3224_v59, %v2816_v60  ;;  %v3328_v6 = vpack.c.bf16 %v3291_v55, %v3290_v4  ;;  %v3766_v8 = vsel %vm3638_vm15, %v8898_v12, %v3702_v36  ;;  %v3124_v60 = vpop.permute.xlu2 %3123  ;;  %v3129_v59 = vpop.permute.xlu0 %3128  ;;  %v2826_v12 = vadd.f32 %v9078_v5, %v8266_v39 }
 0x4c9   : > { %v3821_v46 = vpack.c.bf16 %v3767_v24, %v3766_v8  ;;  %v3228_v62 = vmul.f32 %v9068_v49, %v3124_v60  ;;  %v2833_v55 = vadd.f32 %v9078_v5, %v8323_v40  ;;  %v9318_v60 = vld [vmem:[%s10223_s5] ss:$0 sm:$0xff] }
 0x4cb   : > { %v3292_v20 = vadd.f32 %v3228_v62, %v2826_v12 }
 0x4cd   : > { %v2817_v1 = vpop.f32.mrf.mxu0 }
 0x4ce   : > { %v2818_v0 = vadd.f32 %v9078_v5, %v2817_v1  ;;  %v3545_v57 = vpop.f32.mrf.mxu1 }
 0x4cf   : > { %v3546_v43 = vadd.f32 %v8895_v16, %v3545_v57 }
 0x4d0   : > { %v3289_v44 = vadd.f32 %v3225_v50, %v2818_v0 }
 0x4d1   : > { %4254 = vrot.lane.b32.xlu1 %v3546_v43, %s6955_s26  ;;  %v3718_v42 = vmul.f32 0.01, %v3546_v43  ;;  %vm3654_vm13 = vcmp.ge.f32.partialorder %v3546_v43, 0.0 }
 0x4d2   : > { %v3327_v9 = vpack.c.bf16 %v3289_v44, %v3288_v47  ;;  %v2828_v44 = vadd.f32 %v9078_v5, %v8283_v56  ;;  %v3769_v56 = vsel %vm3641_vm4, %v8945_v54, %v3705_v37  ;;  %v3230_v54 = vmul.f32 %v9068_v49, %v3134_v26 }
 0x4d3   : > { %v3782_v17 = vsel %vm3654_vm13, %v3546_v43, %v3718_v42  ;;  %v3229_v43 = vmul.f32 %v9068_v49, %v3129_v59  ;;  %v2841_v26 = vadd.f32 %v9078_v5, %v8365_v29  ;;  %v6340_v29 = vld [vmem:[%s10226_s8] sm:$0xff] }
 0x4d4   : > { %6219 = vmatmul.msk.bf16.gmra.mxu1 %vm3354_vm1, %v3327_v9  ;;  %4781 = vmatpush.bf16.msrb.mxu3 %v6340_v29 }
 0x4d5   : > { %v9324_v59 = vpop.f32.mrf.mxu0 }
 0x4d6   : > { %v3547_v19 = vpop.f32.mrf.mxu1 }
 0x4d7   : > { %v3548_v51 = vadd.f32 %v8895_v16, %v3547_v19  ;;  %v3293_v19 = vadd.f32 %v3229_v43, %v2828_v44  ;;  %v2836_v43 = vadd.f32 %v9078_v5, %v8336_v45 }
 0x4d8   : > { %6238 = vmatmul.msk.bf16.gmra.mxu0 %vm3856_vm3, %v3820_v28  ;;  %v3704_v28 = vmul.f32 0.01, %v9126_v3 }
 0x4d9   : > { %4256 = vrot.lane.b32.xlu2 %v3548_v51, %s6955_s26  ;;  %vm3655_vm14 = vcmp.ge.f32.partialorder %v3548_v51, 0.0  ;;  %v3719_v33 = vmul.f32 0.01, %v3548_v51  ;;  %v3329_v39 = vpack.c.bf16 %v3293_v19, %v3292_v20 }
 0x4da   : > { %v3768_v2 = vsel %vm3640_vm5, %v9126_v3, %v3704_v28  ;;  %v2831_v3 = vadd.f32 %v9078_v5, %v8290_v13 }
 0x4db   : > { %v3783_v18 = vsel %vm3655_vm14, %v3548_v51, %v3719_v33  ;;  %v3822_v51 = vpack.c.bf16 %v3769_v56, %v3768_v2 }
 0x4dc   : > { %v3829_v31 = vpack.c.bf16 %v3783_v18, %v3782_v17  ;;  %v3139_v17 = vpop.permute.xlu2 %3138 }
 0x4de   : > { %v3550_v11 = vpop.f32.mrf.mxu1  ;;  %6247 = vmatmul.msk.bf16.gmra.mxu2 %vm3856_vm3, %v3829_v31  ;;  %v3231_v31 = vmul.f32 %v9068_v49, %v3139_v17 }
 0x4df   : > { %v3551_v61 = vadd.f32 %v8895_v16, %v3550_v11  ;;  %v3294_v11 = vadd.f32 %v3230_v54, %v2831_v3 }
 0x4e0   : > { %v3295_v36 = vadd.f32 %v3231_v31, %v2833_v55 }
 0x4e1   : > { %4258 = vrot.lane.b32.xlu0 %v3551_v61, %s6955_s26  ;;  %v3720_v1 = vmul.f32 0.01, %v3551_v61  ;;  %vm3656_vm0 = vcmp.ge.f32.partialorder %v3551_v61, 0.0 }
 0x4e2   : > { %v3330_v13 = vpack.c.bf16 %v3295_v36, %v3294_v11  ;;  %v2846_v36 = vadd.f32 %v9078_v5, %v8389_v15 }
 0x4e3   : > { %v3784_v57 = vsel %vm3656_vm0, %v3551_v61, %v3720_v1  ;;  %v3707_v61 = vmul.f32 0.01, %v9138_v7 }
 0x4e4   : > { %6220 = vmatmul.msk.bf16.gmra.mxu1 %vm3354_vm1, %v3328_v6  ;;  %v3706_v6 = vmul.f32 0.01, %v9132_v53  ;;  %v3154_v19 = vpop.permute.xlu2 %3153 }
 0x4e5   : > { %v3771_v40 = vsel %vm3643_vm8, %v9138_v7, %v3707_v61  ;;  %v3234_v2 = vmul.f32 %v9068_v49, %v3154_v19 }
 0x4e6   : > { %v3552_v48 = vpop.f32.mrf.mxu1  ;;  %v3770_v24 = vsel %vm3642_vm10, %v9132_v53, %v3706_v6 }
 0x4e7   : > { %v3553_v50 = vadd.f32 %v8895_v16, %v3552_v48  ;;  %v3823_v48 = vpack.c.bf16 %v3771_v40, %v3770_v24  ;;  %v3298_v23 = vadd.f32 %v3234_v2, %v2841_v26 }
 0x4e8   : > { %6239 = vmatmul.msk.bf16.gmra.mxu0 %vm3856_vm3, %v3821_v46  ;;  %v3149_v46 = vpop.permute.xlu1 %3148 }
 0x4e9   : > { %4260 = vrot.lane.b32.xlu1 %v3553_v50, %s6955_s26  ;;  %vm3657_vm2 = vcmp.ge.f32.partialorder %v3553_v50, 0.0  ;;  %v3721_v0 = vmul.f32 0.01, %v3553_v50  ;;  %v3233_v53 = vmul.f32 %v9068_v49, %v3149_v46 }
 0x4eb   : > { %v3785_v63 = vsel %vm3657_vm2, %v3553_v50, %v3721_v0  ;;  %v3144_v50 = vpop.permute.xlu0 %3143 }
 0x4ec   : > { %v3830_v47 = vpack.c.bf16 %v3785_v63, %v3784_v57  ;;  %v2838_v57 = vadd.f32 %v9078_v5, %v8345_v25  ;;  %v3232_v63 = vmul.f32 %v9068_v49, %v3144_v50  ;;  %v3169_v55 = vpop.permute.xlu2 %3168 }
 0x4ed   : > { %v3237_v6 = vmul.f32 %v9068_v49, %v3169_v55 }
 0x4ee   : > { %v3555_v9 = vpop.f32.mrf.mxu1  ;;  %6248 = vmatmul.msk.bf16.gmra.mxu2 %vm3856_vm3, %v3830_v47  ;;  %v3297_v47 = vadd.f32 %v3233_v53, %v2838_v57 }
 0x4ef   : > { %v3556_v41 = vadd.f32 %v8895_v16, %v3555_v9  ;;  %v3296_v9 = vadd.f32 %v3232_v63, %v2836_v43  ;;  %v3301_v24 = vadd.f32 %v3237_v6, %v2848_v52 }
 0x4f0   : > { %v3164_v27 = vpop.permute.xlu1 %3163 }
 0x4f1   : > { %4262 = vrot.lane.b32.xlu2 %v3556_v41, %s6955_s26  ;;  %v3722_v33 = vmul.f32 0.01, %v3556_v41  ;;  %vm3658_vm6 = vcmp.ge.f32.partialorder %v3556_v41, 0.0  ;;  %v3331_v37 = vpack.c.bf16 %v3297_v47, %v3296_v9 }
 0x4f3   : > { %v3786_v58 = vsel %vm3658_vm6, %v3556_v41, %v3722_v33  ;;  %v9334_v41 = vpop.f32.mrf.mxu0  ;;  %v3159_v45 = vpop.permute.xlu0 %3158 }
 0x4f4   : > { %6221 = vmatmul.msk.bf16.gmra.mxu1 %vm3354_vm1, %v3329_v39  ;;  %v3235_v33 = vmul.f32 %v9068_v49, %v3159_v45 }
 0x4f6   : > { %v3557_v42 = vpop.f32.mrf.mxu1  ;;  %v3299_v54 = vadd.f32 %v3235_v33, %v2843_v32 }
 0x4f7   : > { %v3558_v22 = vadd.f32 %v8895_v16, %v3557_v42 }
 0x4f8   : > { %6240 = vmatmul.msk.bf16.gmra.mxu0 %vm3856_vm3, %v3822_v51 }
 0x4f9   : > { %4264 = vrot.lane.b32.xlu0 %v3558_v22, %s6955_s26  ;;  %vm3659_vm7 = vcmp.ge.f32.partialorder %v3558_v22, 0.0  ;;  %v3723_v18 = vmul.f32 0.01, %v3558_v22 }
 0x4fb   : > { %v3787_v30 = vsel %vm3659_vm7, %v3558_v22, %v3723_v18 }
 0x4fc   : > { %v3831_v38 = vpack.c.bf16 %v3787_v30, %v3786_v58  ;;  %v3332_v58 = vpack.c.bf16 %v3299_v54, %v3298_v23 }
 0x4fe   : > { %v3560_v35 = vpop.f32.mrf.mxu1  ;;  %6249 = vmatmul.msk.bf16.gmra.mxu2 %vm3856_vm3, %v3831_v38 }
 0x4ff   : > { %v3561_v4 = vadd.f32 %v8895_v16, %v3560_v35  ;;  %v3236_v35 = vmul.f32 %v9068_v49, %v3164_v27 }
 0x501   : > { %4266 = vrot.lane.b32.xlu1 %v3561_v4, %s6955_s26  ;;  %v3724_v16 = vmul.f32 0.01, %v3561_v4  ;;  %vm3660_vm11 = vcmp.ge.f32.partialorder %v3561_v4, 0.0  ;;  %v3300_v21 = vadd.f32 %v3236_v35, %v2846_v36 }
 0x503   : > { %v3788_v0 = vsel %vm3660_vm11, %v3561_v4, %v3724_v16 }
 0x504   : > { %6222 = vmatmul.msk.bf16.gmra.mxu1 %vm3354_vm1, %v3330_v13 }
 0x506   : > { %v3562_v8 = vpop.f32.mrf.mxu1 }
 0x507   : > { %v3563_v1 = vadd.f32 %v9318_v60, %v3562_v8  ;;  %v3333_v8 = vpack.c.bf16 %v3301_v24, %v3300_v21 }
 0x508   : > { %6241 = vmatmul.msk.bf16.gmra.mxu0 %vm3856_vm3, %v3823_v48 }
 0x509   : > { %v3725_v7 = vmul.f32 0.01, %v3563_v1  ;;  %4268 = vrot.lane.b32.xlu2 %v3563_v1, %s6955_s26  ;;  %vm3661_vm12 = vcmp.ge.f32.partialorder %v3563_v1, 0.0 }
 0x50b   : > { %v3789_v62 = vsel %vm3661_vm12, %v3563_v1, %v3725_v7 }
 0x50c   : > { %v3832_v12 = vpack.c.bf16 %v3789_v62, %v3788_v0 }
 0x50e   : > { %v3565_v44 = vpop.f32.mrf.mxu1  ;;  %6250 = vmatmul.msk.bf16.gmra.mxu2 %vm3856_vm3, %v3832_v12 }
 0x50f   : > { %v3566_v20 = vadd.f32 %v9318_v60, %v3565_v44 }
 0x511   : > { %4270 = vrot.lane.b32.xlu0 %v3566_v20, %s6955_s26  ;;  %v3726_v28 = vmul.f32 0.01, %v3566_v20  ;;  %vm3662_vm13 = vcmp.ge.f32.partialorder %v3566_v20, 0.0 }
 0x513   : > { %v3790_v42 = vsel %vm3662_vm13, %v3566_v20, %v3726_v28 }
 0x514   : > { %6223 = vmatmul.msk.bf16.gmra.mxu1 %vm3354_vm1, %v3331_v37 }
 0x516   : > { %v3567_v25 = vpop.f32.mrf.mxu1 }
 0x517   : > { %v3568_v39 = vadd.f32 %v9318_v60, %v3567_v25 }
 0x518   : > { %6242 = vmatmul.msk.bf16.gmra.mxu0 %vm3856_vm3, %v3824_v10  ;;  %v9349_v10 = vpop.f32.mrf.mxu0 }
 0x519   : > { %v3727_v56 = vmul.f32 0.01, %v3568_v39  ;;  %4272 = vrot.lane.b32.xlu1 %v3568_v39, %s6955_s26  ;;  %vm3663_vm14 = vcmp.ge.f32.partialorder %v3568_v39, 0.0 }
 0x51b   : > { %v3791_v51 = vsel %vm3663_vm14, %v3568_v39, %v3727_v56 }
 0x51c   : > { %v3833_v22 = vpack.c.bf16 %v3791_v51, %v3790_v42 }
 0x51e   : > { %v3570_v17 = vpop.f32.mrf.mxu1  ;;  %6251 = vmatmul.msk.bf16.gmra.mxu2 %vm3856_vm3, %v3833_v22 }
 0x51f   : > { %v3571_v18 = vadd.f32 %v9318_v60, %v3570_v17 }
 0x520   : > { %v9359_v38 = vpop.f32.mrf.mxu0 }
 0x521   : > { %4274 = vrot.lane.b32.xlu2 %v3571_v18, %s6955_s26  ;;  %v3728_v3 = vmul.f32 0.01, %v3571_v18  ;;  %vm3664_vm9 = vcmp.ge.f32.partialorder %v3571_v18, 0.0 }
 0x523   : > { %v3792_v61 = vsel %vm3664_vm9, %v3571_v18, %v3728_v3 }
 0x524   : > { %6224 = vmatmul.msk.bf16.gmra.mxu1 %vm3354_vm1, %v3332_v58 }
 0x526   : > { %v3572_v30 = vpop.f32.mrf.mxu1 }
 0x527   : > { %v3573_v31 = vadd.f32 %v9318_v60, %v3572_v30 }
 0x528   : > { %6243 = vmatmul.msk.bf16.gmra.mxu0 %vm3856_vm3, %v3825_v14 }
 0x529   : > { %v3729_v11 = vmul.f32 0.01, %v3573_v31  ;;  %4276 = vrot.lane.b32.xlu0 %v3573_v31, %s6955_s26  ;;  %vm3665_vm15 = vcmp.ge.f32.partialorder %v3573_v31, 0.0 }
 0x52b   : > { %v3793_v4 = vsel %vm3665_vm15, %v3573_v31, %v3729_v11 }
 0x52c   : > { %v3834_v13 = vpack.c.bf16 %v3793_v4, %v3792_v61 }
 0x52e   : > { %v3575_v14 = vpop.f32.mrf.mxu1  ;;  %6252 = vmatmul.msk.bf16.gmra.mxu2 %vm3856_vm3, %v3834_v13 }
 0x52f   : > { %v3576_v40 = vadd.f32 %v9318_v60, %v3575_v14 }
 0x531   : > { %4278 = vrot.lane.b32.xlu1 %v3576_v40, %s6955_s26  ;;  %v3730_v15 = vmul.f32 0.01, %v3576_v40  ;;  %vm3666_vm0 = vcmp.ge.f32.partialorder %v3576_v40, 0.0 }
 0x533   : > { %v3794_v34 = vsel %vm3666_vm0, %v3576_v40, %v3730_v15 }
 0x534   : > { %6225 = vmatmul.msk.bf16.gmra.mxu1 %vm3354_vm1, %v3333_v8 }
 0x536   : > { %v3577_v48 = vpop.f32.mrf.mxu1 }
 0x537   : > { %v3578_v49 = vadd.f32 %v9318_v60, %v3577_v48 }
 0x539   : > { %v3731_v46 = vmul.f32 0.01, %v3578_v49  ;;  %4280 = vrot.lane.b32.xlu2 %v3578_v49, %s6955_s26  ;;  %vm3667_vm2 = vcmp.ge.f32.partialorder %v3578_v49, 0.0 }
 0x53b   : > { %v3795_v5 = vsel %vm3667_vm2, %v3578_v49, %v3731_v46 }
 0x53c   : > { %v3835_v16 = vpack.c.bf16 %v3795_v5, %v3794_v34  ;;  %v9411_v34 = vpop.f32.mrf.mxu0 }
 0x53e   : > { %v3580_v1 = vpop.f32.mrf.mxu1  ;;  %6253 = vmatmul.msk.bf16.vlgmr.msra.gmra.mxu3 %vm3856_vm3, %v3835_v16 }
 0x53f   : > { %v3581_v50 = vadd.f32 %v9318_v60, %v3580_v1 }
 0x541   : > { %4282 = vrot.lane.b32.xlu0 %v3581_v50, %s6955_s26  ;;  %v3732_v53 = vmul.f32 0.01, %v3581_v50  ;;  %vm3668_vm1 = vcmp.ge.f32.partialorder %v3581_v50, 0.0 }
 0x543   : > { %v3796_v57 = vsel %vm3668_vm1, %v3581_v50, %v3732_v53 }
 0x546   : > { %v3582_v7 = vpop.f32.mrf.mxu1 }
 0x547   : > { %v3583_v0 = vadd.f32 %v9318_v60, %v3582_v7 }
 0x549   : > { %v3733_v62 = vmul.f32 0.01, %v3583_v0  ;;  %4284 = vrot.lane.b32.xlu1 %v3583_v0, %s6955_s26  ;;  %vm3669_vm4 = vcmp.ge.f32.partialorder %v3583_v0, 0.0 }
 0x54b   : > { %v3797_v63 = vsel %vm3669_vm4, %v3583_v0, %v3733_v62  ;;  %v3974_v62 = vpop.f32.mrf.mxu0 }
 0x54c   : > { %v3836_v12 = vpack.c.bf16 %v3797_v63, %v3796_v57 }
 0x54e   : > { %6254 = vmatmul.msk.bf16.gmra.mxu3 %vm3856_vm3, %v3836_v12  ;;  %v6341_v12 = vld [vmem:[%s10228_s10] sm:$0xff] }
 0x54f   : > { %5282 = vmatpush.bf16.msrb.mxu2 %v6341_v12 }
 0x551   : > { %v3585_v43 = vpop.f32.mrf.mxu1 }
 0x552   : > { %v3586_v47 = vadd.f32 %v9318_v60, %v3585_v43 }
 0x554   : > { %4286 = vrot.lane.b32.xlu2 %v3586_v47, %s6955_s26  ;;  %v3734_v20 = vmul.f32 0.01, %v3586_v47  ;;  %vm3670_vm5 = vcmp.ge.f32.partialorder %v3586_v47, 0.0 }
 0x556   : > { %v3798_v25 = vsel %vm3670_vm5, %v3586_v47, %v3734_v20  ;;  %v9422_v20 = vpop.f32.mrf.mxu0 }
 0x559   : > { %v3587_v44 = vpop.f32.mrf.mxu1 }
 0x55a   : > { %v3588_v9 = vadd.f32 %v9318_v60, %v3587_v44 }
 0x55c   : > { %v3735_v37 = vmul.f32 0.01, %v3588_v9  ;;  %4288 = vrot.lane.b32.xlu0 %v3588_v9, %s6955_s26  ;;  %vm3671_vm6 = vcmp.ge.f32.partialorder %v3588_v9, 0.0 }
 0x55e   : > { %v3799_v19 = vsel %vm3671_vm6, %v3588_v9, %v3735_v37  ;;  %v9428_v37 = vld [vmem:[%s10225_s7] ss:$0 sm:$0xff] }
 0x55f   : > { %v3837_v28 = vpack.c.bf16 %v3799_v19, %v3798_v25 }
 0x561   : > { %v3590_v39 = vpop.f32.mrf.mxu1  ;;  %6255 = vmatmul.msk.bf16.gmra.mxu3 %vm3856_vm3, %v3837_v28 }
 0x562   : > { %v3591_v45 = vadd.f32 %v9318_v60, %v3590_v39  ;;  %v3965_v39 = vadd.f32 %v9428_v37, %v9334_v41 }
 0x564   : > { %4290 = vrot.lane.b32.xlu1 %v3591_v45, %s6955_s26  ;;  %v3736_v2 = vmul.f32 0.01, %v3591_v45  ;;  %vm3672_vm7 = vcmp.ge.f32.partialorder %v3591_v45, 0.0 }
 0x566   : > { %v3800_v26 = vsel %vm3672_vm7, %v3591_v45, %v3736_v2  ;;  %v3963_v45 = vadd.f32 %v9428_v37, %v9324_v59  ;;  %v3970_v59 = vadd.f32 %v9428_v37, %v9359_v38 }
 0x569   : > { %v3592_v56 = vpop.f32.mrf.mxu1 }
 0x56a   : > { %v3593_v42 = vadd.f32 %v9318_v60, %v3592_v56  ;;  %v4189_v56 = vpop.permute.xlu1 %4188 }
 0x56b   : > { %v4379_v2 = vadd.f32 %v4189_v56, %v3965_v39 }
 0x56c   : > { %v3737_v51 = vmul.f32 0.01, %v3593_v42  ;;  %4292 = vrot.lane.b32.xlu2 %v3593_v42, %s6955_s26  ;;  %vm3673_vm8 = vcmp.ge.f32.partialorder %v3593_v42, 0.0 }
 0x56d   : > { %vm4443_vm4 = vcmp.ge.f32.partialorder %v4379_v2, 0.0 }
 0x56e   : > { %v3801_v33 = vsel %vm3673_vm8, %v3593_v42, %v3737_v51  ;;  %v4187_v42 = vpop.permute.xlu0 %4186  ;;  %v3979_v51 = vpop.f32.mrf.mxu0 }
 0x56f   : > { %v3838_v22 = vpack.c.bf16 %v3801_v33, %v3800_v26  ;;  %v4378_v26 = vadd.f32 %v4187_v42, %v3963_v45  ;;  %v4507_v33 = vmul.f32 0.01, %v4379_v2 }
 0x571   : > { %v3595_v32 = vpop.f32.mrf.mxu1  ;;  %6256 = vmatmul.msk.bf16.gmra.mxu3 %vm3856_vm3, %v3838_v22  ;;  %vm4442_vm5 = vcmp.ge.f32.partialorder %v4378_v26, 0.0 }
 0x572   : > { %v3596_v23 = vadd.f32 %v9318_v60, %v3595_v32  ;;  %v4506_v32 = vmul.f32 0.01, %v4378_v26 }
 0x574   : > { %4294 = vrot.lane.b32.xlu0 %v3596_v23, %s6955_s26  ;;  %v3738_v18 = vmul.f32 0.01, %v3596_v23  ;;  %vm3674_vm10 = vcmp.ge.f32.partialorder %v3596_v23, 0.0  ;;  %v9441_v41 = vsel %vm4442_vm5, %v4378_v26, %v4506_v32 }
 0x576   : > { %v3802_v29 = vsel %vm3674_vm10, %v3596_v23, %v3738_v18  ;;  %v9439_v23 = vsel %vm4443_vm4, %v4379_v2, %v4507_v33 }
 0x577   : > { %v4634_v18 = vpack.c.bf16 %v9439_v23, %v9441_v41 }
 0x579   : > { %v3597_v17 = vpop.f32.mrf.mxu1 }
 0x57a   : > { %v3598_v54 = vadd.f32 %v9318_v60, %v3597_v17  ;;  %v3982_v17 = vpop.f32.mrf.mxu0 }
 0x57c   : > { %v3739_v58 = vmul.f32 0.01, %v3598_v54  ;;  %4296 = vrot.lane.b32.xlu1 %v3598_v54, %s6955_s26  ;;  %vm3675_vm11 = vcmp.ge.f32.partialorder %v3598_v54, 0.0 }
 0x57e   : > { %v3803_v30 = vsel %vm3675_vm11, %v3598_v54, %v3739_v58  ;;  %v3968_v54 = vadd.f32 %v9428_v37, %v9349_v10 }
 0x57f   : > { %v3839_v27 = vpack.c.bf16 %v3803_v30, %v3802_v29  ;;  %v4193_v29 = vpop.permute.xlu0 %4192 }
 0x580   : > { %v4381_v30 = vadd.f32 %v4193_v29, %v3970_v59 }
 0x581   : > { %v3600_v3 = vpop.f32.mrf.mxu1  ;;  %6257 = vmatmul.msk.bf16.gmra.mxu3 %vm3856_vm3, %v3839_v27  ;;  %v4191_v27 = vpop.permute.xlu2 %4190 }
 0x582   : > { %v3601_v31 = vadd.f32 %v9318_v60, %v3600_v3  ;;  %v4380_v3 = vadd.f32 %v4191_v27, %v3968_v54  ;;  %vm4445_vm6 = vcmp.ge.f32.partialorder %v4381_v30, 0.0 }
 0x584   : > { %4298 = vrot.lane.b32.xlu2 %v3601_v31, %s6955_s26  ;;  %v3740_v11 = vmul.f32 0.01, %v3601_v31  ;;  %vm3676_vm12 = vcmp.ge.f32.partialorder %v3601_v31, 0.0  ;;  %vm4444_vm7 = vcmp.ge.f32.partialorder %v4380_v3, 0.0 }
 0x586   : > { %v3804_v4 = vsel %vm3676_vm12, %v3601_v31, %v3740_v11  ;;  %v4509_v31 = vmul.f32 0.01, %v4381_v30  ;;  %v4508_v11 = vmul.f32 0.01, %v4380_v3 }
 0x588   : > { %v9456_v38 = vsel %vm4444_vm7, %v4380_v3, %v4508_v11 }
 0x589   : > { %v3602_v55 = vpop.f32.mrf.mxu1 }
 0x58a   : > { %v3603_v35 = vadd.f32 %v9318_v60, %v3602_v55  ;;  %v3984_v55 = vpop.f32.mrf.mxu0 }
 0x58c   : > { %v3741_v61 = vmul.f32 0.01, %v3603_v35  ;;  %4300 = vrot.lane.b32.xlu0 %v3603_v35, %s6955_s26  ;;  %vm3677_vm13 = vcmp.ge.f32.partialorder %v3603_v35, 0.0 }
 0x58e   : > { %v3805_v36 = vsel %vm3677_vm13, %v3603_v35, %v3741_v61  ;;  %v9454_v61 = vsel %vm4445_vm6, %v4381_v30, %v4509_v31 }
 0x58f   : > { %v3840_v6 = vpack.c.bf16 %v3805_v36, %v3804_v4  ;;  %v4635_v10 = vpack.c.bf16 %v9454_v61, %v9456_v38  ;;  %v3975_v4 = vadd.f32 %v9428_v37, %v3974_v62  ;;  %v3973_v36 = vadd.f32 %v9428_v37, %v9411_v34 }
 0x591   : > { %v3605_v13 = vpop.f32.mrf.mxu1  ;;  %6258 = vmatmul.msk.bf16.gmra.mxu3 %vm3856_vm3, %v3840_v6  ;;  %v4197_v6 = vpop.permute.xlu2 %4196 }
 0x592   : > { %v3606_v52 = vadd.f32 %v9318_v60, %v3605_v13  ;;  %v3987_v13 = vpop.f32.mrf.mxu0 }
 0x593   : > { %v3988_v59 = vadd.f32 %v9428_v37, %v3987_v13 }
 0x594   : > { %4302 = vrot.lane.b32.xlu1 %v3606_v52, %s6955_s26  ;;  %v3742_v14 = vmul.f32 0.01, %v3606_v52  ;;  %vm3678_vm14 = vcmp.ge.f32.partialorder %v3606_v52, 0.0 }
 0x596   : > { %v3806_v8 = vsel %vm3678_vm14, %v3606_v52, %v3742_v14  ;;  %v4383_v52 = vadd.f32 %v4197_v6, %v3975_v4  ;;  %v4195_v14 = vpop.permute.xlu1 %4194 }
 0x598   : > { %vm4447_vm8 = vcmp.ge.f32.partialorder %v4383_v52, 0.0 }
 0x599   : > { %v3607_v21 = vpop.f32.mrf.mxu1  ;;  %v4203_v45 = vpop.permute.xlu2 %4202 }
 0x59a   : > { %v3608_v40 = vadd.f32 %v9318_v60, %v3607_v21 }
 0x59c   : > { %v3743_v24 = vmul.f32 0.01, %v3608_v40  ;;  %4304 = vrot.lane.b32.xlu2 %v3608_v40, %s6955_s26  ;;  %vm3679_vm9 = vcmp.ge.f32.partialorder %v3608_v40, 0.0 }
 0x59e   : > { %v3807_v48 = vsel %vm3679_vm9, %v3608_v40, %v3743_v24  ;;  %v4382_v40 = vadd.f32 %v4195_v14, %v3973_v36  ;;  %v4511_v24 = vmul.f32 0.01, %v4383_v52 }
 0x59f   : > { %v3841_v15 = vpack.c.bf16 %v3807_v48, %v3806_v8 }
 0x5a0   : > { %v4510_v8 = vmul.f32 0.01, %v4382_v40  ;;  %vm4446_vm10 = vcmp.ge.f32.partialorder %v4382_v40, 0.0 }
 0x5a1   : > { %v3610_v49 = vpop.f32.mrf.mxu1  ;;  %6259 = vmatmul.msk.bf16.gmra.mxu3 %vm3856_vm3, %v3841_v15  ;;  %v9468_v15 = vsel %vm4447_vm8, %v4383_v52, %v4511_v24  ;;  %v4209_v54 = vpop.permute.xlu2 %4208 }
 0x5a2   : > { %v3611_v46 = vadd.f32 %v9318_v60, %v3610_v49  ;;  %v3989_v49 = vpop.f32.mrf.mxu0 }
 0x5a4   : > { %4306 = vrot.lane.b32.xlu0 %v3611_v46, %s6955_s26  ;;  %v3744_v16 = vmul.f32 0.01, %v3611_v46  ;;  %vm3680_vm15 = vcmp.ge.f32.partialorder %v3611_v46, 0.0 }
 0x5a6   : > { %v3808_v7 = vsel %vm3680_vm15, %v3611_v46, %v3744_v16  ;;  %v9470_v46 = vsel %vm4446_vm10, %v4382_v40, %v4510_v8  ;;  %v3978_v16 = vadd.f32 %v9428_v37, %v9422_v20  ;;  %v3985_v20 = vadd.f32 %v9428_v37, %v3984_v55 }
 0x5a7   : > { %v4636_v34 = vpack.c.bf16 %v9468_v15, %v9470_v46 }
 0x5a9   : > { %v3612_v5 = vpop.f32.mrf.mxu1 }
 0x5aa   : > { %v3613_v1 = vadd.f32 %v9318_v60, %v3612_v5  ;;  %v3980_v5 = vadd.f32 %v9428_v37, %v3979_v51  ;;  %v3992_v62 = vpop.f32.mrf.mxu0 }
 0x5ab   : > { %v3993_v14 = vadd.f32 %v9428_v37, %v3992_v62 }
 0x5ac   : > { %v3745_v50 = vmul.f32 0.01, %v3613_v1  ;;  %4308 = vrot.lane.b32.xlu1 %v3613_v1, %s6955_s26  ;;  %vm3681_vm0 = vcmp.ge.f32.partialorder %v3613_v1, 0.0 }
 0x5ae   : > { %v3809_v53 = vsel %vm3681_vm0, %v3613_v1, %v3745_v50  ;;  %v4201_v1 = vpop.permute.xlu1 %4200 }
 0x5af   : > { %v3842_v0 = vpack.c.bf16 %v3809_v53, %v3808_v7  ;;  %v4385_v50 = vadd.f32 %v4201_v1, %v3980_v5  ;;  %v4199_v53 = vpop.permute.xlu0 %4198 }
 0x5b1   : > { %v3615_v57 = vpop.f32.mrf.mxu1  ;;  %6260 = vmatmul.msk.bf16.gmra.mxu3 %vm3856_vm3, %v3842_v0  ;;  %v4384_v0 = vadd.f32 %v4199_v53, %v3978_v16  ;;  %vm4449_vm11 = vcmp.ge.f32.partialorder %v4385_v50, 0.0 }
 0x5b2   : > { %v3616_v63 = vadd.f32 %v9318_v60, %v3615_v57  ;;  %v4513_v57 = vmul.f32 0.01, %v4385_v50 }
 0x5b3   : > { %vm4448_vm12 = vcmp.ge.f32.partialorder %v4384_v0, 0.0 }
 0x5b4   : > { %4310 = vrot.lane.b32.xlu2 %v3616_v63, %s6955_s26  ;;  %v3746_v47 = vmul.f32 0.01, %v3616_v63  ;;  %vm3682_vm2 = vcmp.ge.f32.partialorder %v3616_v63, 0.0  ;;  %v9480_v12 = vsel %vm4449_vm11, %v4385_v50, %v4513_v57 }
 0x5b6   : > { %v3810_v25 = vsel %vm3682_vm2, %v3616_v63, %v3746_v47  ;;  %v4512_v63 = vmul.f32 0.01, %v4384_v0  ;;  %v4207_v27 = vpop.permute.xlu1 %4206 }
 0x5b7   : > { %v4388_v31 = vadd.f32 %v4207_v27, %v3988_v59 }
 0x5b8   : > { %v9484_v47 = vsel %vm4448_vm12, %v4384_v0, %v4512_v63 }
 0x5b9   : > { %v3617_v43 = vpop.f32.mrf.mxu1  ;;  %v4516_v11 = vmul.f32 0.01, %v4388_v31  ;;  %vm4452_vm15 = vcmp.ge.f32.partialorder %v4388_v31, 0.0 }
 0x5ba   : > { %v3618_v44 = vadd.f32 %v9318_v60, %v3617_v43 }
 0x5bb   : > { %v9510_v36 = vsel %vm4452_vm15, %v4388_v31, %v4516_v11 }
 0x5bc   : > { %v3747_v9 = vmul.f32 0.01, %v3618_v44  ;;  %4312 = vrot.lane.b32.xlu0 %v3618_v44, %s6955_s26  ;;  %vm3683_vm1 = vcmp.ge.f32.partialorder %v3618_v44, 0.0 }
 0x5be   : > { %v3811_v19 = vsel %vm3683_vm1, %v3618_v44, %v3747_v9  ;;  %v4637_v44 = vpack.c.bf16 %v9480_v12, %v9484_v47  ;;  %v3994_v9 = vpop.f32.mrf.mxu0  ;;  %v4213_v40 = vpop.permute.xlu1 %4212 }
 0x5bf   : > { %v3843_v28 = vpack.c.bf16 %v3811_v19, %v3810_v25  ;;  %v3983_v25 = vadd.f32 %v9428_v37, %v3982_v17  ;;  %v4205_v19 = vpop.permute.xlu0 %4204  ;;  %v3995_v52 = vadd.f32 %v9428_v37, %v3994_v9 }
 0x5c1   : > { %v9432_v60 = vpop.f32.mrf.mxu3  ;;  %6261 = vmatmul.msk.bf16.gmra.mxu3 %vm3856_vm3, %v3843_v28  ;;  %v4387_v28 = vadd.f32 %v4205_v19, %v3985_v20  ;;  %v4386_v56 = vadd.f32 %v4203_v45, %v3983_v25  ;;  %v4391_v24 = vadd.f32 %v4213_v40, %v3995_v52  ;;  %v4215_v19 = vpop.permute.xlu2 %4214 }
 0x5c3   : > { %v4515_v2 = vmul.f32 0.01, %v4387_v28  ;;  %vm4451_vm13 = vcmp.ge.f32.partialorder %v4387_v28, 0.0  ;;  %v4514_v42 = vmul.f32 0.01, %v4386_v56  ;;  %vm4450_vm14 = vcmp.ge.f32.partialorder %v4386_v56, 0.0 }
 0x5c4   : > { %v4519_v5 = vmul.f32 0.01, %v4391_v24  ;;  %vm4455_vm0 = vcmp.ge.f32.partialorder %v4391_v24, 0.0 }
 0x5c5   : > { %v9493_v26 = vsel %vm4451_vm13, %v4387_v28, %v4515_v2  ;;  %v9497_v32 = vsel %vm4450_vm14, %v4386_v56, %v4514_v42  ;;  %v9532_v56 = vpop.f32.mrf.mxu2 }
 0x5c6   : > { %v3997_v51 = vpop.f32.mrf.mxu0  ;;  %v4638_v17 = vpack.c.bf16 %v9493_v26, %v9497_v32  ;;  %v9519_v50 = vsel %vm4455_vm0, %v4391_v24, %v4519_v5  ;;  %v4219_v11 = vpop.permute.xlu1 %4218 }
 0x5c7   : > { %v3998_v63 = vadd.f32 %v9428_v37, %v3997_v51 }
 0x5c9   : > { %v9437_v22 = vpop.f32.mrf.mxu3  ;;  %v4392_v28 = vadd.f32 %v4215_v19, %v3998_v63  ;;  %v4221_v27 = vpop.permute.xlu2 %4220 }
 0x5cb   : > { %v4520_v2 = vmul.f32 0.01, %v4392_v28  ;;  %vm4456_vm4 = vcmp.ge.f32.partialorder %v4392_v28, 0.0 }
 0x5cd   : > { %v9538_v59 = vsel %vm4456_vm4, %v4392_v28, %v4520_v2  ;;  %v9567_v28 = vld [vmem:[%s10227_s9] ss:$0 sm:$0xff] }
 0x5ce   : > { %v3999_v3 = vpop.f32.mrf.mxu0 }
 0x5cf   : > { %v4000_v57 = vadd.f32 %v9428_v37, %v3999_v3  ;;  %v9545_v3 = vpop.f32.mrf.mxu2 }
 0x5d1   : > { %6266 = vmatmul.msk.bf16.vlgmr.msrb.gmra.mxu3 %vm3856_vm3, %v4634_v18  ;;  %v9450_v58 = vpop.f32.mrf.mxu3  ;;  %v3990_v18 = vadd.f32 %v9428_v37, %v3989_v49  ;;  %v4211_v49 = vpop.permute.xlu0 %4210 }
 0x5d3   : > { %v4389_v29 = vadd.f32 %v4209_v54, %v3990_v18 }
 0x5d5   : > { %v4517_v55 = vmul.f32 0.01, %v4389_v29  ;;  %vm4453_vm9 = vcmp.ge.f32.partialorder %v4389_v29, 0.0 }
 0x5d6   : > { %v4002_v6 = vpop.f32.mrf.mxu0 }
 0x5d7   : > { %v9549_v24 = vpop.f32.mrf.mxu2 }
 0x5d9   : > { %v9452_v35 = vpop.f32.mrf.mxu3 }
 0x5de   : > { %v4004_v16 = vpop.f32.mrf.mxu0 }
 0x5df   : > { %v4005_v54 = vadd.f32 %v9428_v37, %v4004_v16  ;;  %v9562_v19 = vpop.f32.mrf.mxu2 }
 0x5e1   : > { %6267 = vmatmul.msk.bf16.gmra.mxu3 %vm3856_vm3, %v4635_v10  ;;  %v9506_v10 = vsel %vm4453_vm9, %v4389_v29, %v4517_v55  ;;  %v4003_v29 = vadd.f32 %v9428_v37, %v4002_v6  ;;  %v4395_v31 = vadd.f32 %v4221_v27, %v4005_v54 }
 0x5e2   : > { %v4639_v13 = vpack.c.bf16 %v9506_v10, %v9510_v36 }
 0x5e3   : > { %vm4459_vm5 = vcmp.ge.f32.partialorder %v4395_v31, 0.0 }
 0x5e4   : > { %v9464_v21 = vpop.f32.mrf.mxu3 }
 0x5e6   : > { %v4007_v20 = vpop.f32.mrf.mxu0 }
 0x5ec   : > { %v9466_v48 = vpop.f32.mrf.mxu3 }
 0x5ee   : > { %v4009_v18 = vpop.f32.mrf.mxu0 }
 0x5ef   : > { %v4010_v16 = vadd.f32 %v9428_v37, %v4009_v18 }
 0x5f1   : > { %6268 = vmatmul.msk.bf16.gmra.mxu3 %vm3856_vm3, %v4636_v34  ;;  %v4390_v34 = vadd.f32 %v4211_v49, %v3993_v14  ;;  %v4523_v14 = vmul.f32 0.01, %v4395_v31 }
 0x5f3   : > { %v4518_v1 = vmul.f32 0.01, %v4390_v34  ;;  %vm4454_vm2 = vcmp.ge.f32.partialorder %v4390_v34, 0.0  ;;  %v9551_v49 = vsel %vm4459_vm5, %v4395_v31, %v4523_v14 }
 0x5f4   : > { %v9478_v7 = vpop.f32.mrf.mxu3 }
 0x5f5   : > { %v9523_v0 = vsel %vm4454_vm2, %v4390_v34, %v4518_v1 }
 0x5f6   : > { %v4640_v62 = vpack.c.bf16 %v9519_v50, %v9523_v0  ;;  %v4012_v52 = vpop.f32.mrf.mxu0 }
 0x5fc   : > { %v9482_v43 = vpop.f32.mrf.mxu3 }
 0x5fe   : > { %v4014_v1 = vpop.f32.mrf.mxu0 }
 0x601   : > { %6269 = vmatmul.msk.bf16.gmra.mxu3 %vm3856_vm3, %v4637_v44  ;;  %v4217_v44 = vpop.permute.xlu0 %4216 }
 0x602   : > { %v4393_v9 = vadd.f32 %v4217_v44, %v4000_v57  ;;  %v4225_v57 = vpop.permute.xlu1 %4224 }
 0x603   : > { %v4397_v63 = vadd.f32 %v4225_v57, %v4010_v16  ;;  %v4013_v57 = vadd.f32 %v9428_v37, %v4012_v52 }
 0x604   : > { %v9491_v39 = vpop.f32.mrf.mxu3  ;;  %v4521_v45 = vmul.f32 0.01, %v4393_v9  ;;  %vm4457_vm1 = vcmp.ge.f32.partialorder %v4393_v9, 0.0 }
 0x605   : > { %v4525_v2 = vmul.f32 0.01, %v4397_v63  ;;  %vm4461_vm7 = vcmp.ge.f32.partialorder %v4397_v63, 0.0 }
 0x606   : > { %v9534_v42 = vsel %vm4457_vm1, %v4393_v9, %v4521_v45  ;;  %v4017_v54 = vpop.f32.mrf.mxu0 }
 0x607   : > { %v4641_v51 = vpack.c.bf16 %v9534_v42, %v9538_v59 }
 0x609   : > { %v4223_v9 = vpop.permute.xlu0 %4222 }
 0x60c   : > { %v9495_v33 = vpop.f32.mrf.mxu3 }
 0x611   : > { %6270 = vmatmul.msk.bf16.gmra.mxu3 %vm3856_vm3, %v4638_v17 }
 0x614   : > { %v9504_v30 = vpop.f32.mrf.mxu3 }
 0x61c   : > { %v9508_v4 = vpop.f32.mrf.mxu3 }
 0x621   : > { %6271 = vmatmul.msk.bf16.gmra.mxu3 %vm3856_vm3, %v4639_v13  ;;  %v4394_v13 = vadd.f32 %v4219_v11, %v4003_v29 }
 0x623   : > { %v4522_v40 = vmul.f32 0.01, %v4394_v13  ;;  %vm4458_vm6 = vcmp.ge.f32.partialorder %v4394_v13, 0.0 }
 0x624   : > { %v9517_v8 = vpop.f32.mrf.mxu3 }
 0x625   : > { %10485 = vst [vmem:[#allocation86_spill] sm:$0xff] %v9517_v8  ;;  %v9555_v6 = vsel %vm4458_vm6, %v4394_v13, %v4522_v40  ;;  %v9575_v13 = vpop.f32.mrf.mxu2 }
 0x626   : > { %v4642_v5 = vpack.c.bf16 %v9551_v49, %v9555_v6 }
 0x62c   : > { %v9521_v53 = vpop.f32.mrf.mxu3 }
 0x62d   : > { %10486 = vst [vmem:[#allocation67_spill] sm:$0xff] %v9521_v53 }
 0x631   : > { %6272 = vmatmul.msk.bf16.gmra.mxu3 %vm3856_vm3, %v4640_v62  ;;  %v4008_v62 = vadd.f32 %v9428_v37, %v4007_v20  ;;  %v9570_v20 = vsel %vm4461_vm7, %v4397_v63, %v4525_v2  ;;  %v4227_v2 = vpop.permute.xlu2 %4226 }
 0x632   : > { %10491 = vst [vmem:[#allocation83_spill] sm:$0xff] %v9570_v20 }
 0x633   : > { %v4396_v45 = vadd.f32 %v4223_v9, %v4008_v62 }
 0x634   : > { %v9530_v25 = vpop.f32.mrf.mxu3 }
 0x635   : > { %10487 = vst [vmem:[#allocation76_spill] sm:$0xff] %v9530_v25  ;;  %vm4460_vm8 = vcmp.ge.f32.partialorder %v4396_v45, 0.0 }
 0x63c   : > { %v9536_v17 = vpop.f32.mrf.mxu3 }
 0x63d   : > { %10488 = vst [vmem:[#allocation7_spill] sm:$0xff] %v9536_v17 }
 0x641   : > { %6273 = vmatmul.msk.bf16.gmra.mxu3 %vm3856_vm3, %v4641_v51  ;;  %v4524_v51 = vmul.f32 0.01, %v4396_v45 }
 0x643   : > { %v9573_v11 = vsel %vm4460_vm8, %v4396_v45, %v4524_v51  ;;  %v4019_v51 = vpop.f32.mrf.mxu0 }
 0x644   : > { %v9547_v55 = vpop.f32.mrf.mxu3  ;;  %v4643_v40 = vpack.c.bf16 %v9570_v20, %v9573_v11 }
 0x645   : > { %10489 = vst [vmem:[#allocation12_spill] sm:$0xff] %v9547_v55 }
 0x64c   : > { %v9553_v34 = vpop.f32.mrf.mxu3 }
 0x64d   : > { %10490 = vst [vmem:[#allocation82_spill] sm:$0xff] %v9553_v34  ;;  %v9583_v34 = vpop.f32.mrf.mxu2 }
 0x651   : > { %6274 = vmatmul.msk.bf16.gmra.mxu3 %vm3856_vm3, %v4642_v5  ;;  %v4015_v5 = vadd.f32 %v9428_v37, %v4014_v1 }
 0x654   : > { %v4783_v44 = vpop.f32.mrf.mxu3 }
 0x655   : > { %v4784_v18 = vadd.f32 %v9567_v28, %v4783_v44  ;;  %v4229_v44 = vpop.permute.xlu0 %4228 }
 0x656   : > { %v4399_v9 = vadd.f32 %v4229_v44, %v4015_v5  ;;  %v4022_v5 = vpop.f32.mrf.mxu0 }
 0x657   : > { %v5007_v27 = vmul.f32 0.01, %v4784_v18  ;;  %vm4943_vm10 = vcmp.ge.f32.partialorder %v4784_v18, 0.0 }
 0x658   : > { %v4527_v55 = vmul.f32 0.01, %v4399_v9  ;;  %vm4463_vm12 = vcmp.ge.f32.partialorder %v4399_v9, 0.0 }
 0x659   : > { %v5071_v16 = vsel %vm4943_vm10, %v4784_v18, %v5007_v27 }
 0x65a   : > { %v9586_v27 = vsel %vm4463_vm12, %v4399_v9, %v4527_v55  ;;  %v4018_v9 = vadd.f32 %v9428_v37, %v4017_v54 }
 0x65b   : > { %10492 = vst [vmem:[#allocation23_spill] sm:$0xff] %v9586_v27 }
 0x65c   : > { %v4785_v29 = vpop.f32.mrf.mxu3 }
 0x65d   : > { %v4786_v31 = vadd.f32 %v9567_v28, %v4785_v29  ;;  %v4398_v29 = vadd.f32 %v4227_v2, %v4013_v57  ;;  %v4020_v57 = vadd.f32 %v9428_v37, %v4019_v51  ;;  %v4233_v2 = vpop.permute.xlu2 %4232 }
 0x65f   : > { %vm4944_vm11 = vcmp.ge.f32.partialorder %v4786_v31, 0.0  ;;  %v5008_v14 = vmul.f32 0.01, %v4786_v31  ;;  %v4526_v18 = vmul.f32 0.01, %v4398_v29  ;;  %vm4462_vm13 = vcmp.ge.f32.partialorder %v4398_v29, 0.0 }
 0x661   : > { %v5072_v62 = vsel %vm4944_vm11, %v4786_v31, %v5008_v14  ;;  %6275 = vmatmul.msk.bf16.gmra.mxu3 %vm3856_vm3, %v4643_v40  ;;  %v9589_v40 = vsel %vm4462_vm13, %v4398_v29, %v4526_v18  ;;  %v4401_v29 = vadd.f32 %v4233_v2, %v4020_v57 }
 0x662   : > { %v5135_v63 = vpack.c.bf16 %v5072_v62, %v5071_v16  ;;  %10493 = vst [vmem:[#allocation34_spill] sm:$0xff] %v9589_v40  ;;  %v4644_v62 = vpack.c.bf16 %v9586_v27, %v9589_v40  ;;  %v4024_v27 = vpop.f32.mrf.mxu0 }
 0x663   : > { %v4529_v17 = vmul.f32 0.01, %v4401_v29  ;;  %vm4465_vm15 = vcmp.ge.f32.partialorder %v4401_v29, 0.0 }
 0x664   : > { %v4788_v45 = vpop.f32.mrf.mxu3  ;;  %6302 = vmatmul.msk.bf16.vlgmr.msrb.gmra.mxu2 %vm3856_vm3, %v5135_v63  ;;  %v9594_v63 = vpop.f32.mrf.mxu2 }
 0x665   : > { %v4789_v1 = vadd.f32 %v9567_v28, %v4788_v45 }
 0x667   : > { %v5009_v31 = vmul.f32 0.01, %v4789_v1  ;;  %vm4945_vm14 = vcmp.ge.f32.partialorder %v4789_v1, 0.0 }
 0x669   : > { %v5073_v55 = vsel %vm4945_vm14, %v4789_v1, %v5009_v31  ;;  %v9602_v1 = vsel %vm4465_vm15, %v4401_v29, %v4529_v17  ;;  %v4023_v17 = vadd.f32 %v9428_v37, %v4022_v5 }
 0x66a   : > { %10494 = vst [vmem:[#allocation14_spill] sm:$0xff] %v9602_v1  ;;  %v4027_v29 = vpop.f32.mrf.mxu0 }
 0x66c   : > { %v4790_v52 = vpop.f32.mrf.mxu3  ;;  %v9600_v53 = vpop.f32.mrf.mxu2 }
 0x66d   : > { %v4791_v14 = vadd.f32 %v9567_v28, %v4790_v52  ;;  %v4231_v52 = vpop.permute.xlu1 %4230 }
 0x66e   : > { %v4400_v25 = vadd.f32 %v4231_v52, %v4018_v9 }
 0x66f   : > { %vm4946_vm9 = vcmp.ge.f32.partialorder %v4791_v14, 0.0  ;;  %v5010_v16 = vmul.f32 0.01, %v4791_v14 }
 0x670   : > { %v4528_v8 = vmul.f32 0.01, %v4400_v25  ;;  %vm4464_vm0 = vcmp.ge.f32.partialorder %v4400_v25, 0.0 }
 0x671   : > { %6276 = vmatmul.msk.bf16.gmra.mxu3 %vm3856_vm3, %v4644_v62  ;;  %v5074_v44 = vsel %vm4946_vm9, %v4791_v14, %v5010_v16 }
 0x672   : > { %v5136_v45 = vpack.c.bf16 %v5074_v44, %v5073_v55  ;;  %v9605_v16 = vsel %vm4464_vm0, %v4400_v25, %v4528_v8  ;;  %v4025_v55 = vadd.f32 %v9428_v37, %v4024_v27  ;;  %v4235_v25 = vpop.permute.xlu0 %4234 }
 0x673   : > { %10495 = vst [vmem:[#allocation3_spill] sm:$0xff] %v9605_v16  ;;  %v4645_v57 = vpack.c.bf16 %v9602_v1, %v9605_v16 }
 0x674   : > { %v4793_v18 = vpop.f32.mrf.mxu3  ;;  %6303 = vmatmul.msk.bf16.gmra.mxu2 %vm3856_vm3, %v5136_v45  ;;  %v9613_v52 = vpop.f32.mrf.mxu2 }
 0x675   : > { %v4794_v51 = vadd.f32 %v9567_v28, %v4793_v18  ;;  %v4237_v2 = vpop.permute.xlu1 %4236 }
 0x676   : > { %v4403_v18 = vadd.f32 %v4237_v2, %v4025_v55 }
 0x677   : > { %v5011_v31 = vmul.f32 0.01, %v4794_v51  ;;  %vm4947_vm2 = vcmp.ge.f32.partialorder %v4794_v51, 0.0 }
 0x678   : > { %v4531_v1 = vmul.f32 0.01, %v4403_v18  ;;  %vm4467_vm4 = vcmp.ge.f32.partialorder %v4403_v18, 0.0 }
 0x679   : > { %v5075_v44 = vsel %vm4947_vm2, %v4794_v51, %v5011_v31  ;;  %v4029_v31 = vpop.f32.mrf.mxu0 }
 0x67a   : > { %v9616_v51 = vsel %vm4467_vm4, %v4403_v18, %v4531_v1  ;;  %v4028_v18 = vadd.f32 %v9428_v37, %v4027_v29 }
 0x67c   : > { %v4795_v54 = vpop.f32.mrf.mxu3 }
 0x67d   : > { %v4796_v14 = vadd.f32 %v9567_v28, %v4795_v54  ;;  %v4402_v54 = vadd.f32 %v4235_v25, %v4023_v17  ;;  %v4241_v25 = vpop.permute.xlu0 %4240 }
 0x67f   : > { %vm4948_vm1 = vcmp.ge.f32.partialorder %v4796_v14, 0.0  ;;  %v5012_v62 = vmul.f32 0.01, %v4796_v14  ;;  %vm4466_vm5 = vcmp.ge.f32.partialorder %v4402_v54, 0.0 }
 0x681   : > { %6277 = vmatmul.msk.bf16.gmra.mxu3 %vm3856_vm3, %v4645_v57  ;;  %v5076_v9 = vsel %vm4948_vm1, %v4796_v14, %v5012_v62  ;;  %v4530_v57 = vmul.f32 0.01, %v4402_v54 }
 0x682   : > { %v5137_v45 = vpack.c.bf16 %v5076_v9, %v5075_v44  ;;  %v9621_v44 = vpop.f32.mrf.mxu2 }
 0x683   : > { %v9619_v55 = vsel %vm4466_vm5, %v4402_v54, %v4530_v57 }
 0x684   : > { %v4798_v8 = vpop.f32.mrf.mxu3  ;;  %6304 = vmatmul.msk.bf16.gmra.mxu2 %vm3856_vm3, %v5137_v45  ;;  %v4646_v17 = vpack.c.bf16 %v9616_v51, %v9619_v55  ;;  %v4030_v45 = vadd.f32 %v9428_v37, %v4029_v31 }
 0x685   : > { %v4799_v27 = vadd.f32 %v9567_v28, %v4798_v8 }
 0x686   : > { %v4405_v54 = vadd.f32 %v4241_v25, %v4030_v45 }
 0x687   : > { %v5013_v14 = vmul.f32 0.01, %v4799_v27  ;;  %vm4949_vm6 = vcmp.ge.f32.partialorder %v4799_v27, 0.0 }
 0x688   : > { %v4533_v40 = vmul.f32 0.01, %v4405_v54  ;;  %vm4469_vm8 = vcmp.ge.f32.partialorder %v4405_v54, 0.0 }
 0x689   : > { %v5077_v2 = vsel %vm4949_vm6, %v4799_v27, %v5013_v14 }
 0x68a   : > { %v9629_v20 = vpop.f32.mrf.mxu2  ;;  %v9632_v14 = vsel %vm4469_vm8, %v4405_v54, %v4533_v40  ;;  %v4033_v40 = vadd.f32 %v9428_v37, %v9532_v56 }
 0x68b   : > { %10496 = vst [vmem:[#allocation9_spill] sm:$0xff] %v9632_v14 }
 0x68c   : > { %v4800_v5 = vpop.f32.mrf.mxu3 }
 0x68d   : > { %v4801_v62 = vadd.f32 %v9567_v28, %v4800_v5  ;;  %v4239_v5 = vpop.permute.xlu2 %4238 }
 0x68e   : > { %v4404_v16 = vadd.f32 %v4239_v5, %v4028_v18 }
 0x68f   : > { %vm4950_vm7 = vcmp.ge.f32.partialorder %v4801_v62, 0.0  ;;  %v5014_v9 = vmul.f32 0.01, %v4801_v62 }
 0x690   : > { %v4532_v27 = vmul.f32 0.01, %v4404_v16  ;;  %vm4468_vm10 = vcmp.ge.f32.partialorder %v4404_v16, 0.0 }
 0x691   : > { %v5078_v1 = vsel %vm4950_vm7, %v4801_v62, %v5014_v9  ;;  %6278 = vmatmul.msk.bf16.gmra.mxu3 %vm3856_vm3, %v4646_v17 }
 0x692   : > { %v5138_v8 = vpack.c.bf16 %v5078_v1, %v5077_v2  ;;  %v9635_v17 = vsel %vm4468_vm10, %v4404_v16, %v4532_v27  ;;  %v4035_v1 = vadd.f32 %v9428_v37, %v9545_v3  ;;  %v9644_v16 = vpop.f32.mrf.mxu2  ;;  %v4243_v27 = vpop.permute.xlu1 %4242 }
 0x693   : > { %10497 = vst [vmem:[#allocation87_spill] sm:$0xff] %v9635_v17  ;;  %v4647_v2 = vpack.c.bf16 %v9632_v14, %v9635_v17 }
 0x694   : > { %v4803_v57 = vpop.f32.mrf.mxu3  ;;  %6305 = vmatmul.msk.bf16.gmra.mxu2 %vm3856_vm3, %v5138_v8 }
 0x695   : > { %v4804_v31 = vadd.f32 %v9567_v28, %v4803_v57  ;;  %v4245_v54 = vpop.permute.xlu2 %4244 }
 0x696   : > { %v4407_v57 = vadd.f32 %v4245_v54, %v4035_v1  ;;  %v4038_v54 = vadd.f32 %v9428_v37, %v9549_v24 }
 0x697   : > { %v5015_v29 = vmul.f32 0.01, %v4804_v31  ;;  %vm4951_vm11 = vcmp.ge.f32.partialorder %v4804_v31, 0.0 }
 0x698   : > { %v4535_v14 = vmul.f32 0.01, %v4407_v57  ;;  %vm4471_vm13 = vcmp.ge.f32.partialorder %v4407_v57, 0.0 }
 0x699   : > { %v5079_v18 = vsel %vm4951_vm11, %v4804_v31, %v5015_v29 }
 0x69a   : > { %v9648_v29 = vsel %vm4471_vm13, %v4407_v57, %v4535_v14  ;;  %v9650_v56 = vpop.f32.mrf.mxu2 }
 0x69b   : > { %10498 = vst [vmem:[#allocation19_spill] sm:$0xff] %v9648_v29 }
 0x69c   : > { %v4805_v62 = vpop.f32.mrf.mxu3 }
 0x69d   : > { %v4806_v9 = vadd.f32 %v9567_v28, %v4805_v62  ;;  %v4406_v62 = vadd.f32 %v4243_v27, %v4033_v40  ;;  %v4040_v40 = vadd.f32 %v9428_v37, %v9562_v19 }
 0x69f   : > { %vm4952_vm12 = vcmp.ge.f32.partialorder %v4806_v9, 0.0  ;;  %v5016_v45 = vmul.f32 0.01, %v4806_v9  ;;  %v4534_v31 = vmul.f32 0.01, %v4406_v62  ;;  %vm4470_vm14 = vcmp.ge.f32.partialorder %v4406_v62, 0.0 }
 0x6a1   : > { %v5080_v8 = vsel %vm4952_vm12, %v4806_v9, %v5016_v45  ;;  %6279 = vmatmul.msk.bf16.gmra.mxu3 %vm3856_vm3, %v4647_v2  ;;  %v9653_v1 = vsel %vm4470_vm14, %v4406_v62, %v4534_v31  ;;  %v4247_v31 = vpop.permute.xlu0 %4246 }
 0x6a2   : > { %v5139_v25 = vpack.c.bf16 %v5080_v8, %v5079_v18  ;;  %v4648_v8 = vpack.c.bf16 %v9648_v29, %v9653_v1  ;;  %v9663_v17 = vpop.f32.mrf.mxu2 }
 0x6a4   : > { %v4808_v5 = vpop.f32.mrf.mxu3  ;;  %6306 = vmatmul.msk.bf16.gmra.mxu2 %vm3856_vm3, %v5139_v25 }
 0x6a5   : > { %v4809_v3 = vadd.f32 %v9567_v28, %v4808_v5  ;;  %v4249_v5 = vpop.permute.xlu1 %4248 }
 0x6a6   : > { %v4409_v27 = vadd.f32 %v4249_v5, %v4040_v40  ;;  %v4043_v5 = vadd.f32 %v9428_v37, %v9575_v13 }
 0x6a7   : > { %v5017_v45 = vmul.f32 0.01, %v4809_v3  ;;  %vm4953_vm9 = vcmp.ge.f32.partialorder %v4809_v3, 0.0 }
 0x6a8   : > { %v4537_v29 = vmul.f32 0.01, %v4409_v27  ;;  %vm4473_vm0 = vcmp.ge.f32.partialorder %v4409_v27, 0.0 }
 0x6a9   : > { %v5081_v25 = vsel %vm4953_vm9, %v4809_v3, %v5017_v45 }
 0x6aa   : > { %v9666_v45 = vsel %vm4473_vm0, %v4409_v27, %v4537_v29 }
 0x6ab   : > { %10499 = vst [vmem:[#allocation70_spill] sm:$0xff] %v9666_v45 }
 0x6ac   : > { %v4810_v9 = vpop.f32.mrf.mxu3 }
 0x6ad   : > { %v4811_v2 = vadd.f32 %v9567_v28, %v4810_v9  ;;  %v4408_v9 = vadd.f32 %v4247_v31, %v4038_v54  ;;  %v9675_v54 = vpop.f32.mrf.mxu2 }
 0x6af   : > { %vm4954_vm15 = vcmp.ge.f32.partialorder %v4811_v2, 0.0  ;;  %v5018_v18 = vmul.f32 0.01, %v4811_v2  ;;  %v4536_v3 = vmul.f32 0.01, %v4408_v9  ;;  %vm4472_vm2 = vcmp.ge.f32.partialorder %v4408_v9, 0.0 }
 0x6b1   : > { %v5082_v14 = vsel %vm4954_vm15, %v4811_v2, %v5018_v18  ;;  %6280 = vmatmul.msk.bf16.gmra.mxu3 %vm3856_vm3, %v4648_v8  ;;  %v9669_v8 = vsel %vm4472_vm2, %v4408_v9, %v4536_v3  ;;  %v4251_v3 = vpop.permute.xlu2 %4250  ;;  %vm5764_vm2 = vcmask 125952  }
 0x6b2   : > { %v5140_v57 = vpack.c.bf16 %v5082_v14, %v5081_v25  ;;  %10500 = vst [vmem:[#allocation75_spill] sm:$0xff] %v9669_v8  ;;  %v4649_v25 = vpack.c.bf16 %v9666_v45, %v9669_v8  ;;  %v4045_v14 = vadd.f32 %v9428_v37, %v9583_v34 }
 0x6b4   : > { %v4813_v62 = vpop.f32.mrf.mxu3  ;;  %6307 = vmatmul.msk.bf16.gmra.mxu2 %vm3856_vm3, %v5140_v57 }
 0x6b5   : > { %v4814_v19 = vadd.f32 %v9567_v28, %v4813_v62  ;;  %v4253_v62 = vpop.permute.xlu0 %4252 }
 0x6b6   : > { %v4411_v31 = vadd.f32 %v4253_v62, %v4045_v14 }
 0x6b7   : > { %v5019_v24 = vmul.f32 0.01, %v4814_v19  ;;  %vm4955_vm1 = vcmp.ge.f32.partialorder %v4814_v19, 0.0 }
 0x6b8   : > { %v4539_v45 = vmul.f32 0.01, %v4411_v31  ;;  %vm4475_vm5 = vcmp.ge.f32.partialorder %v4411_v31, 0.0 }
 0x6b9   : > { %v5083_v57 = vsel %vm4955_vm1, %v4814_v19, %v5019_v24  ;;  %v9682_v19 = vpop.f32.mrf.mxu2 }
 0x6ba   : > { %v9684_v24 = vsel %vm4475_vm5, %v4411_v31, %v4539_v45  ;;  %v4048_v45 = vadd.f32 %v9428_v37, %v9594_v63  ;;  %v4257_v31 = vpop.permute.xlu2 %4256 }
 0x6bb   : > { %10501 = vst [vmem:[#allocation22_spill] sm:$0xff] %v9684_v24 }
 0x6bc   : > { %v4815_v2 = vpop.f32.mrf.mxu3 }
 0x6bd   : > { %v4816_v18 = vadd.f32 %v9567_v28, %v4815_v2  ;;  %v4410_v2 = vadd.f32 %v4251_v3, %v4043_v5  ;;  %v4255_v3 = vpop.permute.xlu1 %4254 }
 0x6bf   : > { %vm4956_vm4 = vcmp.ge.f32.partialorder %v4816_v18, 0.0  ;;  %v5020_v40 = vmul.f32 0.01, %v4816_v18  ;;  %v4538_v8 = vmul.f32 0.01, %v4410_v2  ;;  %vm4474_vm6 = vcmp.ge.f32.partialorder %v4410_v2, 0.0 }
 0x6c1   : > { %v5084_v29 = vsel %vm4956_vm4, %v4816_v18, %v5020_v40  ;;  %6281 = vmatmul.msk.bf16.gmra.mxu3 %vm3856_vm3, %v4649_v25  ;;  %v9687_v25 = vsel %vm4474_vm6, %v4410_v2, %v4538_v8  ;;  %v9697_v2 = vpop.f32.mrf.mxu2 }
 0x6c2   : > { %v5141_v27 = vpack.c.bf16 %v5084_v29, %v5083_v57  ;;  %v4650_v57 = vpack.c.bf16 %v9684_v24, %v9687_v25  ;;  %v4050_v29 = vadd.f32 %v9428_v37, %v9600_v53 }
 0x6c4   : > { %v4818_v9 = vpop.f32.mrf.mxu3  ;;  %6308 = vmatmul.msk.bf16.gmra.mxu2 %vm3856_vm3, %v5141_v27  ;;  %v4413_v8 = vadd.f32 %v4257_v31, %v4050_v29  ;;  %v4053_v31 = vadd.f32 %v9428_v37, %v9613_v52 }
 0x6c5   : > { %v4819_v34 = vadd.f32 %v9567_v28, %v4818_v9 }
 0x6c6   : > { %v4541_v24 = vmul.f32 0.01, %v4413_v8  ;;  %vm4477_vm10 = vcmp.ge.f32.partialorder %v4413_v8, 0.0 }
 0x6c7   : > { %v5021_v13 = vmul.f32 0.01, %v4819_v34  ;;  %vm4957_vm7 = vcmp.ge.f32.partialorder %v4819_v34, 0.0 }
 0x6c9   : > { %v5085_v5 = vsel %vm4957_vm7, %v4819_v34, %v5021_v13  ;;  %v9700_v13 = vsel %vm4477_vm10, %v4413_v8, %v4541_v24  ;;  %v9705_v29 = vpop.f32.mrf.mxu2 }
 0x6cc   : > { %v4820_v18 = vpop.f32.mrf.mxu3 }
 0x6cd   : > { %v4821_v40 = vadd.f32 %v9567_v28, %v4820_v18  ;;  %v4412_v18 = vadd.f32 %v4255_v3, %v4048_v45  ;;  %v4055_v45 = vadd.f32 %v9428_v37, %v9621_v44  ;;  %v4259_v44 = vpop.permute.xlu0 %4258 }
 0x6cf   : > { %vm4958_vm8 = vcmp.ge.f32.partialorder %v4821_v40, 0.0  ;;  %v5022_v14 = vmul.f32 0.01, %v4821_v40  ;;  %v4540_v34 = vmul.f32 0.01, %v4412_v18  ;;  %vm4476_vm11 = vcmp.ge.f32.partialorder %v4412_v18, 0.0 }
 0x6d1   : > { %v5086_v27 = vsel %vm4958_vm8, %v4821_v40, %v5022_v14  ;;  %6282 = vmatmul.msk.bf16.gmra.mxu3 %vm3856_vm3, %v4650_v57  ;;  %v9703_v57 = vsel %vm4476_vm11, %v4412_v18, %v4540_v34  ;;  %v9718_v34 = vld [vmem:[%s10229_s11] ss:$0 sm:$0xff] }
 0x6d2   : > { %v5142_v62 = vpack.c.bf16 %v5086_v27, %v5085_v5  ;;  %v4651_v27 = vpack.c.bf16 %v9700_v13, %v9703_v57 }
 0x6d4   : > { %v4823_v9 = vpop.f32.mrf.mxu3  ;;  %6309 = vmatmul.msk.bf16.gmra.mxu2 %vm3856_vm3, %v5142_v62 }
 0x6d5   : > { %v4824_v53 = vadd.f32 %v9567_v28, %v4823_v9  ;;  %v4261_v9 = vpop.permute.xlu1 %4260 }
 0x6d6   : > { %v4415_v3 = vadd.f32 %v4261_v9, %v4055_v45 }
 0x6d7   : > { %v5023_v63 = vmul.f32 0.01, %v4824_v53  ;;  %vm4959_vm12 = vcmp.ge.f32.partialorder %v4824_v53, 0.0 }
 0x6d8   : > { %vm4479_vm14 = vcmp.ge.f32.partialorder %v4415_v3, 0.0 }
 0x6d9   : > { %v5087_v62 = vsel %vm4959_vm12, %v4824_v53, %v5023_v63  ;;  %v4414_v53 = vadd.f32 %v4259_v44, %v4053_v31  ;;  %v4543_v63 = vmul.f32 0.01, %v4415_v3 }
 0x6db   : > { %vm4478_vm9 = vcmp.ge.f32.partialorder %v4414_v53, 0.0  ;;  %v9724_v45 = vsel %vm4479_vm14, %v4415_v3, %v4543_v63 }
 0x6dc   : > { %v4825_v40 = vpop.f32.mrf.mxu3  ;;  %10502 = vst [vmem:[#allocation2_spill] sm:$0xff] %v9724_v45 }
 0x6dd   : > { %v4826_v14 = vadd.f32 %v9567_v28, %v4825_v40 }
 0x6df   : > { %vm4960_vm13 = vcmp.ge.f32.partialorder %v4826_v14, 0.0  ;;  %v5024_v5 = vmul.f32 0.01, %v4826_v14 }
 0x6e1   : > { %v5088_v24 = vsel %vm4960_vm13, %v4826_v14, %v5024_v5  ;;  %6283 = vmatmul.msk.bf16.gmra.mxu3 %vm3856_vm3, %v4651_v27  ;;  %v4542_v5 = vmul.f32 0.01, %v4414_v53 }
 0x6e2   : > { %v5143_v8 = vpack.c.bf16 %v5088_v24, %v5087_v62 }
 0x6e3   : > { %v9727_v9 = vsel %vm4478_vm9, %v4414_v53, %v4542_v5  ;;  %v4060_v53 = vadd.f32 %v9428_v37, %v9644_v16 }
 0x6e4   : > { %v4828_v18 = vpop.f32.mrf.mxu3  ;;  %6310 = vmatmul.msk.bf16.gmra.mxu2 %vm3856_vm3, %v5143_v8  ;;  %10503 = vst [vmem:[#allocation37_spill] sm:$0xff] %v9727_v9 }
 0x6e5   : > { %v4829_v52 = vadd.f32 %v9567_v28, %v4828_v18 }
 0x6e7   : > { %v5284_v40 = vpop.f32.mrf.mxu2  ;;  %v5025_v8 = vmul.f32 0.01, %v4829_v52  ;;  %vm4961_vm0 = vcmp.ge.f32.partialorder %v4829_v52, 0.0 }
 0x6e8   : > { %v5285_v14 = vadd.f32 %v9718_v34, %v5284_v40  ;;  %v4652_v40 = vpack.c.bf16 %v9724_v45, %v9727_v9 }
 0x6ea   : > { %v5444_v27 = vadd.f32 %v5285_v14, %v9441_v41  ;;  %v5089_v14 = vsel %vm4961_vm0, %v4829_v52, %v5025_v8  ;;  %v4263_v52 = vpop.permute.xlu2 %4262 }
 0x6ec   : > { %vm5508_vm15 = vcmp.ge.f32.partialorder %v5444_v27, 0.0  ;;  %v5572_v62 = vmul.f32 0.01, %v5444_v27  ;;  %v4830_v24 = vpop.f32.mrf.mxu3 }
 0x6ed   : > { %v4831_v31 = vadd.f32 %v9567_v28, %v4830_v24 }
 0x6ee   : > { %v5636_v41 = vsel %vm5508_vm15, %v5444_v27, %v5572_v62  ;;  %v4058_v27 = vadd.f32 %v9428_v37, %v9629_v20 }
 0x6ef   : > { %v5700_v18 = vpack.c.bf16 %v5636_v41, %v5636_v41  ;;  %vm4962_vm1 = vcmp.ge.f32.partialorder %v4831_v31, 0.0  ;;  %v5026_v3 = vmul.f32 0.01, %v4831_v31  ;;  %v5286_v44 = vpop.f32.mrf.mxu2  ;;  %v4265_v41 = vpop.permute.xlu0 %4264 }
 0x6f0   : > { %v5287_v63 = vadd.f32 %v9718_v34, %v5286_v44  ;;  %v4417_v45 = vadd.f32 %v4265_v41, %v4060_v53  ;;  %v4416_v8 = vadd.f32 %v4263_v52, %v4058_v27 }
 0x6f1   : > { %5765 = vst.msk [vmem:[%s9732_s20] sm:$0xf] %vm5764_vm2, %v5700_v18  ;;  %v5090_v5 = vsel %vm4962_vm1, %v4831_v31, %v5026_v3  ;;  %6284 = vmatmul.msk.bf16.gmra.mxu3 %vm3856_vm3, %v4652_v40 }
 0x6f2   : > { %v5144_v62 = vpack.c.bf16 %v5090_v5, %v5089_v14  ;;  %v5445_v24 = vadd.f32 %v5287_v63, %v9439_v23  ;;  %v4545_v44 = vmul.f32 0.01, %v4417_v45  ;;  %vm4481_vm5 = vcmp.ge.f32.partialorder %v4417_v45, 0.0 }
 0x6f3   : > { %v4544_v20 = vmul.f32 0.01, %v4416_v8  ;;  %vm4480_vm6 = vcmp.ge.f32.partialorder %v4416_v8, 0.0 }
 0x6f4   : > { %vm5509_vm4 = vcmp.ge.f32.partialorder %v5445_v24, 0.0  ;;  %v5573_v9 = vmul.f32 0.01, %v5445_v24  ;;  %v4833_v16 = vpop.f32.mrf.mxu3  ;;  %6311 = vmatmul.msk.bf16.gmra.mxu2 %vm3856_vm3, %v5144_v62  ;;  %v9751_v63 = vsel %vm4481_vm5, %v4417_v45, %v4545_v44  ;;  %v4065_v45 = vadd.f32 %v9428_v37, %v9663_v17 }
 0x6f5   : > { %v4834_v23 = vadd.f32 %v9567_v28, %v4833_v16  ;;  %v9754_v62 = vsel %vm4480_vm6, %v4416_v8, %v4544_v20  ;;  %v4063_v8 = vadd.f32 %v9428_v37, %v9650_v56  ;;  %v4269_v20 = vpop.permute.xlu2 %4268 }
 0x6f6   : > { %v5637_v18 = vsel %vm5509_vm4, %v5445_v24, %v5573_v9 }
 0x6f7   : > { %v5701_v31 = vpack.c.bf16 %v5637_v18, %v5637_v18  ;;  %v5289_v3 = vpop.f32.mrf.mxu2  ;;  %v5027_v5 = vmul.f32 0.01, %v4834_v23  ;;  %vm4963_vm8 = vcmp.ge.f32.partialorder %v4834_v23, 0.0 }
 0x6f8   : > { %v5290_v40 = vadd.f32 %v9718_v34, %v5289_v3 }
 0x6f9   : > { %5766 = vst.msk [vmem:[%s9732_s20 + $0x4] sm:$0xf] %vm5764_vm2, %v5701_v31  ;;  %v5091_v31 = vsel %vm4963_vm8, %v4834_v23, %v5027_v5  ;;  %v4267_v23 = vpop.permute.xlu1 %4266 }
 0x6fa   : > { %v5446_v53 = vadd.f32 %v5290_v40, %v9456_v38  ;;  %v4653_v38 = vpack.c.bf16 %v9751_v63, %v9754_v62 }
 0x6fc   : > { %vm5510_vm7 = vcmp.ge.f32.partialorder %v5446_v53, 0.0  ;;  %v5574_v14 = vmul.f32 0.01, %v5446_v53  ;;  %v4835_v9 = vpop.f32.mrf.mxu3 }
 0x6fd   : > { %v4836_v27 = vadd.f32 %v9567_v28, %v4835_v9  ;;  %v4418_v9 = vadd.f32 %v4267_v23, %v4063_v8 }
 0x6fe   : > { %v5638_v24 = vsel %vm5510_vm7, %v5446_v53, %v5574_v14  ;;  %v4419_v53 = vadd.f32 %v4269_v20, %v4065_v45 }
 0x6ff   : > { %v5702_v41 = vpack.c.bf16 %v5638_v24, %v5638_v24  ;;  %vm4964_vm10 = vcmp.ge.f32.partialorder %v4836_v27, 0.0  ;;  %v5028_v16 = vmul.f32 0.01, %v4836_v27  ;;  %v5291_v52 = vpop.f32.mrf.mxu2  ;;  %vm4482_vm13 = vcmp.ge.f32.partialorder %v4418_v9, 0.0 }
 0x700   : > { %v5292_v18 = vadd.f32 %v9718_v34, %v5291_v52  ;;  %vm4483_vm12 = vcmp.ge.f32.partialorder %v4419_v53, 0.0 }
 0x701   : > { %5767 = vst.msk [vmem:[%s9732_s20 + $0x8] sm:$0xf] %vm5764_vm2, %v5702_v41  ;;  %v5092_v3 = vsel %vm4964_vm10, %v4836_v27, %v5028_v16  ;;  %6285 = vmatmul.msk.bf16.gmra.mxu3 %vm3856_vm3, %v4653_v38  ;;  %v4547_v41 = vmul.f32 0.01, %v4419_v53 }
 0x702   : > { %v5145_v44 = vpack.c.bf16 %v5092_v3, %v5091_v31  ;;  %v5447_v40 = vadd.f32 %v5292_v18, %v9454_v61  ;;  %v4546_v61 = vmul.f32 0.01, %v4418_v9 }
 0x703   : > { %v9773_v52 = vsel %vm4483_vm12, %v4419_v53, %v4547_v41  ;;  %v9783_v53 = vld [vmem:[%s10225_s7] ss:$0 sm:$0xff]  ;;  %v4273_v41 = vpop.permute.xlu1 %4272 }
 0x704   : > { %vm5511_vm11 = vcmp.ge.f32.partialorder %v5447_v40, 0.0  ;;  %v5575_v14 = vmul.f32 0.01, %v5447_v40  ;;  %v4838_v17 = vpop.f32.mrf.mxu3  ;;  %6312 = vmatmul.msk.bf16.gmra.mxu2 %vm3856_vm3, %v5145_v44  ;;  %v9776_v3 = vsel %vm4482_vm13, %v4418_v9, %v4546_v61 }
 0x705   : > { %v4839_v37 = vadd.f32 %v9567_v28, %v4838_v17 }
 0x706   : > { %v5639_v5 = vsel %vm5511_vm11, %v5447_v40, %v5575_v14  ;;  %v4070_v14 = vadd.f32 %v9783_v53, %v9682_v19 }
 0x707   : > { %v5703_v27 = vpack.c.bf16 %v5639_v5, %v5639_v5  ;;  %v5294_v24 = vpop.f32.mrf.mxu2  ;;  %v5029_v18 = vmul.f32 0.01, %v4839_v37  ;;  %vm4965_vm9 = vcmp.ge.f32.partialorder %v4839_v37, 0.0  ;;  %v4068_v5 = vadd.f32 %v9783_v53, %v9675_v54 }
 0x708   : > { %v5295_v16 = vadd.f32 %v9718_v34, %v5294_v24 }
 0x709   : > { %5768 = vst.msk [vmem:[%s9732_s20 + $0xc] sm:$0xf] %vm5764_vm2, %v5703_v27  ;;  %v5093_v23 = vsel %vm4965_vm9, %v4839_v37, %v5029_v18  ;;  %v4271_v37 = vpop.permute.xlu0 %4270 }
 0x70a   : > { %v5448_v56 = vadd.f32 %v5295_v16, %v9470_v46  ;;  %v4654_v46 = vpack.c.bf16 %v9773_v52, %v9776_v3  ;;  %v4421_v16 = vadd.f32 %v4273_v41, %v4070_v14  ;;  %v4075_v41 = vadd.f32 %v9783_v53, %v9705_v29 }
 0x70c   : > { %vm5512_vm14 = vcmp.ge.f32.partialorder %v5448_v56, 0.0  ;;  %v5576_v38 = vmul.f32 0.01, %v5448_v56  ;;  %v4840_v45 = vpop.f32.mrf.mxu3  ;;  %vm4485_vm1 = vcmp.ge.f32.partialorder %v4421_v16, 0.0 }
 0x70d   : > { %v4841_v31 = vadd.f32 %v9567_v28, %v4840_v45 }
 0x70e   : > { %v5640_v8 = vsel %vm5512_vm14, %v5448_v56, %v5576_v38  ;;  %v4420_v56 = vadd.f32 %v4271_v37, %v4068_v5  ;;  %v4073_v37 = vadd.f32 %v9783_v53, %v9697_v2 }
 0x70f   : > { %v5704_v44 = vpack.c.bf16 %v5640_v8, %v5640_v8  ;;  %vm4966_vm15 = vcmp.ge.f32.partialorder %v4841_v31, 0.0  ;;  %v5030_v40 = vmul.f32 0.01, %v4841_v31  ;;  %v5296_v20 = vpop.f32.mrf.mxu2 }
 0x710   : > { %v5297_v17 = vadd.f32 %v9718_v34, %v5296_v20  ;;  %v4548_v54 = vmul.f32 0.01, %v4420_v56  ;;  %vm4484_vm4 = vcmp.ge.f32.partialorder %v4420_v56, 0.0 }
 0x711   : > { %5769 = vst.msk [vmem:[%s9732_s20 + $0x10] sm:$0xf] %vm5764_vm2, %v5704_v44  ;;  %v5094_v9 = vsel %vm4966_vm15, %v4841_v31, %v5030_v40  ;;  %6286 = vmatmul.msk.bf16.gmra.mxu3 %vm3856_vm3, %v4654_v46  ;;  %v4549_v31 = vmul.f32 0.01, %v4421_v16 }
 0x712   : > { %v5146_v27 = vpack.c.bf16 %v5094_v9, %v5093_v23  ;;  %v5449_v24 = vadd.f32 %v5297_v17, %v9468_v15  ;;  %v9803_v23 = vsel %vm4484_vm4, %v4420_v56, %v4548_v54 }
 0x713   : > { %v9800_v40 = vsel %vm4485_vm1, %v4421_v16, %v4549_v31 }
 0x714   : > { %vm5513_vm0 = vcmp.ge.f32.partialorder %v5449_v24, 0.0  ;;  %v5577_v61 = vmul.f32 0.01, %v5449_v24  ;;  %v4843_v19 = vpop.f32.mrf.mxu3  ;;  %6313 = vmatmul.msk.bf16.gmra.mxu2 %vm3856_vm3, %v5146_v27 }
 0x715   : > { %v4844_v15 = vadd.f32 %v9567_v28, %v4843_v19 }
 0x716   : > { %v5641_v38 = vsel %vm5513_vm0, %v5449_v24, %v5577_v61 }
 0x717   : > { %v5705_v45 = vpack.c.bf16 %v5641_v38, %v5641_v38  ;;  %v5299_v18 = vpop.f32.mrf.mxu2  ;;  %v5031_v14 = vmul.f32 0.01, %v4844_v15  ;;  %vm4967_vm6 = vcmp.ge.f32.partialorder %v4844_v15, 0.0 }
 0x718   : > { %v5300_v8 = vadd.f32 %v9718_v34, %v5299_v18 }
 0x719   : > { %5770 = vst.msk [vmem:[%s9732_s20 + $0x14] sm:$0xf] %vm5764_vm2, %v5705_v45  ;;  %v5095_v61 = vsel %vm4967_vm6, %v4844_v15, %v5031_v14  ;;  %v4277_v45 = vpop.permute.xlu0 %4276 }
 0x71a   : > { %v5450_v44 = vadd.f32 %v5300_v8, %v9484_v47  ;;  %v4655_v47 = vpack.c.bf16 %v9800_v40, %v9803_v23  ;;  %v4423_v18 = vadd.f32 %v4277_v45, %v4075_v41  ;;  %v4275_v8 = vpop.permute.xlu2 %4274 }
 0x71b   : > { %v4422_v15 = vadd.f32 %v4275_v8, %v4073_v37 }
 0x71c   : > { %vm5514_vm5 = vcmp.ge.f32.partialorder %v5450_v44, 0.0  ;;  %v5578_v20 = vmul.f32 0.01, %v5450_v44  ;;  %v4845_v46 = vpop.f32.mrf.mxu3  ;;  %vm4487_vm10 = vcmp.ge.f32.partialorder %v4423_v18, 0.0 }
 0x71d   : > { %v4846_v17 = vadd.f32 %v9567_v28, %v4845_v46  ;;  %v4551_v46 = vmul.f32 0.01, %v4423_v18  ;;  %v4550_v2 = vmul.f32 0.01, %v4422_v15  ;;  %vm4486_vm11 = vcmp.ge.f32.partialorder %v4422_v15, 0.0 }
 0x71e   : > { %v5642_v9 = vsel %vm5514_vm5, %v5450_v44, %v5578_v20 }
 0x71f   : > { %v5706_v5 = vpack.c.bf16 %v5642_v9, %v5642_v9  ;;  %vm4968_vm7 = vcmp.ge.f32.partialorder %v4846_v17, 0.0  ;;  %v5032_v27 = vmul.f32 0.01, %v4846_v17  ;;  %v5301_v24 = vpop.f32.mrf.mxu2  ;;  %v9822_v9 = vsel %vm4487_vm10, %v4423_v18, %v4551_v46 }
 0x720   : > { %v5302_v16 = vadd.f32 %v9718_v34, %v5301_v24  ;;  %v9825_v41 = vsel %vm4486_vm11, %v4422_v15, %v4550_v2 }
 0x721   : > { %5771 = vst.msk [vmem:[%s9732_s20 + $0x18] sm:$0xf] %vm5764_vm2, %v5706_v5  ;;  %v5096_v19 = vsel %vm4968_vm7, %v4846_v17, %v5032_v27  ;;  %6287 = vmatmul.msk.bf16.gmra.mxu3 %vm3856_vm3, %v4655_v47 }
 0x722   : > { %v5147_v56 = vpack.c.bf16 %v5096_v19, %v5095_v61  ;;  %v5451_v38 = vadd.f32 %v5302_v16, %v9480_v12  ;;  %v4281_v15 = vpop.permute.xlu2 %4280 }
 0x724   : > { %vm5515_vm8 = vcmp.ge.f32.partialorder %v5451_v38, 0.0  ;;  %v5579_v31 = vmul.f32 0.01, %v5451_v38  ;;  %v4848_v29 = vpop.f32.mrf.mxu3  ;;  %6314 = vmatmul.msk.bf16.gmra.mxu2 %vm3856_vm3, %v5147_v56  ;;  %v4080_v56 = vadd.f32 %v9783_v53, %v9437_v22 }
 0x725   : > { %v4849_v12 = vadd.f32 %v9567_v28, %v4848_v29 }
 0x726   : > { %v5643_v54 = vsel %vm5515_vm8, %v5451_v38, %v5579_v31  ;;  %v4078_v31 = vadd.f32 %v9783_v53, %v9432_v60 }
 0x727   : > { %v5707_v44 = vpack.c.bf16 %v5643_v54, %v5643_v54  ;;  %v5304_v20 = vpop.f32.mrf.mxu2  ;;  %v5033_v24 = vmul.f32 0.01, %v4849_v12  ;;  %vm4969_vm13 = vcmp.ge.f32.partialorder %v4849_v12, 0.0  ;;  %v4425_v54 = vadd.f32 %v4281_v15, %v4080_v56 }
 0x728   : > { %v5305_v14 = vadd.f32 %v9718_v34, %v5304_v20  ;;  %v4279_v20 = vpop.permute.xlu1 %4278 }
 0x729   : > { %5772 = vst.msk [vmem:[%s9732_s20 + $0x1c] sm:$0xf] %vm5764_vm2, %v5707_v44  ;;  %v5097_v45 = vsel %vm4969_vm13, %v4849_v12, %v5033_v24  ;;  %v4424_v46 = vadd.f32 %v4279_v20, %v4078_v31  ;;  %vm4489_vm15 = vcmp.ge.f32.partialorder %v4425_v54, 0.0 }
 0x72a   : > { %v5452_v17 = vadd.f32 %v5305_v14, %v9497_v32  ;;  %v4656_v32 = vpack.c.bf16 %v9822_v9, %v9825_v41 }
 0x72b   : > { %vm4488_vm0 = vcmp.ge.f32.partialorder %v4424_v46, 0.0 }
 0x72c   : > { %vm5516_vm12 = vcmp.ge.f32.partialorder %v5452_v17, 0.0  ;;  %v5580_v5 = vmul.f32 0.01, %v5452_v17  ;;  %v4850_v27 = vpop.f32.mrf.mxu3 }
 0x72d   : > { %v4851_v47 = vadd.f32 %v9567_v28, %v4850_v27 }
 0x72e   : > { %v5644_v16 = vsel %vm5516_vm12, %v5452_v17, %v5580_v5  ;;  %v4553_v17 = vmul.f32 0.01, %v4425_v54 }
 0x72f   : > { %v5708_v61 = vpack.c.bf16 %v5644_v16, %v5644_v16  ;;  %vm4970_vm14 = vcmp.ge.f32.partialorder %v4851_v47, 0.0  ;;  %v5034_v19 = vmul.f32 0.01, %v4851_v47  ;;  %v5306_v37 = vpop.f32.mrf.mxu2 }
 0x730   : > { %v5307_v38 = vadd.f32 %v9718_v34, %v5306_v37  ;;  %v9844_v24 = vsel %vm4489_vm15, %v4425_v54, %v4553_v17 }
 0x731   : > { %5773 = vst.msk [vmem:[%s9732_s20 + $0x20] sm:$0xf] %vm5764_vm2, %v5708_v61  ;;  %v5098_v18 = vsel %vm4970_vm14, %v4851_v47, %v5034_v19  ;;  %6288 = vmatmul.msk.bf16.gmra.mxu3 %vm3856_vm3, %v4656_v32 }
 0x732   : > { %v5148_v29 = vpack.c.bf16 %v5098_v18, %v5097_v45  ;;  %v5453_v8 = vadd.f32 %v5307_v38, %v9493_v26  ;;  %v4552_v26 = vmul.f32 0.01, %v4424_v46  ;;  %v4085_v18 = vadd.f32 %v9783_v53, %v9452_v35 }
 0x734   : > { %vm5517_vm9 = vcmp.ge.f32.partialorder %v5453_v8, 0.0  ;;  %v5581_v44 = vmul.f32 0.01, %v5453_v8  ;;  %v4853_v22 = vpop.f32.mrf.mxu3  ;;  %6315 = vmatmul.msk.bf16.gmra.mxu2 %vm3856_vm3, %v5148_v29  ;;  %v9847_v37 = vsel %vm4488_vm0, %v4424_v46, %v4552_v26  ;;  %v4283_v46 = vpop.permute.xlu0 %4282 }
 0x735   : > { %v4854_v60 = vadd.f32 %v9567_v28, %v4853_v22 }
 0x736   : > { %v5645_v14 = vsel %vm5517_vm9, %v5453_v8, %v5581_v44  ;;  %v4083_v8 = vadd.f32 %v9783_v53, %v9450_v58  ;;  %v4285_v44 = vpop.permute.xlu1 %4284  ;;  %v9867_v58 = vld [vmem:[%s10227_s9] ss:$0 sm:$0xff] }
 0x737   : > { %v5709_v12 = vpack.c.bf16 %v5645_v14, %v5645_v14  ;;  %v5309_v2 = vpop.f32.mrf.mxu2  ;;  %v5035_v61 = vmul.f32 0.01, %v4854_v60  ;;  %vm4971_vm4 = vcmp.ge.f32.partialorder %v4854_v60, 0.0  ;;  %v4427_v22 = vadd.f32 %v4285_v44, %v4085_v18 }
 0x738   : > { %v5310_v5 = vadd.f32 %v9718_v34, %v5309_v2  ;;  %v4426_v14 = vadd.f32 %v4283_v46, %v4083_v8  ;;  %v4287_v46 = vpop.permute.xlu2 %4286 }
 0x739   : > { %5774 = vst.msk [vmem:[%s9732_s20 + $0x24] sm:$0xf] %vm5764_vm2, %v5709_v12  ;;  %v5099_v29 = vsel %vm4971_vm4, %v4854_v60, %v5035_v61  ;;  %vm4491_vm7 = vcmp.ge.f32.partialorder %v4427_v22, 0.0 }
 0x73a   : > { %v5454_v27 = vadd.f32 %v5310_v5, %v9510_v36  ;;  %v4657_v36 = vpack.c.bf16 %v9844_v24, %v9847_v37  ;;  %v4555_v5 = vmul.f32 0.01, %v4427_v22  ;;  %v4554_v26 = vmul.f32 0.01, %v4426_v14 }
 0x73b   : > { %vm4490_vm8 = vcmp.ge.f32.partialorder %v4426_v14, 0.0 }
 0x73c   : > { %vm5518_vm1 = vcmp.ge.f32.partialorder %v5454_v27, 0.0  ;;  %v5582_v47 = vmul.f32 0.01, %v5454_v27  ;;  %v4855_v16 = vpop.f32.mrf.mxu3 }
 0x73d   : > { %v4856_v19 = vadd.f32 %v9567_v28, %v4855_v16 }
 0x73e   : > { %v5646_v32 = vsel %vm5518_vm1, %v5454_v27, %v5582_v47  ;;  %v9871_v47 = vsel %vm4491_vm7, %v4427_v22, %v4555_v5  ;;  %v4289_v22 = vpop.permute.xlu0 %4288 }
 0x73f   : > { %v5710_v56 = vpack.c.bf16 %v5646_v32, %v5646_v32  ;;  %vm4972_vm5 = vcmp.ge.f32.partialorder %v4856_v19, 0.0  ;;  %v5036_v38 = vmul.f32 0.01, %v4856_v19  ;;  %v5311_v45 = vpop.f32.mrf.mxu2 }
 0x740   : > { %v5312_v31 = vadd.f32 %v9718_v34, %v5311_v45 }
 0x741   : > { %5775 = vst.msk [vmem:[%s9732_s20 + $0x28] sm:$0xf] %vm5764_vm2, %v5710_v56  ;;  %v5100_v28 = vsel %vm4972_vm5, %v4856_v19, %v5036_v38  ;;  %6289 = vmatmul.msk.bf16.gmra.mxu3 %vm3856_vm3, %v4657_v36  ;;  %v9874_v56 = vsel %vm4490_vm8, %v4426_v14, %v4554_v26 }
 0x742   : > { %v5149_v15 = vpack.c.bf16 %v5100_v28, %v5099_v29  ;;  %v5455_v54 = vadd.f32 %v5312_v31, %v9506_v10  ;;  %v4090_v31 = vadd.f32 %v9783_v53, %v9466_v48 }
 0x744   : > { %vm5519_vm6 = vcmp.ge.f32.partialorder %v5455_v54, 0.0  ;;  %v5583_v20 = vmul.f32 0.01, %v5455_v54  ;;  %v4858_v35 = vpop.f32.mrf.mxu3  ;;  %6316 = vmatmul.msk.bf16.gmra.mxu2 %vm3856_vm3, %v5149_v15  ;;  %v4088_v15 = vadd.f32 %v9783_v53, %v9464_v21 }
 0x745   : > { %v4859_v10 = vadd.f32 %v9867_v58, %v4858_v35 }
 0x746   : > { %v5647_v12 = vsel %vm5519_vm6, %v5455_v54, %v5583_v20  ;;  %v4429_v20 = vadd.f32 %v4289_v22, %v4090_v31  ;;  %v4428_v14 = vadd.f32 %v4287_v46, %v4088_v15 }
 0x747   : > { %v5711_v2 = vpack.c.bf16 %v5647_v12, %v5647_v12  ;;  %v5314_v17 = vpop.f32.mrf.mxu2  ;;  %v5037_v19 = vmul.f32 0.01, %v4859_v10  ;;  %vm4973_vm11 = vcmp.ge.f32.partialorder %v4859_v10, 0.0 }
 0x748   : > { %v5315_v60 = vadd.f32 %v9718_v34, %v5314_v17  ;;  %v4557_v5 = vmul.f32 0.01, %v4429_v20  ;;  %vm4493_vm14 = vcmp.ge.f32.partialorder %v4429_v20, 0.0  ;;  %vm4492_vm9 = vcmp.ge.f32.partialorder %v4428_v14, 0.0 }
 0x749   : > { %5776 = vst.msk [vmem:[%s9732_s20 + $0x2c] sm:$0xf] %vm5764_vm2, %v5711_v2  ;;  %v5101_v28 = vsel %vm4973_vm11, %v4859_v10, %v5037_v19 }
 0x74a   : > { %v5456_v27 = vadd.f32 %v5315_v60, %v9523_v0  ;;  %v4658_v0 = vpack.c.bf16 %v9871_v47, %v9874_v56  ;;  %v9893_v26 = vsel %vm4493_vm14, %v4429_v20, %v4557_v5 }
 0x74c   : > { %vm5520_vm10 = vcmp.ge.f32.partialorder %v5456_v27, 0.0  ;;  %v5584_v16 = vmul.f32 0.01, %v5456_v27  ;;  %v4860_v61 = vpop.f32.mrf.mxu3 }
 0x74d   : > { %v4861_v32 = vadd.f32 %v9867_v58, %v4860_v61 }
 0x74e   : > { %v5648_v38 = vsel %vm5520_vm10, %v5456_v27, %v5584_v16 }
 0x74f   : > { %v5712_v45 = vpack.c.bf16 %v5648_v38, %v5648_v38  ;;  %vm4974_vm12 = vcmp.ge.f32.partialorder %v4861_v32, 0.0  ;;  %v5038_v36 = vmul.f32 0.01, %v4861_v32  ;;  %v5316_v18 = vpop.f32.mrf.mxu2 }
 0x750   : > { %v5317_v29 = vadd.f32 %v9718_v34, %v5316_v18 }
 0x751   : > { %5777 = vst.msk [vmem:[%s9732_s20 + $0x30] sm:$0xf] %vm5764_vm2, %v5712_v45  ;;  %v5102_v8 = vsel %vm4974_vm12, %v4861_v32, %v5038_v36  ;;  %6290 = vmatmul.msk.bf16.gmra.mxu3 %vm3856_vm3, %v4658_v0  ;;  %v4095_v0 = vadd.f32 %v9783_v53, %v9482_v43 }
 0x752   : > { %v5150_v54 = vpack.c.bf16 %v5102_v8, %v5101_v28  ;;  %v5457_v44 = vadd.f32 %v5317_v29, %v9519_v50  ;;  %v4556_v50 = vmul.f32 0.01, %v4428_v14  ;;  %v4093_v8 = vadd.f32 %v9783_v53, %v9478_v7 }
 0x754   : > { %vm5521_vm13 = vcmp.ge.f32.partialorder %v5457_v44, 0.0  ;;  %v5585_v35 = vmul.f32 0.01, %v5457_v44  ;;  %v4863_v48 = vpop.f32.mrf.mxu3  ;;  %6317 = vmatmul.msk.bf16.gmra.mxu2 %vm3856_vm3, %v5150_v54  ;;  %v9896_v32 = vsel %vm4492_vm9, %v4428_v14, %v4556_v50 }
 0x755   : > { %v4864_v21 = vadd.f32 %v9867_v58, %v4863_v48 }
 0x756   : > { %v5649_v12 = vsel %vm5521_vm13, %v5457_v44, %v5585_v35  ;;  %v4293_v44 = vpop.permute.xlu2 %4292  ;;  %v4291_v35 = vpop.permute.xlu1 %4290 }
 0x757   : > { %v5713_v2 = vpack.c.bf16 %v5649_v12, %v5649_v12  ;;  %v5319_v17 = vpop.f32.mrf.mxu2  ;;  %v5039_v61 = vmul.f32 0.01, %v4864_v21  ;;  %vm4975_vm0 = vcmp.ge.f32.partialorder %v4864_v21, 0.0  ;;  %v4431_v22 = vadd.f32 %v4293_v44, %v4095_v0  ;;  %v4295_v44 = vpop.permute.xlu0 %4294 }
 0x758   : > { %v5320_v60 = vadd.f32 %v9718_v34, %v5319_v17  ;;  %v4430_v48 = vadd.f32 %v4291_v35, %v4093_v8 }
 0x759   : > { %5778 = vst.msk [vmem:[%s9732_s20 + $0x34] sm:$0xf] %vm5764_vm2, %v5713_v2  ;;  %v5103_v29 = vsel %vm4975_vm0, %v4864_v21, %v5039_v61  ;;  %v4559_v2 = vmul.f32 0.01, %v4431_v22  ;;  %vm4495_vm5 = vcmp.ge.f32.partialorder %v4431_v22, 0.0 }
 0x75a   : > { %v5458_v10 = vadd.f32 %v5320_v60, %v9538_v59  ;;  %v4659_v59 = vpack.c.bf16 %v9893_v26, %v9896_v32  ;;  %vm4494_vm6 = vcmp.ge.f32.partialorder %v4430_v48, 0.0 }
 0x75b   : > { %v9915_v60 = vsel %vm4495_vm5, %v4431_v22, %v4559_v2 }
 0x75c   : > { %vm5522_vm15 = vcmp.ge.f32.partialorder %v5458_v10, 0.0  ;;  %v5586_v27 = vmul.f32 0.01, %v5458_v10  ;;  %v4865_v16 = vpop.f32.mrf.mxu3 }
 0x75d   : > { %v4866_v19 = vadd.f32 %v9867_v58, %v4865_v16 }
 0x75e   : > { %v5650_v38 = vsel %vm5522_vm15, %v5458_v10, %v5586_v27  ;;  %v4297_v8 = vpop.permute.xlu1 %4296 }
 0x75f   : > { %v5714_v45 = vpack.c.bf16 %v5650_v38, %v5650_v38  ;;  %vm4976_vm1 = vcmp.ge.f32.partialorder %v4866_v19, 0.0  ;;  %v5040_v36 = vmul.f32 0.01, %v4866_v19  ;;  %v5321_v18 = vpop.f32.mrf.mxu2 }
 0x760   : > { %v5322_v31 = vadd.f32 %v9718_v34, %v5321_v18 }
 0x761   : > { %5779 = vst.msk [vmem:[%s9732_s20 + $0x38] sm:$0xf] %vm5764_vm2, %v5714_v45  ;;  %v5104_v28 = vsel %vm4976_vm1, %v4866_v19, %v5040_v36  ;;  %6291 = vmatmul.msk.bf16.gmra.mxu3 %vm3856_vm3, %v4659_v59  ;;  %v4100_v36 = vadd.f32 %v9783_v53, %v9495_v33 }
 0x762   : > { %v5151_v15 = vpack.c.bf16 %v5104_v28, %v5103_v29  ;;  %v5459_v54 = vadd.f32 %v5322_v31, %v9534_v42  ;;  %v4558_v42 = vmul.f32 0.01, %v4430_v48  ;;  %v4098_v31 = vadd.f32 %v9783_v53, %v9491_v39 }
 0x764   : > { %vm5523_vm4 = vcmp.ge.f32.partialorder %v5459_v54, 0.0  ;;  %v5587_v20 = vmul.f32 0.01, %v5459_v54  ;;  %v4868_v43 = vpop.f32.mrf.mxu3  ;;  %6318 = vmatmul.msk.bf16.gmra.mxu2 %vm3856_vm3, %v5151_v15  ;;  %v9918_v16 = vsel %vm4494_vm6, %v4430_v48, %v4558_v42  ;;  %v4433_v15 = vadd.f32 %v4297_v8, %v4100_v36 }
 0x765   : > { %v4869_v7 = vadd.f32 %v9867_v58, %v4868_v43  ;;  %v4432_v22 = vadd.f32 %v4295_v44, %v4098_v31 }
 0x766   : > { %v5651_v46 = vsel %vm5523_vm4, %v5459_v54, %v5587_v20  ;;  %v4561_v48 = vmul.f32 0.01, %v4433_v15  ;;  %vm4497_vm12 = vcmp.ge.f32.partialorder %v4433_v15, 0.0 }
 0x767   : > { %v5715_v14 = vpack.c.bf16 %v5651_v46, %v5651_v46  ;;  %v5324_v12 = vpop.f32.mrf.mxu2  ;;  %v5041_v10 = vmul.f32 0.01, %v4869_v7  ;;  %vm4977_vm8 = vcmp.ge.f32.partialorder %v4869_v7, 0.0  ;;  %vm4496_vm13 = vcmp.ge.f32.partialorder %v4432_v22, 0.0 }
 0x768   : > { %v5325_v17 = vadd.f32 %v9718_v34, %v5324_v12  ;;  %v9937_v12 = vsel %vm4497_vm12, %v4433_v15, %v4561_v48 }
 0x769   : > { %5780 = vst.msk [vmem:[%s9732_s20 + $0x3c] sm:$0xf] %vm5764_vm2, %v5715_v14  ;;  %v5105_v59 = vsel %vm4977_vm8, %v4869_v7, %v5041_v10 }
 0x76a   : > { %v5460_v5 = vadd.f32 %v5325_v17, %v9555_v6  ;;  %v4660_v6 = vpack.c.bf16 %v9915_v60, %v9918_v16 }
 0x76c   : > { %vm5524_vm7 = vcmp.ge.f32.partialorder %v5460_v5, 0.0  ;;  %v5588_v21 = vmul.f32 0.01, %v5460_v5  ;;  %v4870_v50 = vpop.f32.mrf.mxu3 }
 0x76d   : > { %v4871_v27 = vadd.f32 %v9867_v58, %v4870_v50 }
 0x76e   : > { %v5652_v61 = vsel %vm5524_vm7, %v5460_v5, %v5588_v21 }
 0x76f   : > { %v5716_v19 = vpack.c.bf16 %v5652_v61, %v5652_v61  ;;  %vm4978_vm10 = vcmp.ge.f32.partialorder %v4871_v27, 0.0  ;;  %v5042_v38 = vmul.f32 0.01, %v4871_v27  ;;  %v5326_v45 = vpop.f32.mrf.mxu2  ;;  %v4105_v61 = vadd.f32 %v9783_v53, %v9508_v4 }
 0x770   : > { %v5327_v18 = vadd.f32 %v9718_v34, %v5326_v45 }
 0x771   : > { %5781 = vst.msk [vmem:[%s9732_s20 + $0x40] sm:$0xf] %vm5764_vm2, %v5716_v19  ;;  %v5106_v0 = vsel %vm4978_vm10, %v4871_v27, %v5042_v38  ;;  %6292 = vmatmul.msk.bf16.gmra.mxu3 %vm3856_vm3, %v4660_v6  ;;  %v4103_v6 = vadd.f32 %v9783_v53, %v9504_v30 }
 0x772   : > { %v5152_v29 = vpack.c.bf16 %v5106_v0, %v5105_v59  ;;  %v5461_v28 = vadd.f32 %v5327_v18, %v9551_v49  ;;  %v4560_v49 = vmul.f32 0.01, %v4432_v22  ;;  %v10504_v18 = vld [vmem:[#allocation83_spill] sm:$0xff]  ;;  %v4301_v0 = vpop.permute.xlu0 %4300 }
 0x773   : > { %v4435_v31 = vadd.f32 %v4301_v0, %v4105_v61 }
 0x774   : > { %vm5525_vm11 = vcmp.ge.f32.partialorder %v5461_v28, 0.0  ;;  %v5589_v54 = vmul.f32 0.01, %v5461_v28  ;;  %v4873_v33 = vpop.f32.mrf.mxu3  ;;  %6319 = vmatmul.msk.bf16.gmra.mxu2 %vm3856_vm3, %v5152_v29  ;;  %v9940_v5 = vsel %vm4496_vm13, %v4432_v22, %v4560_v49 }
 0x775   : > { %v4874_v39 = vadd.f32 %v9867_v58, %v4873_v33  ;;  %v4563_v44 = vmul.f32 0.01, %v4435_v31  ;;  %vm4499_vm1 = vcmp.ge.f32.partialorder %v4435_v31, 0.0 }
 0x776   : > { %v5653_v20 = vsel %vm5525_vm11, %v5461_v28, %v5589_v54  ;;  %v4299_v28 = vpop.permute.xlu2 %4298 }
 0x777   : > { %v5717_v43 = vpack.c.bf16 %v5653_v20, %v5653_v20  ;;  %v5329_v35 = vpop.f32.mrf.mxu2  ;;  %v5043_v7 = vmul.f32 0.01, %v4874_v39  ;;  %vm4979_vm9 = vcmp.ge.f32.partialorder %v4874_v39, 0.0  ;;  %v4434_v8 = vadd.f32 %v4299_v28, %v4103_v6 }
 0x778   : > { %v5330_v46 = vadd.f32 %v9718_v34, %v5329_v35  ;;  %v9959_v48 = vsel %vm4499_vm1, %v4435_v31, %v4563_v44 }
 0x779   : > { %5782 = vst.msk [vmem:[%s9732_s20 + $0x44] sm:$0xf] %vm5764_vm2, %v5717_v43  ;;  %v5107_v38 = vsel %vm4979_vm9, %v4874_v39, %v5043_v7  ;;  %v4562_v20 = vmul.f32 0.01, %v4434_v8  ;;  %v10505_v43 = vld [vmem:[#allocation34_spill] sm:$0xff]  ;;  %vm4498_vm4 = vcmp.ge.f32.partialorder %v4434_v8, 0.0 }
 0x77a   : > { %v5462_v14 = vadd.f32 %v5330_v46, %v9573_v11  ;;  %v4661_v11 = vpack.c.bf16 %v9937_v12, %v9940_v5 }
 0x77c   : > { %vm5526_vm14 = vcmp.ge.f32.partialorder %v5462_v14, 0.0  ;;  %v5590_v2 = vmul.f32 0.01, %v5462_v14  ;;  %v4875_v17 = vpop.f32.mrf.mxu3 }
 0x77d   : > { %v4876_v42 = vadd.f32 %v9867_v58, %v4875_v17 }
 0x77e   : > { %v5654_v21 = vsel %vm5526_vm14, %v5462_v14, %v5590_v2  ;;  %v9962_v2 = vsel %vm4498_vm4, %v4434_v8, %v4562_v20  ;;  %v10509_v20 = vld [vmem:[#allocation3_spill] sm:$0xff] }
 0x77f   : > { %v5718_v50 = vpack.c.bf16 %v5654_v21, %v5654_v21  ;;  %vm4980_vm15 = vcmp.ge.f32.partialorder %v4876_v42, 0.0  ;;  %v5044_v10 = vmul.f32 0.01, %v4876_v42  ;;  %v5331_v27 = vpop.f32.mrf.mxu2 }
 0x780   : > { %v5332_v19 = vadd.f32 %v9718_v34, %v5331_v27 }
 0x781   : > { %5783 = vst.msk [vmem:[%s9732_s20 + $0x48] sm:$0xf] %vm5764_vm2, %v5718_v50  ;;  %v5108_v45 = vsel %vm4980_vm15, %v4876_v42, %v5044_v10  ;;  %6293 = vmatmul.msk.bf16.gmra.mxu3 %vm3856_vm3, %v4661_v11  ;;  %v4662_v50 = vpack.c.bf16 %v9959_v48, %v9962_v2  ;;  %v10506_v10 = vld [vmem:[#allocation67_spill] sm:$0xff] }
 0x782   : > { %v5153_v36 = vpack.c.bf16 %v5108_v45, %v5107_v38  ;;  %v5463_v59 = vadd.f32 %v5332_v19, %v10504_v18  ;;  %v4110_v27 = vadd.f32 %v9783_v53, %v10506_v10  ;;  %v10507_v38 = vld [vmem:[#allocation86_spill] sm:$0xff] }
 0x783   : > { %v4108_v45 = vadd.f32 %v9783_v53, %v10507_v38 }
 0x784   : > { %vm5527_vm0 = vcmp.ge.f32.partialorder %v5463_v59, 0.0  ;;  %v5591_v29 = vmul.f32 0.01, %v5463_v59  ;;  %v4878_v4 = vpop.f32.mrf.mxu3  ;;  %6320 = vmatmul.msk.bf16.gmra.mxu2 %vm3856_vm3, %v5153_v36  ;;  %v10508_v36 = vld [vmem:[#allocation23_spill] sm:$0xff] }
 0x785   : > { %v4879_v30 = vadd.f32 %v9867_v58, %v4878_v4  ;;  %v4303_v4 = vpop.permute.xlu1 %4302 }
 0x786   : > { %v5655_v15 = vsel %vm5527_vm0, %v5463_v59, %v5591_v29  ;;  %v4305_v59 = vpop.permute.xlu2 %4304  ;;  %v4436_v28 = vadd.f32 %v4303_v4, %v4108_v45  ;;  %v10511_v45 = vld [vmem:[#allocation76_spill] sm:$0xff] }
 0x787   : > { %v5719_v54 = vpack.c.bf16 %v5655_v15, %v5655_v15  ;;  %v5334_v33 = vpop.f32.mrf.mxu2  ;;  %v5045_v49 = vmul.f32 0.01, %v4879_v30  ;;  %vm4981_vm6 = vcmp.ge.f32.partialorder %v4879_v30, 0.0  ;;  %v4437_v0 = vadd.f32 %v4305_v59, %v4110_v27  ;;  %v10510_v27 = vld [vmem:[#allocation7_spill] sm:$0xff] }
 0x788   : > { %v5335_v22 = vadd.f32 %v9718_v34, %v5334_v33  ;;  %vm4500_vm11 = vcmp.ge.f32.partialorder %v4436_v28, 0.0 }
 0x789   : > { %5784 = vst.msk [vmem:[%s9732_s20 + $0x4c] sm:$0xf] %vm5764_vm2, %v5719_v54  ;;  %v5109_v61 = vsel %vm4981_vm6, %v4879_v30, %v5045_v49  ;;  %v4565_v33 = vmul.f32 0.01, %v4437_v0  ;;  %vm4501_vm10 = vcmp.ge.f32.partialorder %v4437_v0, 0.0 }
 0x78a   : > { %v5464_v35 = vadd.f32 %v5335_v22, %v10505_v43  ;;  %v4564_v30 = vmul.f32 0.01, %v4436_v28 }
 0x78c   : > { %vm5528_vm5 = vcmp.ge.f32.partialorder %v5464_v35, 0.0  ;;  %v5592_v46 = vmul.f32 0.01, %v5464_v35  ;;  %v4880_v39 = vpop.f32.mrf.mxu3 }
 0x78d   : > { %v4881_v14 = vadd.f32 %v9867_v58, %v4880_v39 }
 0x78e   : > { %v5656_v17 = vsel %vm5528_vm5, %v5464_v35, %v5592_v46  ;;  %v9981_v35 = vsel %vm4501_vm10, %v4437_v0, %v4565_v33  ;;  %v4309_v0 = vpop.permute.xlu1 %4308 }
 0x78f   : > { %v5720_v7 = vpack.c.bf16 %v5656_v17, %v5656_v17  ;;  %vm4982_vm7 = vcmp.ge.f32.partialorder %v4881_v14, 0.0  ;;  %v5046_v42 = vmul.f32 0.01, %v4881_v14  ;;  %v5336_v21 = vpop.f32.mrf.mxu2  ;;  %v9984_v17 = vsel %vm4500_vm11, %v4436_v28, %v4564_v30  ;;  %v4307_v28 = vpop.permute.xlu0 %4306 }
 0x790   : > { %v5337_v11 = vadd.f32 %v9718_v34, %v5336_v21  ;;  %v4663_v10 = vpack.c.bf16 %v9981_v35, %v9984_v17 }
 0x791   : > { %5785 = vst.msk [vmem:[%s9732_s20 + $0x50] sm:$0xf] %vm5764_vm2, %v5720_v7  ;;  %v5110_v19 = vsel %vm4982_vm7, %v4881_v14, %v5046_v42  ;;  %6294 = vmatmul.msk.bf16.gmra.mxu3 %vm3856_vm3, %v4662_v50 }
 0x792   : > { %v5154_v6 = vpack.c.bf16 %v5110_v19, %v5109_v61  ;;  %v5465_v18 = vadd.f32 %v5337_v11, %v10508_v36  ;;  %v4115_v11 = vadd.f32 %v9783_v53, %v10510_v27  ;;  %v10513_v27 = vld [vmem:[#allocation82_spill] sm:$0xff] }
 0x794   : > { %vm5529_vm8 = vcmp.ge.f32.partialorder %v5465_v18, 0.0  ;;  %v5593_v31 = vmul.f32 0.01, %v5465_v18  ;;  %v4883_v29 = vpop.f32.mrf.mxu3  ;;  %6321 = vmatmul.msk.bf16.gmra.mxu2 %vm3856_vm3, %v5154_v6  ;;  %v4113_v6 = vadd.f32 %v9783_v53, %v10511_v45 }
 0x795   : > { %v4884_v22 = vadd.f32 %v9867_v58, %v4883_v29 }
 0x796   : > { %v5657_v8 = vsel %vm5529_vm8, %v5465_v18, %v5593_v31  ;;  %v10512_v18 = vld [vmem:[#allocation14_spill] sm:$0xff]  ;;  %v4439_v31 = vadd.f32 %v4309_v0, %v4115_v11  ;;  %v4120_v11 = vadd.f32 %v9783_v53, %v10513_v27 }
 0x797   : > { %v5721_v15 = vpack.c.bf16 %v5657_v8, %v5657_v8  ;;  %v5339_v54 = vpop.f32.mrf.mxu2  ;;  %v5047_v49 = vmul.f32 0.01, %v4884_v22  ;;  %vm4983_vm13 = vcmp.ge.f32.partialorder %v4884_v22, 0.0  ;;  %v4438_v8 = vadd.f32 %v4307_v28, %v4113_v6  ;;  %v10514_v6 = vld [vmem:[#allocation12_spill] sm:$0xff]  ;;  %v4313_v0 = vpop.permute.xlu0 %4312 }
 0x798   : > { %v5340_v44 = vadd.f32 %v9718_v34, %v5339_v54  ;;  %vm4503_vm15 = vcmp.ge.f32.partialorder %v4439_v31, 0.0  ;;  %v4311_v28 = vpop.permute.xlu2 %4310 }
 0x799   : > { %5786 = vst.msk [vmem:[%s9732_s20 + $0x54] sm:$0xf] %vm5764_vm2, %v5721_v15  ;;  %v5111_v19 = vsel %vm4983_vm13, %v4884_v22, %v5047_v49  ;;  %vm4502_vm0 = vcmp.ge.f32.partialorder %v4438_v8, 0.0 }
 0x79a   : > { %v5466_v43 = vadd.f32 %v5340_v44, %v10509_v20  ;;  %v4567_v44 = vmul.f32 0.01, %v4439_v31  ;;  %v4566_v20 = vmul.f32 0.01, %v4438_v8 }
 0x79c   : > { %vm5530_vm12 = vcmp.ge.f32.partialorder %v5466_v43, 0.0  ;;  %v5594_v46 = vmul.f32 0.01, %v5466_v43  ;;  %v4885_v39 = vpop.f32.mrf.mxu3 }
 0x79d   : > { %v4886_v14 = vadd.f32 %v9867_v58, %v4885_v39 }
 0x79e   : > { %v5658_v7 = vsel %vm5530_vm12, %v5466_v43, %v5594_v46  ;;  %v10003_v46 = vsel %vm4503_vm15, %v4439_v31, %v4567_v44  ;;  %v4441_v31 = vadd.f32 %v4313_v0, %v4120_v11 }
 0x79f   : > { %v5722_v42 = vpack.c.bf16 %v5658_v7, %v5658_v7  ;;  %vm4984_vm14 = vcmp.ge.f32.partialorder %v4886_v14, 0.0  ;;  %v5048_v21 = vmul.f32 0.01, %v4886_v14  ;;  %v5341_v50 = vpop.f32.mrf.mxu2 }
 0x7a0   : > { %v5342_v61 = vadd.f32 %v9718_v34, %v5341_v50  ;;  %v4569_v44 = vmul.f32 0.01, %v4441_v31  ;;  %vm4505_vm7 = vcmp.ge.f32.partialorder %v4441_v31, 0.0 }
 0x7a1   : > { %5787 = vst.msk [vmem:[%s9732_s20 + $0x58] sm:$0xf] %vm5764_vm2, %v5722_v42  ;;  %v5112_v38 = vsel %vm4984_vm14, %v4886_v14, %v5048_v21  ;;  %6295 = vmatmul.msk.bf16.gmra.mxu3 %vm3856_vm3, %v4663_v10  ;;  %v10006_v42 = vsel %vm4502_vm0, %v4438_v8, %v4566_v20 }
 0x7a2   : > { %v5155_v36 = vpack.c.bf16 %v5112_v38, %v5111_v19  ;;  %v5467_v59 = vadd.f32 %v5342_v61, %v10512_v18  ;;  %v10015_v61 = vld [vmem:[%s10229_s11] ss:$0 sm:$0xff] }
 0x7a4   : > { %vm5531_vm9 = vcmp.ge.f32.partialorder %v5467_v59, 0.0  ;;  %v5595_v29 = vmul.f32 0.01, %v5467_v59  ;;  %v4888_v4 = vpop.f32.mrf.mxu3  ;;  %6322 = vmatmul.msk.bf16.gmra.mxu2 %vm3856_vm3, %v5155_v36  ;;  %v4118_v36 = vadd.f32 %v9783_v53, %v10514_v6  ;;  %v10516_v6 = vld [vmem:[#allocation9_spill] sm:$0xff] }
 0x7a5   : > { %v4889_v30 = vadd.f32 %v9867_v58, %v4888_v4 }
 0x7a6   : > { %v5659_v15 = vsel %vm5531_vm9, %v5467_v59, %v5595_v29  ;;  %v4440_v8 = vadd.f32 %v4311_v28, %v4118_v36 }
 0x7a7   : > { %v5723_v54 = vpack.c.bf16 %v5659_v15, %v5659_v15  ;;  %v5344_v33 = vpop.f32.mrf.mxu2  ;;  %v5049_v14 = vmul.f32 0.01, %v4889_v30  ;;  %vm4985_vm4 = vcmp.ge.f32.partialorder %v4889_v30, 0.0 }
 0x7a8   : > { %v5345_v22 = vadd.f32 %v9718_v34, %v5344_v33  ;;  %v4568_v53 = vmul.f32 0.01, %v4440_v8  ;;  %vm4504_vm8 = vcmp.ge.f32.partialorder %v4440_v8, 0.0 }
 0x7a9   : > { %5788 = vst.msk [vmem:[%s9732_s20 + $0x5c] sm:$0xf] %vm5764_vm2, %v5723_v54  ;;  %v5113_v38 = vsel %vm4985_vm4, %v4889_v30, %v5049_v14  ;;  %v10515_v30 = vld [vmem:[#allocation87_spill] sm:$0xff] }
 0x7aa   : > { %v5468_v43 = vadd.f32 %v5345_v22, %v9619_v55  ;;  %v4664_v55 = vpack.c.bf16 %v10003_v46, %v10006_v42 }
 0x7ac   : > { %vm5532_vm1 = vcmp.ge.f32.partialorder %v5468_v43, 0.0  ;;  %v5596_v39 = vmul.f32 0.01, %v5468_v43  ;;  %v4890_v49 = vpop.f32.mrf.mxu3 }
 0x7ad   : > { %v4891_v7 = vadd.f32 %v9867_v58, %v4890_v49 }
 0x7ae   : > { %v5660_v34 = vsel %vm5532_vm1, %v5468_v43, %v5596_v39  ;;  %v10030_v43 = vsel %vm4505_vm7, %v4441_v31, %v4569_v44 }
 0x7af   : > { %v5724_v21 = vpack.c.bf16 %v5660_v34, %v5660_v34  ;;  %vm4986_vm5 = vcmp.ge.f32.partialorder %v4891_v7, 0.0  ;;  %v5050_v50 = vmul.f32 0.01, %v4891_v7  ;;  %v5346_v10 = vpop.f32.mrf.mxu2  ;;  %v10033_v34 = vsel %vm4504_vm8, %v4440_v8, %v4568_v53 }
 0x7b0   : > { %v5347_v19 = vadd.f32 %v10015_v61, %v5346_v10  ;;  %v4665_v27 = vpack.c.bf16 %v10030_v43, %v10033_v34 }
 0x7b1   : > { %5789 = vst.msk [vmem:[%s9732_s20 + $0x60] sm:$0xf] %vm5764_vm2, %v5724_v21  ;;  %v5114_v45 = vsel %vm4986_vm5, %v4891_v7, %v5050_v50  ;;  %6296 = vmatmul.msk.bf16.gmra.mxu3 %vm3856_vm3, %v4664_v55 }
 0x7b2   : > { %v5156_v18 = vpack.c.bf16 %v5114_v45, %v5113_v38  ;;  %v5469_v59 = vadd.f32 %v5347_v19, %v9616_v51 }
 0x7b4   : > { %vm5533_vm6 = vcmp.ge.f32.partialorder %v5469_v59, 0.0  ;;  %v5597_v29 = vmul.f32 0.01, %v5469_v59  ;;  %v4893_v4 = vpop.f32.mrf.mxu3  ;;  %6323 = vmatmul.msk.bf16.gmra.mxu2 %vm3856_vm3, %v5156_v18 }
 0x7b5   : > { %v4894_v51 = vadd.f32 %v9867_v58, %v4893_v4 }
 0x7b6   : > { %v5661_v15 = vsel %vm5533_vm6, %v5469_v59, %v5597_v29 }
 0x7b7   : > { %v5725_v54 = vpack.c.bf16 %v5661_v15, %v5661_v15  ;;  %v5349_v33 = vpop.f32.mrf.mxu2  ;;  %v5051_v14 = vmul.f32 0.01, %v4894_v51  ;;  %vm4987_vm11 = vcmp.ge.f32.partialorder %v4894_v51, 0.0 }
 0x7b8   : > { %v5350_v22 = vadd.f32 %v10015_v61, %v5349_v33 }
 0x7b9   : > { %5790 = vst.msk [vmem:[%s9732_s20 + $0x64] sm:$0xf] %vm5764_vm2, %v5725_v54  ;;  %v5115_v19 = vsel %vm4987_vm11, %v4894_v51, %v5051_v14  ;;  %v10517_v14 = vld [vmem:[#allocation19_spill] sm:$0xff] }
 0x7ba   : > { %v5470_v20 = vadd.f32 %v5350_v22, %v10515_v30 }
 0x7bc   : > { %vm5534_vm10 = vcmp.ge.f32.partialorder %v5470_v20, 0.0  ;;  %v5598_v39 = vmul.f32 0.01, %v5470_v20  ;;  %v4895_v49 = vpop.f32.mrf.mxu3 }
 0x7bd   : > { %v4896_v7 = vadd.f32 %v9867_v58, %v4895_v49 }
 0x7be   : > { %v5662_v21 = vsel %vm5534_vm10, %v5470_v20, %v5598_v39 }
 0x7bf   : > { %v5726_v50 = vpack.c.bf16 %v5662_v21, %v5662_v21  ;;  %vm4988_vm12 = vcmp.ge.f32.partialorder %v4896_v7, 0.0  ;;  %v5052_v10 = vmul.f32 0.01, %v4896_v7  ;;  %v5351_v55 = vpop.f32.mrf.mxu2 }
 0x7c0   : > { %v5352_v11 = vadd.f32 %v10015_v61, %v5351_v55 }
 0x7c1   : > { %5791 = vst.msk [vmem:[%s9732_s20 + $0x68] sm:$0xf] %vm5764_vm2, %v5726_v50  ;;  %v5116_v38 = vsel %vm4988_vm12, %v4896_v7, %v5052_v10  ;;  %6297 = vmatmul.msk.bf16.gmra.mxu3 %vm3856_vm3, %v4665_v27 }
 0x7c2   : > { %v5157_v45 = vpack.c.bf16 %v5116_v38, %v5115_v19  ;;  %v5471_v36 = vadd.f32 %v5352_v11, %v10516_v6  ;;  %v10518_v38 = vld [vmem:[#allocation75_spill] sm:$0xff] }
 0x7c4   : > { %vm5535_vm13 = vcmp.ge.f32.partialorder %v5471_v36, 0.0  ;;  %v5599_v18 = vmul.f32 0.01, %v5471_v36  ;;  %v4898_v59 = vpop.f32.mrf.mxu3  ;;  %6324 = vmatmul.msk.bf16.gmra.mxu2 %vm3856_vm3, %v5157_v45 }
 0x7c5   : > { %v4899_v28 = vadd.f32 %v9867_v58, %v4898_v59 }
 0x7c6   : > { %v5663_v0 = vsel %vm5535_vm13, %v5471_v36, %v5599_v18 }
 0x7c7   : > { %v5727_v31 = vpack.c.bf16 %v5663_v0, %v5663_v0  ;;  %v5354_v29 = vpop.f32.mrf.mxu2  ;;  %v5053_v33 = vmul.f32 0.01, %v4899_v28  ;;  %vm4989_vm9 = vcmp.ge.f32.partialorder %v4899_v28, 0.0 }
 0x7c8   : > { %v5355_v4 = vadd.f32 %v10015_v61, %v5354_v29 }
 0x7c9   : > { %5792 = vst.msk [vmem:[%s9732_s20 + $0x6c] sm:$0xf] %vm5764_vm2, %v5727_v31  ;;  %v5117_v39 = vsel %vm4989_vm9, %v4899_v28, %v5053_v33  ;;  %v10519_v33 = vld [vmem:[#allocation70_spill] sm:$0xff] }
 0x7ca   : > { %v5472_v8 = vadd.f32 %v5355_v4, %v9653_v1 }
 0x7cc   : > { %vm5536_vm14 = vcmp.ge.f32.partialorder %v5472_v8, 0.0  ;;  %v5600_v15 = vmul.f32 0.01, %v5472_v8  ;;  %v4900_v54 = vpop.f32.mrf.mxu3 }
 0x7cd   : > { %v4901_v44 = vadd.f32 %v9867_v58, %v4900_v54 }
 0x7ce   : > { %v5664_v22 = vsel %vm5536_vm14, %v5472_v8, %v5600_v15 }
 0x7cf   : > { %v5728_v51 = vpack.c.bf16 %v5664_v22, %v5664_v22  ;;  %vm4990_vm15 = vcmp.ge.f32.partialorder %v4901_v44, 0.0  ;;  %v5054_v53 = vmul.f32 0.01, %v4901_v44  ;;  %v5356_v30 = vpop.f32.mrf.mxu2 }
 0x7d0   : > { %v5357_v20 = vadd.f32 %v10015_v61, %v5356_v30 }
 0x7d1   : > { %5793 = vst.msk [vmem:[%s9732_s20 + $0x70] sm:$0xf] %vm5764_vm2, %v5728_v51  ;;  %v5118_v49 = vsel %vm4990_vm15, %v4901_v44, %v5054_v53 }
 0x7d2   : > { %v5158_v1 = vpack.c.bf16 %v5118_v49, %v5117_v39  ;;  %v5473_v7 = vadd.f32 %v5357_v20, %v10517_v14 }
 0x7d4   : > { %vm5537_vm0 = vcmp.ge.f32.partialorder %v5473_v7, 0.0  ;;  %v5601_v21 = vmul.f32 0.01, %v5473_v7  ;;  %v4903_v50 = vpop.f32.mrf.mxu3  ;;  %6325 = vmatmul.msk.bf16.gmra.mxu2 %vm3856_vm3, %v5158_v1 }
 0x7d5   : > { %v4904_v19 = vadd.f32 %v9867_v58, %v4903_v50 }
 0x7d6   : > { %v5665_v10 = vsel %vm5537_vm0, %v5473_v7, %v5601_v21 }
 0x7d7   : > { %v5729_v55 = vpack.c.bf16 %v5665_v10, %v5665_v10  ;;  %v5359_v27 = vpop.f32.mrf.mxu2  ;;  %v5055_v18 = vmul.f32 0.01, %v4904_v19  ;;  %vm4991_vm4 = vcmp.ge.f32.partialorder %v4904_v19, 0.0 }
 0x7d8   : > { %v5360_v11 = vadd.f32 %v10015_v61, %v5359_v27 }
 0x7d9   : > { %5794 = vst.msk [vmem:[%s9732_s20 + $0x74] sm:$0xf] %vm5764_vm2, %v5729_v55  ;;  %v5119_v8 = vsel %vm4991_vm4, %v4904_v19, %v5055_v18 }
 0x7da   : > { %v5474_v45 = vadd.f32 %v5360_v11, %v10518_v38 }
 0x7dc   : > { %vm5538_vm1 = vcmp.ge.f32.partialorder %v5474_v45, 0.0  ;;  %v5602_v6 = vmul.f32 0.01, %v5474_v45  ;;  %v4905_v36 = vpop.f32.mrf.mxu3 }
 0x7dd   : > { %v4906_v59 = vadd.f32 %v9867_v58, %v4905_v36 }
 0x7de   : > { %v5666_v0 = vsel %vm5538_vm1, %v5474_v45, %v5602_v6  ;;  %v10520_v6 = vld [vmem:[#allocation22_spill] sm:$0xff] }
 0x7df   : > { %v5730_v31 = vpack.c.bf16 %v5666_v0, %v5666_v0  ;;  %vm4992_vm5 = vcmp.ge.f32.partialorder %v4906_v59, 0.0  ;;  %v5056_v29 = vmul.f32 0.01, %v4906_v59  ;;  %v5361_v4 = vpop.f32.mrf.mxu2 }
 0x7e0   : > { %v5362_v28 = vadd.f32 %v10015_v61, %v5361_v4 }
 0x7e1   : > { %5795 = vst.msk [vmem:[%s9732_s20 + $0x78] sm:$0xf] %vm5764_vm2, %v5730_v31  ;;  %v5120_v15 = vsel %vm4992_vm5, %v4906_v59, %v5056_v29 }
 0x7e2   : > { %v5159_v54 = vpack.c.bf16 %v5120_v15, %v5119_v8  ;;  %v5475_v44 = vadd.f32 %v5362_v28, %v10519_v33 }
 0x7e4   : > { %vm5539_vm6 = vcmp.ge.f32.partialorder %v5475_v44, 0.0  ;;  %v5603_v22 = vmul.f32 0.01, %v5475_v44  ;;  %v4908_v51 = vpop.f32.mrf.mxu3  ;;  %6326 = vmatmul.msk.bf16.gmra.mxu2 %vm3856_vm3, %v5159_v54 }
 0x7e5   : > { %v4909_v49 = vadd.f32 %v9867_v58, %v4908_v51 }
 0x7e6   : > { %v5667_v53 = vsel %vm5539_vm6, %v5475_v44, %v5603_v22 }
 0x7e7   : > { %v5731_v30 = vpack.c.bf16 %v5667_v53, %v5667_v53  ;;  %v5364_v20 = vpop.f32.mrf.mxu2  ;;  %v5057_v21 = vmul.f32 0.01, %v4909_v49  ;;  %vm4993_vm8 = vcmp.ge.f32.partialorder %v4909_v49, 0.0 }
 0x7e8   : > { %v5365_v39 = vadd.f32 %v10015_v61, %v5364_v20 }
 0x7e9   : > { %5796 = vst.msk [vmem:[%s9732_s20 + $0x7c] sm:$0xf] %vm5764_vm2, %v5731_v30  ;;  %v5121_v38 = vsel %vm4993_vm8, %v4909_v49, %v5057_v21 }
 0x7ea   : > { %v5476_v1 = vadd.f32 %v5365_v39, %v9687_v25 }
 0x7ec   : > { %vm5540_vm7 = vcmp.ge.f32.partialorder %v5476_v1, 0.0  ;;  %v5604_v14 = vmul.f32 0.01, %v5476_v1  ;;  %v4910_v7 = vpop.f32.mrf.mxu3 }
 0x7ed   : > { %v4911_v50 = vadd.f32 %v9867_v58, %v4910_v7 }
 0x7ee   : > { %v5668_v10 = vsel %vm5540_vm7, %v5476_v1, %v5604_v14 }
 0x7ef   : > { %v5732_v55 = vpack.c.bf16 %v5668_v10, %v5668_v10  ;;  %vm4994_vm10 = vcmp.ge.f32.partialorder %v4911_v50, 0.0  ;;  %v5058_v27 = vmul.f32 0.01, %v4911_v50  ;;  %v5366_v11 = vpop.f32.mrf.mxu2 }
 0x7f0   : > { %v5367_v19 = vadd.f32 %v10015_v61, %v5366_v11  ;;  %v10521_v11 = vld [vmem:[#allocation37_spill] sm:$0xff] }
 0x7f1   : > { %5797 = vst.msk [vmem:[%s9732_s20 + $0x80] sm:$0xf] %vm5764_vm2, %v5732_v55  ;;  %v5122_v45 = vsel %vm4994_vm10, %v4911_v50, %v5058_v27 }
 0x7f2   : > { %v5160_v25 = vpack.c.bf16 %v5122_v45, %v5121_v38  ;;  %v5477_v36 = vadd.f32 %v5367_v19, %v10520_v6 }
 0x7f4   : > { %vm5541_vm11 = vcmp.ge.f32.partialorder %v5477_v36, 0.0  ;;  %v5605_v18 = vmul.f32 0.01, %v5477_v36  ;;  %v4913_v59 = vpop.f32.mrf.mxu3  ;;  %6327 = vmatmul.msk.bf16.gmra.mxu2 %vm3856_vm3, %v5160_v25 }
 0x7f5   : > { %v4914_v28 = vadd.f32 %v9867_v58, %v4913_v59 }
 0x7f6   : > { %v5669_v0 = vsel %vm5541_vm11, %v5477_v36, %v5605_v18 }
 0x7f7   : > { %v5733_v31 = vpack.c.bf16 %v5669_v0, %v5669_v0  ;;  %v5369_v29 = vpop.f32.mrf.mxu2  ;;  %v5059_v33 = vmul.f32 0.01, %v4914_v28  ;;  %vm4995_vm13 = vcmp.ge.f32.partialorder %v4914_v28, 0.0 }
 0x7f8   : > { %v5370_v4 = vadd.f32 %v10015_v61, %v5369_v29 }
 0x7f9   : > { %5798 = vst.msk [vmem:[%s9732_s20 + $0x84] sm:$0xf] %vm5764_vm2, %v5733_v31  ;;  %v5123_v39 = vsel %vm4995_vm13, %v4914_v28, %v5059_v33  ;;  %v10522_v28 = vld [vmem:[#allocation2_spill] sm:$0xff] }
 0x7fa   : > { %v5478_v8 = vadd.f32 %v5370_v4, %v9703_v57 }
 0x7fc   : > { %vm5542_vm12 = vcmp.ge.f32.partialorder %v5478_v8, 0.0  ;;  %v5606_v15 = vmul.f32 0.01, %v5478_v8  ;;  %v4915_v54 = vpop.f32.mrf.mxu3 }
 0x7fd   : > { %v4916_v44 = vadd.f32 %v9867_v58, %v4915_v54 }
 0x7fe   : > { %v5670_v22 = vsel %vm5542_vm12, %v5478_v8, %v5606_v15 }
 0x7ff   : > { %v5734_v51 = vpack.c.bf16 %v5670_v22, %v5670_v22  ;;  %vm4996_vm14 = vcmp.ge.f32.partialorder %v4916_v44, 0.0  ;;  %v5060_v53 = vmul.f32 0.01, %v4916_v44  ;;  %v5371_v30 = vpop.f32.mrf.mxu2 }
 0x800   : > { %v5372_v20 = vadd.f32 %v10015_v61, %v5371_v30 }
 0x801   : > { %5799 = vst.msk [vmem:[%s9732_s20 + $0x88] sm:$0xf] %vm5764_vm2, %v5734_v51  ;;  %v5124_v49 = vsel %vm4996_vm14, %v4916_v44, %v5060_v53 }
 0x802   : > { %v5161_v57 = vpack.c.bf16 %v5124_v49, %v5123_v39  ;;  %v5479_v1 = vadd.f32 %v5372_v20, %v9700_v13 }
 0x804   : > { %vm5543_vm9 = vcmp.ge.f32.partialorder %v5479_v1, 0.0  ;;  %v5607_v14 = vmul.f32 0.01, %v5479_v1  ;;  %v4918_v7 = vpop.f32.mrf.mxu3  ;;  %6328 = vmatmul.msk.bf16.gmra.mxu2 %vm3856_vm3, %v5161_v57 }
 0x805   : > { %v4919_v27 = vadd.f32 %v9867_v58, %v4918_v7 }
 0x806   : > { %v5671_v21 = vsel %vm5543_vm9, %v5479_v1, %v5607_v14 }
 0x807   : > { %v5735_v50 = vpack.c.bf16 %v5671_v21, %v5671_v21  ;;  %v5374_v10 = vpop.f32.mrf.mxu2  ;;  %v5061_v45 = vmul.f32 0.01, %v4919_v27  ;;  %vm4997_vm0 = vcmp.ge.f32.partialorder %v4919_v27, 0.0 }
 0x808   : > { %v5375_v55 = vadd.f32 %v10015_v61, %v5374_v10 }
 0x809   : > { %5800 = vst.msk [vmem:[%s9732_s20 + $0x8c] sm:$0xf] %vm5764_vm2, %v5735_v50  ;;  %v5125_v31 = vsel %vm4997_vm0, %v4919_v27, %v5061_v45 }
 0x80a   : > { %v5480_v19 = vadd.f32 %v5375_v55, %v10521_v11 }
 0x80c   : > { %vm5544_vm15 = vcmp.ge.f32.partialorder %v5480_v19, 0.0  ;;  %v5608_v38 = vmul.f32 0.01, %v5480_v19  ;;  %v4920_v13 = vpop.f32.mrf.mxu3 }
 0x80d   : > { %v4921_v25 = vadd.f32 %v9867_v58, %v4920_v13 }
 0x80e   : > { %v5672_v6 = vsel %vm5544_vm15, %v5480_v19, %v5608_v38 }
 0x80f   : > { %v5736_v36 = vpack.c.bf16 %v5672_v6, %v5672_v6  ;;  %vm4998_vm1 = vcmp.ge.f32.partialorder %v4921_v25, 0.0  ;;  %v5062_v18 = vmul.f32 0.01, %v4921_v25  ;;  %v5376_v59 = vpop.f32.mrf.mxu2 }
 0x810   : > { %v5377_v0 = vadd.f32 %v10015_v61, %v5376_v59 }
 0x811   : > { %5801 = vst.msk [vmem:[%s9732_s20 + $0x90] sm:$0xf] %vm5764_vm2, %v5736_v36  ;;  %v5126_v29 = vsel %vm4998_vm1, %v4921_v25, %v5062_v18 }
 0x812   : > { %v5162_v4 = vpack.c.bf16 %v5126_v29, %v5125_v31  ;;  %v5481_v8 = vadd.f32 %v5377_v0, %v10522_v28 }
 0x814   : > { %vm5545_vm4 = vcmp.ge.f32.partialorder %v5481_v8, 0.0  ;;  %v5609_v15 = vmul.f32 0.01, %v5481_v8  ;;  %v4923_v54 = vpop.f32.mrf.mxu3  ;;  %6329 = vmatmul.msk.bf16.gmra.mxu2 %vm3856_vm3, %v5162_v4 }
 0x815   : > { %v4924_v53 = vadd.f32 %v9867_v58, %v4923_v54 }
 0x816   : > { %v5673_v33 = vsel %vm5545_vm4, %v5481_v8, %v5609_v15 }
 0x817   : > { %v5737_v44 = vpack.c.bf16 %v5673_v33, %v5673_v33  ;;  %v5379_v22 = vpop.f32.mrf.mxu2  ;;  %v5063_v49 = vmul.f32 0.01, %v4924_v53  ;;  %vm4999_vm6 = vcmp.ge.f32.partialorder %v4924_v53, 0.0 }
 0x818   : > { %v5380_v51 = vadd.f32 %v10015_v61, %v5379_v22 }
 0x819   : > { %5802 = vst.msk [vmem:[%s9732_s20 + $0x94] sm:$0xf] %vm5764_vm2, %v5737_v44  ;;  %v5127_v10 = vsel %vm4999_vm6, %v4924_v53, %v5063_v49 }
 0x81a   : > { %v5482_v30 = vadd.f32 %v5380_v51, %v9754_v62 }
 0x81c   : > { %vm5546_vm5 = vcmp.ge.f32.partialorder %v5482_v30, 0.0  ;;  %v5610_v20 = vmul.f32 0.01, %v5482_v30  ;;  %v4925_v39 = vpop.f32.mrf.mxu3 }
 0x81d   : > { %v4926_v57 = vadd.f32 %v9867_v58, %v4925_v39 }
 0x81e   : > { %v5674_v1 = vsel %vm5546_vm5, %v5482_v30, %v5610_v20  ;;  %v6940_v20 = vld [vmem:[%s10227_s9] ss:$0 sm:$0xff] }
 0x81f   : > { %v5738_v14 = vpack.c.bf16 %v5674_v1, %v5674_v1  ;;  %vm5000_vm7 = vcmp.ge.f32.partialorder %v4926_v57, 0.0  ;;  %v5064_v7 = vmul.f32 0.01, %v4926_v57  ;;  %v5381_v21 = vpop.f32.mrf.mxu2 }
 0x820   : > { %v5382_v50 = vadd.f32 %v10015_v61, %v5381_v21 }
 0x821   : > { %5803 = vst.msk [vmem:[%s9732_s20 + $0x98] sm:$0xf] %vm5764_vm2, %v5738_v14  ;;  %v5128_v55 = vsel %vm5000_vm7, %v4926_v57, %v5064_v7 }
 0x822   : > { %v5163_v62 = vpack.c.bf16 %v5128_v55, %v5127_v10  ;;  %v5483_v27 = vadd.f32 %v5382_v50, %v9751_v63 }
 0x824   : > { %vm5547_vm8 = vcmp.ge.f32.partialorder %v5483_v27, 0.0  ;;  %v5611_v11 = vmul.f32 0.01, %v5483_v27  ;;  %v4928_v19 = vpop.f32.mrf.mxu3  ;;  %6330 = vmatmul.msk.bf16.gmra.mxu2 %vm3856_vm3, %v5163_v62 }
 0x825   : > { %v4929_v6 = vadd.f32 %v9867_v58, %v4928_v19 }
 0x826   : > { %v5675_v38 = vsel %vm5547_vm8, %v5483_v27, %v5611_v11 }
 0x827   : > { %v5739_v13 = vpack.c.bf16 %v5675_v38, %v5675_v38  ;;  %v5384_v45 = vpop.f32.mrf.mxu2  ;;  %v5065_v59 = vmul.f32 0.01, %v4929_v6  ;;  %vm5001_vm11 = vcmp.ge.f32.partialorder %v4929_v6, 0.0 }
 0x828   : > { %v5385_v25 = vadd.f32 %v10015_v61, %v5384_v45 }
 0x829   : > { %5804 = vst.msk [vmem:[%s9732_s20 + $0x9c] sm:$0xf] %vm5764_vm2, %v5739_v13  ;;  %v5129_v15 = vsel %vm5001_vm11, %v4929_v6, %v5065_v59 }
 0x82a   : > { %v5484_v36 = vadd.f32 %v5385_v25, %v9776_v3 }
 0x82c   : > { %vm5548_vm10 = vcmp.ge.f32.partialorder %v5484_v36, 0.0  ;;  %v5612_v18 = vmul.f32 0.01, %v5484_v36  ;;  %v4930_v63 = vpop.f32.mrf.mxu3 }
 0x82d   : > { %v4931_v0 = vadd.f32 %v9867_v58, %v4930_v63 }
 0x82e   : > { %v5676_v31 = vsel %vm5548_vm10, %v5484_v36, %v5612_v18 }
 0x82f   : > { %v5740_v29 = vpack.c.bf16 %v5676_v31, %v5676_v31  ;;  %vm5002_vm12 = vcmp.ge.f32.partialorder %v4931_v0, 0.0  ;;  %v5066_v4 = vmul.f32 0.01, %v4931_v0  ;;  %v5386_v28 = vpop.f32.mrf.mxu2 }
 0x830   : > { %v5387_v8 = vadd.f32 %v10015_v61, %v5386_v28 }
 0x831   : > { %5805 = vst.msk [vmem:[%s9732_s20 + $0xa0] sm:$0xf] %vm5764_vm2, %v5740_v29  ;;  %v5130_v54 = vsel %vm5002_vm12, %v4931_v0, %v5066_v4 }
 0x832   : > { %v5164_v3 = vpack.c.bf16 %v5130_v54, %v5129_v15  ;;  %v5485_v33 = vadd.f32 %v5387_v8, %v9773_v52 }
 0x834   : > { %vm5549_vm13 = vcmp.ge.f32.partialorder %v5485_v33, 0.0  ;;  %v5613_v44 = vmul.f32 0.01, %v5485_v33  ;;  %v4933_v22 = vpop.f32.mrf.mxu3  ;;  %6331 = vmatmul.msk.bf16.gmra.mxu2 %vm3856_vm3, %v5164_v3 }
 0x835   : > { %v4934_v39 = vadd.f32 %v6940_v20, %v4933_v22 }
 0x836   : > { %v5677_v58 = vsel %vm5549_vm13, %v5485_v33, %v5613_v44 }
 0x837   : > { %v5741_v51 = vpack.c.bf16 %v5677_v58, %v5677_v58  ;;  %v5389_v53 = vpop.f32.mrf.mxu2  ;;  %v5067_v1 = vmul.f32 0.01, %v4934_v39  ;;  %vm5003_vm9 = vcmp.ge.f32.partialorder %v4934_v39, 0.0 }
 0x838   : > { %v5390_v30 = vadd.f32 %v10015_v61, %v5389_v53 }
 0x839   : > { %5806 = vst.msk [vmem:[%s9732_s20 + $0xa4] sm:$0xf] %vm5764_vm2, %v5741_v51  ;;  %v5131_v62 = vsel %vm5003_vm9, %v4934_v39, %v5067_v1 }
 0x83a   : > { %v5486_v52 = vadd.f32 %v5390_v30, %v9803_v23 }
 0x83c   : > { %vm5550_vm14 = vcmp.ge.f32.partialorder %v5486_v52, 0.0  ;;  %v5614_v49 = vmul.f32 0.01, %v5486_v52  ;;  %v4935_v57 = vpop.f32.mrf.mxu3 }
 0x83d   : > { %v4936_v14 = vadd.f32 %v6940_v20, %v4935_v57 }
 0x83e   : > { %v5678_v7 = vsel %vm5550_vm14, %v5486_v52, %v5614_v49 }
 0x83f   : > { %v5742_v21 = vpack.c.bf16 %v5678_v7, %v5678_v7  ;;  %vm5004_vm15 = vcmp.ge.f32.partialorder %v4936_v14, 0.0  ;;  %v5068_v50 = vmul.f32 0.01, %v4936_v14  ;;  %v5391_v10 = vpop.f32.mrf.mxu2 }
 0x840   : > { %v5392_v55 = vadd.f32 %v10015_v61, %v5391_v10 }
 0x841   : > { %5807 = vst.msk [vmem:[%s9732_s20 + $0xa8] sm:$0xf] %vm5764_vm2, %v5742_v21  ;;  %v5132_v27 = vsel %vm5004_vm15, %v4936_v14, %v5068_v50 }
 0x842   : > { %v5165_v11 = vpack.c.bf16 %v5132_v27, %v5131_v62  ;;  %v5487_v23 = vadd.f32 %v5392_v55, %v9800_v40 }
 0x844   : > { %vm5551_vm0 = vcmp.ge.f32.partialorder %v5487_v23, 0.0  ;;  %v5615_v19 = vmul.f32 0.01, %v5487_v23  ;;  %v4938_v38 = vpop.f32.mrf.mxu3  ;;  %6332 = vmatmul.msk.bf16.gmra.mxu2 %vm3856_vm3, %v5165_v11 }
 0x845   : > { %v4939_v36 = vadd.f32 %v6940_v20, %v4938_v38 }
 0x846   : > { %v5679_v13 = vsel %vm5551_vm0, %v5487_v23, %v5615_v19 }
 0x847   : > { %v5743_v45 = vpack.c.bf16 %v5679_v13, %v5679_v13  ;;  %v5394_v25 = vpop.f32.mrf.mxu2  ;;  %v5069_v40 = vmul.f32 0.01, %v4939_v36  ;;  %vm5005_vm4 = vcmp.ge.f32.partialorder %v4939_v36, 0.0 }
 0x848   : > { %v5395_v6 = vadd.f32 %v10015_v61, %v5394_v25 }
 0x849   : > { %5808 = vst.msk [vmem:[%s9732_s20 + $0xac] sm:$0xf] %vm5764_vm2, %v5743_v45  ;;  %v5133_v15 = vsel %vm5005_vm4, %v4939_v36, %v5069_v40 }
 0x84a   : > { %v5488_v18 = vadd.f32 %v5395_v6, %v9825_v41 }
 0x84c   : > { %vm5552_vm1 = vcmp.ge.f32.partialorder %v5488_v18, 0.0  ;;  %v5616_v63 = vmul.f32 0.01, %v5488_v18  ;;  %v4940_v59 = vpop.f32.mrf.mxu3 }
 0x84d   : > { %v4941_v0 = vadd.f32 %v6940_v20, %v4940_v59 }
 0x84e   : > { %v5680_v31 = vsel %vm5552_vm1, %v5488_v18, %v5616_v63 }
 0x84f   : > { %v5744_v29 = vpack.c.bf16 %v5680_v31, %v5680_v31  ;;  %vm5006_vm5 = vcmp.ge.f32.partialorder %v4941_v0, 0.0  ;;  %v5070_v4 = vmul.f32 0.01, %v4941_v0  ;;  %v5396_v28 = vpop.f32.mrf.mxu2 }
 0x850   : > { %v5397_v8 = vadd.f32 %v10015_v61, %v5396_v28 }
 0x851   : > { %5809 = vst.msk [vmem:[%s9732_s20 + $0xb0] sm:$0xf] %vm5764_vm2, %v5744_v29  ;;  %v5134_v54 = vsel %vm5006_vm5, %v4941_v0, %v5070_v4 }
 0x852   : > { %v5166_v3 = vpack.c.bf16 %v5134_v54, %v5133_v15  ;;  %v5489_v41 = vadd.f32 %v5397_v8, %v9822_v9 }
 0x854   : > { %vm5553_vm6 = vcmp.ge.f32.partialorder %v5489_v41, 0.0  ;;  %v5617_v33 = vmul.f32 0.01, %v5489_v41  ;;  %6333 = vmatmul.msk.bf16.gmra.mxu2 %vm3856_vm3, %v5166_v3 }
 0x856   : > { %v5681_v44 = vsel %vm5553_vm6, %v5489_v41, %v5617_v33 }
 0x857   : > { %v5745_v22 = vpack.c.bf16 %v5681_v44, %v5681_v44  ;;  %v5399_v58 = vpop.f32.mrf.mxu2 }
 0x858   : > { %v5400_v51 = vadd.f32 %v10015_v61, %v5399_v58 }
 0x859   : > { %5810 = vst.msk [vmem:[%s9732_s20 + $0xb4] sm:$0xf] %vm5764_vm2, %v5745_v22 }
 0x85a   : > { %v5490_v53 = vadd.f32 %v5400_v51, %v9847_v37 }
 0x85c   : > { %vm5554_vm7 = vcmp.ge.f32.partialorder %v5490_v53, 0.0  ;;  %v5618_v30 = vmul.f32 0.01, %v5490_v53 }
 0x85e   : > { %v5682_v20 = vsel %vm5554_vm7, %v5490_v53, %v5618_v30 }
 0x85f   : > { %v5746_v39 = vpack.c.bf16 %v5682_v20, %v5682_v20  ;;  %v5401_v9 = vpop.f32.mrf.mxu2 }
 0x860   : > { %v5402_v52 = vadd.f32 %v10015_v61, %v5401_v9 }
 0x861   : > { %5811 = vst.msk [vmem:[%s9732_s20 + $0xb8] sm:$0xf] %vm5764_vm2, %v5746_v39 }
 0x862   : > { %v5491_v49 = vadd.f32 %v5402_v52, %v9844_v24 }
 0x864   : > { %vm5555_vm3 = vcmp.ge.f32.partialorder %v5491_v49, 0.0  ;;  %v5619_v57 = vmul.f32 0.01, %v5491_v49 }
 0x866   : > { %v5683_v1 = vsel %vm5555_vm3, %v5491_v49, %v5619_v57 }
 0x867   : > { %v5747_v14 = vpack.c.bf16 %v5683_v1, %v5683_v1  ;;  %v5404_v7 = vpop.f32.mrf.mxu2 }
 0x868   : > { %v5405_v21 = vadd.f32 %v10015_v61, %v5404_v7 }
 0x869   : > { %5812 = vst.msk [vmem:[%s9732_s20 + $0xbc] sm:$0xf] %vm5764_vm2, %v5747_v14 }
 0x86a   : > { %v5492_v37 = vadd.f32 %v5405_v21, %v9874_v56 }
 0x86c   : > { %vm5556_vm8 = vcmp.ge.f32.partialorder %v5492_v37, 0.0  ;;  %v5620_v50 = vmul.f32 0.01, %v5492_v37 }
 0x86e   : > { %v5684_v10 = vsel %vm5556_vm8, %v5492_v37, %v5620_v50 }
 0x86f   : > { %v5748_v55 = vpack.c.bf16 %v5684_v10, %v5684_v10  ;;  %v5406_v62 = vpop.f32.mrf.mxu2 }
 0x870   : > { %v5407_v27 = vadd.f32 %v10015_v61, %v5406_v62 }
 0x871   : > { %5813 = vst.msk [vmem:[%s9732_s20 + $0xc0] sm:$0xf] %vm5764_vm2, %v5748_v55 }
 0x872   : > { %v5493_v24 = vadd.f32 %v5407_v27, %v9871_v47 }
 0x874   : > { %vm5557_vm10 = vcmp.ge.f32.partialorder %v5493_v24, 0.0  ;;  %v5621_v11 = vmul.f32 0.01, %v5493_v24 }
 0x876   : > { %v5685_v23 = vsel %vm5557_vm10, %v5493_v24, %v5621_v11 }
 0x877   : > { %v5749_v19 = vpack.c.bf16 %v5685_v23, %v5685_v23  ;;  %v5409_v38 = vpop.f32.mrf.mxu2 }
 0x878   : > { %v5410_v13 = vadd.f32 %v10015_v61, %v5409_v38 }
 0x879   : > { %5814 = vst.msk [vmem:[%s9732_s20 + $0xc4] sm:$0xf] %vm5764_vm2, %v5749_v19 }
 0x87a   : > { %v5494_v56 = vadd.f32 %v5410_v13, %v9896_v32 }
 0x87c   : > { %vm5558_vm11 = vcmp.ge.f32.partialorder %v5494_v56, 0.0  ;;  %v5622_v45 = vmul.f32 0.01, %v5494_v56 }
 0x87e   : > { %v5686_v25 = vsel %vm5558_vm11, %v5494_v56, %v5622_v45 }
 0x87f   : > { %v5750_v6 = vpack.c.bf16 %v5686_v25, %v5686_v25  ;;  %v5411_v36 = vpop.f32.mrf.mxu2 }
 0x880   : > { %v5412_v18 = vadd.f32 %v10015_v61, %v5411_v36 }
 0x881   : > { %5815 = vst.msk [vmem:[%s9732_s20 + $0xc8] sm:$0xf] %vm5764_vm2, %v5750_v6 }
 0x882   : > { %v5495_v47 = vadd.f32 %v5412_v18, %v9893_v26 }
 0x884   : > { %vm5559_vm12 = vcmp.ge.f32.partialorder %v5495_v47, 0.0  ;;  %v5623_v63 = vmul.f32 0.01, %v5495_v47 }
 0x886   : > { %v5687_v59 = vsel %vm5559_vm12, %v5495_v47, %v5623_v63 }
 0x887   : > { %v5751_v40 = vpack.c.bf16 %v5687_v59, %v5687_v59  ;;  %v5414_v0 = vpop.f32.mrf.mxu2 }
 0x888   : > { %v5415_v31 = vadd.f32 %v10015_v61, %v5414_v0 }
 0x889   : > { %5816 = vst.msk [vmem:[%s9732_s20 + $0xcc] sm:$0xf] %vm5764_vm2, %v5751_v40 }
 0x88a   : > { %v5496_v32 = vadd.f32 %v5415_v31, %v9918_v16 }
 0x88c   : > { %vm5560_vm13 = vcmp.ge.f32.partialorder %v5496_v32, 0.0  ;;  %v5624_v29 = vmul.f32 0.01, %v5496_v32 }
 0x88e   : > { %v5688_v4 = vsel %vm5560_vm13, %v5496_v32, %v5624_v29 }
 0x88f   : > { %v5752_v28 = vpack.c.bf16 %v5688_v4, %v5688_v4  ;;  %v5416_v8 = vpop.f32.mrf.mxu2 }
 0x890   : > { %v5417_v15 = vadd.f32 %v10015_v61, %v5416_v8 }
 0x891   : > { %5817 = vst.msk [vmem:[%s9732_s20 + $0xd0] sm:$0xf] %vm5764_vm2, %v5752_v28 }
 0x892   : > { %v5497_v26 = vadd.f32 %v5417_v15, %v9915_v60 }
 0x894   : > { %vm5561_vm14 = vcmp.ge.f32.partialorder %v5497_v26, 0.0  ;;  %v5625_v54 = vmul.f32 0.01, %v5497_v26 }
 0x896   : > { %v5689_v3 = vsel %vm5561_vm14, %v5497_v26, %v5625_v54 }
 0x897   : > { %v5753_v41 = vpack.c.bf16 %v5689_v3, %v5689_v3  ;;  %v5419_v33 = vpop.f32.mrf.mxu2 }
 0x898   : > { %v5420_v44 = vadd.f32 %v10015_v61, %v5419_v33 }
 0x899   : > { %5818 = vst.msk [vmem:[%s9732_s20 + $0xd4] sm:$0xf] %vm5764_vm2, %v5753_v41 }
 0x89a   : > { %v5498_v16 = vadd.f32 %v5420_v44, %v9940_v5 }
 0x89c   : > { %vm5562_vm9 = vcmp.ge.f32.partialorder %v5498_v16, 0.0  ;;  %v5626_v22 = vmul.f32 0.01, %v5498_v16 }
 0x89e   : > { %v5690_v58 = vsel %vm5562_vm9, %v5498_v16, %v5626_v22 }
 0x89f   : > { %v5754_v51 = vpack.c.bf16 %v5690_v58, %v5690_v58  ;;  %v5421_v53 = vpop.f32.mrf.mxu2 }
 0x8a0   : > { %v5422_v30 = vadd.f32 %v10015_v61, %v5421_v53 }
 0x8a1   : > { %5819 = vst.msk [vmem:[%s9732_s20 + $0xd8] sm:$0xf] %vm5764_vm2, %v5754_v51 }
 0x8a2   : > { %v5499_v60 = vadd.f32 %v5422_v30, %v9937_v12 }
 0x8a4   : > { %vm5563_vm15 = vcmp.ge.f32.partialorder %v5499_v60, 0.0  ;;  %v5627_v20 = vmul.f32 0.01, %v5499_v60 }
 0x8a6   : > { %v5691_v39 = vsel %vm5563_vm15, %v5499_v60, %v5627_v20 }
 0x8a7   : > { %v5755_v9 = vpack.c.bf16 %v5691_v39, %v5691_v39  ;;  %v5424_v52 = vpop.f32.mrf.mxu2 }
 0x8a8   : > { %v5425_v49 = vadd.f32 %v10015_v61, %v5424_v52 }
 0x8a9   : > { %5820 = vst.msk [vmem:[%s9732_s20 + $0xdc] sm:$0xf] %vm5764_vm2, %v5755_v9 }
 0x8aa   : > { %v5500_v5 = vadd.f32 %v5425_v49, %v9962_v2 }
 0x8ac   : > { %vm5564_vm0 = vcmp.ge.f32.partialorder %v5500_v5, 0.0  ;;  %v5628_v57 = vmul.f32 0.01, %v5500_v5 }
 0x8ae   : > { %v5692_v1 = vsel %vm5564_vm0, %v5500_v5, %v5628_v57 }
 0x8af   : > { %v5756_v14 = vpack.c.bf16 %v5692_v1, %v5692_v1  ;;  %v5426_v7 = vpop.f32.mrf.mxu2 }
 0x8b0   : > { %v5427_v21 = vadd.f32 %v10015_v61, %v5426_v7 }
 0x8b1   : > { %5821 = vst.msk [vmem:[%s9732_s20 + $0xe0] sm:$0xf] %vm5764_vm2, %v5756_v14 }
 0x8b2   : > { %v5501_v12 = vadd.f32 %v5427_v21, %v9959_v48 }
 0x8b4   : > { %vm5565_vm1 = vcmp.ge.f32.partialorder %v5501_v12, 0.0  ;;  %v5629_v37 = vmul.f32 0.01, %v5501_v12 }
 0x8b6   : > { %v5693_v50 = vsel %vm5565_vm1, %v5501_v12, %v5629_v37 }
 0x8b7   : > { %v5757_v10 = vpack.c.bf16 %v5693_v50, %v5693_v50  ;;  %v5429_v55 = vpop.f32.mrf.mxu2 }
 0x8b8   : > { %v5430_v62 = vadd.f32 %v10015_v61, %v5429_v55 }
 0x8b9   : > { %5822 = vst.msk [vmem:[%s9732_s20 + $0xe4] sm:$0xf] %vm5764_vm2, %v5757_v10 }
 0x8ba   : > { %v5502_v2 = vadd.f32 %v5430_v62, %v9984_v17 }
 0x8bc   : > { %vm5566_vm4 = vcmp.ge.f32.partialorder %v5502_v2, 0.0  ;;  %v5630_v27 = vmul.f32 0.01, %v5502_v2 }
 0x8be   : > { %v5694_v24 = vsel %vm5566_vm4, %v5502_v2, %v5630_v27 }
 0x8bf   : > { %v5758_v11 = vpack.c.bf16 %v5694_v24, %v5694_v24  ;;  %v5431_v23 = vpop.f32.mrf.mxu2 }
 0x8c0   : > { %v5432_v19 = vadd.f32 %v10015_v61, %v5431_v23 }
 0x8c1   : > { %5823 = vst.msk [vmem:[%s9732_s20 + $0xe8] sm:$0xf] %vm5764_vm2, %v5758_v11 }
 0x8c2   : > { %v5503_v48 = vadd.f32 %v5432_v19, %v9981_v35 }
 0x8c4   : > { %vm5567_vm5 = vcmp.ge.f32.partialorder %v5503_v48, 0.0  ;;  %v5631_v38 = vmul.f32 0.01, %v5503_v48 }
 0x8c6   : > { %v5695_v13 = vsel %vm5567_vm5, %v5503_v48, %v5631_v38 }
 0x8c7   : > { %v5759_v56 = vpack.c.bf16 %v5695_v13, %v5695_v13  ;;  %v5434_v45 = vpop.f32.mrf.mxu2 }
 0x8c8   : > { %v5435_v25 = vadd.f32 %v10015_v61, %v5434_v45 }
 0x8c9   : > { %5824 = vst.msk [vmem:[%s9732_s20 + $0xec] sm:$0xf] %vm5764_vm2, %v5759_v56 }
 0x8ca   : > { %v5504_v17 = vadd.f32 %v5435_v25, %v10006_v42 }
 0x8cc   : > { %vm5568_vm6 = vcmp.ge.f32.partialorder %v5504_v17, 0.0  ;;  %v5632_v6 = vmul.f32 0.01, %v5504_v17 }
 0x8ce   : > { %v5696_v36 = vsel %vm5568_vm6, %v5504_v17, %v5632_v6 }
 0x8cf   : > { %v5760_v18 = vpack.c.bf16 %v5696_v36, %v5696_v36  ;;  %v5436_v47 = vpop.f32.mrf.mxu2 }
 0x8d0   : > { %v5437_v63 = vadd.f32 %v10015_v61, %v5436_v47 }
 0x8d1   : > { %5825 = vst.msk [vmem:[%s9732_s20 + $0xf0] sm:$0xf] %vm5764_vm2, %v5760_v18 }
 0x8d2   : > { %v5505_v35 = vadd.f32 %v5437_v63, %v10003_v46 }
 0x8d4   : > { %vm5569_vm7 = vcmp.ge.f32.partialorder %v5505_v35, 0.0  ;;  %v5633_v59 = vmul.f32 0.01, %v5505_v35 }
 0x8d6   : > { %v5697_v40 = vsel %vm5569_vm7, %v5505_v35, %v5633_v59 }
 0x8d7   : > { %v5761_v0 = vpack.c.bf16 %v5697_v40, %v5697_v40  ;;  %v5439_v31 = vpop.f32.mrf.mxu2 }
 0x8d8   : > { %v5440_v42 = vadd.f32 %v10015_v61, %v5439_v31 }
 0x8d9   : > { %5826 = vst.msk [vmem:[%s9732_s20 + $0xf4] sm:$0xf] %vm5764_vm2, %v5761_v0 }
 0x8da   : > { %v5506_v32 = vadd.f32 %v5440_v42, %v10033_v34 }
 0x8dc   : > { %vm5570_vm3 = vcmp.ge.f32.partialorder %v5506_v32, 0.0  ;;  %v5634_v29 = vmul.f32 0.01, %v5506_v32 }
 0x8de   : > { %v5698_v4 = vsel %vm5570_vm3, %v5506_v32, %v5634_v29 }
 0x8df   : > { %v5762_v28 = vpack.c.bf16 %v5698_v4, %v5698_v4  ;;  %v5441_v8 = vpop.f32.mrf.mxu2 }
 0x8e0   : > { %v5442_v15 = vadd.f32 %v10015_v61, %v5441_v8 }
 0x8e1   : > { %5827 = vst.msk [vmem:[%s9732_s20 + $0xf8] sm:$0xf] %vm5764_vm2, %v5762_v28 }
 0x8e2   : > { %v5507_v46 = vadd.f32 %v5442_v15, %v10030_v43 }
 0x8e4   : > { %vm5571_vm8 = vcmp.ge.f32.partialorder %v5507_v46, 0.0  ;;  %v5635_v26 = vmul.f32 0.01, %v5507_v46 }
 0x8e6   : > { %v5699_v54 = vsel %vm5571_vm8, %v5507_v46, %v5635_v26 }
 0x8e7   : > { %v5763_v3 = vpack.c.bf16 %v5699_v54, %v5699_v54 }
 0x8e9   : > { %5828 = vst.msk [vmem:[%s9732_s20 + $0xfc] sm:$0xf] %vm5764_vm2, %v5763_v3 }
 0x8ea PF: > { %s22_s21 = sadd.s32 1, %s6947_s21  }
 0x8eb   : > { %p19_p4 = scmp.ge.s32.totalorder %s22_s21, 4  }
 0x8ed   :  { %21 = sbr.rel (!%p19_p4) target bundleno = 1 (0x1), region = 98 }

</bundles_post_ra>
